<compile_context>
chip_gen: v5e
topology: v5e:2x2
jax: 0.10.0
libtpu: 0.0.40
codegen_flags: <defaults>
</compile_context>

<pallas_src>
import functools

import jax
import jax.numpy as jnp
from jax import lax
from jax.experimental import pallas as pl
from jax.experimental.pallas import tpu as pltpu

_VMEM_LIMIT = 32 * 1024 * 1024


# --------------------------- fused conv kernel -------------------------------
def _conv_kernel(x_ref, w_ref, b_ref, o_ref, *, k, ho_n, wo_n):
    """Stride-1 'valid' conv + bias + ReLU for one sample, im2col fused in-kernel.

    x_ref: (1, H, W, Cin)    bf16  whole sample resident in VMEM
    w_ref: (k*k*Cin, Cout)   bf16  rows ordered (tap_i, tap_j, Cin)
    b_ref: (1, Cout)         f32
    o_ref: (1, Ho, Wo, Cout) bf16
    """
    cin = x_ref.shape[3]
    cout = o_ref.shape[3]
    # Hoisted out of the row loop: per-tap weight tiles and the bias broadcast.
    w_taps = [w_ref[pl.ds(t * cin, cin), :] for t in range(k * k)]
    bias = jnp.broadcast_to(b_ref[...], (wo_n, cout)).astype(jnp.float32)

    def row(ho, carry):
        acc = bias
        for i in range(k):
            for j in range(k):
                seg = x_ref[0, ho + i, pl.ds(j, wo_n), :]            # (Wo, Cin)
                acc = acc + jnp.dot(seg, w_taps[i * k + j],
                                    preferred_element_type=jnp.float32)
        o_ref[0, pl.ds(ho, 1), :, :] = (
            jnp.maximum(acc, 0.0)[None, :, :].astype(o_ref.dtype))
        return carry

    lax.fori_loop(0, ho_n, row, 0)


def conv_relu(x_nhwc, w_mat, bias, *, k, ho_n, wo_n, cout):
    """x_nhwc: (N, H, W, Cin); w_mat: (k*k*Cin, Cout). Returns (N, Ho, Wo, Cout) bf16."""
    n, h, w, cin = x_nhwc.shape
    kk = k * k * cin
    assert w_mat.shape == (kk, cout), (w_mat.shape, kk, cout)
    kernel = functools.partial(_conv_kernel, k=k, ho_n=ho_n, wo_n=wo_n)
    return pl.pallas_call(
        kernel,
        out_shape=jax.ShapeDtypeStruct((n, ho_n, wo_n, cout), jnp.bfloat16),
        grid=(n,),
        in_specs=[
            pl.BlockSpec((1, h, w, cin), lambda i: (i, 0, 0, 0)),
            pl.BlockSpec((kk, cout), lambda i: (0, 0)),      # resident across grid
            pl.BlockSpec((1, cout), lambda i: (0, 0)),
        ],
        out_specs=pl.BlockSpec((1, ho_n, wo_n, cout), lambda i: (i, 0, 0, 0)),
        compiler_params=pltpu.CompilerParams(
            dimension_semantics=("parallel",),
            vmem_limit_bytes=_VMEM_LIMIT,
        ),
    )(x_nhwc.astype(jnp.bfloat16), w_mat.astype(jnp.bfloat16),
      bias.reshape(1, cout).astype(jnp.float32))


# ----------------------- fused Linear->ReLU->Linear ---------------------------
def _mlp_kernel(x_ref, w1_ref, b1_ref, w2_ref, b2_ref, o_ref):
    h = jnp.dot(x_ref[...], w1_ref[...], preferred_element_type=jnp.float32)
    h = jnp.maximum(h + b1_ref[...], 0.0)
    o = jnp.dot(h.astype(jnp.bfloat16), w2_ref[...],
                preferred_element_type=jnp.float32)
    o_ref[...] = (o + b2_ref[...]).astype(o_ref.dtype)


def mlp_head(x, w1, b1, w2, b2):
    n, _ = x.shape
    hdim = w1.shape[1]
    odim = w2.shape[1]
    return pl.pallas_call(
        _mlp_kernel,
        out_shape=jax.ShapeDtypeStruct((n, odim), jnp.float32),
        in_specs=[pl.BlockSpec(memory_space=pltpu.MemorySpace.VMEM)
                  for _ in range(5)],
        out_specs=pl.BlockSpec(memory_space=pltpu.MemorySpace.VMEM),
        compiler_params=pltpu.CompilerParams(vmem_limit_bytes=_VMEM_LIMIT),
    )(x.astype(jnp.bfloat16), w1.astype(jnp.bfloat16),
      b1.reshape(1, hdim).astype(jnp.float32),
      w2.astype(jnp.bfloat16), b2.reshape(1, odim).astype(jnp.float32))


# ------------------------------- glue (JAX) ----------------------------------
def _prep_weights(params, in_dim):
    """One-time re-layout of PyTorch-convention params into kernel matrices."""
    # conv1 (k=8, s=4) after 4x4 space-to-depth -> 2x2 stride-1 conv over 16*Cin ch.
    w1 = (params["c1_w"].reshape(8, in_dim, 2, 4, 2, 4)   # (co, ci, a, p, b, q)
          .transpose(2, 4, 3, 5, 1, 0)                    # (a, b, p, q, ci, co)
          .reshape(4 * 16 * in_dim, 8))
    # conv2 (k=5, s=2) after 2x2 space-to-depth -> 3x3 stride-1 conv over 32 ch
    # (taps with i==5 or j==5 are zero-padded and never contribute).
    w2p = jnp.pad(params["c2_w"], ((0, 0), (0, 0), (0, 1), (0, 1)))  # (16,8,6,6)
    w2 = (w2p.reshape(16, 8, 3, 2, 3, 2)                  # (co, ci, a, p, b, q)
          .transpose(2, 4, 3, 5, 1, 0)                    # (a, b, p, q, ci, co)
          .reshape(9 * 32, 16))
    # conv3 (k=5, s=1): rows ordered (i, j, ci).
    w3 = params["c3_w"].transpose(2, 3, 1, 0).reshape(25 * 16, 32)
    # q1: permute input columns from PyTorch's (C, H, W) flatten to our (H, W, C).
    wq1 = (params["q1_w"].reshape(64, 32, 22, 22)
           .transpose(0, 2, 3, 1).reshape(64, 22 * 22 * 32).T)       # (15488, 64)
    wq2 = params["q2_w"].T                                           # (64, out_dim)
    return w1, w2, w3, wq1, wq2


def cnn_forward(params, x):
    """x: (N, in_dim, 224, 224) NCHW (PyTorch convention). Returns (N, out_dim) f32."""
    n, in_dim, hh, ww = x.shape
    # The module hardcodes flatten(22*22*32), which pins the input to 224x224.
    assert (hh, ww) == (224, 224), (hh, ww)
    w1, w2, w3, wq1, wq2 = _prep_weights(params, in_dim)

    # conv1: NCHW -> 4x4 space-to-depth NHWC in a single transpose; feature
    # order (p, q, ci) matches w1's row order.
    x1 = (x.reshape(n, in_dim, 56, 4, 56, 4)
          .transpose(0, 2, 4, 3, 5, 1).reshape(n, 56, 56, 16 * in_dim))
    h1 = conv_relu(x1, w1, params["c1_b"], k=2, ho_n=55, wo_n=55, cout=8)

    # conv2: pad 55 -> 56 (padded row/col only ever multiplies zero weights),
    # 2x2 space-to-depth -> 3x3 stride-1 conv over 32 channels.
    h1p = jnp.pad(h1, ((0, 0), (0, 1), (0, 1), (0, 0)))
    x2 = (h1p.reshape(n, 28, 2, 28, 2, 8)
          .transpose(0, 1, 3, 2, 4, 5).reshape(n, 28, 28, 32))
    h2 = conv_relu(x2, w2, params["c2_b"], k=3, ho_n=26, wo_n=26, cout=16)

    # conv3: already stride 1.
    h3 = conv_relu(h2, w3, params["c3_b"], k=5, ho_n=22, wo_n=22, cout=32)

    # Fused Linear(15488,64)+ReLU -> Linear(64,out_dim). NHWC flatten (H,W,C)
    # matches the permuted wq1 columns, so semantics equal PyTorch's flatten.
    flat = h3.reshape(n, 22 * 22 * 32)
    return mlp_head(flat, wq1, params["q1_b"], wq2, params["q2_b"])


def init_params(key, in_dim, out_dim):
    """Deterministic PyTorch-default-like uniform(-1/sqrt(fan_in), 1/sqrt(fan_in)) init."""
    ks = jax.random.split(key, 10)

    def u(k, shape, fan_in):
        bound = 1.0 / float(fan_in) ** 0.5
        return jax.random.uniform(k, shape, jnp.float32, -bound, bound)

    p = {}
    p["c1_w"] = u(ks[0], (8, in_dim, 8, 8), in_dim * 8 * 8)
    p["c1_b"] = u(ks[1], (8,), in_dim * 8 * 8)
    p["c2_w"] = u(ks[2], (16, 8, 5, 5), 8 * 5 * 5)
    p["c2_b"] = u(ks[3], (16,), 8 * 5 * 5)
    p["c3_w"] = u(ks[4], (32, 16, 5, 5), 16 * 5 * 5)
    p["c3_b"] = u(ks[5], (32,), 16 * 5 * 5)
    p["q1_w"] = u(ks[6], (64, 22 * 22 * 32), 22 * 22 * 32)   # PyTorch Linear: (out, in)
    p["q1_b"] = u(ks[7], (64,), 22 * 22 * 32)
    p["q2_w"] = u(ks[8], (out_dim, 64), 64)
    p["q2_b"] = u(ks[9], (out_dim,), 64)
    return p


if __name__ == "__main__":
    key = jax.random.PRNGKey(0)
    kx, kp = jax.random.split(key)

    batch, in_dim, out_dim = 2, 3, 4
    # Spatial size is pinned to 224x224 by the module itself (22*22*32 flatten).
    x = jax.random.normal(kx, (batch, in_dim, 224, 224), dtype=jnp.float32)
    params = init_params(kp, in_dim, out_dim)

    fwd = jax.jit(cnn_forward)
    out = jax.block_until_ready(fwd(params, x))
    assert out.shape == (batch, out_dim), out.shape
    assert bool(jnp.all(jnp.isfinite(out)))
    print("KERNEL_OK")
</pallas_src>

<mosaic_0001>
module attributes {stable_mosaic.version = 11 : i64} {
  func.func @_conv_kernel(%arg0: i32, %arg1: memref<1x56x56x48xbf16, #tpu.memory_space<vmem>>, %arg2: memref<192x8xbf16, #tpu.memory_space<vmem>>, %arg3: memref<1x8xf32, #tpu.memory_space<vmem>>, %arg4: memref<1x55x55x8xbf16, #tpu.memory_space<vmem>>) attributes {dimension_semantics = [#tpu.dimension_semantics<parallel>], iteration_bounds = array<i64: 2>, scalar_prefetch = 0 : i64, scratch_operands = 0 : i64, tpu.core_type = #tpu.core_type<tc>, window_params = [{transform_indices = @transform_0, window_bounds = array<i64: 1, 56, 56, 48>}, {pipeline_mode = #tpu.pipeline_mode<synchronous>, transform_indices = @transform_1, window_bounds = array<i64: 192, 8>}, {pipeline_mode = #tpu.pipeline_mode<synchronous>, transform_indices = @transform_2, window_bounds = array<i64: 1, 8>}, {transform_indices = @transform_3, window_bounds = array<i64: 1, 55, 55, 8>}]} {
    %c0 = arith.constant 0 : index
    %c0_0 = arith.constant 0 : index
    %0 = vector.load %arg2[%c0, %c0_0] : memref<192x8xbf16, #tpu.memory_space<vmem>>, vector<48x8xbf16>
    %c48 = arith.constant 48 : index
    %c0_1 = arith.constant 0 : index
    %1 = vector.load %arg2[%c48, %c0_1] : memref<192x8xbf16, #tpu.memory_space<vmem>>, vector<48x8xbf16>
    %c96 = arith.constant 96 : index
    %c0_2 = arith.constant 0 : index
    %2 = vector.load %arg2[%c96, %c0_2] : memref<192x8xbf16, #tpu.memory_space<vmem>>, vector<48x8xbf16>
    %c144 = arith.constant 144 : index
    %c0_3 = arith.constant 0 : index
    %3 = vector.load %arg2[%c144, %c0_3] : memref<192x8xbf16, #tpu.memory_space<vmem>>, vector<48x8xbf16>
    %c0_4 = arith.constant 0 : index
    %c0_5 = arith.constant 0 : index
    %4 = vector.load %arg3[%c0_4, %c0_5] : memref<1x8xf32, #tpu.memory_space<vmem>>, vector<1x8xf32>
    %5 = vector.shape_cast %4 : vector<1x8xf32> to vector<1x8xf32>
    %6 = vector.broadcast %5 : vector<1x8xf32> to vector<55x8xf32>
    %c0_i32 = arith.constant 0 : i32
    %c55_i32 = arith.constant 55 : i32
    %7 = arith.addi %c0_i32, %c55_i32 : i32
    %c1_i32 = arith.constant 1 : i32
    scf.for %arg5 = %c0_i32 to %7 step %c1_i32  : i32 {
      %c0_i32_7 = arith.constant 0 : i32
      %8 = arith.addi %arg5, %c0_i32_7 : i32
      %c0_8 = arith.constant 0 : index
      %9 = arith.index_cast %8 : i32 to index
      %c0_9 = arith.constant 0 : index
      %c0_10 = arith.constant 0 : index
      %10 = vector.load %arg1[%c0_8, %9, %c0_9, %c0_10] : memref<1x56x56x48xbf16, #tpu.memory_space<vmem>>, vector<1x1x55x48xbf16>
      %11 = vector.shape_cast %10 : vector<1x1x55x48xbf16> to vector<55x48xbf16>
      %cst = arith.constant dense<0.000000e+00> : vector<55x8xf32>
      %12 = tpu.matmul %11, %0, %cst {dimension_numbers = #tpu.dot_dimension_numbers<[1], [0], [0], [1], [0, 0, 1, 1], [], []>} : vector<55x48xbf16>, vector<48x8xbf16>, vector<55x8xf32> -> vector<55x8xf32>
      %13 = arith.addf %6, %12 : vector<55x8xf32>
      %c0_i32_11 = arith.constant 0 : i32
      %14 = arith.addi %arg5, %c0_i32_11 : i32
      %c0_12 = arith.constant 0 : index
      %15 = arith.index_cast %14 : i32 to index
      %c1 = arith.constant 1 : index
      %c0_13 = arith.constant 0 : index
      %16 = vector.load %arg1[%c0_12, %15, %c1, %c0_13] : memref<1x56x56x48xbf16, #tpu.memory_space<vmem>>, vector<1x1x55x48xbf16>
      %17 = vector.shape_cast %16 : vector<1x1x55x48xbf16> to vector<55x48xbf16>
      %cst_14 = arith.constant dense<0.000000e+00> : vector<55x8xf32>
      %18 = tpu.matmul %17, %1, %cst_14 {dimension_numbers = #tpu.dot_dimension_numbers<[1], [0], [0], [1], [0, 0, 1, 1], [], []>} : vector<55x48xbf16>, vector<48x8xbf16>, vector<55x8xf32> -> vector<55x8xf32>
      %19 = arith.addf %13, %18 : vector<55x8xf32>
      %c1_i32_15 = arith.constant 1 : i32
      %20 = arith.addi %arg5, %c1_i32_15 : i32
      %c0_16 = arith.constant 0 : index
      %21 = arith.index_cast %20 : i32 to index
      %c0_17 = arith.constant 0 : index
      %c0_18 = arith.constant 0 : index
      %22 = vector.load %arg1[%c0_16, %21, %c0_17, %c0_18] : memref<1x56x56x48xbf16, #tpu.memory_space<vmem>>, vector<1x1x55x48xbf16>
      %23 = vector.shape_cast %22 : vector<1x1x55x48xbf16> to vector<55x48xbf16>
      %cst_19 = arith.constant dense<0.000000e+00> : vector<55x8xf32>
      %24 = tpu.matmul %23, %2, %cst_19 {dimension_numbers = #tpu.dot_dimension_numbers<[1], [0], [0], [1], [0, 0, 1, 1], [], []>} : vector<55x48xbf16>, vector<48x8xbf16>, vector<55x8xf32> -> vector<55x8xf32>
      %25 = arith.addf %19, %24 : vector<55x8xf32>
      %c1_i32_20 = arith.constant 1 : i32
      %26 = arith.addi %arg5, %c1_i32_20 : i32
      %c0_21 = arith.constant 0 : index
      %27 = arith.index_cast %26 : i32 to index
      %c1_22 = arith.constant 1 : index
      %c0_23 = arith.constant 0 : index
      %28 = vector.load %arg1[%c0_21, %27, %c1_22, %c0_23] : memref<1x56x56x48xbf16, #tpu.memory_space<vmem>>, vector<1x1x55x48xbf16>
      %29 = vector.shape_cast %28 : vector<1x1x55x48xbf16> to vector<55x48xbf16>
      %cst_24 = arith.constant dense<0.000000e+00> : vector<55x8xf32>
      %30 = tpu.matmul %29, %3, %cst_24 {dimension_numbers = #tpu.dot_dimension_numbers<[1], [0], [0], [1], [0, 0, 1, 1], [], []>} : vector<55x48xbf16>, vector<48x8xbf16>, vector<55x8xf32> -> vector<55x8xf32>
      %31 = arith.addf %25, %30 : vector<55x8xf32>
      %cst_25 = arith.constant 0.000000e+00 : f32
      %32 = vector.broadcast %cst_25 : f32 to vector<55x8xf32>
      %33 = arith.maximumf %31, %32 : vector<55x8xf32>
      %34 = vector.shape_cast %33 : vector<55x8xf32> to vector<1x55x8xf32>
      %35 = arith.truncf %34 : vector<1x55x8xf32> to vector<1x55x8xbf16>
      %c0_26 = arith.constant 0 : index
      %36 = arith.index_cast %arg5 : i32 to index
      %c0_27 = arith.constant 0 : index
      %c0_28 = arith.constant 0 : index
      %37 = vector.load %arg4[%c0_26, %36, %c0_27, %c0_28] : memref<1x55x55x8xbf16, #tpu.memory_space<vmem>>, vector<1x1x55x8xbf16>
      %38 = vector.shape_cast %37 : vector<1x1x55x8xbf16> to vector<1x55x8xbf16>
      %39 = vector.shape_cast %35 : vector<1x55x8xbf16> to vector<1x1x55x8xbf16>
      tpu.vector_store %arg4[%c0_26, %36, %c0_27, %c0_28], %39 {strides = array<i32>} : memref<1x55x55x8xbf16, #tpu.memory_space<vmem>>, vector<1x1x55x8xbf16>,
    }
    %c55_i32_6 = arith.constant 55 : i32
    return
  }
  func.func @transform_0(%arg0: i32) -> (i32, i32, i32, i32) {
    %c0_i32 = arith.constant 0 : i32
    %c0_i32_0 = arith.constant 0 : i32
    %c0_i32_1 = arith.constant 0 : i32
    %c0_i32_2 = arith.constant 0 : i32
    return %arg0, %c0_i32, %c0_i32_0, %c0_i32_1 : i32, i32, i32, i32
  }
  func.func @transform_1(%arg0: i32) -> (i32, i32) {
    %c0_i32 = arith.constant 0 : i32
    %c0_i32_0 = arith.constant 0 : i32
    %c0_i32_1 = arith.constant 0 : i32
    return %c0_i32, %c0_i32_0 : i32, i32
  }
  func.func @transform_2(%arg0: i32) -> (i32, i32) {
    %c0_i32 = arith.constant 0 : i32
    %c0_i32_0 = arith.constant 0 : i32
    %c0_i32_1 = arith.constant 0 : i32
    return %c0_i32, %c0_i32_0 : i32, i32
  }
  func.func @transform_3(%arg0: i32) -> (i32, i32, i32, i32) {
    %c0_i32 = arith.constant 0 : i32
    %c0_i32_0 = arith.constant 0 : i32
    %c0_i32_1 = arith.constant 0 : i32
    %c0_i32_2 = arith.constant 0 : i32
    return %arg0, %c0_i32, %c0_i32_0, %c0_i32_1 : i32, i32, i32, i32
  }
}

module attributes {stable_mosaic.version = 11 : i64} {
  func.func @_conv_kernel(%arg0: i32, %arg1: memref<1x28x28x32xbf16, #tpu.memory_space<vmem>>, %arg2: memref<288x16xbf16, #tpu.memory_space<vmem>>, %arg3: memref<1x16xf32, #tpu.memory_space<vmem>>, %arg4: memref<1x26x26x16xbf16, #tpu.memory_space<vmem>>) attributes {dimension_semantics = [#tpu.dimension_semantics<parallel>], iteration_bounds = array<i64: 2>, scalar_prefetch = 0 : i64, scratch_operands = 0 : i64, tpu.core_type = #tpu.core_type<tc>, window_params = [{transform_indices = @transform_0, window_bounds = array<i64: 1, 28, 28, 32>}, {pipeline_mode = #tpu.pipeline_mode<synchronous>, transform_indices = @transform_1, window_bounds = array<i64: 288, 16>}, {pipeline_mode = #tpu.pipeline_mode<synchronous>, transform_indices = @transform_2, window_bounds = array<i64: 1, 16>}, {transform_indices = @transform_3, window_bounds = array<i64: 1, 26, 26, 16>}]} {
    %c0 = arith.constant 0 : index
    %c0_0 = arith.constant 0 : index
    %0 = vector.load %arg2[%c0, %c0_0] : memref<288x16xbf16, #tpu.memory_space<vmem>>, vector<32x16xbf16>
    %c32 = arith.constant 32 : index
    %c0_1 = arith.constant 0 : index
    %1 = vector.load %arg2[%c32, %c0_1] : memref<288x16xbf16, #tpu.memory_space<vmem>>, vector<32x16xbf16>
    %c64 = arith.constant 64 : index
    %c0_2 = arith.constant 0 : index
    %2 = vector.load %arg2[%c64, %c0_2] : memref<288x16xbf16, #tpu.memory_space<vmem>>, vector<32x16xbf16>
    %c96 = arith.constant 96 : index
    %c0_3 = arith.constant 0 : index
    %3 = vector.load %arg2[%c96, %c0_3] : memref<288x16xbf16, #tpu.memory_space<vmem>>, vector<32x16xbf16>
    %c128 = arith.constant 128 : index
    %c0_4 = arith.constant 0 : index
    %4 = vector.load %arg2[%c128, %c0_4] : memref<288x16xbf16, #tpu.memory_space<vmem>>, vector<32x16xbf16>
    %c160 = arith.constant 160 : index
    %c0_5 = arith.constant 0 : index
    %5 = vector.load %arg2[%c160, %c0_5] : memref<288x16xbf16, #tpu.memory_space<vmem>>, vector<32x16xbf16>
    %c192 = arith.constant 192 : index
    %c0_6 = arith.constant 0 : index
    %6 = vector.load %arg2[%c192, %c0_6] : memref<288x16xbf16, #tpu.memory_space<vmem>>, vector<32x16xbf16>
    %c224 = arith.constant 224 : index
    %c0_7 = arith.constant 0 : index
    %7 = vector.load %arg2[%c224, %c0_7] : memref<288x16xbf16, #tpu.memory_space<vmem>>, vector<32x16xbf16>
    %c256 = arith.constant 256 : index
    %c0_8 = arith.constant 0 : index
    %8 = vector.load %arg2[%c256, %c0_8] : memref<288x16xbf16, #tpu.memory_space<vmem>>, vector<32x16xbf16>
    %c0_9 = arith.constant 0 : index
    %c0_10 = arith.constant 0 : index
    %9 = vector.load %arg3[%c0_9, %c0_10] : memref<1x16xf32, #tpu.memory_space<vmem>>, vector<1x16xf32>
    %10 = vector.shape_cast %9 : vector<1x16xf32> to vector<1x16xf32>
    %11 = vector.broadcast %10 : vector<1x16xf32> to vector<26x16xf32>
    %c0_i32 = arith.constant 0 : i32
    %c26_i32 = arith.constant 26 : i32
    %12 = arith.addi %c0_i32, %c26_i32 : i32
    %c1_i32 = arith.constant 1 : i32
    scf.for %arg5 = %c0_i32 to %12 step %c1_i32  : i32 {
      %c0_i32_12 = arith.constant 0 : i32
      %13 = arith.addi %arg5, %c0_i32_12 : i32
      %c0_13 = arith.constant 0 : index
      %14 = arith.index_cast %13 : i32 to index
      %c0_14 = arith.constant 0 : index
      %c0_15 = arith.constant 0 : index
      %15 = vector.load %arg1[%c0_13, %14, %c0_14, %c0_15] : memref<1x28x28x32xbf16, #tpu.memory_space<vmem>>, vector<1x1x26x32xbf16>
      %16 = vector.shape_cast %15 : vector<1x1x26x32xbf16> to vector<26x32xbf16>
      %cst = arith.constant dense<0.000000e+00> : vector<26x16xf32>
      %17 = tpu.matmul %16, %0, %cst {dimension_numbers = #tpu.dot_dimension_numbers<[1], [0], [0], [1], [0, 0, 1, 1], [], []>} : vector<26x32xbf16>, vector<32x16xbf16>, vector<26x16xf32> -> vector<26x16xf32>
      %18 = arith.addf %11, %17 : vector<26x16xf32>
      %c0_i32_16 = arith.constant 0 : i32
      %19 = arith.addi %arg5, %c0_i32_16 : i32
      %c0_17 = arith.constant 0 : index
      %20 = arith.index_cast %19 : i32 to index
      %c1 = arith.constant 1 : index
      %c0_18 = arith.constant 0 : index
      %21 = vector.load %arg1[%c0_17, %20, %c1, %c0_18] : memref<1x28x28x32xbf16, #tpu.memory_space<vmem>>, vector<1x1x26x32xbf16>
      %22 = vector.shape_cast %21 : vector<1x1x26x32xbf16> to vector<26x32xbf16>
      %cst_19 = arith.constant dense<0.000000e+00> : vector<26x16xf32>
      %23 = tpu.matmul %22, %1, %cst_19 {dimension_numbers = #tpu.dot_dimension_numbers<[1], [0], [0], [1], [0, 0, 1, 1], [], []>} : vector<26x32xbf16>, vector<32x16xbf16>, vector<26x16xf32> -> vector<26x16xf32>
      %24 = arith.addf %18, %23 : vector<26x16xf32>
      %c0_i32_20 = arith.constant 0 : i32
      %25 = arith.addi %arg5, %c0_i32_20 : i32
      %c0_21 = arith.constant 0 : index
      %26 = arith.index_cast %25 : i32 to index
      %c2 = arith.constant 2 : index
      %c0_22 = arith.constant 0 : index
      %27 = vector.load %arg1[%c0_21, %26, %c2, %c0_22] : memref<1x28x28x32xbf16, #tpu.memory_space<vmem>>, vector<1x1x26x32xbf16>
      %28 = vector.shape_cast %27 : vector<1x1x26x32xbf16> to vector<26x32xbf16>
      %cst_23 = arith.constant dense<0.000000e+00> : vector<26x16xf32>
      %29 = tpu.matmul %28, %2, %cst_23 {dimension_numbers = #tpu.dot_dimension_numbers<[1], [0], [0], [1], [0, 0, 1, 1], [], []>} : vector<26x32xbf16>, vector<32x16xbf16>, vector<26x16xf32> -> vector<26x16xf32>
      %30 = arith.addf %24, %29 : vector<26x16xf32>
      %c1_i32_24 = arith.constant 1 : i32
      %31 = arith.addi %arg5, %c1_i32_24 : i32
      %c0_25 = arith.constant 0 : index
      %32 = arith.index_cast %31 : i32 to index
      %c0_26 = arith.constant 0 : index
      %c0_27 = arith.constant 0 : index
      %33 = vector.load %arg1[%c0_25, %32, %c0_26, %c0_27] : memref<1x28x28x32xbf16, #tpu.memory_space<vmem>>, vector<1x1x26x32xbf16>
      %34 = vector.shape_cast %33 : vector<1x1x26x32xbf16> to vector<26x32xbf16>
      %cst_28 = arith.constant dense<0.000000e+00> : vector<26x16xf32>
      %35 = tpu.matmul %34, %3, %cst_28 {dimension_numbers = #tpu.dot_dimension_numbers<[1], [0], [0], [1], [0, 0, 1, 1], [], []>} : vector<26x32xbf16>, vector<32x16xbf16>, vector<26x16xf32> -> vector<26x16xf32>
      %36 = arith.addf %30, %35 : vector<26x16xf32>
      %c1_i32_29 = arith.constant 1 : i32
      %37 = arith.addi %arg5, %c1_i32_29 : i32
      %c0_30 = arith.constant 0 : index
      %38 = arith.index_cast %37 : i32 to index
      %c1_31 = arith.constant 1 : index
      %c0_32 = arith.constant 0 : index
      %39 = vector.load %arg1[%c0_30, %38, %c1_31, %c0_32] : memref<1x28x28x32xbf16, #tpu.memory_space<vmem>>, vector<1x1x26x32xbf16>
      %40 = vector.shape_cast %39 : vector<1x1x26x32xbf16> to vector<26x32xbf16>
      %cst_33 = arith.constant dense<0.000000e+00> : vector<26x16xf32>
      %41 = tpu.matmul %40, %4, %cst_33 {dimension_numbers = #tpu.dot_dimension_numbers<[1], [0], [0], [1], [0, 0, 1, 1], [], []>} : vector<26x32xbf16>, vector<32x16xbf16>, vector<26x16xf32> -> vector<26x16xf32>
      %42 = arith.addf %36, %41 : vector<26x16xf32>
      %c1_i32_34 = arith.constant 1 : i32
      %43 = arith.addi %arg5, %c1_i32_34 : i32
      %c0_35 = arith.constant 0 : index
      %44 = arith.index_cast %43 : i32 to index
      %c2_36 = arith.constant 2 : index
      %c0_37 = arith.constant 0 : index
      %45 = vector.load %arg1[%c0_35, %44, %c2_36, %c0_37] : memref<1x28x28x32xbf16, #tpu.memory_space<vmem>>, vector<1x1x26x32xbf16>
      %46 = vector.shape_cast %45 : vector<1x1x26x32xbf16> to vector<26x32xbf16>
      %cst_38 = arith.constant dense<0.000000e+00> : vector<26x16xf32>
      %47 = tpu.matmul %46, %5, %cst_38 {dimension_numbers = #tpu.dot_dimension_numbers<[1], [0], [0], [1], [0, 0, 1, 1], [], []>} : vector<26x32xbf16>, vector<32x16xbf16>, vector<26x16xf32> -> vector<26x16xf32>
      %48 = arith.addf %42, %47 : vector<26x16xf32>
      %c2_i32 = arith.constant 2 : i32
      %49 = arith.addi %arg5, %c2_i32 : i32
      %c0_39 = arith.constant 0 : index
      %50 = arith.index_cast %49 : i32 to index
      %c0_40 = arith.constant 0 : index
      %c0_41 = arith.constant 0 : index
      %51 = vector.load %arg1[%c0_39, %50, %c0_40, %c0_41] : memref<1x28x28x32xbf16, #tpu.memory_space<vmem>>, vector<1x1x26x32xbf16>
      %52 = vector.shape_cast %51 : vector<1x1x26x32xbf16> to vector<26x32xbf16>
      %cst_42 = arith.constant dense<0.000000e+00> : vector<26x16xf32>
      %53 = tpu.matmul %52, %6, %cst_42 {dimension_numbers = #tpu.dot_dimension_numbers<[1], [0], [0], [1], [0, 0, 1, 1], [], []>} : vector<26x32xbf16>, vector<32x16xbf16>, vector<26x16xf32> -> vector<26x16xf32>
      %54 = arith.addf %48, %53 : vector<26x16xf32>
      %c2_i32_43 = arith.constant 2 : i32
      %55 = arith.addi %arg5, %c2_i32_43 : i32
      %c0_44 = arith.constant 0 : index
      %56 = arith.index_cast %55 : i32 to index
      %c1_45 = arith.constant 1 : index
      %c0_46 = arith.constant 0 : index
      %57 = vector.load %arg1[%c0_44, %56, %c1_45, %c0_46] : memref<1x28x28x32xbf16, #tpu.memory_space<vmem>>, vector<1x1x26x32xbf16>
      %58 = vector.shape_cast %57 : vector<1x1x26x32xbf16> to vector<26x32xbf16>
      %cst_47 = arith.constant dense<0.000000e+00> : vector<26x16xf32>
      %59 = tpu.matmul %58, %7, %cst_47 {dimension_numbers = #tpu.dot_dimension_numbers<[1], [0], [0], [1], [0, 0, 1, 1], [], []>} : vector<26x32xbf16>, vector<32x16xbf16>, vector<26x16xf32> -> vector<26x16xf32>
      %60 = arith.addf %54, %59 : vector<26x16xf32>
      %c2_i32_48 = arith.constant 2 : i32
      %61 = arith.addi %arg5, %c2_i32_48 : i32
      %c0_49 = arith.constant 0 : index
      %62 = arith.index_cast %61 : i32 to index
      %c2_50 = arith.constant 2 : index
      %c0_51 = arith.constant 0 : index
      %63 = vector.load %arg1[%c0_49, %62, %c2_50, %c0_51] : memref<1x28x28x32xbf16, #tpu.memory_space<vmem>>, vector<1x1x26x32xbf16>
      %64 = vector.shape_cast %63 : vector<1x1x26x32xbf16> to vector<26x32xbf16>
      %cst_52 = arith.constant dense<0.000000e+00> : vector<26x16xf32>
      %65 = tpu.matmul %64, %8, %cst_52 {dimension_numbers = #tpu.dot_dimension_numbers<[1], [0], [0], [1], [0, 0, 1, 1], [], []>} : vector<26x32xbf16>, vector<32x16xbf16>, vector<26x16xf32> -> vector<26x16xf32>
      %66 = arith.addf %60, %65 : vector<26x16xf32>
      %cst_53 = arith.constant 0.000000e+00 : f32
      %67 = vector.broadcast %cst_53 : f32 to vector<26x16xf32>
      %68 = arith.maximumf %66, %67 : vector<26x16xf32>
      %69 = vector.shape_cast %68 : vector<26x16xf32> to vector<1x26x16xf32>
      %70 = arith.truncf %69 : vector<1x26x16xf32> to vector<1x26x16xbf16>
      %c0_54 = arith.constant 0 : index
      %71 = arith.index_cast %arg5 : i32 to index
      %c0_55 = arith.constant 0 : index
      %c0_56 = arith.constant 0 : index
      %72 = vector.load %arg4[%c0_54, %71, %c0_55, %c0_56] : memref<1x26x26x16xbf16, #tpu.memory_space<vmem>>, vector<1x1x26x16xbf16>
      %73 = vector.shape_cast %72 : vector<1x1x26x16xbf16> to vector<1x26x16xbf16>
      %74 = vector.shape_cast %70 : vector<1x26x16xbf16> to vector<1x1x26x16xbf16>
      tpu.vector_store %arg4[%c0_54, %71, %c0_55, %c0_56], %74 {strides = array<i32>} : memref<1x26x26x16xbf16, #tpu.memory_space<vmem>>, vector<1x1x26x16xbf16>,
    }
    %c26_i32_11 = arith.constant 26 : i32
    return
  }
  func.func @transform_0(%arg0: i32) -> (i32, i32, i32, i32) {
    %c0_i32 = arith.constant 0 : i32
    %c0_i32_0 = arith.constant 0 : i32
    %c0_i32_1 = arith.constant 0 : i32
    %c0_i32_2 = arith.constant 0 : i32
    return %arg0, %c0_i32, %c0_i32_0, %c0_i32_1 : i32, i32, i32, i32
  }
  func.func @transform_1(%arg0: i32) -> (i32, i32) {
    %c0_i32 = arith.constant 0 : i32
    %c0_i32_0 = arith.constant 0 : i32
    %c0_i32_1 = arith.constant 0 : i32
    return %c0_i32, %c0_i32_0 : i32, i32
  }
  func.func @transform_2(%arg0: i32) -> (i32, i32) {
    %c0_i32 = arith.constant 0 : i32
    %c0_i32_0 = arith.constant 0 : i32
    %c0_i32_1 = arith.constant 0 : i32
    return %c0_i32, %c0_i32_0 : i32, i32
  }
  func.func @transform_3(%arg0: i32) -> (i32, i32, i32, i32) {
    %c0_i32 = arith.constant 0 : i32
    %c0_i32_0 = arith.constant 0 : i32
    %c0_i32_1 = arith.constant 0 : i32
    %c0_i32_2 = arith.constant 0 : i32
    return %arg0, %c0_i32, %c0_i32_0, %c0_i32_1 : i32, i32, i32, i32
  }
}

module attributes {stable_mosaic.version = 11 : i64} {
  func.func @_conv_kernel(%arg0: i32, %arg1: memref<1x26x26x16xbf16, #tpu.memory_space<vmem>>, %arg2: memref<400x32xbf16, #tpu.memory_space<vmem>>, %arg3: memref<1x32xf32, #tpu.memory_space<vmem>>, %arg4: memref<1x22x22x32xbf16, #tpu.memory_space<vmem>>) attributes {dimension_semantics = [#tpu.dimension_semantics<parallel>], iteration_bounds = array<i64: 2>, scalar_prefetch = 0 : i64, scratch_operands = 0 : i64, tpu.core_type = #tpu.core_type<tc>, window_params = [{transform_indices = @transform_0, window_bounds = array<i64: 1, 26, 26, 16>}, {pipeline_mode = #tpu.pipeline_mode<synchronous>, transform_indices = @transform_1, window_bounds = array<i64: 400, 32>}, {pipeline_mode = #tpu.pipeline_mode<synchronous>, transform_indices = @transform_2, window_bounds = array<i64: 1, 32>}, {transform_indices = @transform_3, window_bounds = array<i64: 1, 22, 22, 32>}]} {
    %c0 = arith.constant 0 : index
    %c0_0 = arith.constant 0 : index
    %0 = vector.load %arg2[%c0, %c0_0] : memref<400x32xbf16, #tpu.memory_space<vmem>>, vector<16x32xbf16>
    %c16 = arith.constant 16 : index
    %c0_1 = arith.constant 0 : index
    %1 = vector.load %arg2[%c16, %c0_1] : memref<400x32xbf16, #tpu.memory_space<vmem>>, vector<16x32xbf16>
    %c32 = arith.constant 32 : index
    %c0_2 = arith.constant 0 : index
    %2 = vector.load %arg2[%c32, %c0_2] : memref<400x32xbf16, #tpu.memory_space<vmem>>, vector<16x32xbf16>
    %c48 = arith.constant 48 : index
    %c0_3 = arith.constant 0 : index
    %3 = vector.load %arg2[%c48, %c0_3] : memref<400x32xbf16, #tpu.memory_space<vmem>>, vector<16x32xbf16>
    %c64 = arith.constant 64 : index
    %c0_4 = arith.constant 0 : index
    %4 = vector.load %arg2[%c64, %c0_4] : memref<400x32xbf16, #tpu.memory_space<vmem>>, vector<16x32xbf16>
    %c80 = arith.constant 80 : index
    %c0_5 = arith.constant 0 : index
    %5 = vector.load %arg2[%c80, %c0_5] : memref<400x32xbf16, #tpu.memory_space<vmem>>, vector<16x32xbf16>
    %c96 = arith.constant 96 : index
    %c0_6 = arith.constant 0 : index
    %6 = vector.load %arg2[%c96, %c0_6] : memref<400x32xbf16, #tpu.memory_space<vmem>>, vector<16x32xbf16>
    %c112 = arith.constant 112 : index
    %c0_7 = arith.constant 0 : index
    %7 = vector.load %arg2[%c112, %c0_7] : memref<400x32xbf16, #tpu.memory_space<vmem>>, vector<16x32xbf16>
    %c128 = arith.constant 128 : index
    %c0_8 = arith.constant 0 : index
    %8 = vector.load %arg2[%c128, %c0_8] : memref<400x32xbf16, #tpu.memory_space<vmem>>, vector<16x32xbf16>
    %c144 = arith.constant 144 : index
    %c0_9 = arith.constant 0 : index
    %9 = vector.load %arg2[%c144, %c0_9] : memref<400x32xbf16, #tpu.memory_space<vmem>>, vector<16x32xbf16>
    %c160 = arith.constant 160 : index
    %c0_10 = arith.constant 0 : index
    %10 = vector.load %arg2[%c160, %c0_10] : memref<400x32xbf16, #tpu.memory_space<vmem>>, vector<16x32xbf16>
    %c176 = arith.constant 176 : index
    %c0_11 = arith.constant 0 : index
    %11 = vector.load %arg2[%c176, %c0_11] : memref<400x32xbf16, #tpu.memory_space<vmem>>, vector<16x32xbf16>
    %c192 = arith.constant 192 : index
    %c0_12 = arith.constant 0 : index
    %12 = vector.load %arg2[%c192, %c0_12] : memref<400x32xbf16, #tpu.memory_space<vmem>>, vector<16x32xbf16>
    %c208 = arith.constant 208 : index
    %c0_13 = arith.constant 0 : index
    %13 = vector.load %arg2[%c208, %c0_13] : memref<400x32xbf16, #tpu.memory_space<vmem>>, vector<16x32xbf16>
    %c224 = arith.constant 224 : index
    %c0_14 = arith.constant 0 : index
    %14 = vector.load %arg2[%c224, %c0_14] : memref<400x32xbf16, #tpu.memory_space<vmem>>, vector<16x32xbf16>
    %c240 = arith.constant 240 : index
    %c0_15 = arith.constant 0 : index
    %15 = vector.load %arg2[%c240, %c0_15] : memref<400x32xbf16, #tpu.memory_space<vmem>>, vector<16x32xbf16>
    %c256 = arith.constant 256 : index
    %c0_16 = arith.constant 0 : index
    %16 = vector.load %arg2[%c256, %c0_16] : memref<400x32xbf16, #tpu.memory_space<vmem>>, vector<16x32xbf16>
    %c272 = arith.constant 272 : index
    %c0_17 = arith.constant 0 : index
    %17 = vector.load %arg2[%c272, %c0_17] : memref<400x32xbf16, #tpu.memory_space<vmem>>, vector<16x32xbf16>
    %c288 = arith.constant 288 : index
    %c0_18 = arith.constant 0 : index
    %18 = vector.load %arg2[%c288, %c0_18] : memref<400x32xbf16, #tpu.memory_space<vmem>>, vector<16x32xbf16>
    %c304 = arith.constant 304 : index
    %c0_19 = arith.constant 0 : index
    %19 = vector.load %arg2[%c304, %c0_19] : memref<400x32xbf16, #tpu.memory_space<vmem>>, vector<16x32xbf16>
    %c320 = arith.constant 320 : index
    %c0_20 = arith.constant 0 : index
    %20 = vector.load %arg2[%c320, %c0_20] : memref<400x32xbf16, #tpu.memory_space<vmem>>, vector<16x32xbf16>
    %c336 = arith.constant 336 : index
    %c0_21 = arith.constant 0 : index
    %21 = vector.load %arg2[%c336, %c0_21] : memref<400x32xbf16, #tpu.memory_space<vmem>>, vector<16x32xbf16>
    %c352 = arith.constant 352 : index
    %c0_22 = arith.constant 0 : index
    %22 = vector.load %arg2[%c352, %c0_22] : memref<400x32xbf16, #tpu.memory_space<vmem>>, vector<16x32xbf16>
    %c368 = arith.constant 368 : index
    %c0_23 = arith.constant 0 : index
    %23 = vector.load %arg2[%c368, %c0_23] : memref<400x32xbf16, #tpu.memory_space<vmem>>, vector<16x32xbf16>
    %c384 = arith.constant 384 : index
    %c0_24 = arith.constant 0 : index
    %24 = vector.load %arg2[%c384, %c0_24] : memref<400x32xbf16, #tpu.memory_space<vmem>>, vector<16x32xbf16>
    %c0_25 = arith.constant 0 : index
    %c0_26 = arith.constant 0 : index
    %25 = vector.load %arg3[%c0_25, %c0_26] : memref<1x32xf32, #tpu.memory_space<vmem>>, vector<1x32xf32>
    %26 = vector.shape_cast %25 : vector<1x32xf32> to vector<1x32xf32>
    %27 = vector.broadcast %26 : vector<1x32xf32> to vector<22x32xf32>
    %c0_i32 = arith.constant 0 : i32
    %c22_i32 = arith.constant 22 : i32
    %28 = arith.addi %c0_i32, %c22_i32 : i32
    %c1_i32 = arith.constant 1 : i32
    scf.for %arg5 = %c0_i32 to %28 step %c1_i32  : i32 {
      %c0_i32_28 = arith.constant 0 : i32
      %29 = arith.addi %arg5, %c0_i32_28 : i32
      %c0_29 = arith.constant 0 : index
      %30 = arith.index_cast %29 : i32 to index
      %c0_30 = arith.constant 0 : index
      %c0_31 = arith.constant 0 : index
      %31 = vector.load %arg1[%c0_29, %30, %c0_30, %c0_31] : memref<1x26x26x16xbf16, #tpu.memory_space<vmem>>, vector<1x1x22x16xbf16>
      %32 = vector.shape_cast %31 : vector<1x1x22x16xbf16> to vector<22x16xbf16>
      %cst = arith.constant dense<0.000000e+00> : vector<22x32xf32>
      %33 = tpu.matmul %32, %0, %cst {dimension_numbers = #tpu.dot_dimension_numbers<[1], [0], [0], [1], [0, 0, 1, 1], [], []>} : vector<22x16xbf16>, vector<16x32xbf16>, vector<22x32xf32> -> vector<22x32xf32>
      %34 = arith.addf %27, %33 : vector<22x32xf32>
      %c0_i32_32 = arith.constant 0 : i32
      %35 = arith.addi %arg5, %c0_i32_32 : i32
      %c0_33 = arith.constant 0 : index
      %36 = arith.index_cast %35 : i32 to index
      %c1 = arith.constant 1 : index
      %c0_34 = arith.constant 0 : index
      %37 = vector.load %arg1[%c0_33, %36, %c1, %c0_34] : memref<1x26x26x16xbf16, #tpu.memory_space<vmem>>, vector<1x1x22x16xbf16>
      %38 = vector.shape_cast %37 : vector<1x1x22x16xbf16> to vector<22x16xbf16>
      %cst_35 = arith.constant dense<0.000000e+00> : vector<22x32xf32>
      %39 = tpu.matmul %38, %1, %cst_35 {dimension_numbers = #tpu.dot_dimension_numbers<[1], [0], [0], [1], [0, 0, 1, 1], [], []>} : vector<22x16xbf16>, vector<16x32xbf16>, vector<22x32xf32> -> vector<22x32xf32>
      %40 = arith.addf %34, %39 : vector<22x32xf32>
      %c0_i32_36 = arith.constant 0 : i32
      %41 = arith.addi %arg5, %c0_i32_36 : i32
      %c0_37 = arith.constant 0 : index
      %42 = arith.index_cast %41 : i32 to index
      %c2 = arith.constant 2 : index
      %c0_38 = arith.constant 0 : index
      %43 = vector.load %arg1[%c0_37, %42, %c2, %c0_38] : memref<1x26x26x16xbf16, #tpu.memory_space<vmem>>, vector<1x1x22x16xbf16>
      %44 = vector.shape_cast %43 : vector<1x1x22x16xbf16> to vector<22x16xbf16>
      %cst_39 = arith.constant dense<0.000000e+00> : vector<22x32xf32>
      %45 = tpu.matmul %44, %2, %cst_39 {dimension_numbers = #tpu.dot_dimension_numbers<[1], [0], [0], [1], [0, 0, 1, 1], [], []>} : vector<22x16xbf16>, vector<16x32xbf16>, vector<22x32xf32> -> vector<22x32xf32>
      %46 = arith.addf %40, %45 : vector<22x32xf32>
      %c0_i32_40 = arith.constant 0 : i32
      %47 = arith.addi %arg5, %c0_i32_40 : i32
      %c0_41 = arith.constant 0 : index
      %48 = arith.index_cast %47 : i32 to index
      %c3 = arith.constant 3 : index
      %c0_42 = arith.constant 0 : index
      %49 = vector.load %arg1[%c0_41, %48, %c3, %c0_42] : memref<1x26x26x16xbf16, #tpu.memory_space<vmem>>, vector<1x1x22x16xbf16>
      %50 = vector.shape_cast %49 : vector<1x1x22x16xbf16> to vector<22x16xbf16>
      %cst_43 = arith.constant dense<0.000000e+00> : vector<22x32xf32>
      %51 = tpu.matmul %50, %3, %cst_43 {dimension_numbers = #tpu.dot_dimension_numbers<[1], [0], [0], [1], [0, 0, 1, 1], [], []>} : vector<22x16xbf16>, vector<16x32xbf16>, vector<22x32xf32> -> vector<22x32xf32>
      %52 = arith.addf %46, %51 : vector<22x32xf32>
      %c0_i32_44 = arith.constant 0 : i32
      %53 = arith.addi %arg5, %c0_i32_44 : i32
      %c0_45 = arith.constant 0 : index
      %54 = arith.index_cast %53 : i32 to index
      %c4 = arith.constant 4 : index
      %c0_46 = arith.constant 0 : index
      %55 = vector.load %arg1[%c0_45, %54, %c4, %c0_46] : memref<1x26x26x16xbf16, #tpu.memory_space<vmem>>, vector<1x1x22x16xbf16>
      %56 = vector.shape_cast %55 : vector<1x1x22x16xbf16> to vector<22x16xbf16>
      %cst_47 = arith.constant dense<0.000000e+00> : vector<22x32xf32>
      %57 = tpu.matmul %56, %4, %cst_47 {dimension_numbers = #tpu.dot_dimension_numbers<[1], [0], [0], [1], [0, 0, 1, 1], [], []>} : vector<22x16xbf16>, vector<16x32xbf16>, vector<22x32xf32> -> vector<22x32xf32>
      %58 = arith.addf %52, %57 : vector<22x32xf32>
      %c1_i32_48 = arith.constant 1 : i32
      %59 = arith.addi %arg5, %c1_i32_48 : i32
      %c0_49 = arith.constant 0 : index
      %60 = arith.index_cast %59 : i32 to index
      %c0_50 = arith.constant 0 : index
      %c0_51 = arith.constant 0 : index
      %61 = vector.load %arg1[%c0_49, %60, %c0_50, %c0_51] : memref<1x26x26x16xbf16, #tpu.memory_space<vmem>>, vector<1x1x22x16xbf16>
      %62 = vector.shape_cast %61 : vector<1x1x22x16xbf16> to vector<22x16xbf16>
      %cst_52 = arith.constant dense<0.000000e+00> : vector<22x32xf32>
      %63 = tpu.matmul %62, %5, %cst_52 {dimension_numbers = #tpu.dot_dimension_numbers<[1], [0], [0], [1], [0, 0, 1, 1], [], []>} : vector<22x16xbf16>, vector<16x32xbf16>, vector<22x32xf32> -> vector<22x32xf32>
      %64 = arith.addf %58, %63 : vector<22x32xf32>
      %c1_i32_53 = arith.constant 1 : i32
      %65 = arith.addi %arg5, %c1_i32_53 : i32
      %c0_54 = arith.constant 0 : index
      %66 = arith.index_cast %65 : i32 to index
      %c1_55 = arith.constant 1 : index
      %c0_56 = arith.constant 0 : index
      %67 = vector.load %arg1[%c0_54, %66, %c1_55, %c0_56] : memref<1x26x26x16xbf16, #tpu.memory_space<vmem>>, vector<1x1x22x16xbf16>
      %68 = vector.shape_cast %67 : vector<1x1x22x16xbf16> to vector<22x16xbf16>
      %cst_57 = arith.constant dense<0.000000e+00> : vector<22x32xf32>
      %69 = tpu.matmul %68, %6, %cst_57 {dimension_numbers = #tpu.dot_dimension_numbers<[1], [0], [0], [1], [0, 0, 1, 1], [], []>} : vector<22x16xbf16>, vector<16x32xbf16>, vector<22x32xf32> -> vector<22x32xf32>
      %70 = arith.addf %64, %69 : vector<22x32xf32>
      %c1_i32_58 = arith.constant 1 : i32
      %71 = arith.addi %arg5, %c1_i32_58 : i32
      %c0_59 = arith.constant 0 : index
      %72 = arith.index_cast %71 : i32 to index
      %c2_60 = arith.constant 2 : index
      %c0_61 = arith.constant 0 : index
      %73 = vector.load %arg1[%c0_59, %72, %c2_60, %c0_61] : memref<1x26x26x16xbf16, #tpu.memory_space<vmem>>, vector<1x1x22x16xbf16>
      %74 = vector.shape_cast %73 : vector<1x1x22x16xbf16> to vector<22x16xbf16>
      %cst_62 = arith.constant dense<0.000000e+00> : vector<22x32xf32>
      %75 = tpu.matmul %74, %7, %cst_62 {dimension_numbers = #tpu.dot_dimension_numbers<[1], [0], [0], [1], [0, 0, 1, 1], [], []>} : vector<22x16xbf16>, vector<16x32xbf16>, vector<22x32xf32> -> vector<22x32xf32>
      %76 = arith.addf %70, %75 : vector<22x32xf32>
      %c1_i32_63 = arith.constant 1 : i32
      %77 = arith.addi %arg5, %c1_i32_63 : i32
      %c0_64 = arith.constant 0 : index
      %78 = arith.index_cast %77 : i32 to index
      %c3_65 = arith.constant 3 : index
      %c0_66 = arith.constant 0 : index
      %79 = vector.load %arg1[%c0_64, %78, %c3_65, %c0_66] : memref<1x26x26x16xbf16, #tpu.memory_space<vmem>>, vector<1x1x22x16xbf16>
      %80 = vector.shape_cast %79 : vector<1x1x22x16xbf16> to vector<22x16xbf16>
      %cst_67 = arith.constant dense<0.000000e+00> : vector<22x32xf32>
      %81 = tpu.matmul %80, %8, %cst_67 {dimension_numbers = #tpu.dot_dimension_numbers<[1], [0], [0], [1], [0, 0, 1, 1], [], []>} : vector<22x16xbf16>, vector<16x32xbf16>, vector<22x32xf32> -> vector<22x32xf32>
      %82 = arith.addf %76, %81 : vector<22x32xf32>
      %c1_i32_68 = arith.constant 1 : i32
      %83 = arith.addi %arg5, %c1_i32_68 : i32
      %c0_69 = arith.constant 0 : index
      %84 = arith.index_cast %83 : i32 to index
      %c4_70 = arith.constant 4 : index
      %c0_71 = arith.constant 0 : index
      %85 = vector.load %arg1[%c0_69, %84, %c4_70, %c0_71] : memref<1x26x26x16xbf16, #tpu.memory_space<vmem>>, vector<1x1x22x16xbf16>
      %86 = vector.shape_cast %85 : vector<1x1x22x16xbf16> to vector<22x16xbf16>
      %cst_72 = arith.constant dense<0.000000e+00> : vector<22x32xf32>
      %87 = tpu.matmul %86, %9, %cst_72 {dimension_numbers = #tpu.dot_dimension_numbers<[1], [0], [0], [1], [0, 0, 1, 1], [], []>} : vector<22x16xbf16>, vector<16x32xbf16>, vector<22x32xf32> -> vector<22x32xf32>
      %88 = arith.addf %82, %87 : vector<22x32xf32>
      %c2_i32 = arith.constant 2 : i32
      %89 = arith.addi %arg5, %c2_i32 : i32
      %c0_73 = arith.constant 0 : index
      %90 = arith.index_cast %89 : i32 to index
      %c0_74 = arith.constant 0 : index
      %c0_75 = arith.constant 0 : index
      %91 = vector.load %arg1[%c0_73, %90, %c0_74, %c0_75] : memref<1x26x26x16xbf16, #tpu.memory_space<vmem>>, vector<1x1x22x16xbf16>
      %92 = vector.shape_cast %91 : vector<1x1x22x16xbf16> to vector<22x16xbf16>
      %cst_76 = arith.constant dense<0.000000e+00> : vector<22x32xf32>
      %93 = tpu.matmul %92, %10, %cst_76 {dimension_numbers = #tpu.dot_dimension_numbers<[1], [0], [0], [1], [0, 0, 1, 1], [], []>} : vector<22x16xbf16>, vector<16x32xbf16>, vector<22x32xf32> -> vector<22x32xf32>
      %94 = arith.addf %88, %93 : vector<22x32xf32>
      %c2_i32_77 = arith.constant 2 : i32
      %95 = arith.addi %arg5, %c2_i32_77 : i32
      %c0_78 = arith.constant 0 : index
      %96 = arith.index_cast %95 : i32 to index
      %c1_79 = arith.constant 1 : index
      %c0_80 = arith.constant 0 : index
      %97 = vector.load %arg1[%c0_78, %96, %c1_79, %c0_80] : memref<1x26x26x16xbf16, #tpu.memory_space<vmem>>, vector<1x1x22x16xbf16>
      %98 = vector.shape_cast %97 : vector<1x1x22x16xbf16> to vector<22x16xbf16>
      %cst_81 = arith.constant dense<0.000000e+00> : vector<22x32xf32>
      %99 = tpu.matmul %98, %11, %cst_81 {dimension_numbers = #tpu.dot_dimension_numbers<[1], [0], [0], [1], [0, 0, 1, 1], [], []>} : vector<22x16xbf16>, vector<16x32xbf16>, vector<22x32xf32> -> vector<22x32xf32>
      %100 = arith.addf %94, %99 : vector<22x32xf32>
      %c2_i32_82 = arith.constant 2 : i32
      %101 = arith.addi %arg5, %c2_i32_82 : i32
      %c0_83 = arith.constant 0 : index
      %102 = arith.index_cast %101 : i32 to index
      %c2_84 = arith.constant 2 : index
      %c0_85 = arith.constant 0 : index
      %103 = vector.load %arg1[%c0_83, %102, %c2_84, %c0_85] : memref<1x26x26x16xbf16, #tpu.memory_space<vmem>>, vector<1x1x22x16xbf16>
      %104 = vector.shape_cast %103 : vector<1x1x22x16xbf16> to vector<22x16xbf16>
      %cst_86 = arith.constant dense<0.000000e+00> : vector<22x32xf32>
      %105 = tpu.matmul %104, %12, %cst_86 {dimension_numbers = #tpu.dot_dimension_numbers<[1], [0], [0], [1], [0, 0, 1, 1], [], []>} : vector<22x16xbf16>, vector<16x32xbf16>, vector<22x32xf32> -> vector<22x32xf32>
      %106 = arith.addf %100, %105 : vector<22x32xf32>
      %c2_i32_87 = arith.constant 2 : i32
      %107 = arith.addi %arg5, %c2_i32_87 : i32
      %c0_88 = arith.constant 0 : index
      %108 = arith.index_cast %107 : i32 to index
      %c3_89 = arith.constant 3 : index
      %c0_90 = arith.constant 0 : index
      %109 = vector.load %arg1[%c0_88, %108, %c3_89, %c0_90] : memref<1x26x26x16xbf16, #tpu.memory_space<vmem>>, vector<1x1x22x16xbf16>
      %110 = vector.shape_cast %109 : vector<1x1x22x16xbf16> to vector<22x16xbf16>
      %cst_91 = arith.constant dense<0.000000e+00> : vector<22x32xf32>
      %111 = tpu.matmul %110, %13, %cst_91 {dimension_numbers = #tpu.dot_dimension_numbers<[1], [0], [0], [1], [0, 0, 1, 1], [], []>} : vector<22x16xbf16>, vector<16x32xbf16>, vector<22x32xf32> -> vector<22x32xf32>
      %112 = arith.addf %106, %111 : vector<22x32xf32>
      %c2_i32_92 = arith.constant 2 : i32
      %113 = arith.addi %arg5, %c2_i32_92 : i32
      %c0_93 = arith.constant 0 : index
      %114 = arith.index_cast %113 : i32 to index
      %c4_94 = arith.constant 4 : index
      %c0_95 = arith.constant 0 : index
      %115 = vector.load %arg1[%c0_93, %114, %c4_94, %c0_95] : memref<1x26x26x16xbf16, #tpu.memory_space<vmem>>, vector<1x1x22x16xbf16>
      %116 = vector.shape_cast %115 : vector<1x1x22x16xbf16> to vector<22x16xbf16>
      %cst_96 = arith.constant dense<0.000000e+00> : vector<22x32xf32>
      %117 = tpu.matmul %116, %14, %cst_96 {dimension_numbers = #tpu.dot_dimension_numbers<[1], [0], [0], [1], [0, 0, 1, 1], [], []>} : vector<22x16xbf16>, vector<16x32xbf16>, vector<22x32xf32> -> vector<22x32xf32>
      %118 = arith.addf %112, %117 : vector<22x32xf32>
      %c3_i32 = arith.constant 3 : i32
      %119 = arith.addi %arg5, %c3_i32 : i32
      %c0_97 = arith.constant 0 : index
      %120 = arith.index_cast %119 : i32 to index
      %c0_98 = arith.constant 0 : index
      %c0_99 = arith.constant 0 : index
      %121 = vector.load %arg1[%c0_97, %120, %c0_98, %c0_99] : memref<1x26x26x16xbf16, #tpu.memory_space<vmem>>, vector<1x1x22x16xbf16>
      %122 = vector.shape_cast %121 : vector<1x1x22x16xbf16> to vector<22x16xbf16>
      %cst_100 = arith.constant dense<0.000000e+00> : vector<22x32xf32>
      %123 = tpu.matmul %122, %15, %cst_100 {dimension_numbers = #tpu.dot_dimension_numbers<[1], [0], [0], [1], [0, 0, 1, 1], [], []>} : vector<22x16xbf16>, vector<16x32xbf16>, vector<22x32xf32> -> vector<22x32xf32>
      %124 = arith.addf %118, %123 : vector<22x32xf32>
      %c3_i32_101 = arith.constant 3 : i32
      %125 = arith.addi %arg5, %c3_i32_101 : i32
      %c0_102 = arith.constant 0 : index
      %126 = arith.index_cast %125 : i32 to index
      %c1_103 = arith.constant 1 : index
      %c0_104 = arith.constant 0 : index
      %127 = vector.load %arg1[%c0_102, %126, %c1_103, %c0_104] : memref<1x26x26x16xbf16, #tpu.memory_space<vmem>>, vector<1x1x22x16xbf16>
      %128 = vector.shape_cast %127 : vector<1x1x22x16xbf16> to vector<22x16xbf16>
      %cst_105 = arith.constant dense<0.000000e+00> : vector<22x32xf32>
      %129 = tpu.matmul %128, %16, %cst_105 {dimension_numbers = #tpu.dot_dimension_numbers<[1], [0], [0], [1], [0, 0, 1, 1], [], []>} : vector<22x16xbf16>, vector<16x32xbf16>, vector<22x32xf32> -> vector<22x32xf32>
      %130 = arith.addf %124, %129 : vector<22x32xf32>
      %c3_i32_106 = arith.constant 3 : i32
      %131 = arith.addi %arg5, %c3_i32_106 : i32
      %c0_107 = arith.constant 0 : index
      %132 = arith.index_cast %131 : i32 to index
      %c2_108 = arith.constant 2 : index
      %c0_109 = arith.constant 0 : index
      %133 = vector.load %arg1[%c0_107, %132, %c2_108, %c0_109] : memref<1x26x26x16xbf16, #tpu.memory_space<vmem>>, vector<1x1x22x16xbf16>
      %134 = vector.shape_cast %133 : vector<1x1x22x16xbf16> to vector<22x16xbf16>
      %cst_110 = arith.constant dense<0.000000e+00> : vector<22x32xf32>
      %135 = tpu.matmul %134, %17, %cst_110 {dimension_numbers = #tpu.dot_dimension_numbers<[1], [0], [0], [1], [0, 0, 1, 1], [], []>} : vector<22x16xbf16>, vector<16x32xbf16>, vector<22x32xf32> -> vector<22x32xf32>
      %136 = arith.addf %130, %135 : vector<22x32xf32>
      %c3_i32_111 = arith.constant 3 : i32
      %137 = arith.addi %arg5, %c3_i32_111 : i32
      %c0_112 = arith.constant 0 : index
      %138 = arith.index_cast %137 : i32 to index
      %c3_113 = arith.constant 3 : index
      %c0_114 = arith.constant 0 : index
      %139 = vector.load %arg1[%c0_112, %138, %c3_113, %c0_114] : memref<1x26x26x16xbf16, #tpu.memory_space<vmem>>, vector<1x1x22x16xbf16>
      %140 = vector.shape_cast %139 : vector<1x1x22x16xbf16> to vector<22x16xbf16>
      %cst_115 = arith.constant dense<0.000000e+00> : vector<22x32xf32>
      %141 = tpu.matmul %140, %18, %cst_115 {dimension_numbers = #tpu.dot_dimension_numbers<[1], [0], [0], [1], [0, 0, 1, 1], [], []>} : vector<22x16xbf16>, vector<16x32xbf16>, vector<22x32xf32> -> vector<22x32xf32>
      %142 = arith.addf %136, %141 : vector<22x32xf32>
      %c3_i32_116 = arith.constant 3 : i32
      %143 = arith.addi %arg5, %c3_i32_116 : i32
      %c0_117 = arith.constant 0 : index
      %144 = arith.index_cast %143 : i32 to index
      %c4_118 = arith.constant 4 : index
      %c0_119 = arith.constant 0 : index
      %145 = vector.load %arg1[%c0_117, %144, %c4_118, %c0_119] : memref<1x26x26x16xbf16, #tpu.memory_space<vmem>>, vector<1x1x22x16xbf16>
      %146 = vector.shape_cast %145 : vector<1x1x22x16xbf16> to vector<22x16xbf16>
      %cst_120 = arith.constant dense<0.000000e+00> : vector<22x32xf32>
      %147 = tpu.matmul %146, %19, %cst_120 {dimension_numbers = #tpu.dot_dimension_numbers<[1], [0], [0], [1], [0, 0, 1, 1], [], []>} : vector<22x16xbf16>, vector<16x32xbf16>, vector<22x32xf32> -> vector<22x32xf32>
      %148 = arith.addf %142, %147 : vector<22x32xf32>
      %c4_i32 = arith.constant 4 : i32
      %149 = arith.addi %arg5, %c4_i32 : i32
      %c0_121 = arith.constant 0 : index
      %150 = arith.index_cast %149 : i32 to index
      %c0_122 = arith.constant 0 : index
      %c0_123 = arith.constant 0 : index
      %151 = vector.load %arg1[%c0_121, %150, %c0_122, %c0_123] : memref<1x26x26x16xbf16, #tpu.memory_space<vmem>>, vector<1x1x22x16xbf16>
      %152 = vector.shape_cast %151 : vector<1x1x22x16xbf16> to vector<22x16xbf16>
      %cst_124 = arith.constant dense<0.000000e+00> : vector<22x32xf32>
      %153 = tpu.matmul %152, %20, %cst_124 {dimension_numbers = #tpu.dot_dimension_numbers<[1], [0], [0], [1], [0, 0, 1, 1], [], []>} : vector<22x16xbf16>, vector<16x32xbf16>, vector<22x32xf32> -> vector<22x32xf32>
      %154 = arith.addf %148, %153 : vector<22x32xf32>
      %c4_i32_125 = arith.constant 4 : i32
      %155 = arith.addi %arg5, %c4_i32_125 : i32
      %c0_126 = arith.constant 0 : index
      %156 = arith.index_cast %155 : i32 to index
      %c1_127 = arith.constant 1 : index
      %c0_128 = arith.constant 0 : index
      %157 = vector.load %arg1[%c0_126, %156, %c1_127, %c0_128] : memref<1x26x26x16xbf16, #tpu.memory_space<vmem>>, vector<1x1x22x16xbf16>
      %158 = vector.shape_cast %157 : vector<1x1x22x16xbf16> to vector<22x16xbf16>
      %cst_129 = arith.constant dense<0.000000e+00> : vector<22x32xf32>
      %159 = tpu.matmul %158, %21, %cst_129 {dimension_numbers = #tpu.dot_dimension_numbers<[1], [0], [0], [1], [0, 0, 1, 1], [], []>} : vector<22x16xbf16>, vector<16x32xbf16>, vector<22x32xf32> -> vector<22x32xf32>
      %160 = arith.addf %154, %159 : vector<22x32xf32>
      %c4_i32_130 = arith.constant 4 : i32
      %161 = arith.addi %arg5, %c4_i32_130 : i32
      %c0_131 = arith.constant 0 : index
      %162 = arith.index_cast %161 : i32 to index
      %c2_132 = arith.constant 2 : index
      %c0_133 = arith.constant 0 : index
      %163 = vector.load %arg1[%c0_131, %162, %c2_132, %c0_133] : memref<1x26x26x16xbf16, #tpu.memory_space<vmem>>, vector<1x1x22x16xbf16>
      %164 = vector.shape_cast %163 : vector<1x1x22x16xbf16> to vector<22x16xbf16>
      %cst_134 = arith.constant dense<0.000000e+00> : vector<22x32xf32>
      %165 = tpu.matmul %164, %22, %cst_134 {dimension_numbers = #tpu.dot_dimension_numbers<[1], [0], [0], [1], [0, 0, 1, 1], [], []>} : vector<22x16xbf16>, vector<16x32xbf16>, vector<22x32xf32> -> vector<22x32xf32>
      %166 = arith.addf %160, %165 : vector<22x32xf32>
      %c4_i32_135 = arith.constant 4 : i32
      %167 = arith.addi %arg5, %c4_i32_135 : i32
      %c0_136 = arith.constant 0 : index
      %168 = arith.index_cast %167 : i32 to index
      %c3_137 = arith.constant 3 : index
      %c0_138 = arith.constant 0 : index
      %169 = vector.load %arg1[%c0_136, %168, %c3_137, %c0_138] : memref<1x26x26x16xbf16, #tpu.memory_space<vmem>>, vector<1x1x22x16xbf16>
      %170 = vector.shape_cast %169 : vector<1x1x22x16xbf16> to vector<22x16xbf16>
      %cst_139 = arith.constant dense<0.000000e+00> : vector<22x32xf32>
      %171 = tpu.matmul %170, %23, %cst_139 {dimension_numbers = #tpu.dot_dimension_numbers<[1], [0], [0], [1], [0, 0, 1, 1], [], []>} : vector<22x16xbf16>, vector<16x32xbf16>, vector<22x32xf32> -> vector<22x32xf32>
      %172 = arith.addf %166, %171 : vector<22x32xf32>
      %c4_i32_140 = arith.constant 4 : i32
      %173 = arith.addi %arg5, %c4_i32_140 : i32
      %c0_141 = arith.constant 0 : index
      %174 = arith.index_cast %173 : i32 to index
      %c4_142 = arith.constant 4 : index
      %c0_143 = arith.constant 0 : index
      %175 = vector.load %arg1[%c0_141, %174, %c4_142, %c0_143] : memref<1x26x26x16xbf16, #tpu.memory_space<vmem>>, vector<1x1x22x16xbf16>
      %176 = vector.shape_cast %175 : vector<1x1x22x16xbf16> to vector<22x16xbf16>
      %cst_144 = arith.constant dense<0.000000e+00> : vector<22x32xf32>
      %177 = tpu.matmul %176, %24, %cst_144 {dimension_numbers = #tpu.dot_dimension_numbers<[1], [0], [0], [1], [0, 0, 1, 1], [], []>} : vector<22x16xbf16>, vector<16x32xbf16>, vector<22x32xf32> -> vector<22x32xf32>
      %178 = arith.addf %172, %177 : vector<22x32xf32>
      %cst_145 = arith.constant 0.000000e+00 : f32
      %179 = vector.broadcast %cst_145 : f32 to vector<22x32xf32>
      %180 = arith.maximumf %178, %179 : vector<22x32xf32>
      %181 = vector.shape_cast %180 : vector<22x32xf32> to vector<1x22x32xf32>
      %182 = arith.truncf %181 : vector<1x22x32xf32> to vector<1x22x32xbf16>
      %c0_146 = arith.constant 0 : index
      %183 = arith.index_cast %arg5 : i32 to index
      %c0_147 = arith.constant 0 : index
      %c0_148 = arith.constant 0 : index
      %184 = vector.load %arg4[%c0_146, %183, %c0_147, %c0_148] : memref<1x22x22x32xbf16, #tpu.memory_space<vmem>>, vector<1x1x22x32xbf16>
      %185 = vector.shape_cast %184 : vector<1x1x22x32xbf16> to vector<1x22x32xbf16>
      %186 = vector.shape_cast %182 : vector<1x22x32xbf16> to vector<1x1x22x32xbf16>
      tpu.vector_store %arg4[%c0_146, %183, %c0_147, %c0_148], %186 {strides = array<i32>} : memref<1x22x22x32xbf16, #tpu.memory_space<vmem>>, vector<1x1x22x32xbf16>,
    }
    %c22_i32_27 = arith.constant 22 : i32
    return
  }
  func.func @transform_0(%arg0: i32) -> (i32, i32, i32, i32) {
    %c0_i32 = arith.constant 0 : i32
    %c0_i32_0 = arith.constant 0 : i32
    %c0_i32_1 = arith.constant 0 : i32
    %c0_i32_2 = arith.constant 0 : i32
    return %arg0, %c0_i32, %c0_i32_0, %c0_i32_1 : i32, i32, i32, i32
  }
  func.func @transform_1(%arg0: i32) -> (i32, i32) {
    %c0_i32 = arith.constant 0 : i32
    %c0_i32_0 = arith.constant 0 : i32
    %c0_i32_1 = arith.constant 0 : i32
    return %c0_i32, %c0_i32_0 : i32, i32
  }
  func.func @transform_2(%arg0: i32) -> (i32, i32) {
    %c0_i32 = arith.constant 0 : i32
    %c0_i32_0 = arith.constant 0 : i32
    %c0_i32_1 = arith.constant 0 : i32
    return %c0_i32, %c0_i32_0 : i32, i32
  }
  func.func @transform_3(%arg0: i32) -> (i32, i32, i32, i32) {
    %c0_i32 = arith.constant 0 : i32
    %c0_i32_0 = arith.constant 0 : i32
    %c0_i32_1 = arith.constant 0 : i32
    %c0_i32_2 = arith.constant 0 : i32
    return %arg0, %c0_i32, %c0_i32_0, %c0_i32_1 : i32, i32, i32, i32
  }
}

module attributes {stable_mosaic.version = 11 : i64} {
  func.func @_mlp_kernel(%arg0: memref<2x15488xbf16, #tpu.memory_space<vmem>>, %arg1: memref<15488x64xbf16, #tpu.memory_space<vmem>>, %arg2: memref<1x64xf32, #tpu.memory_space<vmem>>, %arg3: memref<64x4xbf16, #tpu.memory_space<vmem>>, %arg4: memref<1x4xf32, #tpu.memory_space<vmem>>, %arg5: memref<2x4xf32, #tpu.memory_space<vmem>>) attributes {dimension_semantics = [], scalar_prefetch = 0 : i64, scratch_operands = 0 : i64, tpu.core_type = #tpu.core_type<tc>} {
    %c0 = arith.constant 0 : index
    %c0_0 = arith.constant 0 : index
    %0 = vector.load %arg0[%c0, %c0_0] : memref<2x15488xbf16, #tpu.memory_space<vmem>>, vector<2x15488xbf16>
    %c0_1 = arith.constant 0 : index
    %c0_2 = arith.constant 0 : index
    %1 = vector.load %arg1[%c0_1, %c0_2] : memref<15488x64xbf16, #tpu.memory_space<vmem>>, vector<15488x64xbf16>
    %cst = arith.constant dense<0.000000e+00> : vector<2x64xf32>
    %2 = tpu.matmul %0, %1, %cst {dimension_numbers = #tpu.dot_dimension_numbers<[1], [0], [0], [1], [0, 0, 1, 1], [], []>} : vector<2x15488xbf16>, vector<15488x64xbf16>, vector<2x64xf32> -> vector<2x64xf32>
    %c0_3 = arith.constant 0 : index
    %c0_4 = arith.constant 0 : index
    %3 = vector.load %arg2[%c0_3, %c0_4] : memref<1x64xf32, #tpu.memory_space<vmem>>, vector<1x64xf32>
    %4 = vector.broadcast %3 : vector<1x64xf32> to vector<2x64xf32>
    %5 = arith.addf %2, %4 : vector<2x64xf32>
    %cst_5 = arith.constant 0.000000e+00 : f32
    %6 = vector.broadcast %cst_5 : f32 to vector<2x64xf32>
    %7 = arith.maximumf %5, %6 : vector<2x64xf32>
    %8 = arith.truncf %7 : vector<2x64xf32> to vector<2x64xbf16>
    %c0_6 = arith.constant 0 : index
    %c0_7 = arith.constant 0 : index
    %9 = vector.load %arg3[%c0_6, %c0_7] : memref<64x4xbf16, #tpu.memory_space<vmem>>, vector<64x4xbf16>
    %cst_8 = arith.constant dense<0.000000e+00> : vector<2x4xf32>
    %10 = tpu.matmul %8, %9, %cst_8 {dimension_numbers = #tpu.dot_dimension_numbers<[1], [0], [0], [1], [0, 0, 1, 1], [], []>} : vector<2x64xbf16>, vector<64x4xbf16>, vector<2x4xf32> -> vector<2x4xf32>
    %c0_9 = arith.constant 0 : index
    %c0_10 = arith.constant 0 : index
    %11 = vector.load %arg4[%c0_9, %c0_10] : memref<1x4xf32, #tpu.memory_space<vmem>>, vector<1x4xf32>
    %12 = vector.broadcast %11 : vector<1x4xf32> to vector<2x4xf32>
    %13 = arith.addf %10, %12 : vector<2x4xf32>
    %c0_11 = arith.constant 0 : index
    %c0_12 = arith.constant 0 : index
    %14 = vector.load %arg5[%c0_11, %c0_12] : memref<2x4xf32, #tpu.memory_space<vmem>>, vector<2x4xf32>
    tpu.vector_store %arg5[%c0_11, %c0_12], %13 {strides = array<i32>} : memref<2x4xf32, #tpu.memory_space<vmem>>, vector<2x4xf32>,
    return
  }
}

</mosaic_0001>

<bundles_post_ra>
// kernel: cnn_forward.4
= control target key start
LH: loop header
LB: loop body
LE: loop exit
PB: predicated region body
PF: predicated region fallthrough
CT: control target
= control target key end

     0   :  { %s856_s12 = smov 0   ;;  %s1097_s0 = inlined_call_operand.vmem [shape: bf16[2,56,56,48], index: 0, kind: input, shape index: {}]   ;;  %s1098_s1 = inlined_call_operand.vmem [shape: bf16[192,8], index: 1, kind: input, shape index: {}]   ;;  %s1099_s2 = inlined_call_operand.vmem [shape: f32[1,8], index: 2, kind: input, shape index: {}]   ;;  %s1100_s3 = inlined_call_operand.vmem [shape: bf16[2,55,55,8], index: 3, kind: output, shape index: {}]  }
   0x1 LB: > { %s675_s13 = sadd.s32 4294967295, %s830_s12   ;;  %p679_p0 = scmp.ge.s32.totalorder %s830_s12, 1  ;;  %s830_s12 = sphi %s856_s12, %s13_s12  }
   0x2   : > { %p137_p1 = scmp.lt.s32.totalorder %s830_s12, 3 }
   0x4   : > { %p138_p2 = pnand %p679_p0, %p137_p1 }
   0x5   : > { %p161_p3 = scmp.lt.s32.totalorder (!%p138_p2), %s675_s13, 1  ;;  %s999_s22 = smov (!%p138_p2), 0  }
   0x6   : > { %141 = sbr.rel (%p138_p2) target bundleno = 224 (0xe0), region = 32 }
   0xb   : > { %v867_v0 = vld [vmem:[%s1098_s1] sm:$0xf]  ;;  %v872_v1 = vld [vmem:[%s1098_s1] sm:$0xf0]  ;;  %v877_v2 = vld [vmem:[%s1098_s1 + $0x8] sm:$0xf] }
   0xc   : > { %v882_v3 = vld [vmem:[%s1098_s1 + $0x8] sm:$0xf0]  ;;  %v887_v4 = vld [vmem:[%s1098_s1 + $0x10] sm:$0xf]  ;;  %s1102_s13 = smov (!%p161_p3, %s675_s13), 1 }
   0xd   : > { %v892_v5 = vld [vmem:[%s1098_s1 + $0x10] sm:$0xf0]  ;;  %v897_v6 = vld [vmem:[%s1098_s1 + $0x18] sm:$0xf]  ;;  %v902_v7 = vld [vmem:[%s1098_s1 + $0x18] sm:$0xf0] }
   0xe   : > { %v907_v8 = vld [vmem:[%s1098_s1 + $0x20] sm:$0xf]  ;;  %v912_v9 = vld [vmem:[%s1098_s1 + $0x20] sm:$0xf0]  ;;  %s801_s7 = smul.u32 1568, %s1102_s13 }
   0xf   : > { %v917_v10 = vld [vmem:[%s1098_s1 + $0x28] sm:$0xf]  ;;  %v922_v11 = vld [vmem:[%s1098_s1 + $0x28] sm:$0xf0]  ;;  %s802_s14 = smul.u32 1540, %s1102_s13 }
  0x10   : > { %v927_v12 = vld [vmem:[%s1098_s1 + $0x30] sm:$0xf]  ;;  %v932_v13 = vld [vmem:[%s1098_s1 + $0x30] sm:$0xf0]  ;;  %s937_s21 = scalar_lea.vmem %s1097_s0, %s801_s7  ;;  %v942_v14 = vld [vmem:[%s1098_s1 + $0x38] sm:$0xf] }
  0x11   : > { %v947_v15 = vld [vmem:[%s1098_s1 + $0x38] sm:$0xf0]  ;;  %v952_v16 = vld [vmem:[%s1098_s1 + $0x40] sm:$0xf]  ;;  %s957_s29 = scalar_lea.vmem %s1100_s3, %s802_s14  ;;  %v962_v17 = vld [vmem:[%s1098_s1 + $0x40] sm:$0xf0] }
  0x12   : > { %v967_v18 = vld [vmem:[%s1098_s1 + $0x48] sm:$0xf]  ;;  %v972_v19 = vld [vmem:[%s1098_s1 + $0x48] sm:$0xf0]  ;;  %v977_v20 = vld [vmem:[%s1098_s1 + $0x50] sm:$0xf] }
  0x13   : > { %v982_v21 = vld [vmem:[%s1098_s1 + $0x50] sm:$0xf0]  ;;  %v987_v22 = vld [vmem:[%s1098_s1 + $0x58] sm:$0xf]  ;;  %v992_v23 = vld [vmem:[%s1098_s1 + $0x58] sm:$0xf0] }
  0x14   : > { %v997_v24 = vld [vmem:[%s1099_s2] ss:$0 sm:$0xff] }
  0x15 LB: >> { %v706_v25 = vor.u32 %v892_v5, %v887_v4  ;;  %v757_v26 = vor.u32 %v962_v17, %v952_v16  ;;  %v722_v27 = vor.u32 %v922_v11, %v917_v10  ;;  %v773_v28 = vor.u32 %v992_v23, %v987_v22  ;;  %s793_s23 = smul.u32 28, %s834_s22  ;;  %s205_s22 = sadd.s32 1, %s834_s22   ;;  %s834_s22 = sphi %s999_s22, %s205_s22  }
  0x16   : >> { %v702_v29 = vor.u32 %v882_v3, %v877_v2  ;;  %v753_v30 = vor.u32 %v947_v15, %v942_v14  ;;  %v718_v31 = vor.u32 %v912_v9, %v907_v8  ;;  %v769_v32 = vor.u32 %v982_v21, %v977_v20  ;;  %p202_p4 = scmp.ge.s32.totalorder %s205_s22, 55  }
  0x17   : >> { %270 = vmatpush.bf16.msra.mxu0 %v706_v25  ;;  %457 = vmatpush.bf16.msra.mxu2 %v757_v26  ;;  %s1024_s13 = scalar_lea.vmem %s937_s21, %s793_s23  ;;  %v698_v33 = vor.u32 %v872_v1, %v867_v0  ;;  %v749_v37 = vor.u32 %v932_v13, %v927_v12  ;;  %v714_v38 = vor.u32 %v902_v7, %v897_v6  ;;  %vm252_vm0 = vcmask 392192   ;;  %s1069_s24 = scalar_lea.vmem %s957_s29, %s793_s23 }
  0x18   : >> { %363 = vmatpush.bf16.msra.mxu1 %v722_v27  ;;  %549 = vmatpush.bf16.msra.mxu3 %v773_v28  ;;  %v794_v34 = vld [vmem:[%s1024_s13] sm:$0xff]  ;;  %v795_v36 = vld [vmem:[%s1024_s13 + $0x8] sm:$0xff]  ;;  %v765_v39 = vor.u32 %v972_v19, %v967_v18  ;;  %vm300_vm1 = vsmask.f32 7424  ;;  %v796_v55 = vld [vmem:[%s1024_s13 + $0x10] sm:$0xff]  ;;  %vm595_vm2 = vcmask 60416  }
  0x19   : >> { %v797_v35 = vld [vmem:[%s1024_s13 + $0x1c] sm:$0xff]  ;;  %v798_v40 = vld [vmem:[%s1024_s13 + $0x24] sm:$0xff]  ;;  %v303_v41 = vshll.u32 %v794_v34, 16  ;;  %v301_v43 = vshrl.u32 %v794_v34, 16  ;;  %v307_v44 = vshll.u32 %v795_v36, 16  ;;  %v799_v56 = vld [vmem:[%s1024_s13 + $0x2c] sm:$0xff] }
  0x1a   : >> { %v489_v42 = vshll.u32 %v797_v35, 16  ;;  %v487_v45 = vshrl.u32 %v797_v35, 16  ;;  %v493_v46 = vshll.u32 %v798_v40, 16  ;;  %v311_v57 = vshrl.u32 %v795_v36, 16  ;;  %v215_v26 = vld [vmem:[%s1024_s13 + $0x18] sm:$0xf] }
  0x1b   : >> { %271 = vmatpush.bf16.msra.mxu0 %v702_v29  ;;  %458 = vmatpush.bf16.msra.mxu2 %v753_v30  ;;  %v305_v47 = vrot.slane %v303_v41, 1  ;;  %v309_v48 = vrot.slane %v307_v44, 1  ;;  %v314_v58 = vshll.u32 %v796_v55, 16  ;;  %v497_v59 = vshrl.u32 %v798_v40, 16  ;;  %v733_v27 = vld [vmem:[%s1024_s13 + $0x34] sm:$0xf] }
  0x1c   : >> { %364 = vmatpush.bf16.msra.mxu1 %v718_v31  ;;  %550 = vmatpush.bf16.msra.mxu3 %v769_v32  ;;  %v491_v49 = vrot.slane %v489_v42, 1  ;;  %v495_v50 = vrot.slane %v493_v46, 1  ;;  %v500_v60 = vshll.u32 %v799_v56, 16  ;;  %v229_v30 = vunpack.c.l.b16 %v215_v26 }
  0x1d   : >> { %v306_v51 = vor.u32 %v305_v47, %v301_v43  ;;  %v313_v61 = vor.u32 %v311_v57, %v309_v48  ;;  %v316_v62 = vrot.slane %v314_v58, 1  ;;  %v417_v31 = vunpack.c.l.b16 %v733_v27 }
  0x1e   : >> { %v492_v52 = vor.u32 %v491_v49, %v487_v45  ;;  %v499_v63 = vor.u32 %v497_v59, %v495_v50  ;;  %v502_v25 = vrot.slane %v500_v60, 1  ;;  %v233_v32 = vpack.c.b16 %v229_v30, %v229_v30 }
  0x1f   : >> { %272 = vmatpush.bf16.msra.mxu0 %v698_v33  ;;  %459 = vmatpush.bf16.msra.mxu2 %v749_v37  ;;  %v310_v53 = vsel %vm300_vm1, %v306_v51, %v309_v48  ;;  %v317_v28 = vsel %vm300_vm1, %v313_v61, %v316_v62  ;;  %v421_v33 = vpack.c.b16 %v417_v31, %v417_v31  ;;  %v504_v37 = vshrl.u32 %v799_v56, 16 }
  0x20   : >> { %365 = vmatpush.bf16.msra.mxu1 %v714_v38  ;;  %551 = vmatpush.bf16.msra.mxu3 %v765_v39  ;;  %v496_v54 = vsel %vm300_vm1, %v492_v52, %v495_v50  ;;  %v503_v29 = vsel %vm300_vm1, %v499_v63, %v502_v25  ;;  %vm603_vm3 = vsmask.f32 3328 }
  0x21   : >> { %v507_v38 = vshll.u32 %v421_v33, 16  ;;  %v506_v42 = vor.u32 %v504_v37, %v502_v25  ;;  %v511_v45 = vshrl.u32 %v421_v33, 16  ;;  %vm604_vm4 = vmand %vm595_vm2, %vm603_vm3 }
  0x22   : >> { %707 = vmatmul.msk.bf16.vlgmr.msra.gmra.mxu0 %vm252_vm0, %v794_v34  ;;  %758 = vmatmul.msk.bf16.vlgmr.msra.gmra.mxu2 %vm252_vm0, %v797_v35  ;;  %v318_v34 = vshrl.u32 %v796_v55, 16  ;;  %v321_v35 = vshll.u32 %v233_v32, 16 }
  0x23   : >> { %723 = vmatmul.msk.bf16.vlgmr.msra.gmra.mxu1 %vm252_vm0, %v310_v53  ;;  %774 = vmatmul.msk.bf16.vlgmr.msra.gmra.mxu3 %vm252_vm0, %v496_v54  ;;  %v509_v43 = vrot.slane %v507_v38, 1 }
  0x24   : >> { %v320_v39 = vor.u32 %v318_v34, %v316_v62  ;;  %v323_v41 = vrot.slane %v321_v35, 1 }
  0x25   : >> { %v513_v47 = vor.u32 %v511_v45, %v509_v43 }
  0x26   : >> { %v324_v44 = vsel %vm300_vm1, %v320_v39, %v323_v41 }
  0x32   : >> { %708 = vmatmul.msk.bf16.gmra.mxu0 %vm252_vm0, %v795_v36  ;;  %759 = vmatmul.msk.bf16.gmra.mxu2 %vm252_vm0, %v798_v40  ;;  %v510_v36 = vsel %vm300_vm1, %v506_v42, %v509_v43  ;;  %v325_v40 = vshrl.u32 %v233_v32, 16 }
  0x33   : >> { %724 = vmatmul.msk.bf16.gmra.mxu1 %vm252_vm0, %v317_v28  ;;  %775 = vmatmul.msk.bf16.gmra.mxu3 %vm252_vm0, %v503_v29 }
  0x34   : >> { %v327_v46 = vor.u32 %v325_v40, %v323_v41 }
  0x42   : >> { %709 = vmatmul.msk.bf16.gmra.mxu0 %vm252_vm0, %v796_v55  ;;  %760 = vmatmul.msk.bf16.gmra.mxu2 %vm252_vm0, %v799_v56 }
  0x43   : >> { %725 = vmatmul.msk.bf16.gmra.mxu1 %vm252_vm0, %v324_v44  ;;  %776 = vmatmul.msk.bf16.gmra.mxu3 %vm252_vm0, %v510_v36 }
  0x52   : >> { %710 = vmatmul.msk.bf16.gmra.mxu0 %vm252_vm0, %v233_v32  ;;  %761 = vmatmul.msk.bf16.gmra.mxu2 %vm252_vm0, %v421_v33 }
  0x53   : >> { %726 = vmatmul.msk.bf16.gmra.mxu1 %vm252_vm0, %v327_v46  ;;  %777 = vmatmul.msk.bf16.gmra.mxu3 %vm252_vm0, %v513_v47 }
  0x9f   : >> { %v274_v48 = vpop.f32.mrf.mxu0 }
  0xa0   : >> { %v293_v49 = vadd.f32 %v997_v24, %v274_v48  ;;  %v367_v50 = vpop.f32.mrf.mxu1 }
  0xa2   : >> { %v386_v51 = vadd.f32 %v367_v50, %v293_v49 }
  0xa5   : >> { %v461_v52 = vpop.f32.mrf.mxu2 }
  0xa6   : >> { %v480_v53 = vadd.f32 %v461_v52, %v386_v51  ;;  %v553_v54 = vpop.f32.mrf.mxu3 }
  0xa7   : >> { %v276_v55 = vpop.f32.mrf.mxu0 }
  0xa8   : >> { %v294_v56 = vadd.f32 %v997_v24, %v276_v55  ;;  %v572_v57 = vadd.f32 %v553_v54, %v480_v53  ;;  %v369_v58 = vpop.f32.mrf.mxu1 }
  0xaa   : >> { %v579_v59 = vmax.f32 %v572_v57, 0.0  ;;  %v387_v61 = vadd.f32 %v369_v58, %v294_v56 }
  0xac   : >> { %v586_v60 = vpack.c.bf16 %v579_v59, %v579_v59 }
  0xad   : >> { %v463_v62 = vpop.f32.mrf.mxu2 }
  0xae   : >> { %596 = vst.msk [vmem:[%s1069_s24] sm:$0xf] %vm595_vm2, %v586_v60  ;;  %v481_v63 = vadd.f32 %v463_v62, %v387_v61  ;;  %v555_v25 = vpop.f32.mrf.mxu3 }
  0xaf   : >> { %v279_v26 = vpop.f32.mrf.mxu0 }
  0xb0   : >> { %v295_v27 = vadd.f32 %v997_v24, %v279_v26  ;;  %v573_v28 = vadd.f32 %v555_v25, %v481_v63  ;;  %v372_v29 = vpop.f32.mrf.mxu1 }
  0xb2   : >> { %v580_v30 = vmax.f32 %v573_v28, 0.0  ;;  %v388_v31 = vadd.f32 %v372_v29, %v295_v27 }
  0xb4   : >> { %v587_v32 = vpack.c.bf16 %v580_v30, %v580_v30 }
  0xb5   : >> { %v466_v33 = vpop.f32.mrf.mxu2 }
  0xb6   : >> { %597 = vst.msk [vmem:[%s1069_s24 + $0x4] sm:$0xf] %vm595_vm2, %v587_v32  ;;  %v482_v34 = vadd.f32 %v466_v33, %v388_v31  ;;  %v558_v35 = vpop.f32.mrf.mxu3 }
  0xb7   : >> { %v281_v37 = vpop.f32.mrf.mxu0 }
  0xb8   : >> { %v296_v38 = vadd.f32 %v997_v24, %v281_v37  ;;  %v574_v39 = vadd.f32 %v558_v35, %v482_v34  ;;  %v374_v41 = vpop.f32.mrf.mxu1 }
  0xba   : >> { %v581_v42 = vmax.f32 %v574_v39, 0.0  ;;  %v389_v44 = vadd.f32 %v374_v41, %v296_v38 }
  0xbc   : >> { %v588_v43 = vpack.c.bf16 %v581_v42, %v581_v42 }
  0xbd   : >> { %v468_v36 = vpop.f32.mrf.mxu2 }
  0xbe   : >> { %598 = vst.msk [vmem:[%s1069_s24 + $0x8] sm:$0xf] %vm595_vm2, %v588_v43  ;;  %v483_v40 = vadd.f32 %v468_v36, %v389_v44  ;;  %v560_v45 = vpop.f32.mrf.mxu3  ;;  %v605_v43 = vld [vmem:[%s1069_s24 + $0x18] sm:$0xf] }
  0xbf   : >> { %v284_v46 = vpop.f32.mrf.mxu0 }
  0xc0   : >> { %v297_v47 = vadd.f32 %v997_v24, %v284_v46  ;;  %v575_v48 = vadd.f32 %v560_v45, %v483_v40  ;;  %v377_v49 = vpop.f32.mrf.mxu1 }
  0xc2   : >> { %v582_v50 = vmax.f32 %v575_v48, 0.0  ;;  %v390_v51 = vadd.f32 %v377_v49, %v297_v47 }
  0xc4   : >> { %v589_v52 = vpack.c.bf16 %v582_v50, %v582_v50 }
  0xc5   : >> { %v471_v53 = vpop.f32.mrf.mxu2 }
  0xc6   : >> { %599 = vst.msk [vmem:[%s1069_s24 + $0xc] sm:$0xf] %vm595_vm2, %v589_v52  ;;  %v484_v54 = vadd.f32 %v471_v53, %v390_v51  ;;  %v563_v55 = vpop.f32.mrf.mxu3 }
  0xc7   : >> { %v286_v56 = vpop.f32.mrf.mxu0 }
  0xc8   : >> { %v298_v57 = vadd.f32 %v997_v24, %v286_v56  ;;  %v576_v58 = vadd.f32 %v563_v55, %v484_v54  ;;  %v379_v59 = vpop.f32.mrf.mxu1 }
  0xca   : >> { %v583_v60 = vmax.f32 %v576_v58, 0.0  ;;  %v391_v62 = vadd.f32 %v379_v59, %v298_v57 }
  0xcc   : >> { %v590_v61 = vpack.c.bf16 %v583_v60, %v583_v60 }
  0xcd   : >> { %v473_v63 = vpop.f32.mrf.mxu2 }
  0xce   : >> { %600 = vst.msk [vmem:[%s1069_s24 + $0x10] sm:$0xf] %vm595_vm2, %v590_v61  ;;  %v485_v25 = vadd.f32 %v473_v63, %v391_v62  ;;  %v565_v26 = vpop.f32.mrf.mxu3 }
  0xcf   : >> { %v289_v27 = vpop.f32.mrf.mxu0 }
  0xd0   : >> { %v299_v28 = vadd.f32 %v997_v24, %v289_v27  ;;  %v577_v29 = vadd.f32 %v565_v26, %v485_v25  ;;  %v382_v30 = vpop.f32.mrf.mxu1 }
  0xd2   : >> { %v584_v31 = vmax.f32 %v577_v29, 0.0  ;;  %v392_v32 = vadd.f32 %v382_v30, %v299_v28 }
  0xd4   : >> { %v591_v33 = vpack.c.bf16 %v584_v31, %v584_v31 }
  0xd5   : >> { %v476_v34 = vpop.f32.mrf.mxu2 }
  0xd6   : >> { %601 = vst.msk [vmem:[%s1069_s24 + $0x14] sm:$0xf] %vm595_vm2, %v591_v33  ;;  %v486_v35 = vadd.f32 %v476_v34, %v392_v32  ;;  %v568_v37 = vpop.f32.mrf.mxu3 }
  0xd7   : >> { %v291_v38 = vpop.f32.mrf.mxu0 }
  0xd8   : >> { %v578_v39 = vadd.f32 %v568_v37, %v486_v35  ;;  %v384_v41 = vpop.f32.mrf.mxu1 }
  0xda   : >> { %v585_v42 = vmax.f32 %v578_v39, 0.0 }
  0xdb   : > { %204 = sbr.rel (!%p202_p4) target bundleno = 21 (0x15), region = 72 }
  0xdc   : >> { %v592_v44 = vpack.c.bf16 %v585_v42, %v585_v42 }
  0xdd   : >> { %v478_v36 = vpop.f32.mrf.mxu2 }
  0xde   : >> { %v606_v40 = vsel %vm604_vm4, %v592_v44, %v605_v43  ;;  %v570_v45 = vpop.f32.mrf.mxu3 }
  0xdf   : >> { %607 = vst [vmem:[%s1069_s24 + $0x18] sm:$0xf] %v606_v40 }
  0xe0 PF: > { %s13_s12 = sadd.s32 1, %s830_s12  }
  0xe1   : > { %p10_p5 = scmp.ge.s32.totalorder %s13_s12, 4  }
  0xe3   :  { %12 = sbr.rel (!%p10_p5) target bundleno = 1 (0x1), region = 83 }

// kernel: cnn_forward.5
= control target key start
LH: loop header
LB: loop body
LE: loop exit
PB: predicated region body
PF: predicated region fallthrough
CT: control target
= control target key end

     0   :  { %s1020_s12 = smov 0   ;;  %s1344_s0 = inlined_call_operand.vmem [shape: bf16[2,28,28,32], index: 0, kind: input, shape index: {}]   ;;  %s1345_s1 = inlined_call_operand.vmem [shape: bf16[288,16], index: 1, kind: input, shape index: {}]   ;;  %s1346_s2 = inlined_call_operand.vmem [shape: f32[1,16], index: 2, kind: input, shape index: {}]   ;;  %s1347_s3 = inlined_call_operand.vmem [shape: bf16[2,26,26,16], index: 3, kind: output, shape index: {}]  }
   0x1 LB: > { %s804_s13 = sadd.s32 4294967295, %s994_s12   ;;  %p808_p0 = scmp.ge.s32.totalorder %s994_s12, 1  ;;  %s994_s12 = sphi %s1020_s12, %s13_s12  }
   0x2   : > { %p137_p1 = scmp.lt.s32.totalorder %s994_s12, 3 }
   0x4   : > { %p138_p2 = pnand %p808_p0, %p137_p1 }
   0x5   : > { %p161_p3 = scmp.lt.s32.totalorder (!%p138_p2), %s804_s13, 1  ;;  %s1223_s22 = smov (!%p138_p2), 0  }
   0x6   : > { %141 = sbr.rel (%p138_p2) target bundleno = 247 (0xf7), region = 32 }
   0xb   : > { %v1031_v0 = vld [vmem:[%s1345_s1] sm:$0xf]  ;;  %v1036_v1 = vld [vmem:[%s1345_s1] sm:$0xf0]  ;;  %v1041_v2 = vld [vmem:[%s1345_s1 + $0x8] sm:$0xf] }
   0xc   : > { %1348 = vst [vmem:[#allocation2_spill] sm:$0xff] %v1031_v0  ;;  %v1046_v3 = vld [vmem:[%s1345_s1 + $0x8] sm:$0xf0]  ;;  %v1051_v4 = vld [vmem:[%s1345_s1 + $0x10] sm:$0xf]  ;;  %s1365_s13 = smov (!%p161_p3, %s804_s13), 1 }
   0xd   : > { %1349 = vst [vmem:[#allocation3_spill] sm:$0xff] %v1036_v1  ;;  %v1056_v5 = vld [vmem:[%s1345_s1 + $0x10] sm:$0xf0]  ;;  %v1061_v6 = vld [vmem:[%s1345_s1 + $0x18] sm:$0xf]  ;;  %s965_s7 = smul.u32 448, %s1365_s13 }
   0xe   : > { %1350 = vst [vmem:[#allocation4_spill] sm:$0xff] %v1041_v2  ;;  %v1066_v7 = vld [vmem:[%s1345_s1 + $0x18] sm:$0xf0]  ;;  %v1071_v8 = vld [vmem:[%s1345_s1 + $0x20] sm:$0xf]  ;;  %s966_s14 = smul.u32 416, %s1365_s13 }
   0xf   : > { %1351 = vst [vmem:[#allocation5_spill] sm:$0xff] %v1046_v3  ;;  %v1076_v9 = vld [vmem:[%s1345_s1 + $0x20] sm:$0xf0]  ;;  %v1081_v10 = vld [vmem:[%s1345_s1 + $0x28] sm:$0xf]  ;;  %s1101_s21 = scalar_lea.vmem %s1344_s0, %s965_s7 }
  0x10   : > { %1352 = vst [vmem:[#allocation6_spill] sm:$0xff] %v1051_v4  ;;  %v1086_v11 = vld [vmem:[%s1345_s1 + $0x28] sm:$0xf0]  ;;  %v1091_v12 = vld [vmem:[%s1345_s1 + $0x30] sm:$0xf]  ;;  %s1121_s29 = scalar_lea.vmem %s1347_s3, %s966_s14 }
  0x11   : > { %1353 = vst [vmem:[#allocation7_spill] sm:$0xff] %v1056_v5  ;;  %v1096_v13 = vld [vmem:[%s1345_s1 + $0x30] sm:$0xf0]  ;;  %v1106_v14 = vld [vmem:[%s1345_s1 + $0x38] sm:$0xf] }
  0x12   : > { %1354 = vst [vmem:[#allocation8_spill] sm:$0xff] %v1061_v6  ;;  %v1111_v15 = vld [vmem:[%s1345_s1 + $0x38] sm:$0xf0]  ;;  %v1116_v16 = vld [vmem:[%s1345_s1 + $0x40] sm:$0xf] }
  0x13   : > { %1355 = vst [vmem:[#allocation9_spill] sm:$0xff] %v1066_v7  ;;  %v1126_v17 = vld [vmem:[%s1345_s1 + $0x40] sm:$0xf0]  ;;  %v1131_v18 = vld [vmem:[%s1345_s1 + $0x48] sm:$0xf] }
  0x14   : > { %v1136_v19 = vld [vmem:[%s1345_s1 + $0x48] sm:$0xf0]  ;;  %v1141_v20 = vld [vmem:[%s1345_s1 + $0x50] sm:$0xf]  ;;  %v1146_v21 = vld [vmem:[%s1345_s1 + $0x50] sm:$0xf0] }
  0x15   : > { %v1151_v22 = vld [vmem:[%s1345_s1 + $0x58] sm:$0xf]  ;;  %v1156_v23 = vld [vmem:[%s1345_s1 + $0x58] sm:$0xf0]  ;;  %v1161_v24 = vld [vmem:[%s1345_s1 + $0x60] sm:$0xf] }
  0x16   : > { %v1166_v25 = vld [vmem:[%s1345_s1 + $0x60] sm:$0xf0]  ;;  %v1171_v26 = vld [vmem:[%s1345_s1 + $0x68] sm:$0xf]  ;;  %v1176_v27 = vld [vmem:[%s1345_s1 + $0x68] sm:$0xf0] }
  0x17   : > { %v1181_v28 = vld [vmem:[%s1345_s1 + $0x70] sm:$0xf]  ;;  %v1186_v29 = vld [vmem:[%s1345_s1 + $0x70] sm:$0xf0]  ;;  %v1191_v30 = vld [vmem:[%s1345_s1 + $0x78] sm:$0xf] }
  0x18   : > { %v1196_v31 = vld [vmem:[%s1345_s1 + $0x78] sm:$0xf0]  ;;  %v1201_v32 = vld [vmem:[%s1345_s1 + $0x80] sm:$0xf]  ;;  %v1206_v33 = vld [vmem:[%s1345_s1 + $0x80] sm:$0xf0] }
  0x19   : > { %v1211_v34 = vld [vmem:[%s1345_s1 + $0x88] sm:$0xf]  ;;  %v1216_v35 = vld [vmem:[%s1345_s1 + $0x88] sm:$0xf0]  ;;  %v1221_v36 = vld [vmem:[%s1346_s2] ss:$0 sm:$0xff] }
  0x1a LB: >> { %v1356_v2 = vld [vmem:[#allocation4_spill] sm:$0xff]  ;;  %v1357_v3 = vld [vmem:[#allocation5_spill] sm:$0xff]  ;;  %v840_v38 = vor.u32 %v1086_v11, %v1081_v10  ;;  %v855_v39 = vor.u32 %v1111_v15, %v1106_v14  ;;  %v1358_v0 = vld [vmem:[#allocation2_spill] sm:$0xff]  ;;  %s938_s23 = sshll.u32 %s998_s22, 4  ;;  %v836_v42 = vor.u32 %v1076_v9, %v1071_v8  ;;  %v851_v45 = vor.u32 %v1096_v13, %v1091_v12  ;;  %s217_s22 = sadd.s32 1, %s998_s22   ;;  %s998_s22 = sphi %s1223_s22, %s217_s22  }
  0x1b   : >> { %v820_v37 = vor.u32 %v1357_v3, %v1356_v2  ;;  %v1359_v1 = vld [vmem:[#allocation3_spill] sm:$0xff]  ;;  %s1240_s13 = scalar_lea.vmem %s1101_s21, %s938_s23  ;;  %v1360_v6 = vld [vmem:[#allocation8_spill] sm:$0xff]  ;;  %v1361_v7 = vld [vmem:[#allocation9_spill] sm:$0xff]  ;;  %v866_v46 = vor.u32 %v1136_v19, %v1131_v18  ;;  %vm247_vm0 = vcmask 261120   ;;  %v892_v55 = vor.u32 %v1176_v27, %v1171_v26  ;;  %s1329_s24 = scalar_lea.vmem %s1121_s29, %s938_s23 }
  0x1c   : >> { %v816_v40 = vor.u32 %v1359_v1, %v1358_v0  ;;  %369 = vmatpush.bf16.msra.mxu2 %v840_v38  ;;  %428 = vmatpush.bf16.msra.mxu3 %v855_v39  ;;  %v830_v41 = vor.u32 %v1361_v7, %v1360_v6  ;;  %v223_v43 = vld [vmem:[%s1240_s13 + $0x8] sm:$0xf]  ;;  %v224_v44 = vld [vmem:[%s1240_s13 + $0xc] sm:$0x1]  ;;  %v952_v50 = vld [vmem:[%s1240_s13] sm:$0xf0]  ;;  %v903_v56 = vor.u32 %v1196_v31, %v1191_v30 }
  0x1d   : >> { %260 = vmatpush.bf16.msra.mxu0 %v820_v37  ;;  %963 = vmatpush.bf16.msra.mxu1 %v820_v37  ;;  %v231_v47 = vunpack.c.l.b16 %v223_v43  ;;  %v232_v48 = vunpack.c.l.b16 %v224_v44  ;;  %v277_v49 = vld [vmem:[%s1240_s13 + $0xc] sm:$0x3]  ;;  %v941_v51 = vld [vmem:[%s1240_s13] sm:$0xff]   ;;  %v846_v57 = vld [vmem:[%s1240_s13 + $0x18] sm:$0xf]  ;;  %vm341_vm1 = vcmask 1046528   ;;  %v862_v60 = vor.u32 %v1126_v17, %v1116_v16 }
  0x1e   : >> { %v279_v52 = vunpack.c.l.b16 %v277_v49  ;;  %v953_v53 = vld [vmem:[%s1240_s13] sm:$0xe]  ;;  %v1363_v5 = vld [vmem:[#allocation7_spill] sm:$0xff]  ;;  %v858_v61 = vld [vmem:[%s1240_s13 + $0x1c] sm:$0x3]  ;;  %v400_v37 = vunpack.c.l.b16 %v846_v57  ;;  %v877_v39 = vor.u32 %v1156_v23, %v1151_v22  ;;  %v888_v43 = vor.u32 %v1166_v25, %v1161_v24  ;;  %p214_p4 = scmp.ge.s32.totalorder %s217_s22, 26  }
  0x1f   : >> { %v1362_v4 = vld [vmem:[#allocation6_spill] sm:$0xff]  ;;  %v234_v58 = vpack.c.b16 %v232_v48, %v231_v47  ;;  %v954_v59 = vor.u32 %v953_v53, %v952_v50  ;;  %v955_v63 = vld [vmem:[%s1240_s13 + $0x10] sm:$0xff]   ;;  %v447_v38 = vunpack.c.l.b16 %v858_v61  ;;  %v873_v49 = vor.u32 %v1146_v21, %v1141_v20 }
  0x20   : >> { %v826_v54 = vor.u32 %v1363_v5, %v1362_v4  ;;  %370 = vmatpush.bf16.msra.mxu2 %v836_v42  ;;  %v1266_v62 = vpack.c.b16 %v279_v52, %v231_v47  ;;  %429 = vmatpush.bf16.msra.mxu3 %v851_v45  ;;  %v914_v42 = vor.u32 %v1216_v35, %v1211_v34  ;;  %v451_v45 = vshll.u32 %v955_v63, 16 }
  0x21   : >> { %261 = vmatpush.bf16.msra.mxu0 %v816_v40  ;;  %964 = vmatpush.bf16.msra.mxu1 %v816_v40  ;;  %v284_v40 = vshll.u32 %v941_v51, 16  ;;  %v899_v47 = vor.u32 %v1186_v29, %v1181_v28  ;;  %v282_v50 = vshrl.u32 %v941_v51, 16  ;;  %v449_v53 = vshrl.u32 %v955_v63, 16 }
  0x22   : >> { %v343_v44 = vrot.slane %v1266_v62, 1  ;;  %v910_v57 = vor.u32 %v1206_v33, %v1201_v32  ;;  %vm281_vm2 = vsmask.f32 7424  ;;  %vm728_vm3 = vcmask 125952  }
  0x23   : >> { %856 = vmatmul.msk.bf16.vlgmr.msra.gmra.mxu3 %vm247_vm0, %v955_v63  ;;  %v286_v52 = vrot.slane %v284_v40, 1  ;;  %vm732_vm4 = vcmask 122880  }
  0x24   : >> { %821 = vmatmul.msk.bf16.vlgmr.msra.gmra.mxu0 %vm247_vm0, %v941_v51  ;;  %822 = vmatmul.msk.bf16.vlgmr.msra.gmra.mxu1 %vm247_vm0, %v234_v58  ;;  %v847_v58 = vld [vmem:[%s1240_s13 + $0x1c] sm:$0x1] }
  0x25   : >> { %320 = vmatpush.bf16.msrb.mxu1 %v830_v41  ;;  %487 = vmatpush.bf16.msrb.mxu0 %v866_v46  ;;  %v342_v41 = vrot.slane %v954_v59, 1  ;;  %v1278_v46 = vpack.c.b16 %v447_v38, %v400_v37  ;;  %v287_v51 = vor.u32 %v286_v52, %v282_v50  ;;  %v401_v63 = vunpack.c.l.b16 %v847_v58  ;;  %v883_v38 = vld [vmem:[%s1240_s13 + $0x28] sm:$0xf] }
  0x26   : >> { %594 = vmatpush.bf16.msrb.mxu2 %v892_v55  ;;  %653 = vmatpush.bf16.msrb.mxu3 %v903_v56  ;;  %v453_v55 = vrot.slane %v451_v45, 1  ;;  %v289_v56 = vshll.u32 %v1266_v62, 16 }
  0x27   : >> { %v344_v48 = vsel %vm341_vm1, %v342_v41, %v343_v44 }
  0x28   : >> { %841 = vmatmul.msk.bf16.vlgmr.msra.gmra.mxu2 %vm247_vm0, %v344_v48  ;;  %v454_v59 = vor.u32 %v453_v55, %v449_v53  ;;  %v293_v53 = vshrl.u32 %v1266_v62, 16  ;;  %v460_v55 = vshrl.u32 %v1278_v46, 16 }
  0x29   : >> { %321 = vmatpush.bf16.msrb.mxu1 %v826_v54  ;;  %488 = vmatpush.bf16.msrb.mxu0 %v862_v60  ;;  %v456_v54 = vshll.u32 %v1278_v46, 16  ;;  %v291_v60 = vrot.slane %v289_v56, 1 }
  0x2a   : >> { %595 = vmatpush.bf16.msrb.mxu2 %v888_v43  ;;  %654 = vmatpush.bf16.msrb.mxu3 %v899_v47  ;;  %v566_v43 = vunpack.c.l.b16 %v883_v38  ;;  %v959_v47 = vld [vmem:[%s1240_s13 + $0x20] sm:$0xff]  }
  0x2b   : >> { %v458_v61 = vrot.slane %v456_v54, 1  ;;  %v292_v40 = vsel %vm281_vm2, %v287_v51, %v291_v60  ;;  %v617_v48 = vshll.u32 %v959_v47, 16  ;;  %v615_v50 = vshrl.u32 %v959_v47, 16  ;;  %v961_v38 = vld [vmem:[%s1240_s13 + $0x20] sm:$0xe] }
  0x2d   : >> { %535 = vmatpush.bf16.msra.mxu1 %v877_v39  ;;  %701 = vmatpush.bf16.msra.mxu0 %v914_v42  ;;  %v895_v39 = vld [vmem:[%s1240_s13 + $0x2c] sm:$0x3]  ;;  %v459_v41 = vsel %vm281_vm2, %v454_v59, %v458_v61  ;;  %v403_v42 = vpack.c.b16 %v401_v63, %v400_v37  ;;  %v619_v52 = vrot.slane %v617_v48, 1  ;;  %v462_v58 = vor.u32 %v460_v55, %v458_v61  ;;  %v957_v59 = vld [vmem:[%s1240_s13 + $0x10] sm:$0xe] }
  0x2e   : >> { %v613_v45 = vunpack.c.l.b16 %v895_v39  ;;  %v960_v63 = vld [vmem:[%s1240_s13 + $0x20] sm:$0xf0] }
  0x2f   : >> { %v620_v56 = vor.u32 %v619_v52, %v615_v50  ;;  %v962_v39 = vor.u32 %v961_v38, %v960_v63 }
  0x31   : >> { %536 = vmatpush.bf16.msra.mxu1 %v873_v49  ;;  %702 = vmatpush.bf16.msra.mxu0 %v910_v57  ;;  %v614_v49 = vpack.c.b16 %v613_v45, %v566_v43  ;;  %v295_v57 = vor.u32 %v293_v53, %v291_v60  ;;  %v509_v60 = vrot.slane %v1278_v46, 1  ;;  %v674_v61 = vrot.slane %v962_v39, 1 }
  0x33   : >> { %857 = vmatmul.msk.bf16.gmra.mxu3 %vm247_vm0, %v403_v42  ;;  %v622_v37 = vshll.u32 %v614_v49, 16  ;;  %v884_v42 = vld [vmem:[%s1240_s13 + $0x2c] sm:$0x1]  ;;  %v626_v45 = vshrl.u32 %v614_v49, 16 }
  0x34   : >> { %831 = vmatmul.msk.bf16.vlgmr.msrb.gmra.mxu1 %vm247_vm0, %v292_v40  ;;  %867 = vmatmul.msk.bf16.vlgmr.msrb.gmra.mxu0 %vm247_vm0, %v459_v41  ;;  %v675_v41 = vrot.slane %v614_v49, 1  ;;  %v567_v48 = vunpack.c.l.b16 %v884_v42 }
  0x35   : >> { %v624_v54 = vrot.slane %v622_v37, 1 }
  0x36   : >> { %v676_v52 = vsel %vm341_vm1, %v674_v61, %v675_v41 }
  0x37   : >> { %v625_v51 = vsel %vm281_vm2, %v620_v56, %v624_v54  ;;  %v628_v37 = vor.u32 %v626_v45, %v624_v54 }
  0x38   : >> { %842 = vmatmul.msk.bf16.gmra.mxu2 %vm247_vm0, %v343_v44  ;;  %v956_v44 = vld [vmem:[%s1240_s13 + $0x10] sm:$0xf0] }
  0x39   : >> { %v958_v62 = vor.u32 %v957_v59, %v956_v44 }
  0x3b   : >> { %v508_v40 = vrot.slane %v958_v62, 1 }
  0x3d   : >> { %v510_v50 = vsel %vm341_vm1, %v508_v40, %v509_v60 }
  0x43   : >> { %904 = vmatmul.msk.bf16.vlgmr.msrb.gmra.mxu3 %vm247_vm0, %v625_v51 }
  0x44   : >> { %832 = vmatmul.msk.bf16.gmra.mxu1 %vm247_vm0, %v295_v57  ;;  %868 = vmatmul.msk.bf16.gmra.mxu0 %vm247_vm0, %v462_v58 }
  0x48   : >> { %893 = vmatmul.msk.bf16.vlgmr.msrb.gmra.mxu2 %vm247_vm0, %v959_v47  ;;  %v569_v47 = vpack.c.b16 %v567_v48, %v566_v43 }
  0x53   : >> { %905 = vmatmul.msk.bf16.gmra.mxu3 %vm247_vm0, %v628_v37 }
  0x54   : >> { %878 = vmatmul.msk.bf16.vlgmr.msra.gmra.mxu1 %vm247_vm0, %v510_v50  ;;  %915 = vmatmul.msk.bf16.vlgmr.msra.gmra.mxu0 %vm247_vm0, %v676_v52 }
  0x58   : >> { %894 = vmatmul.msk.bf16.gmra.mxu2 %vm247_vm0, %v569_v47 }
  0x64   : >> { %879 = vmatmul.msk.bf16.gmra.mxu1 %vm247_vm0, %v509_v60  ;;  %916 = vmatmul.msk.bf16.gmra.mxu0 %vm247_vm0, %v675_v41 }
  0xa1   : >> { %v263_v46 = vpop.f32.mrf.mxu0  ;;  %v268_v49 = vpop.f32.mrf.mxu1 }
  0xa2   : >> { %v273_v40 = vadd.f32 %v1221_v36, %v263_v46  ;;  %v275_v46 = vadd.f32 %v1221_v36, %v268_v49 }
  0xa6   : >> { %v431_v56 = vpop.f32.mrf.mxu3 }
  0xa9   : >> { %v265_v53 = vpop.f32.mrf.mxu0  ;;  %v270_v55 = vpop.f32.mrf.mxu1 }
  0xaa   : >> { %v274_v50 = vadd.f32 %v1221_v36, %v265_v53 }
  0xab   : >> { %v372_v57 = vpop.f32.mrf.mxu2 }
  0xae   : >> { %v433_v51 = vpop.f32.mrf.mxu3 }
  0xb1   : >> { %v323_v54 = vpop.f32.mrf.mxu1  ;;  %v490_v58 = vpop.f32.mrf.mxu0 }
  0xb2   : >> { %v333_v61 = vadd.f32 %v323_v54, %v273_v40 }
  0xb3   : >> { %v374_v44 = vpop.f32.mrf.mxu2 }
  0xb4   : >> { %v382_v42 = vadd.f32 %v372_v57, %v333_v61 }
  0xb6   : >> { %v436_v38 = vpop.f32.mrf.mxu3  ;;  %v441_v52 = vadd.f32 %v431_v56, %v382_v42 }
  0xb8   : >> { %v500_v1 = vadd.f32 %v490_v58, %v441_v52  ;;  %v276_v58 = vadd.f32 %v1221_v36, %v270_v55 }
  0xb9   : >> { %v325_v59 = vpop.f32.mrf.mxu1  ;;  %v492_v43 = vpop.f32.mrf.mxu0 }
  0xba   : >> { %v334_v37 = vadd.f32 %v325_v59, %v274_v50 }
  0xbb   : >> { %v377_v63 = vpop.f32.mrf.mxu2 }
  0xbc   : >> { %v383_v2 = vadd.f32 %v374_v44, %v334_v37 }
  0xbe   : >> { %v438_v41 = vpop.f32.mrf.mxu3  ;;  %v442_v54 = vadd.f32 %v433_v51, %v383_v2 }
  0xc0   : >> { %v501_v7 = vadd.f32 %v492_v43, %v442_v54 }
  0xc1   : >> { %v328_v62 = vpop.f32.mrf.mxu1  ;;  %v495_v39 = vpop.f32.mrf.mxu0 }
  0xc2   : >> { %v335_v40 = vadd.f32 %v328_v62, %v275_v46 }
  0xc3   : >> { %v379_v60 = vpop.f32.mrf.mxu2 }
  0xc4   : >> { %v384_v53 = vadd.f32 %v377_v63, %v335_v40 }
  0xc6   : >> { %v656_v0 = vpop.f32.mrf.mxu3  ;;  %v443_v2 = vadd.f32 %v436_v38, %v384_v53 }
  0xc8   : >> { %v502_v49 = vadd.f32 %v495_v39, %v443_v2 }
  0xc9   : >> { %v330_v45 = vpop.f32.mrf.mxu1  ;;  %v497_v48 = vpop.f32.mrf.mxu0 }
  0xcb   : >> { %v597_v47 = vpop.f32.mrf.mxu2 }
  0xce   : >> { %v658_v59 = vpop.f32.mrf.mxu3 }
  0xd1   : >> { %v538_v3 = vpop.f32.mrf.mxu1  ;;  %v704_v4 = vpop.f32.mrf.mxu0 }
  0xd2   : >> { %v548_v5 = vadd.f32 %v538_v3, %v500_v1  ;;  %v336_v3 = vadd.f32 %v330_v45, %v276_v58 }
  0xd3   : >> { %v599_v6 = vpop.f32.mrf.mxu2 }
  0xd4   : >> { %v607_v57 = vadd.f32 %v597_v47, %v548_v5  ;;  %v385_v51 = vadd.f32 %v379_v60, %v336_v3 }
  0xd6   : >> { %v666_v61 = vadd.f32 %v656_v0, %v607_v57  ;;  %v661_v52 = vpop.f32.mrf.mxu3  ;;  %v444_v37 = vadd.f32 %v438_v41, %v385_v51 }
  0xd8   : >> { %v714_v56 = vadd.f32 %v704_v4, %v666_v61 }
  0xd9   : >> { %v540_v42 = vpop.f32.mrf.mxu1  ;;  %v706_v1 = vpop.f32.mrf.mxu0 }
  0xda   : >> { %v718_v44 = vmax.f32 %v714_v56, 0.0  ;;  %v549_v50 = vadd.f32 %v540_v42, %v501_v7 }
  0xdb   : >> { %v602_v55 = vpop.f32.mrf.mxu2 }
  0xdc   : >> { %v722_v5 = vpack.c.bf16 %v718_v44, %v718_v44  ;;  %v608_v0 = vadd.f32 %v599_v6, %v549_v50  ;;  %v503_v6 = vadd.f32 %v497_v48, %v444_v37 }
  0xde   : >> { %729 = vst.msk [vmem:[%s1329_s24] sm:$0xf] %vm728_vm3, %v722_v5  ;;  %v667_v4 = vadd.f32 %v658_v59, %v608_v0  ;;  %v663_v56 = vpop.f32.mrf.mxu3 }
  0xe0   : >> { %v715_v43 = vadd.f32 %v706_v1, %v667_v4 }
  0xe1   : >> { %v543_v63 = vpop.f32.mrf.mxu1  ;;  %v709_v38 = vpop.f32.mrf.mxu0 }
  0xe2   : >> { %v719_v7 = vmax.f32 %v715_v43, 0.0  ;;  %v550_v62 = vadd.f32 %v543_v63, %v502_v49 }
  0xe3   : >> { %v604_v57 = vpop.f32.mrf.mxu2 }
  0xe4   : >> { %v723_v47 = vpack.c.bf16 %v719_v7, %v719_v7  ;;  %v609_v46 = vadd.f32 %v602_v55, %v550_v62 }
  0xe6   : >> { %730 = vst.msk [vmem:[%s1329_s24 + $0x4] sm:$0xf] %vm728_vm3, %v723_v47  ;;  %v668_v45 = vadd.f32 %v661_v52, %v609_v46 }
  0xe8   : >> { %v716_v54 = vadd.f32 %v709_v38, %v668_v45 }
  0xe9   : >> { %v545_v40 = vpop.f32.mrf.mxu1  ;;  %v711_v41 = vpop.f32.mrf.mxu0 }
  0xea   : >> { %v720_v39 = vmax.f32 %v716_v54, 0.0  ;;  %v551_v60 = vadd.f32 %v545_v40, %v503_v6 }
  0xec   : >> { %v724_v61 = vpack.c.bf16 %v720_v39, %v720_v39  ;;  %v610_v53 = vadd.f32 %v604_v57, %v551_v60 }
  0xee   : >> { %731 = vst.msk [vmem:[%s1329_s24 + $0x8] sm:$0xf] %vm728_vm3, %v724_v61  ;;  %v669_v59 = vadd.f32 %v663_v56, %v610_v53 }
  0xf0   : >> { %v717_v42 = vadd.f32 %v711_v41, %v669_v59 }
  0xf2   : >> { %v721_v58 = vmax.f32 %v717_v42, 0.0  ;;  %216 = sbr.rel (!%p214_p4) target bundleno = 26 (0x1a), region = 73 }
  0xf4   : >> { %v725_v44 = vpack.c.bf16 %v721_v58, %v721_v58 }
  0xf6   : >> { %733 = vst.msk [vmem:[%s1329_s24 + $0xc] sm:$0x1] %vm732_vm4, %v725_v44 }
  0xf7 PF: > { %s13_s12 = sadd.s32 1, %s994_s12  }
  0xf8   : > { %p10_p5 = scmp.ge.s32.totalorder %s13_s12, 4  }
  0xfa   :  { %12 = sbr.rel (!%p10_p5) target bundleno = 1 (0x1), region = 84 }

// kernel: cnn_forward.6
= control target key start
LH: loop header
LB: loop body
LE: loop exit
PB: predicated region body
PF: predicated region fallthrough
CT: control target
= control target key end

     0   :  { %s1894_s12 = smov 0   ;;  %s2416_s0 = inlined_call_operand.vmem [shape: bf16[2,26,26,16], index: 0, kind: input, shape index: {}]   ;;  %s2417_s1 = inlined_call_operand.vmem [shape: bf16[400,32], index: 1, kind: input, shape index: {}]   ;;  %s2418_s2 = inlined_call_operand.vmem [shape: f32[1,32], index: 2, kind: input, shape index: {}]   ;;  %s2419_s3 = inlined_call_operand.vmem [shape: bf16[2,22,22,32], index: 3, kind: output, shape index: {}]  }
   0x1 LB: > { %s1541_s13 = sadd.s32 4294967295, %s1868_s12   ;;  %p1545_p0 = scmp.ge.s32.totalorder %s1868_s12, 1  ;;  %s1868_s12 = sphi %s1894_s12, %s13_s12  }
   0x2   : > { %p137_p1 = scmp.lt.s32.totalorder %s1868_s12, 3 }
   0x4   : > { %p138_p2 = pnand %p1545_p0, %p137_p1 }
   0x5   : > { %p161_p3 = scmp.lt.s32.totalorder (!%p138_p2), %s1541_s13, 1  ;;  %s2167_s25 = smov (!%p138_p2), 0  }
   0x6   : > { %141 = sbr.rel (%p138_p2) target bundleno = 383 (0x17f), region = 32 }
   0xb   : > { %v1905_v0 = vld [vmem:[%s2417_s1] sm:$0xf]  ;;  %v1910_v1 = vld [vmem:[%s2417_s1] sm:$0xf0]  ;;  %v1915_v2 = vld [vmem:[%s2417_s1 + $0x8] sm:$0xf] }
   0xc   : > { %2421 = vst [vmem:[#allocation2_spill] sm:$0xff] %v1905_v0  ;;  %v1920_v3 = vld [vmem:[%s2417_s1 + $0x8] sm:$0xf0]  ;;  %v1925_v4 = vld [vmem:[%s2417_s1 + $0x10] sm:$0xf]  ;;  %s2481_s13 = smov (!%p161_p3, %s1541_s13), 1 }
   0xd   : > { %2422 = vst [vmem:[#allocation3_spill] sm:$0xff] %v1910_v1  ;;  %v1930_v5 = vld [vmem:[%s2417_s1 + $0x10] sm:$0xf0]  ;;  %v1935_v6 = vld [vmem:[%s2417_s1 + $0x18] sm:$0xf]  ;;  %s1839_s7 = smul.u32 416, %s2481_s13 }
   0xe   : > { %2423 = vst [vmem:[#allocation4_spill] sm:$0xff] %v1915_v2  ;;  %v1940_v7 = vld [vmem:[%s2417_s1 + $0x18] sm:$0xf0]  ;;  %v1945_v8 = vld [vmem:[%s2417_s1 + $0x20] sm:$0xf]  ;;  %s1840_s14 = smul.u32 264, %s2481_s13 }
   0xf   : > { %2424 = vst [vmem:[#allocation5_spill] sm:$0xff] %v1920_v3  ;;  %v1950_v9 = vld [vmem:[%s2417_s1 + $0x20] sm:$0xf0]  ;;  %v1955_v10 = vld [vmem:[%s2417_s1 + $0x28] sm:$0xf]  ;;  %s1975_s21 = scalar_lea.vmem %s2416_s0, %s1839_s7 }
  0x10   : > { %2425 = vst [vmem:[#allocation6_spill] sm:$0xff] %v1925_v4  ;;  %v1960_v11 = vld [vmem:[%s2417_s1 + $0x28] sm:$0xf0]  ;;  %v1965_v12 = vld [vmem:[%s2417_s1 + $0x30] sm:$0xf]  ;;  %s1995_s29 = scalar_lea.vmem %s2419_s3, %s1840_s14 }
  0x11   : > { %2426 = vst [vmem:[#allocation7_spill] sm:$0xff] %v1930_v5  ;;  %v1970_v13 = vld [vmem:[%s2417_s1 + $0x30] sm:$0xf0]  ;;  %v1980_v14 = vld [vmem:[%s2417_s1 + $0x38] sm:$0xf] }
  0x12   : > { %2427 = vst [vmem:[#allocation8_spill] sm:$0xff] %v1935_v6  ;;  %v1985_v15 = vld [vmem:[%s2417_s1 + $0x38] sm:$0xf0]  ;;  %v1990_v16 = vld [vmem:[%s2417_s1 + $0x40] sm:$0xf] }
  0x13   : > { %2428 = vst [vmem:[#allocation9_spill] sm:$0xff] %v1940_v7  ;;  %v2000_v17 = vld [vmem:[%s2417_s1 + $0x40] sm:$0xf0]  ;;  %v2005_v18 = vld [vmem:[%s2417_s1 + $0x48] sm:$0xf] }
  0x14   : > { %2429 = vst [vmem:[#allocation10_spill] sm:$0xff] %v1945_v8  ;;  %v2010_v19 = vld [vmem:[%s2417_s1 + $0x48] sm:$0xf0]  ;;  %v2015_v20 = vld [vmem:[%s2417_s1 + $0x50] sm:$0xf] }
  0x15   : > { %2430 = vst [vmem:[#allocation11_spill] sm:$0xff] %v1950_v9  ;;  %v2020_v21 = vld [vmem:[%s2417_s1 + $0x50] sm:$0xf0]  ;;  %v2025_v22 = vld [vmem:[%s2417_s1 + $0x58] sm:$0xf] }
  0x16   : > { %2431 = vst [vmem:[#allocation12_spill] sm:$0xff] %v1955_v10  ;;  %v2030_v23 = vld [vmem:[%s2417_s1 + $0x58] sm:$0xf0]  ;;  %v2035_v24 = vld [vmem:[%s2417_s1 + $0x60] sm:$0xf] }
  0x17   : > { %2432 = vst [vmem:[#allocation13_spill] sm:$0xff] %v1960_v11  ;;  %v2040_v25 = vld [vmem:[%s2417_s1 + $0x60] sm:$0xf0]  ;;  %v2045_v26 = vld [vmem:[%s2417_s1 + $0x68] sm:$0xf] }
  0x18   : > { %2433 = vst [vmem:[#allocation14_spill] sm:$0xff] %v1965_v12  ;;  %v2050_v27 = vld [vmem:[%s2417_s1 + $0x68] sm:$0xf0]  ;;  %v2055_v28 = vld [vmem:[%s2417_s1 + $0x70] sm:$0xf] }
  0x19   : > { %2434 = vst [vmem:[#allocation15_spill] sm:$0xff] %v1970_v13  ;;  %v2060_v29 = vld [vmem:[%s2417_s1 + $0x70] sm:$0xf0]  ;;  %v2065_v30 = vld [vmem:[%s2417_s1 + $0x78] sm:$0xf] }
  0x1a   : > { %2435 = vst [vmem:[#allocation16_spill] sm:$0xff] %v1980_v14  ;;  %v2070_v31 = vld [vmem:[%s2417_s1 + $0x78] sm:$0xf0]  ;;  %v2075_v32 = vld [vmem:[%s2417_s1 + $0x80] sm:$0xf] }
  0x1b   : > { %2436 = vst [vmem:[#allocation17_spill] sm:$0xff] %v1985_v15  ;;  %v2080_v33 = vld [vmem:[%s2417_s1 + $0x80] sm:$0xf0]  ;;  %v2085_v34 = vld [vmem:[%s2417_s1 + $0x88] sm:$0xf] }
  0x1c   : > { %2437 = vst [vmem:[#allocation18_spill] sm:$0xff] %v1990_v16  ;;  %v2090_v35 = vld [vmem:[%s2417_s1 + $0x88] sm:$0xf0]  ;;  %v2095_v36 = vld [vmem:[%s2417_s1 + $0x90] sm:$0xf] }
  0x1d   : > { %2438 = vst [vmem:[#allocation19_spill] sm:$0xff] %v2000_v17  ;;  %v2100_v37 = vld [vmem:[%s2417_s1 + $0x90] sm:$0xf0]  ;;  %v2105_v38 = vld [vmem:[%s2417_s1 + $0x98] sm:$0xf] }
  0x1e   : > { %2439 = vst [vmem:[#allocation20_spill] sm:$0xff] %v2005_v18  ;;  %v2110_v39 = vld [vmem:[%s2417_s1 + $0x98] sm:$0xf0]  ;;  %v2115_v40 = vld [vmem:[%s2417_s1 + $0xa0] sm:$0xf] }
  0x1f   : > { %2440 = vst [vmem:[#allocation21_spill] sm:$0xff] %v2010_v19  ;;  %v2120_v41 = vld [vmem:[%s2417_s1 + $0xa0] sm:$0xf0]  ;;  %v2125_v42 = vld [vmem:[%s2417_s1 + $0xa8] sm:$0xf] }
  0x20   : > { %2441 = vst [vmem:[#allocation22_spill] sm:$0xff] %v2015_v20  ;;  %v2130_v43 = vld [vmem:[%s2417_s1 + $0xa8] sm:$0xf0]  ;;  %v2135_v44 = vld [vmem:[%s2417_s1 + $0xb0] sm:$0xf] }
  0x21   : > { %2442 = vst [vmem:[#allocation23_spill] sm:$0xff] %v2020_v21  ;;  %v2140_v45 = vld [vmem:[%s2417_s1 + $0xb0] sm:$0xf0]  ;;  %v2145_v46 = vld [vmem:[%s2417_s1 + $0xb8] sm:$0xf] }
  0x22   : > { %2443 = vst [vmem:[#allocation24_spill] sm:$0xff] %v2025_v22  ;;  %v2150_v47 = vld [vmem:[%s2417_s1 + $0xb8] sm:$0xf0]  ;;  %v2155_v48 = vld [vmem:[%s2417_s1 + $0xc0] sm:$0xf] }
  0x23   : > { %2444 = vst [vmem:[#allocation25_spill] sm:$0xff] %v2030_v23  ;;  %v2160_v49 = vld [vmem:[%s2417_s1 + $0xc0] sm:$0xf0]  ;;  %v2165_v50 = vld [vmem:[%s2418_s2] ss:$0 sm:$0xff] }
  0x24   : > { %2445 = vst [vmem:[#allocation26_spill] sm:$0xff] %v2035_v24 }
  0x25   : > { %2446 = vst [vmem:[#allocation27_spill] sm:$0xff] %v2040_v25 }
  0x26   : > { %2447 = vst [vmem:[#allocation28_spill] sm:$0xff] %v2045_v26 }
  0x27   : > { %2448 = vst [vmem:[#allocation29_spill] sm:$0xff] %v2050_v27 }
  0x28   : > { %2449 = vst [vmem:[#allocation30_spill] sm:$0xff] %v2055_v28 }
  0x29 LB: >> { %v2450_v0 = vld [vmem:[#allocation2_spill] sm:$0xff]  ;;  %v2451_v1 = vld [vmem:[#allocation3_spill] sm:$0xff]  ;;  %v2452_v2 = vld [vmem:[#allocation4_spill] sm:$0xff]  ;;  %s1792_s26 = sshll.u32 %s1872_s25, 4  ;;  %vm252_vm0 = vcmask 130048   ;;  %vm336_vm1 = vcmask 1046528   ;;  %s1872_s25 = sphi %s2167_s25, %s231_s25  }
  0x2a   : >> { %v1553_v51 = vor.u32 %v2451_v1, %v2450_v0  ;;  %v2453_v3 = vld [vmem:[#allocation5_spill] sm:$0xff]  ;;  %v2454_v4 = vld [vmem:[#allocation6_spill] sm:$0xff]  ;;  %v2455_v5 = vld [vmem:[#allocation7_spill] sm:$0xff]  ;;  %s2188_s27 = scalar_lea.vmem %s1975_s21, %s1792_s26  ;;  %vm387_vm2 = vsmask.f32 6400  ;;  %vm442_vm3 = vcmask 1045504  }
  0x2b   : >> { %v1559_v52 = vor.u32 %v2453_v3, %v2452_v2  ;;  %v1565_v53 = vor.u32 %v2455_v5, %v2454_v4  ;;  %v2456_v6 = vld [vmem:[#allocation8_spill] sm:$0xff]  ;;  %v2457_v7 = vld [vmem:[#allocation9_spill] sm:$0xff]  ;;  %v2458_v8 = vld [vmem:[#allocation10_spill] sm:$0xff]  ;;  %vm284_vm4 = vsmask.f32 7424  ;;  %s1798_s28 = smul.u32 12, %s1872_s25 }
  0x2c   : >> { %v1575_v54 = vor.u32 %v2457_v7, %v2456_v6  ;;  %v2459_v9 = vld [vmem:[#allocation11_spill] sm:$0xff]  ;;  %266 = vmatpush.bf16.msra.mxu0 %v1553_v51  ;;  %1838 = vmatpush.bf16.msra.mxu1 %v1553_v51  ;;  %v2460_v12 = vld [vmem:[#allocation14_spill] sm:$0xff]  ;;  %v2462_v14 = vld [vmem:[#allocation16_spill] sm:$0xff]  ;;  %vm1460_vm5 = vcmask 257024   ;;  %vm1463_vm6 = vcmask 256000   ;;  %s231_s25 = sadd.s32 1, %s1872_s25  }
  0x2d   : >> { %v1581_v55 = vor.u32 %v2459_v9, %v2458_v8  ;;  %v2461_v13 = vld [vmem:[#allocation15_spill] sm:$0xff]  ;;  %v2463_v15 = vld [vmem:[#allocation17_spill] sm:$0xff]  ;;  %359 = vmatpush.bf16.msra.mxu2 %v1565_v53  ;;  %v2464_v16 = vld [vmem:[#allocation18_spill] sm:$0xff]  ;;  %s1459_s30 = scalar_lea.vmem %s1995_s29, %s1798_s28  ;;  %p228_p4 = scmp.ge.s32.totalorder %s231_s25, 22  }
  0x2e   : >> { %v1598_v56 = vor.u32 %v2461_v13, %v2460_v12  ;;  %v1605_v57 = vor.u32 %v2463_v15, %v2462_v14  ;;  %v2465_v17 = vld [vmem:[#allocation19_spill] sm:$0xff]  ;;  %v1800_v59 = vld [vmem:[%s2188_s27] sm:$0xff]   ;;  %424 = vmatpush.bf16.msra.mxu3 %v1575_v54  ;;  %v2466_v10 = vld [vmem:[#allocation12_spill] sm:$0xff] }
  0x2f   : >> { %v1619_v58 = vor.u32 %v2465_v17, %v2464_v16  ;;  %v237_v60 = vld [vmem:[%s2188_s27 + $0x8] sm:$0x7]  ;;  %v1819_v61 = vld [vmem:[%s2188_s27] sm:$0xf0]  ;;  %1554 = vmatmul.msk.bf16.vlgmr.msra.gmra.mxu0 %vm252_vm0, %v1800_v59  ;;  %v1820_v51 = vld [vmem:[%s2188_s27] sm:$0xe] }
  0x30   : >> { %318 = vmatpush.bf16.msrb.mxu1 %v1559_v52  ;;  %465 = vmatpush.bf16.msrb.mxu0 %v1581_v55  ;;  %v243_v62 = vunpack.c.l.b16 %v237_v60  ;;  %v280_v63 = vld [vmem:[%s2188_s27 + $0x4] sm:$0xff]   ;;  %v1821_v52 = vor.u32 %v1820_v51, %v1819_v61  ;;  %v373_v1 = vld [vmem:[%s2188_s27] sm:$0xe]  ;;  %v1793_v2 = vld [vmem:[%s2188_s27 + $0x8] sm:$0x10]  ;;  %v287_v51 = vshll.u32 %v1800_v59, 16 }
  0x31   : >> { %564 = vmatpush.bf16.msrb.mxu2 %v1598_v56  ;;  %v282_v0 = vunpack.c.h.b16 %v280_v63  ;;  %v1570_v53 = vld [vmem:[%s2188_s27 + $0x8] sm:$0xf]  ;;  %v382_v3 = vunpack.c.l.b16 %v280_v63  ;;  %v2467_v11 = vld [vmem:[#allocation13_spill] sm:$0xff]  ;;  %v381_v55 = vunpack.c.l.b16 %v373_v1  ;;  %v438_v60 = vld [vmem:[%s2188_s27] sm:$0xc] }
  0x32   : >> { %604 = vmatpush.bf16.msrb.mxu3 %v1605_v57  ;;  %v1591_v4 = vor.u32 %v2467_v11, %v2466_v10  ;;  %v245_v54 = vpack.c.b16 %v243_v62, %v243_v62  ;;  %v2203_v5 = vor.u32 %v1793_v2, %v1570_v53  ;;  %v337_v7 = vrot.slane %v1821_v52, 1  ;;  %v2468_v20 = vld [vmem:[#allocation22_spill] sm:$0xff]  ;;  %v2469_v21 = vld [vmem:[#allocation23_spill] sm:$0xff]  ;;  %v2470_v22 = vld [vmem:[#allocation24_spill] sm:$0xff] }
  0x33   : >> { %v2206_v6 = vpack.c.b16 %v282_v0, %v282_v0  ;;  %v440_v56 = vunpack.c.l.b16 %v438_v60  ;;  %v385_v61 = vpack.c.b16 %v382_v3, %v381_v55  ;;  %v285_v60 = vshrl.u32 %v1800_v59, 16  ;;  %v2471_v23 = vld [vmem:[#allocation25_spill] sm:$0xff]  ;;  %v2472_v18 = vld [vmem:[#allocation20_spill] sm:$0xff]  ;;  %v2474_v24 = vld [vmem:[#allocation26_spill] sm:$0xff] }
  0x34   : >> { %668 = vmatpush.bf16.msra.mxu0 %v1619_v58  ;;  %1555 = vmatmul.msk.bf16.vlgmr.msra.gmra.mxu1 %vm252_vm0, %v245_v54  ;;  %v397_v63 = vshrl.u32 %v2203_v5, 16  ;;  %v400_v57 = vshll.u32 %v2203_v5, 16  ;;  %v289_v9 = vrot.slane %v287_v51, 1  ;;  %v444_v11 = vrot.slane %v2203_v5, 2  ;;  %v2473_v19 = vld [vmem:[#allocation21_spill] sm:$0xff]  ;;  %v2475_v25 = vld [vmem:[#allocation27_spill] sm:$0xff] }
  0x35   : >> { %v338_v58 = vrot.slane %v2206_v6, 1  ;;  %v441_v62 = vpack.c.b16 %v382_v3, %v440_v56  ;;  %513 = vmatpush.bf16.msra.mxu1 %v1591_v4  ;;  %v389_v1 = vshrl.u32 %v385_v61, 16  ;;  %v392_v2 = vshll.u32 %v385_v61, 16  ;;  %v2476_v28 = vld [vmem:[#allocation30_spill] sm:$0xff]  ;;  %v2477_v26 = vld [vmem:[#allocation28_spill] sm:$0xff]  ;;  %v2478_v27 = vld [vmem:[#allocation29_spill] sm:$0xff] }
  0x36   : >> { %v399_v53 = vrot.slane %v397_v63, 1  ;;  %v402_v0 = vrot.slane %v400_v57, 2  ;;  %v292_v3 = vshll.u32 %v2206_v6, 16  ;;  %v1636_v63 = vor.u32 %v2469_v21, %v2468_v20  ;;  %v1835_v14 = vld [vmem:[%s2188_s27 + $0x40] sm:$0xf0] }
  0x37   : >> { %v339_v52 = vsel %vm336_vm1, %v337_v7, %v338_v58  ;;  %v391_v54 = vrot.slane %v389_v1, 1  ;;  %v394_v55 = vrot.slane %v392_v2, 2  ;;  %v443_v10 = vrot.slane %v441_v62, 2  ;;  %v1822_v62 = vld [vmem:[%s2188_s27 + $0x10] sm:$0xff]   ;;  %v1836_v15 = vld [vmem:[%s2188_s27 + $0x40] sm:$0xe] }
  0x38   : >> { %1566 = vmatmul.msk.bf16.vlgmr.msra.gmra.mxu2 %vm252_vm0, %v339_v52  ;;  %v403_v8 = vor.u32 %v402_v0, %v399_v53  ;;  %v290_v7 = vor.u32 %v289_v9, %v285_v60  ;;  %v294_v61 = vrot.slane %v292_v3, 1  ;;  %v1643_v5 = vor.u32 %v2471_v23, %v2470_v22  ;;  %v2226_v9 = vld [vmem:[%s2188_s27 + $0x14] sm:$0xff]   ;;  %v1608_v1 = vld [vmem:[%s2188_s27 + $0x10] sm:$0xe] }
  0x39   : >> { %v395_v4 = vor.u32 %v394_v55, %v391_v54  ;;  %v445_v59 = vsel %vm442_vm3, %v443_v10, %v444_v11  ;;  %756 = vmatpush.bf16.msra.mxu2 %v1636_v63  ;;  %v529_v10 = vunpack.c.h.b16 %v2226_v9  ;;  %v1626_v51 = vor.u32 %v2473_v19, %v2472_v18  ;;  %v1614_v54 = vld [vmem:[%s2188_s27 + $0x18] sm:$0xf]  ;;  %v1794_v55 = vld [vmem:[%s2188_s27 + $0x18] sm:$0x10]  ;;  %v1823_v63 = vld [vmem:[%s2188_s27 + $0x10] sm:$0xf0] }
  0x3a   : >> { %v295_v57 = vsel %vm284_vm4, %v290_v7, %v294_v61  ;;  %v533_v53 = vshll.u32 %v1822_v62, 16  ;;  %v1650_v0 = vor.u32 %v2475_v25, %v2474_v24  ;;  %v626_v52 = vunpack.c.l.b16 %v1608_v1 }
  0x3b   : >> { %v404_v56 = vsel %vm387_vm2, %v395_v4, %v403_v8  ;;  %v530_v2 = vpack.c.b16 %v529_v10, %v529_v10  ;;  %v2420_v60 = vunpack.c.l.b16 %v2226_v9  ;;  %v296_v3 = vshrl.u32 %v2206_v6, 16 }
  0x3c   : >> { %1576 = vmatmul.msk.bf16.vlgmr.msra.gmra.mxu3 %vm252_vm0, %v404_v56  ;;  %v531_v4 = vshrl.u32 %v1822_v62, 16  ;;  %v535_v56 = vrot.slane %v533_v53, 1 }
  0x3d   : >> { %807 = vmatpush.bf16.msra.mxu3 %v1643_v5  ;;  %v538_v7 = vshll.u32 %v530_v2, 16  ;;  %v1824_v5 = vld [vmem:[%s2188_s27 + $0x10] sm:$0xe] }
  0x3e   : >> { %v536_v10 = vor.u32 %v535_v56, %v531_v4  ;;  %v1825_v12 = vor.u32 %v1824_v5, %v1823_v63  ;;  %v2266_v63 = vld [vmem:[%s2188_s27 + $0x24] sm:$0xff]   ;;  %v1587_v5 = vld [vmem:[%s2188_s27 + $0x18] sm:$0x7] }
  0x3f   : >> { %1582 = vmatmul.msk.bf16.vlgmr.msrb.gmra.mxu0 %vm252_vm0, %v445_v59  ;;  %v2244_v59 = vor.u32 %v1794_v55, %v1614_v54 }
  0x40   : >> { %847 = vmatpush.bf16.msrb.mxu0 %v1650_v0  ;;  %v582_v13 = vrot.slane %v1825_v12, 1  ;;  %v542_v12 = vshrl.u32 %v530_v2, 16 }
  0x41   : >> { %v641_v6 = vshrl.u32 %v2244_v59, 16  ;;  %v644_v53 = vshll.u32 %v2244_v59, 16 }
  0x43   : >> { %v643_v55 = vrot.slane %v641_v6, 1 }
  0x44   : >> { %1560 = vmatmul.msk.bf16.vlgmr.msrb.gmra.mxu1 %vm252_vm0, %v295_v57  ;;  %v298_v57 = vor.u32 %v296_v3, %v294_v61 }
  0x45   : >> { %708 = vmatpush.bf16.msrb.mxu1 %v1626_v51  ;;  %v540_v51 = vrot.slane %v538_v7, 1  ;;  %v1671_v7 = vor.u32 %v2060_v29, %v2476_v28 }
  0x48   : >> { %1567 = vmatmul.msk.bf16.gmra.mxu2 %vm252_vm0, %v338_v58  ;;  %v630_v58 = vpack.c.b16 %v2420_v60, %v626_v52  ;;  %v646_v60 = vrot.slane %v644_v53, 2 }
  0x4a   : >> { %v633_v1 = vshrl.u32 %v630_v58, 16  ;;  %v636_v0 = vshll.u32 %v630_v58, 16  ;;  %v647_v3 = vor.u32 %v646_v60, %v643_v55  ;;  %v1681_v58 = vor.u32 %v2070_v31, %v2065_v30  ;;  %v1622_v55 = vld [vmem:[%s2188_s27 + $0x10] sm:$0xc] }
  0x4b   : >> { %v1664_v60 = vor.u32 %v2478_v27, %v2477_v26 }
  0x4c   : >> { %1577 = vmatmul.msk.bf16.gmra.mxu3 %vm252_vm0, %v403_v8  ;;  %v541_v8 = vsel %vm284_vm4, %v536_v10, %v540_v51  ;;  %v635_v52 = vrot.slane %v633_v1, 1  ;;  %v638_v54 = vrot.slane %v636_v0, 2  ;;  %v1826_v10 = vld [vmem:[%s2188_s27 + $0x20] sm:$0xff]  }
  0x4d   : >> { %v774_v6 = vshrl.u32 %v1826_v10, 16 }
  0x4e   : >> { %v639_v61 = vor.u32 %v638_v54, %v635_v52  ;;  %v1827_v52 = vld [vmem:[%s2188_s27 + $0x20] sm:$0xf0]  ;;  %v1828_v54 = vld [vmem:[%s2188_s27 + $0x20] sm:$0xe] }
  0x4f   : >> { %1583 = vmatmul.msk.bf16.gmra.mxu0 %vm252_vm0, %v444_v11  ;;  %v583_v11 = vrot.slane %v530_v2, 1  ;;  %v1688_v2 = vor.u32 %v2080_v33, %v2075_v32 }
  0x50   : >> { %v648_v56 = vsel %vm387_vm2, %v639_v61, %v647_v3  ;;  %v1829_v61 = vor.u32 %v1828_v54, %v1827_v52  ;;  %v1726_v54 = vor.u32 %v2120_v41, %v2115_v40 }
  0x51   : >> { %v584_v4 = vsel %vm336_vm1, %v582_v13, %v583_v11  ;;  %v544_v13 = vor.u32 %v542_v12, %v540_v51  ;;  %v776_v51 = vshll.u32 %v1826_v10, 16 }
  0x53   : >> { %v778_v53 = vrot.slane %v776_v51, 1 }
  0x54   : >> { %1561 = vmatmul.msk.bf16.gmra.mxu1 %vm252_vm0, %v298_v57  ;;  %v772_v57 = vunpack.c.h.b16 %v2266_v63 }
  0x56   : >> { %v773_v1 = vpack.c.b16 %v772_v57, %v772_v57  ;;  %v1632_v57 = vld [vmem:[%s2188_s27 + $0x28] sm:$0x7] }
  0x58   : >> { %1599 = vmatmul.msk.bf16.vlgmr.msrb.gmra.mxu2 %vm252_vm0, %v541_v8  ;;  %v781_v8 = vshll.u32 %v773_v1, 16  ;;  %v826_v12 = vrot.slane %v773_v1, 1 }
  0x59   : >> { %951 = vmatpush.bf16.msrb.mxu2 %v1671_v7 }
  0x5a   : >> { %v783_v7 = vrot.slane %v781_v8, 1  ;;  %v870_v8 = vunpack.c.l.b16 %v2266_v63 }
  0x5c   : >> { %1606 = vmatmul.msk.bf16.vlgmr.msrb.gmra.mxu3 %vm252_vm0, %v584_v4  ;;  %v684_v4 = vunpack.c.l.b16 %v1622_v55 }
  0x5d   : >> { %999 = vmatpush.bf16.msrb.mxu3 %v1681_v58 }
  0x5f   : >> { %1620 = vmatmul.msk.bf16.vlgmr.msra.gmra.mxu0 %vm252_vm0, %v648_v56  ;;  %v779_v56 = vor.u32 %v778_v53, %v774_v6  ;;  %v785_v6 = vshrl.u32 %v773_v1, 16  ;;  %v1667_v53 = vld [vmem:[%s2188_s27 + $0x20] sm:$0xc] }
  0x60   : >> { %1050 = vmatpush.bf16.msra.mxu0 %v1688_v2  ;;  %v927_v52 = vunpack.c.l.b16 %v1667_v53 }
  0x61   : >> { %v787_v55 = vor.u32 %v785_v6, %v783_v7 }
  0x62   : >> { %v928_v1 = vpack.c.b16 %v870_v8, %v927_v52 }
  0x64   : >> { %1592 = vmatmul.msk.bf16.vlgmr.msra.gmra.mxu1 %vm252_vm0, %v1822_v62  ;;  %v491_v62 = vunpack.c.l.b16 %v1587_v5  ;;  %v687_v5 = vrot.slane %v2244_v59, 2  ;;  %v929_v63 = vrot.slane %v928_v1, 2 }
  0x65   : >> { %911 = vmatpush.bf16.msra.mxu1 %v1664_v60 }
  0x66   : >> { %v493_v0 = vpack.c.b16 %v491_v62, %v491_v62  ;;  %v1709_v62 = vor.u32 %v2100_v37, %v2095_v36 }
  0x68   : >> { %1600 = vmatmul.msk.bf16.gmra.mxu2 %vm252_vm0, %v544_v13  ;;  %v784_v13 = vsel %vm284_vm4, %v779_v56, %v783_v7  ;;  %v2305_v56 = vld [vmem:[%s2188_s27 + $0x34] sm:$0xff]  }
  0x6c   : >> { %1607 = vmatmul.msk.bf16.gmra.mxu3 %vm252_vm0, %v583_v11  ;;  %v825_v11 = vrot.slane %v1829_v61, 1  ;;  %v1659_v61 = vld [vmem:[%s2188_s27 + $0x28] sm:$0xf] }
  0x6e   : >> { %v827_v60 = vsel %vm336_vm1, %v825_v11, %v826_v12  ;;  %v1653_v11 = vld [vmem:[%s2188_s27 + $0x20] sm:$0xe] }
  0x6f   : >> { %1621 = vmatmul.msk.bf16.gmra.mxu0 %vm252_vm0, %v647_v3  ;;  %v2479_v3 = vunpack.c.l.b16 %v2226_v9  ;;  %v734_v9 = vunpack.c.l.b16 %v1632_v57 }
  0x71   : >> { %v685_v58 = vpack.c.b16 %v2479_v3, %v684_v4  ;;  %v736_v59 = vpack.c.b16 %v734_v9, %v734_v9  ;;  %v1795_v4 = vld [vmem:[%s2188_s27 + $0x28] sm:$0x10] }
  0x72   : >> { %v1660_v3 = vor.u32 %v1795_v4, %v1659_v61 }
  0x73   : >> { %v686_v2 = vrot.slane %v685_v58, 2  ;;  %v1015_v58 = vunpack.c.h.b16 %v2305_v56 }
  0x74   : >> { %1593 = vmatmul.msk.bf16.gmra.mxu1 %vm252_vm0, %v493_v0  ;;  %v1695_v0 = vor.u32 %v2090_v35, %v2085_v34  ;;  %v884_v53 = vshrl.u32 %v1660_v3, 16  ;;  %v887_v52 = vshll.u32 %v1660_v3, 16 }
  0x75   : >> { %v688_v51 = vsel %vm442_vm3, %v686_v2, %v687_v5  ;;  %v930_v2 = vrot.slane %v1660_v3, 2  ;;  %v2312_v7 = vpack.c.b16 %v1015_v58, %v1015_v58  ;;  %v1698_v58 = vld [vmem:[%s2188_s27 + $0x30] sm:$0xe]  ;;  %v1740_v3 = vor.u32 %v2140_v45, %v2135_v44 }
  0x76   : >> { %v889_v61 = vrot.slane %v887_v52, 2 }
  0x77   : >> { %v931_v9 = vsel %vm442_vm3, %v929_v63, %v930_v2  ;;  %v1677_v63 = vld [vmem:[%s2188_s27 + $0x38] sm:$0x7] }
  0x78   : >> { %1637 = vmatmul.msk.bf16.vlgmr.msra.gmra.mxu2 %vm252_vm0, %v1826_v10  ;;  %v1716_v10 = vor.u32 %v2110_v39, %v2105_v38 }
  0x79   : >> { %1154 = vmatpush.bf16.msra.mxu2 %v1709_v62 }
  0x7c   : >> { %1644 = vmatmul.msk.bf16.vlgmr.msra.gmra.mxu3 %vm252_vm0, %v784_v13  ;;  %v1830_v13 = vld [vmem:[%s2188_s27 + $0x30] sm:$0xff]  }
  0x7d   : >> { %1194 = vmatpush.bf16.msra.mxu3 %v1716_v10  ;;  %v1019_v57 = vshll.u32 %v1830_v13, 16  ;;  %v1017_v10 = vshrl.u32 %v1830_v13, 16 }
  0x7f   : >> { %1651 = vmatmul.msk.bf16.vlgmr.msrb.gmra.mxu0 %vm252_vm0, %v827_v60  ;;  %v869_v60 = vunpack.c.l.b16 %v1653_v11 }
  0x80   : >> { %1242 = vmatpush.bf16.msrb.mxu0 %v1726_v54 }
  0x81   : >> { %v873_v62 = vpack.c.b16 %v870_v8, %v869_v60 }
  0x83   : >> { %v879_v6 = vshll.u32 %v873_v62, 16 }
  0x84   : >> { %1627 = vmatmul.msk.bf16.vlgmr.msrb.gmra.mxu1 %vm252_vm0, %v688_v51  ;;  %v1021_v51 = vrot.slane %v1019_v57, 1  ;;  %v1112_v57 = vunpack.c.l.b16 %v1698_v58 }
  0x85   : >> { %1090 = vmatpush.bf16.msrb.mxu1 %v1695_v0  ;;  %v876_v0 = vshrl.u32 %v873_v62, 16  ;;  %v1113_v62 = vunpack.c.l.b16 %v2305_v56 }
  0x87   : >> { %v878_v8 = vrot.slane %v876_v0, 1  ;;  %v1116_v0 = vpack.c.b16 %v1113_v62, %v1112_v57 }
  0x88   : >> { %1638 = vmatmul.msk.bf16.gmra.mxu2 %vm252_vm0, %v736_v59  ;;  %v1024_v59 = vshll.u32 %v2312_v7, 16 }
  0x89   : >> { %v1119_v52 = vshrl.u32 %v1116_v0, 16 }
  0x8a   : >> { %v1026_v54 = vrot.slane %v1024_v59, 1  ;;  %v1733_v59 = vor.u32 %v2130_v43, %v2125_v42 }
  0x8b   : >> { %v1121_v58 = vrot.slane %v1119_v52, 1 }
  0x8c   : >> { %1645 = vmatmul.msk.bf16.gmra.mxu3 %vm252_vm0, %v787_v55  ;;  %v886_v55 = vrot.slane %v884_v53, 1  ;;  %v1028_v53 = vshrl.u32 %v2312_v7, 16 }
  0x8e   : >> { %v890_v1 = vor.u32 %v889_v61, %v886_v55  ;;  %v1712_v55 = vld [vmem:[%s2188_s27 + $0x30] sm:$0xc]  ;;  %v1030_v61 = vor.u32 %v1028_v53, %v1026_v54 }
  0x8f   : >> { %1652 = vmatmul.msk.bf16.gmra.mxu0 %vm252_vm0, %v826_v12  ;;  %v1022_v12 = vor.u32 %v1021_v51, %v1017_v10  ;;  %v1796_v10 = vld [vmem:[%s2188_s27 + $0x38] sm:$0x10]  ;;  %v1754_v51 = vor.u32 %v2150_v47, %v2145_v46  ;;  %v1832_v53 = vld [vmem:[%s2188_s27 + $0x30] sm:$0xe] }
  0x91   : >> { %v1027_v4 = vsel %vm284_vm4, %v1022_v12, %v1026_v54  ;;  %v1122_v12 = vshll.u32 %v1116_v0, 16 }
  0x94   : >> { %1628 = vmatmul.msk.bf16.gmra.mxu1 %vm252_vm0, %v687_v5  ;;  %v881_v5 = vrot.slane %v879_v6, 2 }
  0x96   : >> { %v882_v11 = vor.u32 %v881_v5, %v878_v8 }
  0x98   : >> { %1672 = vmatmul.msk.bf16.vlgmr.msrb.gmra.mxu2 %vm252_vm0, %v931_v9  ;;  %v891_v60 = vsel %vm387_vm2, %v882_v11, %v890_v1  ;;  %v1704_v9 = vld [vmem:[%s2188_s27 + $0x38] sm:$0xf] }
  0x99   : >> { %1333 = vmatpush.bf16.msrb.mxu2 %v1740_v3  ;;  %v2334_v6 = vor.u32 %v1796_v10, %v1704_v9 }
  0x9b   : >> { %v1127_v8 = vshrl.u32 %v2334_v6, 16  ;;  %v1130_v5 = vshll.u32 %v2334_v6, 16  ;;  %v1173_v0 = vrot.slane %v2334_v6, 2  ;;  %v1069_v6 = vrot.slane %v2312_v7, 1  ;;  %v1722_v7 = vld [vmem:[%s2188_s27 + $0x48] sm:$0x7] }
  0x9c   : >> { %1682 = vmatmul.msk.bf16.vlgmr.msrb.gmra.mxu3 %vm252_vm0, %v1830_v13  ;;  %v977_v13 = vunpack.c.l.b16 %v1677_v63  ;;  %v1170_v63 = vunpack.c.l.b16 %v1712_v55 }
  0x9d   : >> { %1397 = vmatpush.bf16.msrb.mxu3 %v1754_v51  ;;  %v1129_v3 = vrot.slane %v1127_v8, 1 }
  0x9e   : >> { %v979_v56 = vpack.c.b16 %v977_v13, %v977_v13  ;;  %v1171_v10 = vpack.c.b16 %v1113_v62, %v1170_v63  ;;  %v2356_v62 = vld [vmem:[%s2188_s27 + $0x40] sm:$0xff]  }
  0x9f   : >> { %1689 = vmatmul.msk.bf16.vlgmr.msra.gmra.mxu0 %vm252_vm0, %v1027_v4  ;;  %v1761_v4 = vor.u32 %v2160_v49, %v2155_v48  ;;  %v1743_v63 = vld [vmem:[%s2188_s27 + $0x40] sm:$0xe] }
  0xa1   : >> { %1437 = vmatpush.bf16.msra.mxu0 %v1761_v4 }
  0xa4   : >> { %1665 = vmatmul.msk.bf16.vlgmr.msra.gmra.mxu1 %vm252_vm0, %v891_v60  ;;  %v1132_v60 = vrot.slane %v1130_v5, 2 }
  0xa5   : >> { %1293 = vmatpush.bf16.msra.mxu1 %v1733_v59  ;;  %v1172_v59 = vrot.slane %v1171_v10, 2 }
  0xa6   : >> { %v1133_v54 = vor.u32 %v1132_v60, %v1129_v3  ;;  %v1729_v60 = vld [vmem:[%s2188_s27 + $0x44] sm:$0xff]  }
  0xa7   : >> { %v1174_v8 = vsel %vm442_vm3, %v1172_v59, %v1173_v0  ;;  %v1356_v59 = vunpack.c.l.b16 %v1729_v60 }
  0xa8   : >> { %1673 = vmatmul.msk.bf16.gmra.mxu2 %vm252_vm0, %v930_v2  ;;  %v1124_v2 = vrot.slane %v1122_v12, 2 }
  0xaa   : >> { %v1125_v9 = vor.u32 %v1124_v2, %v1121_v58 }
  0xac   : >> { %1683 = vmatmul.msk.bf16.gmra.mxu3 %vm252_vm0, %v979_v56  ;;  %v268_v11 = vpop.f32.mrf.mxu0  ;;  %v1134_v51 = vsel %vm387_vm2, %v1125_v9, %v1133_v54  ;;  %v1831_v56 = vld [vmem:[%s2188_s27 + $0x30] sm:$0xf0] }
  0xad   : >> { %v1833_v12 = vor.u32 %v1832_v53, %v1831_v56  ;;  %v1749_v53 = vld [vmem:[%s2188_s27 + $0x48] sm:$0xf] }
  0xaf   : >> { %1690 = vmatmul.msk.bf16.gmra.mxu0 %vm252_vm0, %v1030_v61  ;;  %v1068_v55 = vrot.slane %v1833_v12, 1  ;;  %v277_v61 = vadd.f32 %v2165_v50, %v268_v11  ;;  %v1355_v11 = vunpack.c.l.b16 %v1743_v63 }
  0xb1   : >> { %v2345_v57 = vpop.f32.mrf.mxu1  ;;  %v1070_v2 = vsel %vm336_vm1, %v1068_v55, %v1069_v6  ;;  %v1220_v55 = vunpack.c.l.b16 %v1722_v7 }
  0xb3   : >> { %v1222_v16 = vpack.c.b16 %v1220_v55, %v1220_v55 }
  0xb4   : >> { %1666 = vmatmul.msk.bf16.gmra.mxu1 %vm252_vm0, %v890_v1  ;;  %v270_v13 = vpop.f32.mrf.mxu0 }
  0xb5   : >> { %v278_v12 = vadd.f32 %v2165_v50, %v270_v13 }
  0xb8   : >> { %1710 = vmatmul.msk.bf16.vlgmr.msra.gmra.mxu2 %vm252_vm0, %v1134_v51 }
  0xb9   : >> { %v275_v52 = vpop.f32.mrf.mxu1 }
  0xba   : >> { %v1797_v52 = vld [vmem:[%s2188_s27 + $0x48] sm:$0x10] }
  0xbb   : >> { %v361_v5 = vpop.f32.mrf.mxu2  ;;  %v2375_v63 = vor.u32 %v1797_v52, %v1749_v53  ;;  %v279_v53 = vadd.f32 %v2165_v50, %v2345_v57  ;;  %v1262_v57 = vshll.u32 %v2356_v62, 16 }
  0xbc   : >> { %1717 = vmatmul.msk.bf16.vlgmr.msra.gmra.mxu3 %vm252_vm0, %v1174_v8  ;;  %v467_v1 = vpop.f32.mrf.mxu0 }
  0xbf   : >> { %v426_v4 = vpop.f32.mrf.mxu3  ;;  %1727 = vmatmul.msk.bf16.vlgmr.msrb.gmra.mxu0 %vm252_vm0, %v2356_v62 }
  0xc1   : >> { %v320_v58 = vpop.f32.mrf.mxu1 }
  0xc2   : >> { %v329_v3 = vadd.f32 %v320_v58, %v277_v61  ;;  %v1258_v58 = vunpack.c.h.b16 %v1729_v60  ;;  %v1370_v60 = vshrl.u32 %v2375_v63, 16 }
  0xc3   : >> { %v363_v9 = vpop.f32.mrf.mxu2 }
  0xc4   : >> { %v370_v10 = vadd.f32 %v361_v5, %v329_v3  ;;  %1696 = vmatmul.msk.bf16.vlgmr.msrb.gmra.mxu1 %vm252_vm0, %v1070_v2  ;;  %v469_v51 = vpop.f32.mrf.mxu0  ;;  %v1359_v2 = vpack.c.b16 %v1356_v59, %v1355_v11  ;;  %v2378_v17 = vpack.c.b16 %v1258_v58, %v1258_v58  ;;  %v1373_v11 = vshll.u32 %v2375_v63, 16 }
  0xc6   : >> { %v435_v56 = vadd.f32 %v426_v4, %v370_v10  ;;  %v1365_v7 = vshll.u32 %v1359_v2, 16  ;;  %v1375_v18 = vrot.slane %v1373_v11, 2  ;;  %v1267_v11 = vshll.u32 %v2378_v17, 16 }
  0xc7   : >> { %v428_v8 = vpop.f32.mrf.mxu3 }
  0xc8   : >> { %1711 = vmatmul.msk.bf16.gmra.mxu2 %vm252_vm0, %v1133_v54  ;;  %v2371_v61 = vadd.f32 %v467_v1, %v435_v56  ;;  %v1837_v54 = vor.u32 %v1836_v15, %v1835_v14  ;;  %v1362_v1 = vshrl.u32 %v1359_v2, 16  ;;  %v1757_v56 = vld [vmem:[%s2188_s27 + $0x40] sm:$0xc]  ;;  %v1367_v2 = vrot.slane %v1365_v7, 2 }
  0xc9   : >> { %v322_v5 = vpop.f32.mrf.mxu1  ;;  %v1413_v15 = vunpack.c.l.b16 %v1757_v56 }
  0xca   : >> { %v330_v3 = vadd.f32 %v322_v5, %v278_v12  ;;  %v1311_v55 = vrot.slane %v1837_v54, 1  ;;  %v1312_v5 = vrot.slane %v2378_v17, 1  ;;  %v1364_v14 = vrot.slane %v1362_v1, 1 }
  0xcb   : >> { %v366_v4 = vpop.f32.mrf.mxu2  ;;  %v1260_v1 = vshrl.u32 %v2356_v62, 16  ;;  %v1269_v62 = vrot.slane %v1267_v11, 1 }
  0xcc   : >> { %v371_v10 = vadd.f32 %v363_v9, %v330_v3  ;;  %1718 = vmatmul.msk.bf16.gmra.mxu3 %vm252_vm0, %v1173_v0  ;;  %v472_v13 = vpop.f32.mrf.mxu0  ;;  %v1372_v3 = vrot.slane %v1370_v60, 1  ;;  %v1264_v60 = vrot.slane %v1262_v57, 1 }
  0xce   : >> { %v436_v12 = vadd.f32 %v428_v8, %v371_v10  ;;  %v1368_v10 = vor.u32 %v1367_v2, %v1364_v14  ;;  %v1376_v54 = vor.u32 %v1375_v18, %v1372_v3 }
  0xcf   : >> { %v431_v52 = vpop.f32.mrf.mxu3  ;;  %1728 = vmatmul.msk.bf16.gmra.mxu0 %vm252_vm0, %v1222_v16  ;;  %v1313_v16 = vsel %vm336_vm1, %v1311_v55, %v1312_v5 }
  0xd0   : >> { %v477_v9 = vadd.f32 %v469_v51, %v436_v12  ;;  %v1414_v51 = vpack.c.b16 %v1356_v59, %v1413_v15  ;;  %v1265_v59 = vor.u32 %v1264_v60, %v1260_v1 }
  0xd1   : >> { %v325_v0 = vpop.f32.mrf.mxu1 }
  0xd2   : >> { %v331_v58 = vadd.f32 %v325_v0, %v279_v53  ;;  %v1377_v53 = vsel %vm387_vm2, %v1368_v10, %v1376_v54  ;;  %v1270_v55 = vsel %vm284_vm4, %v1265_v59, %v1269_v62 }
  0xd3   : >> { %v368_v19 = vpop.f32.mrf.mxu2 }
  0xd4   : >> { %v372_v20 = vadd.f32 %v366_v4, %v331_v58  ;;  %1697 = vmatmul.msk.bf16.gmra.mxu1 %vm252_vm0, %v1069_v6  ;;  %v474_v8 = vpop.f32.mrf.mxu0  ;;  %v1415_v4 = vrot.slane %v1414_v51, 2  ;;  %v1416_v6 = vrot.slane %v2375_v63, 2 }
  0xd6   : >> { %v437_v12 = vadd.f32 %v431_v52, %v372_v20  ;;  %v1417_v20 = vsel %vm442_vm3, %v1415_v4, %v1416_v6 }
  0xd7   : >> { %v433_v56 = vpop.f32.mrf.mxu3 }
  0xd8   : >> { %1741 = vmatmul.msk.bf16.vlgmr.msrb.gmra.mxu2 %vm252_vm0, %v1313_v16  ;;  %v478_v7 = vadd.f32 %v472_v13, %v437_v12  ;;  %v1271_v12 = vshrl.u32 %v2378_v17, 16 }
  0xd9   : >> { %v327_v19 = vpop.f32.mrf.mxu1 }
  0xda   : >> { %v1273_v60 = vor.u32 %v1271_v12, %v1269_v62 }
  0xdb   : >> { %v566_v0 = vpop.f32.mrf.mxu2 }
  0xdc   : >> { %1755 = vmatmul.msk.bf16.vlgmr.msrb.gmra.mxu3 %vm252_vm0, %v1377_v53  ;;  %v670_v18 = vpop.f32.mrf.mxu0 }
  0xdf   : >> { %v606_v52 = vpop.f32.mrf.mxu3  ;;  %1762 = vmatmul.msk.bf16.vlgmr.msra.gmra.mxu0 %vm252_vm0, %v1417_v20 }
  0xe1   : >> { %v515_v13 = vpop.f32.mrf.mxu1 }
  0xe2   : >> { %v524_v63 = vadd.f32 %v515_v13, %v2371_v61 }
  0xe3   : >> { %v568_v14 = vpop.f32.mrf.mxu2 }
  0xe4   : >> { %v575_v15 = vadd.f32 %v566_v0, %v524_v63  ;;  %1734 = vmatmul.msk.bf16.vlgmr.msra.gmra.mxu1 %vm252_vm0, %v1270_v55  ;;  %v672_v58 = vpop.f32.mrf.mxu0 }
  0xe6   : >> { %v615_v2 = vadd.f32 %v606_v52, %v575_v15 }
  0xe7   : >> { %v608_v3 = vpop.f32.mrf.mxu3 }
  0xe8   : >> { %1742 = vmatmul.msk.bf16.gmra.mxu2 %vm252_vm0, %v1312_v5  ;;  %v679_v57 = vadd.f32 %v670_v18, %v615_v2 }
  0xe9   : >> { %v517_v8 = vpop.f32.mrf.mxu1 }
  0xea   : >> { %v525_v16 = vadd.f32 %v517_v8, %v477_v9 }
  0xeb   : >> { %v571_v51 = vpop.f32.mrf.mxu2 }
  0xec   : >> { %v576_v10 = vadd.f32 %v568_v14, %v525_v16  ;;  %1756 = vmatmul.msk.bf16.gmra.mxu3 %vm252_vm0, %v1376_v54  ;;  %v675_v1 = vpop.f32.mrf.mxu0 }
  0xee   : >> { %v616_v61 = vadd.f32 %v608_v3, %v576_v10 }
  0xef   : >> { %v611_v56 = vpop.f32.mrf.mxu3  ;;  %1763 = vmatmul.msk.bf16.gmra.mxu0 %vm252_vm0, %v1416_v6 }
  0xf0   : >> { %v680_v19 = vadd.f32 %v672_v58, %v616_v61 }
  0xf1   : >> { %v520_v4 = vpop.f32.mrf.mxu1 }
  0xf2   : >> { %v526_v11 = vadd.f32 %v520_v4, %v478_v7 }
  0xf3   : >> { %v573_v53 = vpop.f32.mrf.mxu2 }
  0xf4   : >> { %v577_v5 = vadd.f32 %v571_v51, %v526_v11  ;;  %1735 = vmatmul.msk.bf16.gmra.mxu1 %vm252_vm0, %v1273_v60  ;;  %v677_v9 = vpop.f32.mrf.mxu0 }
  0xf6   : >> { %v617_v0 = vadd.f32 %v611_v56, %v577_v5 }
  0xf7   : >> { %v613_v59 = vpop.f32.mrf.mxu3 }
  0xf8   : >> { %v681_v18 = vadd.f32 %v675_v1, %v617_v0 }
  0xf9   : >> { %v522_v17 = vpop.f32.mrf.mxu1 }
  0xfb   : >> { %v758_v20 = vpop.f32.mrf.mxu2 }
  0xfc   : >> { %v849_v54 = vpop.f32.mrf.mxu0 }
  0xff   : >> { %v809_v52 = vpop.f32.mrf.mxu3 }
 0x101   : >> { %v710_v13 = vpop.f32.mrf.mxu1 }
 0x102   : >> { %v719_v55 = vadd.f32 %v710_v13, %v679_v57 }
 0x103   : >> { %v760_v63 = vpop.f32.mrf.mxu2 }
 0x104   : >> { %v767_v6 = vadd.f32 %v758_v20, %v719_v55  ;;  %v851_v62 = vpop.f32.mrf.mxu0 }
 0x106   : >> { %v818_v14 = vadd.f32 %v809_v52, %v767_v6 }
 0x107   : >> { %v811_v15 = vpop.f32.mrf.mxu3 }
 0x108   : >> { %v858_v7 = vadd.f32 %v849_v54, %v818_v14 }
 0x109   : >> { %v712_v58 = vpop.f32.mrf.mxu1 }
 0x10a   : >> { %v720_v2 = vadd.f32 %v712_v58, %v680_v19 }
 0x10b   : >> { %v763_v3 = vpop.f32.mrf.mxu2 }
 0x10c   : >> { %v768_v8 = vadd.f32 %v760_v63, %v720_v2  ;;  %v854_v16 = vpop.f32.mrf.mxu0 }
 0x10e   : >> { %v819_v51 = vadd.f32 %v811_v15, %v768_v8 }
 0x10f   : >> { %v814_v10 = vpop.f32.mrf.mxu3 }
 0x110   : >> { %v859_v12 = vadd.f32 %v851_v62, %v819_v51 }
 0x111   : >> { %v715_v1 = vpop.f32.mrf.mxu1 }
 0x112   : >> { %v721_v61 = vadd.f32 %v715_v1, %v681_v18 }
 0x113   : >> { %v765_v56 = vpop.f32.mrf.mxu2 }
 0x114   : >> { %v769_v60 = vadd.f32 %v763_v3, %v721_v61  ;;  %v856_v4 = vpop.f32.mrf.mxu0 }
 0x116   : >> { %v820_v57 = vadd.f32 %v814_v10, %v769_v60 }
 0x117   : >> { %v816_v11 = vpop.f32.mrf.mxu3 }
 0x118   : >> { %v860_v53 = vadd.f32 %v854_v16, %v820_v57 }
 0x119   : >> { %v717_v5 = vpop.f32.mrf.mxu1 }
 0x11b   : >> { %v953_v9 = vpop.f32.mrf.mxu2 }
 0x11c   : >> { %v1052_v0 = vpop.f32.mrf.mxu0 }
 0x11f   : >> { %v1001_v59 = vpop.f32.mrf.mxu3 }
 0x121   : >> { %v913_v17 = vpop.f32.mrf.mxu1 }
 0x122   : >> { %v922_v10 = vadd.f32 %v913_v17, %v858_v7 }
 0x123   : >> { %v955_v19 = vpop.f32.mrf.mxu2 }
 0x124   : >> { %v1054_v20 = vpop.f32.mrf.mxu0  ;;  %v962_v56 = vadd.f32 %v953_v9, %v922_v10 }
 0x126   : >> { %v1010_v11 = vadd.f32 %v1001_v59, %v962_v56 }
 0x127   : >> { %v1003_v54 = vpop.f32.mrf.mxu3 }
 0x129   : >> { %v915_v52 = vpop.f32.mrf.mxu1 }
 0x12a   : >> { %v923_v57 = vadd.f32 %v915_v52, %v859_v12 }
 0x12b   : >> { %v958_v13 = vpop.f32.mrf.mxu2 }
 0x12c   : >> { %v1057_v55 = vpop.f32.mrf.mxu0 }
 0x12f   : >> { %v1006_v63 = vpop.f32.mrf.mxu3 }
 0x131   : >> { %v918_v6 = vpop.f32.mrf.mxu1 }
 0x132   : >> { %v924_v23 = vadd.f32 %v918_v6, %v860_v53 }
 0x133   : >> { %v960_v18 = vpop.f32.mrf.mxu2 }
 0x134   : >> { %v1059_v62 = vpop.f32.mrf.mxu0  ;;  %v963_v18 = vadd.f32 %v955_v19, %v923_v57  ;;  %v964_v7 = vadd.f32 %v958_v13, %v924_v23 }
 0x135   : >> { %v1061_v62 = vadd.f32 %v1052_v0, %v1010_v11 }
 0x136   : >> { %v1011_v24 = vadd.f32 %v1003_v54, %v963_v18  ;;  %v1012_v59 = vadd.f32 %v1006_v63, %v964_v7 }
 0x137   : >> { %v1008_v14 = vpop.f32.mrf.mxu3 }
 0x138   : >> { %v1062_v17 = vadd.f32 %v1054_v20, %v1011_v24  ;;  %v1063_v57 = vadd.f32 %v1057_v55, %v1012_v59 }
 0x139   : >> { %v920_v15 = vpop.f32.mrf.mxu1 }
 0x13b   : >> { %v1156_v58 = vpop.f32.mrf.mxu2 }
 0x13c   : >> { %v1244_v2 = vpop.f32.mrf.mxu0 }
 0x13f   : >> { %v1196_v3 = vpop.f32.mrf.mxu3 }
 0x141   : >> { %v1092_v8 = vpop.f32.mrf.mxu1 }
 0x142   : >> { %v1101_v15 = vadd.f32 %v1092_v8, %v1061_v62 }
 0x143   : >> { %v1158_v16 = vpop.f32.mrf.mxu2 }
 0x144   : >> { %v1246_v51 = vpop.f32.mrf.mxu0  ;;  %v1165_v25 = vadd.f32 %v1156_v58, %v1101_v15 }
 0x146   : >> { %v1205_v10 = vadd.f32 %v1196_v3, %v1165_v25 }
 0x147   : >> { %v1198_v1 = vpop.f32.mrf.mxu3 }
 0x148   : >> { %v1253_v19 = vadd.f32 %v1244_v2, %v1205_v10 }
 0x149   : >> { %v1094_v61 = vpop.f32.mrf.mxu1 }
 0x14a   : >> { %v1102_v9 = vadd.f32 %v1094_v61, %v1062_v17 }
 0x14b   : >> { %v1161_v60 = vpop.f32.mrf.mxu2 }
 0x14c   : >> { %v1249_v4 = vpop.f32.mrf.mxu0  ;;  %v1166_v52 = vadd.f32 %v1158_v16, %v1102_v9 }
 0x14f   : >> { %v1201_v5 = vpop.f32.mrf.mxu3 }
 0x151   : >> { %v1097_v21 = vpop.f32.mrf.mxu1 }
 0x152   : >> { %v1103_v54 = vadd.f32 %v1097_v21, %v1063_v57 }
 0x153   : >> { %v1163_v14 = vpop.f32.mrf.mxu2 }
 0x154   : >> { %v1251_v22 = vpop.f32.mrf.mxu0  ;;  %v1167_v24 = vadd.f32 %v1161_v60, %v1103_v54 }
 0x156   : >> { %v1207_v16 = vadd.f32 %v1201_v5, %v1167_v24 }
 0x157   : >> { %v1203_v26 = vpop.f32.mrf.mxu3 }
 0x158   : >> { %v1206_v26 = vadd.f32 %v1198_v1, %v1166_v52  ;;  %v1255_v11 = vadd.f32 %v1249_v4, %v1207_v16 }
 0x159   : >> { %v1099_v27 = vpop.f32.mrf.mxu1 }
 0x15a   : >> { %v1254_v25 = vadd.f32 %v1246_v51, %v1206_v26 }
 0x15b   : >> { %v1335_v28 = vpop.f32.mrf.mxu2 }
 0x15c   : >> { %v1439_v12 = vpop.f32.mrf.mxu0 }
 0x15f   : >> { %v1399_v56 = vpop.f32.mrf.mxu3 }
 0x161   : >> { %v1295_v0 = vpop.f32.mrf.mxu1 }
 0x162   : >> { %v1304_v22 = vadd.f32 %v1295_v0, %v1253_v19 }
 0x163   : >> { %v1337_v53 = vpop.f32.mrf.mxu2 }
 0x164   : >> { %v1344_v6 = vadd.f32 %v1335_v28, %v1304_v22  ;;  %v1441_v27 = vpop.f32.mrf.mxu0 }
 0x166   : >> { %v1408_v23 = vadd.f32 %v1399_v56, %v1344_v6 }
 0x167   : >> { %v1401_v13 = vpop.f32.mrf.mxu3 }
 0x168   : >> { %v1448_v20 = vadd.f32 %v1439_v12, %v1408_v23 }
 0x169   : >> { %v1297_v58 = vpop.f32.mrf.mxu1 }
 0x16a   : >> { %v1451_v63 = vmax.f32 %v1448_v20, 0.0  ;;  %v1305_v3 = vadd.f32 %v1297_v58, %v1254_v25 }
 0x16b   : >> { %v1340_v2 = vpop.f32.mrf.mxu2 }
 0x16c   : >> { %v1454_v55 = vpack.c.bf16 %v1451_v63, %v1451_v63  ;;  %v1345_v8 = vadd.f32 %v1337_v53, %v1305_v3  ;;  %v1444_v61 = vpop.f32.mrf.mxu0 }
 0x16e   : >> { %1461 = vst.msk [vmem:[%s1459_s30] sm:$0xf] %vm1460_vm5, %v1454_v55  ;;  %v1409_v21 = vadd.f32 %v1401_v13, %v1345_v8 }
 0x16f   : >> { %v1404_v1 = vpop.f32.mrf.mxu3 }
 0x170   : >> { %v1449_v28 = vadd.f32 %v1441_v27, %v1409_v21 }
 0x171   : >> { %v1300_v60 = vpop.f32.mrf.mxu1 }
 0x172   : >> { %v1452_v18 = vmax.f32 %v1449_v28, 0.0  ;;  %v1306_v62 = vadd.f32 %v1300_v60, %v1255_v11 }
 0x173   : >> { %v1342_v51 = vpop.f32.mrf.mxu2 }
 0x174   : >> { %v1455_v14 = vpack.c.bf16 %v1452_v18, %v1452_v18  ;;  %v1346_v15 = vadd.f32 %v1340_v2, %v1306_v62  ;;  %v1446_v7 = vpop.f32.mrf.mxu0 }
 0x176   : >> { %1462 = vst.msk [vmem:[%s1459_s30 + $0x4] sm:$0xf] %vm1460_vm5, %v1455_v14  ;;  %v1410_v17 = vadd.f32 %v1404_v1, %v1346_v15 }
 0x177   : >> { %v1406_v10 = vpop.f32.mrf.mxu3 }
 0x178   : >> { %v1450_v9 = vadd.f32 %v1444_v61, %v1410_v17 }
 0x179   : >> { %v1302_v5 = vpop.f32.mrf.mxu1 }
 0x17a   : >> { %v1453_v12 = vmax.f32 %v1450_v9, 0.0  ;;  %230 = sbr.rel (!%p228_p4) target bundleno = 41 (0x29), region = 75 }
 0x17c   : >> { %v1456_v59 = vpack.c.bf16 %v1453_v12, %v1453_v12 }
 0x17e   : >> { %1464 = vst.msk [vmem:[%s1459_s30 + $0x8] sm:$0x7] %vm1463_vm6, %v1456_v59 }
 0x17f PF: > { %s13_s12 = sadd.s32 1, %s1868_s12  }
 0x180   : > { %p10_p5 = scmp.ge.s32.totalorder %s13_s12, 4  }
 0x182   :  { %12 = sbr.rel (!%p10_p5) target bundleno = 1 (0x1), region = 86 }

// kernel: cnn_forward.7
= control target key start
LH: loop header
LB: loop body
LE: loop exit
PB: predicated region body
PF: predicated region fallthrough
CT: control target
= control target key end

     0   :  { %s17633_s0 = inlined_call_operand.vmem [shape: bf16[2,15488], index: 0, kind: input, shape index: {}]   ;;  %s17634_s1 = inlined_call_operand.vmem [shape: bf16[15488,64], index: 1, kind: input, shape index: {}]   ;;  %s17635_s2 = inlined_call_operand.vmem [shape: f32[1,64], index: 2, kind: input, shape index: {}]   ;;  %s17636_s3 = inlined_call_operand.vmem [shape: bf16[64,4], index: 3, kind: input, shape index: {}]   ;;  %s17637_s4 = inlined_call_operand.vmem [shape: f32[1,4], index: 4, kind: input, shape index: {}]   ;;  %s17638_s5 = inlined_call_operand.hbm [shape: f32[2,4], index: 5, kind: output, shape index: {}]  }
   0x1   :  { %v13602_v0 = vld [vmem:[%s17634_s1 + $0x38] sm:$0xff]  ;;  %v13601_v4 = vld [vmem:[%s17634_s1 + $0x30] sm:$0xff]  ;;  %v13600_v8 = vld [vmem:[%s17634_s1 + $0x28] sm:$0xff] }
   0x2   :  { %v13618_v1 = vld [vmem:[%s17634_s1 + $0xb8] sm:$0xff]  ;;  %8060 = vmatpush.bf16.msra.mxu0 %v13602_v0  ;;  %v13617_v5 = vld [vmem:[%s17634_s1 + $0xb0] sm:$0xff]  ;;  %v13616_v9 = vld [vmem:[%s17634_s1 + $0xa8] sm:$0xff] }
   0x3   :  { %v13610_v2 = vld [vmem:[%s17634_s1 + $0x78] sm:$0xff]  ;;  %8086 = vmatpush.bf16.msra.mxu2 %v13618_v1  ;;  %v13609_v6 = vld [vmem:[%s17634_s1 + $0x70] sm:$0xff]  ;;  %v13608_v10 = vld [vmem:[%s17634_s1 + $0x68] sm:$0xff] }
   0x4   :  { %v13626_v3 = vld [vmem:[%s17634_s1 + $0xf8] sm:$0xff]  ;;  %8073 = vmatpush.bf16.msra.mxu1 %v13610_v2  ;;  %v13625_v7 = vld [vmem:[%s17634_s1 + $0xf0] sm:$0xff]  ;;  %v13624_v11 = vld [vmem:[%s17634_s1 + $0xe8] sm:$0xff] }
   0x5   :  { %8099 = vmatpush.bf16.msra.mxu3 %v13626_v3  ;;  %v13599_v12 = vld [vmem:[%s17634_s1 + $0x20] sm:$0xff]  ;;  %v13598_v16 = vld [vmem:[%s17634_s1 + $0x18] sm:$0xff]  ;;  %v13597_v21 = vld [vmem:[%s17634_s1 + $0x10] sm:$0xff] }
   0x6   :  { %8061 = vmatpush.bf16.msra.mxu0 %v13601_v4  ;;  %v13615_v13 = vld [vmem:[%s17634_s1 + $0xa0] sm:$0xff]  ;;  %v13614_v17 = vld [vmem:[%s17634_s1 + $0x98] sm:$0xff]  ;;  %v13613_v22 = vld [vmem:[%s17634_s1 + $0x90] sm:$0xff] }
   0x7   :  { %8087 = vmatpush.bf16.msra.mxu2 %v13617_v5  ;;  %v13607_v14 = vld [vmem:[%s17634_s1 + $0x60] sm:$0xff]  ;;  %v13606_v18 = vld [vmem:[%s17634_s1 + $0x58] sm:$0xff]  ;;  %v13605_v23 = vld [vmem:[%s17634_s1 + $0x50] sm:$0xff] }
   0x8   :  { %8074 = vmatpush.bf16.msra.mxu1 %v13609_v6  ;;  %v13623_v15 = vld [vmem:[%s17634_s1 + $0xe0] sm:$0xff]  ;;  %v13622_v19 = vld [vmem:[%s17634_s1 + $0xd8] sm:$0xff]  ;;  %v13621_v24 = vld [vmem:[%s17634_s1 + $0xd0] sm:$0xff] }
   0x9   :  { %8100 = vmatpush.bf16.msra.mxu3 %v13625_v7  ;;  %v22_v20 = vld [vmem:[%s17633_s0] sm:$0xff] }
   0xa   :  { %8062 = vmatpush.bf16.msra.mxu0 %v13600_v8  ;;  %1979 = vst [vmem:[#allocation1] ss:$9 sm:$0xff] %v22_v20 }
   0xb   :  { %8088 = vmatpush.bf16.msra.mxu2 %v13616_v9 }
   0xc   :  { %8075 = vmatpush.bf16.msra.mxu1 %v13608_v10 }
   0xd   :  { %8101 = vmatpush.bf16.msra.mxu3 %v13624_v11 }
   0xe   :  { %8063 = vmatpush.bf16.msra.mxu0 %v13599_v12 }
   0xf   :  { %8089 = vmatpush.bf16.msra.mxu2 %v13615_v13 }
  0x10   :  { %8076 = vmatpush.bf16.msra.mxu1 %v13607_v14 }
  0x11   :  { %8102 = vmatpush.bf16.msra.mxu3 %v13623_v15 }
  0x12   :  { %8064 = vmatpush.bf16.msra.mxu0 %v13598_v16 }
  0x13   :  { %8090 = vmatpush.bf16.msra.mxu2 %v13614_v17 }
  0x14   :  { %8077 = vmatpush.bf16.msra.mxu1 %v13606_v18 }
  0x15   :  { %8103 = vmatpush.bf16.msra.mxu3 %v13622_v19 }
  0x16   :  { %10 = vsyncpa [#allocation3], 0  ;;  %8065 = vmatpush.bf16.msra.mxu0 %v13597_v21  ;;  %v13596_v25 = vld [vmem:[%s17634_s1 + $0x8] sm:$0xff]  ;;  %v13595_v29 = vld [vmem:[%s17634_s1] sm:$0xff]  ;;  %vm9671_vm0 = vcmask 523264   ;;  %s14596_s6 = smov [#allocation2]  }
  0x17   :  { %8091 = vmatpush.bf16.msra.mxu2 %v13613_v22  ;;  %v13612_v26 = vld [vmem:[%s17634_s1 + $0x88] sm:$0xff]  ;;  %v13611_v30 = vld [vmem:[%s17634_s1 + $0x80] sm:$0xff]  ;;  %v13634_v31 = vld [vmem:[%s17634_s1 + $0x138] sm:$0xff]  ;;  %s9695_s7 = sshll.u32 %s14596_s6, 4  ;;  %s9697_s10 = sshll.u32 %s17638_s5, 4  ;;  %vm9688_vm1 = vcmask 25600   ;;  %s9696_s7 = int_to_ptr.vmem [resolvable:$true] %s9695_s7  ;;  %s9698_s10 = int_to_ptr.hbm [resolvable:$true] %s9697_s10 }
  0x18   :  { %8078 = vmatpush.bf16.msra.mxu1 %v13605_v23  ;;  %v13604_v27 = vld [vmem:[%s17634_s1 + $0x48] sm:$0xff]  ;;  %v13650_v32 = vld [vmem:[%s17634_s1 + $0x1b8] sm:$0xff]  ;;  %v13603_v33 = vld [vmem:[%s17634_s1 + $0x40] sm:$0xff] }
  0x19   :  { %8104 = vmatpush.bf16.msra.mxu3 %v13621_v24  ;;  %v13620_v28 = vld [vmem:[%s17634_s1 + $0xc8] sm:$0xff]  ;;  %v13619_v34 = vld [vmem:[%s17634_s1 + $0xc0] sm:$0xff]  ;;  %v13642_v35 = vld [vmem:[%s17634_s1 + $0x178] sm:$0xff] }
  0x1a   :  { %8066 = vmatpush.bf16.msra.mxu0 %v13596_v25  ;;  %v13658_v36 = vld [vmem:[%s17634_s1 + $0x1f8] sm:$0xff]  ;;  %v13633_v37 = vld [vmem:[%s17634_s1 + $0x130] sm:$0xff]  ;;  %v1980_v40 = vld [vmem:[#allocation1] sm:$0xff] }
  0x1b   :  { %8092 = vmatpush.bf16.msra.mxu2 %v13612_v26  ;;  %v13649_v38 = vld [vmem:[%s17634_s1 + $0x1b0] sm:$0xff]  ;;  %v1983_v43 = vld [vmem:[#allocation1 + $0x1b] sm:$0xff]  ;;  %v13632_v45 = vld [vmem:[%s17634_s1 + $0x128] sm:$0xff] }
  0x1c   :  { %8079 = vmatpush.bf16.msra.mxu1 %v13604_v27  ;;  %v1982_v39 = vld [vmem:[#allocation1 + $0x12] sm:$0xff]  ;;  %v1981_v44 = vld [vmem:[#allocation1 + $0x9] sm:$0xff]  ;;  %v13631_v49 = vld [vmem:[%s17634_s1 + $0x120] sm:$0xff] }
  0x1d   :  { %8105 = vmatpush.bf16.msra.mxu3 %v13620_v28  ;;  %v13641_v41 = vld [vmem:[%s17634_s1 + $0x170] sm:$0xff]  ;;  %v13648_v46 = vld [vmem:[%s17634_s1 + $0x1a8] sm:$0xff]  ;;  %v13647_v50 = vld [vmem:[%s17634_s1 + $0x1a0] sm:$0xff] }
  0x1e   :  { %8067 = vmatpush.bf16.msra.mxu0 %v13595_v29  ;;  %v13657_v42 = vld [vmem:[%s17634_s1 + $0x1f0] sm:$0xff]  ;;  %v13640_v47 = vld [vmem:[%s17634_s1 + $0x168] sm:$0xff]  ;;  %v13639_v51 = vld [vmem:[%s17634_s1 + $0x160] sm:$0xff] }
  0x1f   :  { %8093 = vmatpush.bf16.msra.mxu2 %v13611_v30  ;;  %v13656_v48 = vld [vmem:[%s17634_s1 + $0x1e8] sm:$0xff]  ;;  %v13655_v52 = vld [vmem:[%s17634_s1 + $0x1e0] sm:$0xff]  ;;  %v13630_v53 = vld [vmem:[%s17634_s1 + $0x118] sm:$0xff] }
  0x20   :  { %8080 = vmatpush.bf16.msra.mxu1 %v13603_v33  ;;  %v13646_v54 = vld [vmem:[%s17634_s1 + $0x198] sm:$0xff]  ;;  %v13629_v57 = vld [vmem:[%s17634_s1 + $0x110] sm:$0xff]  ;;  %v1984_v62 = vld [vmem:[#allocation1 + $0x24] sm:$0xff] }
  0x21   :  { %8106 = vmatpush.bf16.msra.mxu3 %v13619_v34  ;;  %8068 = vmatmul.bf16.vlgmr.msra.gmra.mxu0 %v1980_v40  ;;  %v13638_v55 = vld [vmem:[%s17634_s1 + $0x158] sm:$0xff]  ;;  %v13645_v58 = vld [vmem:[%s17634_s1 + $0x190] sm:$0xff]  ;;  %v23_v1 = vld [vmem:[%s17633_s0 + $0x8] sm:$0xff] }
  0x22   :  { %8112 = vmatpush.bf16.msrb.mxu0 %v13634_v31  ;;  %8094 = vmatmul.bf16.vlgmr.msra.gmra.mxu2 %v1982_v39  ;;  %v13654_v56 = vld [vmem:[%s17634_s1 + $0x1d8] sm:$0xff]  ;;  %v13637_v59 = vld [vmem:[%s17634_s1 + $0x150] sm:$0xff]  ;;  %v13628_v2 = vld [vmem:[%s17634_s1 + $0x108] sm:$0xff] }
  0x23   :  { %8138 = vmatpush.bf16.msrb.mxu2 %v13650_v32  ;;  %8081 = vmatmul.bf16.vlgmr.msra.gmra.mxu1 %v1981_v44  ;;  %v13653_v60 = vld [vmem:[%s17634_s1 + $0x1d0] sm:$0xff]  ;;  %v1987_v63 = vld [vmem:[#allocation1 + $0x3f] sm:$0xff]  ;;  %v13644_v3 = vld [vmem:[%s17634_s1 + $0x188] sm:$0xff] }
  0x24   :  { %8125 = vmatpush.bf16.msrb.mxu1 %v13642_v35  ;;  %8107 = vmatmul.bf16.vlgmr.msra.gmra.mxu3 %v1983_v43  ;;  %v1986_v61 = vld [vmem:[#allocation1 + $0x36] sm:$0xff]  ;;  %v1985_v0 = vld [vmem:[#allocation1 + $0x2d] sm:$0xff]  ;;  %v13627_v6 = vld [vmem:[%s17634_s1 + $0x100] sm:$0xff] }
  0x25   :  { %8151 = vmatpush.bf16.msrb.mxu3 %v13658_v36  ;;  %1989 = vst [vmem:[#allocation1] ss:$9 sm:$0xff] %v23_v1  ;;  %v13636_v4 = vld [vmem:[%s17634_s1 + $0x148] sm:$0xff]  ;;  %v13643_v7 = vld [vmem:[%s17634_s1 + $0x180] sm:$0xff]  ;;  %v13666_v8 = vld [vmem:[%s17634_s1 + $0x238] sm:$0xff] }
  0x26   :  { %8113 = vmatpush.bf16.msrb.mxu0 %v13633_v37  ;;  %v13652_v5 = vld [vmem:[%s17634_s1 + $0x1c8] sm:$0xff]  ;;  %v13682_v9 = vld [vmem:[%s17634_s1 + $0x2b8] sm:$0xff]  ;;  %v13635_v10 = vld [vmem:[%s17634_s1 + $0x140] sm:$0xff] }
  0x27   :  { %8139 = vmatpush.bf16.msrb.mxu2 %v13649_v38  ;;  %v13651_v11 = vld [vmem:[%s17634_s1 + $0x1c0] sm:$0xff]  ;;  %v13674_v12 = vld [vmem:[%s17634_s1 + $0x278] sm:$0xff]  ;;  %v13665_v14 = vld [vmem:[%s17634_s1 + $0x230] sm:$0xff] }
  0x28   :  { %8126 = vmatpush.bf16.msrb.mxu1 %v13641_v41  ;;  %v13690_v13 = vld [vmem:[%s17634_s1 + $0x2f8] sm:$0xff]  ;;  %v13681_v15 = vld [vmem:[%s17634_s1 + $0x2b0] sm:$0xff]  ;;  %v13664_v18 = vld [vmem:[%s17634_s1 + $0x228] sm:$0xff] }
  0x29   :  { %8152 = vmatpush.bf16.msrb.mxu3 %v13657_v42  ;;  %v13673_v16 = vld [vmem:[%s17634_s1 + $0x270] sm:$0xff]  ;;  %v13680_v19 = vld [vmem:[%s17634_s1 + $0x2a8] sm:$0xff]  ;;  %v13663_v22 = vld [vmem:[%s17634_s1 + $0x220] sm:$0xff] }
  0x2a   :  { %8114 = vmatpush.bf16.msrb.mxu0 %v13632_v45  ;;  %v13689_v17 = vld [vmem:[%s17634_s1 + $0x2f0] sm:$0xff]  ;;  %v13672_v20 = vld [vmem:[%s17634_s1 + $0x268] sm:$0xff]  ;;  %v13679_v23 = vld [vmem:[%s17634_s1 + $0x2a0] sm:$0xff] }
  0x2b   :  { %8140 = vmatpush.bf16.msrb.mxu2 %v13648_v46  ;;  %v13688_v21 = vld [vmem:[%s17634_s1 + $0x2e8] sm:$0xff]  ;;  %v13671_v24 = vld [vmem:[%s17634_s1 + $0x260] sm:$0xff]  ;;  %v13662_v26 = vld [vmem:[%s17634_s1 + $0x218] sm:$0xff] }
  0x2c   :  { %8127 = vmatpush.bf16.msrb.mxu1 %v13640_v47  ;;  %v13687_v25 = vld [vmem:[%s17634_s1 + $0x2e0] sm:$0xff]  ;;  %v13678_v27 = vld [vmem:[%s17634_s1 + $0x298] sm:$0xff]  ;;  %v13661_v30 = vld [vmem:[%s17634_s1 + $0x210] sm:$0xff] }
  0x2d   :  { %8153 = vmatpush.bf16.msrb.mxu3 %v13656_v48  ;;  %v13670_v28 = vld [vmem:[%s17634_s1 + $0x258] sm:$0xff]  ;;  %v13677_v31 = vld [vmem:[%s17634_s1 + $0x290] sm:$0xff]  ;;  %v13660_v34 = vld [vmem:[%s17634_s1 + $0x208] sm:$0xff] }
  0x2e   :  { %8115 = vmatpush.bf16.msrb.mxu0 %v13631_v49  ;;  %v13686_v29 = vld [vmem:[%s17634_s1 + $0x2d8] sm:$0xff]  ;;  %v13669_v32 = vld [vmem:[%s17634_s1 + $0x250] sm:$0xff]  ;;  %v13676_v35 = vld [vmem:[%s17634_s1 + $0x288] sm:$0xff] }
  0x2f   :  { %8141 = vmatpush.bf16.msrb.mxu2 %v13647_v50  ;;  %v13685_v33 = vld [vmem:[%s17634_s1 + $0x2d0] sm:$0xff]  ;;  %v13668_v36 = vld [vmem:[%s17634_s1 + $0x248] sm:$0xff]  ;;  %v13659_v38 = vld [vmem:[%s17634_s1 + $0x200] sm:$0xff] }
  0x30   :  { %8128 = vmatpush.bf16.msrb.mxu1 %v13639_v51  ;;  %v13684_v37 = vld [vmem:[%s17634_s1 + $0x2c8] sm:$0xff]  ;;  %v13675_v39 = vld [vmem:[%s17634_s1 + $0x280] sm:$0xff]  ;;  %v13698_v40 = vld [vmem:[%s17634_s1 + $0x338] sm:$0xff] }
  0x31   :  { %8154 = vmatpush.bf16.msrb.mxu3 %v13655_v52  ;;  %v13714_v41 = vld [vmem:[%s17634_s1 + $0x3b8] sm:$0xff]  ;;  %v13667_v42 = vld [vmem:[%s17634_s1 + $0x240] sm:$0xff]  ;;  %v1991_v48 = vld [vmem:[#allocation1 + $0x9] sm:$0xff] }
  0x32   :  { %8116 = vmatpush.bf16.msrb.mxu0 %v13630_v53  ;;  %v13683_v43 = vld [vmem:[%s17634_s1 + $0x2c0] sm:$0xff]  ;;  %v13706_v44 = vld [vmem:[%s17634_s1 + $0x378] sm:$0xff]  ;;  %v13697_v50 = vld [vmem:[%s17634_s1 + $0x330] sm:$0xff] }
  0x33   :  { %8142 = vmatpush.bf16.msrb.mxu2 %v13646_v54  ;;  %v1990_v45 = vld [vmem:[#allocation1] sm:$0xff]  ;;  %v1992_v46 = vld [vmem:[#allocation1 + $0x12] sm:$0xff]  ;;  %v13696_v54 = vld [vmem:[%s17634_s1 + $0x328] sm:$0xff] }
  0x34   :  { %8129 = vmatpush.bf16.msrb.mxu1 %v13638_v55  ;;  %v13722_v47 = vld [vmem:[%s17634_s1 + $0x3f8] sm:$0xff]  ;;  %v13713_v51 = vld [vmem:[%s17634_s1 + $0x3b0] sm:$0xff]  ;;  %v13712_v55 = vld [vmem:[%s17634_s1 + $0x3a8] sm:$0xff] }
  0x35   :  { %8155 = vmatpush.bf16.msrb.mxu3 %v13654_v56  ;;  %v1993_v49 = vld [vmem:[#allocation1 + $0x1b] sm:$0xff]  ;;  %v13705_v52 = vld [vmem:[%s17634_s1 + $0x370] sm:$0xff]  ;;  %v13704_v56 = vld [vmem:[%s17634_s1 + $0x368] sm:$0xff] }
  0x36   :  { %8117 = vmatpush.bf16.msrb.mxu0 %v13629_v57  ;;  %v13721_v53 = vld [vmem:[%s17634_s1 + $0x3f0] sm:$0xff]  ;;  %v13720_v57 = vld [vmem:[%s17634_s1 + $0x3e8] sm:$0xff]  ;;  %v13718_v1 = vld [vmem:[%s17634_s1 + $0x3d8] sm:$0xff] }
  0x37   :  { %8143 = vmatpush.bf16.msrb.mxu2 %v13645_v58  ;;  %v13695_v58 = vld [vmem:[%s17634_s1 + $0x320] sm:$0xff] }
  0x38   :  { %8130 = vmatpush.bf16.msrb.mxu1 %v13637_v59  ;;  %v13711_v59 = vld [vmem:[%s17634_s1 + $0x3a0] sm:$0xff] }
  0x39   :  { %8156 = vmatpush.bf16.msrb.mxu3 %v13653_v60  ;;  %v13703_v60 = vld [vmem:[%s17634_s1 + $0x360] sm:$0xff] }
  0x3a   :  { %8118 = vmatpush.bf16.msrb.mxu0 %v13628_v2  ;;  %v13693_v2 = vld [vmem:[%s17634_s1 + $0x310] sm:$0xff] }
  0x3b   :  { %8144 = vmatpush.bf16.msrb.mxu2 %v13644_v3  ;;  %v13709_v3 = vld [vmem:[%s17634_s1 + $0x390] sm:$0xff] }
  0x3c   :  { %8131 = vmatpush.bf16.msrb.mxu1 %v13636_v4  ;;  %v13701_v4 = vld [vmem:[%s17634_s1 + $0x350] sm:$0xff] }
  0x3d   :  { %8157 = vmatpush.bf16.msrb.mxu3 %v13652_v5  ;;  %v13717_v5 = vld [vmem:[%s17634_s1 + $0x3d0] sm:$0xff] }
  0x3e   :  { %8119 = vmatpush.bf16.msrb.mxu0 %v13627_v6  ;;  %v13692_v6 = vld [vmem:[%s17634_s1 + $0x308] sm:$0xff] }
  0x3f   :  { %8145 = vmatpush.bf16.msrb.mxu2 %v13643_v7  ;;  %v13708_v7 = vld [vmem:[%s17634_s1 + $0x388] sm:$0xff] }
  0x40   :  { %8132 = vmatpush.bf16.msrb.mxu1 %v13635_v10  ;;  %v1995_v10 = vld [vmem:[#allocation1 + $0x2d] sm:$0xff] }
  0x41   :  { %8158 = vmatpush.bf16.msrb.mxu3 %v13651_v11  ;;  %8120 = vmatmul.bf16.vlgmr.msrb.gmra.mxu0 %v1984_v62  ;;  %v13694_v62 = vld [vmem:[%s17634_s1 + $0x318] sm:$0xff] }
  0x42   :  { %8164 = vmatpush.bf16.msra.mxu0 %v13666_v8  ;;  %8146 = vmatmul.bf16.vlgmr.msrb.gmra.mxu2 %v1986_v61  ;;  %v13719_v61 = vld [vmem:[%s17634_s1 + $0x3e0] sm:$0xff] }
  0x43   :  { %8190 = vmatpush.bf16.msra.mxu2 %v13682_v9  ;;  %8133 = vmatmul.bf16.vlgmr.msrb.gmra.mxu1 %v1985_v0  ;;  %v13702_v0 = vld [vmem:[%s17634_s1 + $0x358] sm:$0xff]  ;;  %v1994_v8 = vld [vmem:[#allocation1 + $0x24] sm:$0xff] }
  0x44   :  { %8177 = vmatpush.bf16.msra.mxu1 %v13674_v12  ;;  %8159 = vmatmul.bf16.vlgmr.msrb.gmra.mxu3 %v1987_v63  ;;  %v13710_v63 = vld [vmem:[%s17634_s1 + $0x398] sm:$0xff]  ;;  %v24_v12 = vld [vmem:[%s17633_s0 + $0x10] sm:$0xff] }
  0x45   :  { %8203 = vmatpush.bf16.msra.mxu3 %v13690_v13  ;;  %v1996_v9 = vld [vmem:[#allocation1 + $0x36] sm:$0xff]  ;;  %v1997_v11 = vld [vmem:[#allocation1 + $0x3f] sm:$0xff]  ;;  %v13700_v13 = vld [vmem:[%s17634_s1 + $0x348] sm:$0xff] }
  0x46   :  { %8165 = vmatpush.bf16.msra.mxu0 %v13665_v14  ;;  %1999 = vst [vmem:[#allocation1] ss:$9 sm:$0xff] %v24_v12  ;;  %v13716_v14 = vld [vmem:[%s17634_s1 + $0x3c8] sm:$0xff]  ;;  %v13774_v12 = vld [vmem:[%s17634_s1 + $0x598] sm:$0xff] }
  0x47   :  { %8191 = vmatpush.bf16.msra.mxu2 %v13681_v15  ;;  %v13691_v15 = vld [vmem:[%s17634_s1 + $0x300] sm:$0xff] }
  0x48   :  { %8178 = vmatpush.bf16.msra.mxu1 %v13673_v16  ;;  %v13707_v16 = vld [vmem:[%s17634_s1 + $0x380] sm:$0xff] }
  0x49   :  { %8204 = vmatpush.bf16.msra.mxu3 %v13689_v17  ;;  %v13730_v17 = vld [vmem:[%s17634_s1 + $0x438] sm:$0xff] }
  0x4a   :  { %8166 = vmatpush.bf16.msra.mxu0 %v13664_v18  ;;  %v13746_v18 = vld [vmem:[%s17634_s1 + $0x4b8] sm:$0xff] }
  0x4b   :  { %8192 = vmatpush.bf16.msra.mxu2 %v13680_v19  ;;  %v13699_v19 = vld [vmem:[%s17634_s1 + $0x340] sm:$0xff] }
  0x4c   :  { %8179 = vmatpush.bf16.msra.mxu1 %v13672_v20  ;;  %v13715_v20 = vld [vmem:[%s17634_s1 + $0x3c0] sm:$0xff] }
  0x4d   :  { %8205 = vmatpush.bf16.msra.mxu3 %v13688_v21  ;;  %v13738_v21 = vld [vmem:[%s17634_s1 + $0x478] sm:$0xff] }
  0x4e   :  { %8167 = vmatpush.bf16.msra.mxu0 %v13663_v22  ;;  %v13754_v22 = vld [vmem:[%s17634_s1 + $0x4f8] sm:$0xff] }
  0x4f   :  { %8193 = vmatpush.bf16.msra.mxu2 %v13679_v23  ;;  %v13729_v23 = vld [vmem:[%s17634_s1 + $0x430] sm:$0xff] }
  0x50   :  { %8180 = vmatpush.bf16.msra.mxu1 %v13671_v24  ;;  %v13745_v24 = vld [vmem:[%s17634_s1 + $0x4b0] sm:$0xff] }
  0x51   :  { %8206 = vmatpush.bf16.msra.mxu3 %v13687_v25  ;;  %v13737_v25 = vld [vmem:[%s17634_s1 + $0x470] sm:$0xff] }
  0x52   :  { %8168 = vmatpush.bf16.msra.mxu0 %v13662_v26  ;;  %v13753_v26 = vld [vmem:[%s17634_s1 + $0x4f0] sm:$0xff] }
  0x53   :  { %8194 = vmatpush.bf16.msra.mxu2 %v13678_v27  ;;  %v13728_v27 = vld [vmem:[%s17634_s1 + $0x428] sm:$0xff] }
  0x54   :  { %8181 = vmatpush.bf16.msra.mxu1 %v13670_v28  ;;  %v13744_v28 = vld [vmem:[%s17634_s1 + $0x4a8] sm:$0xff] }
  0x55   :  { %8207 = vmatpush.bf16.msra.mxu3 %v13686_v29  ;;  %v13736_v29 = vld [vmem:[%s17634_s1 + $0x468] sm:$0xff] }
  0x56   :  { %8169 = vmatpush.bf16.msra.mxu0 %v13661_v30  ;;  %v13752_v30 = vld [vmem:[%s17634_s1 + $0x4e8] sm:$0xff] }
  0x57   :  { %8195 = vmatpush.bf16.msra.mxu2 %v13677_v31  ;;  %v13727_v31 = vld [vmem:[%s17634_s1 + $0x420] sm:$0xff] }
  0x58   :  { %8182 = vmatpush.bf16.msra.mxu1 %v13669_v32  ;;  %v13743_v32 = vld [vmem:[%s17634_s1 + $0x4a0] sm:$0xff] }
  0x59   :  { %8208 = vmatpush.bf16.msra.mxu3 %v13685_v33  ;;  %v13735_v33 = vld [vmem:[%s17634_s1 + $0x460] sm:$0xff] }
  0x5a   :  { %8170 = vmatpush.bf16.msra.mxu0 %v13660_v34  ;;  %v13751_v34 = vld [vmem:[%s17634_s1 + $0x4e0] sm:$0xff] }
  0x5b   :  { %8196 = vmatpush.bf16.msra.mxu2 %v13676_v35  ;;  %v13726_v35 = vld [vmem:[%s17634_s1 + $0x418] sm:$0xff] }
  0x5c   :  { %8183 = vmatpush.bf16.msra.mxu1 %v13668_v36  ;;  %v13742_v36 = vld [vmem:[%s17634_s1 + $0x498] sm:$0xff] }
  0x5d   :  { %8209 = vmatpush.bf16.msra.mxu3 %v13684_v37  ;;  %v13734_v37 = vld [vmem:[%s17634_s1 + $0x458] sm:$0xff] }
  0x5e   :  { %8171 = vmatpush.bf16.msra.mxu0 %v13659_v38  ;;  %v13750_v38 = vld [vmem:[%s17634_s1 + $0x4d8] sm:$0xff] }
  0x5f   :  { %8197 = vmatpush.bf16.msra.mxu2 %v13675_v39  ;;  %v13725_v39 = vld [vmem:[%s17634_s1 + $0x410] sm:$0xff] }
  0x60   :  { %8184 = vmatpush.bf16.msra.mxu1 %v13667_v42  ;;  %v13749_v42 = vld [vmem:[%s17634_s1 + $0x4d0] sm:$0xff] }
  0x61   :  { %8210 = vmatpush.bf16.msra.mxu3 %v13683_v43  ;;  %8172 = vmatmul.bf16.vlgmr.msra.gmra.mxu0 %v1990_v45  ;;  %v13724_v43 = vld [vmem:[%s17634_s1 + $0x408] sm:$0xff] }
  0x62   :  { %8216 = vmatpush.bf16.msrb.mxu0 %v13698_v40  ;;  %8198 = vmatmul.bf16.vlgmr.msra.gmra.mxu2 %v1992_v46  ;;  %v13741_v40 = vld [vmem:[%s17634_s1 + $0x490] sm:$0xff]  ;;  %v13732_v45 = vld [vmem:[%s17634_s1 + $0x448] sm:$0xff] }
  0x63   :  { %8242 = vmatpush.bf16.msrb.mxu2 %v13714_v41  ;;  %8185 = vmatmul.bf16.vlgmr.msra.gmra.mxu1 %v1991_v48  ;;  %v13733_v41 = vld [vmem:[%s17634_s1 + $0x450] sm:$0xff]  ;;  %v13748_v46 = vld [vmem:[%s17634_s1 + $0x4c8] sm:$0xff]  ;;  %v13739_v48 = vld [vmem:[%s17634_s1 + $0x480] sm:$0xff] }
  0x64   :  { %8229 = vmatpush.bf16.msrb.mxu1 %v13706_v44  ;;  %8211 = vmatmul.bf16.vlgmr.msra.gmra.mxu3 %v1993_v49  ;;  %v13740_v44 = vld [vmem:[%s17634_s1 + $0x488] sm:$0xff]  ;;  %v13762_v49 = vld [vmem:[%s17634_s1 + $0x538] sm:$0xff] }
  0x65   :  { %8255 = vmatpush.bf16.msrb.mxu3 %v13722_v47  ;;  %v13723_v47 = vld [vmem:[%s17634_s1 + $0x400] sm:$0xff] }
  0x66   :  { %8217 = vmatpush.bf16.msrb.mxu0 %v13697_v50  ;;  %v13778_v50 = vld [vmem:[%s17634_s1 + $0x5b8] sm:$0xff] }
  0x67   :  { %8243 = vmatpush.bf16.msrb.mxu2 %v13713_v51  ;;  %v13731_v51 = vld [vmem:[%s17634_s1 + $0x440] sm:$0xff] }
  0x68   :  { %8230 = vmatpush.bf16.msrb.mxu1 %v13705_v52  ;;  %v13747_v52 = vld [vmem:[%s17634_s1 + $0x4c0] sm:$0xff] }
  0x69   :  { %8256 = vmatpush.bf16.msrb.mxu3 %v13721_v53  ;;  %v13770_v53 = vld [vmem:[%s17634_s1 + $0x578] sm:$0xff] }
  0x6a   :  { %8218 = vmatpush.bf16.msrb.mxu0 %v13696_v54  ;;  %v2000_v54 = vld [vmem:[#allocation1] sm:$0xff] }
  0x6b   :  { %8244 = vmatpush.bf16.msrb.mxu2 %v13712_v55  ;;  %v2002_v55 = vld [vmem:[#allocation1 + $0x12] sm:$0xff] }
  0x6c   :  { %8231 = vmatpush.bf16.msrb.mxu1 %v13704_v56  ;;  %v13786_v56 = vld [vmem:[%s17634_s1 + $0x5f8] sm:$0xff] }
  0x6d   :  { %8257 = vmatpush.bf16.msrb.mxu3 %v13720_v57  ;;  %v2001_v57 = vld [vmem:[#allocation1 + $0x9] sm:$0xff] }
  0x6e   :  { %8219 = vmatpush.bf16.msrb.mxu0 %v13695_v58  ;;  %v2003_v58 = vld [vmem:[#allocation1 + $0x1b] sm:$0xff] }
  0x6f   :  { %8245 = vmatpush.bf16.msrb.mxu2 %v13711_v59  ;;  %v13761_v59 = vld [vmem:[%s17634_s1 + $0x530] sm:$0xff] }
  0x70   :  { %8232 = vmatpush.bf16.msrb.mxu1 %v13703_v60  ;;  %v13777_v60 = vld [vmem:[%s17634_s1 + $0x5b0] sm:$0xff] }
  0x71   :  { %8258 = vmatpush.bf16.msrb.mxu3 %v13719_v61  ;;  %v13769_v61 = vld [vmem:[%s17634_s1 + $0x570] sm:$0xff] }
  0x72   :  { %8220 = vmatpush.bf16.msrb.mxu0 %v13694_v62  ;;  %v13785_v62 = vld [vmem:[%s17634_s1 + $0x5f0] sm:$0xff] }
  0x73   :  { %8246 = vmatpush.bf16.msrb.mxu2 %v13710_v63  ;;  %v13760_v63 = vld [vmem:[%s17634_s1 + $0x528] sm:$0xff] }
  0x74   :  { %8233 = vmatpush.bf16.msrb.mxu1 %v13702_v0  ;;  %v13776_v0 = vld [vmem:[%s17634_s1 + $0x5a8] sm:$0xff] }
  0x75   :  { %8259 = vmatpush.bf16.msrb.mxu3 %v13718_v1  ;;  %v13768_v1 = vld [vmem:[%s17634_s1 + $0x568] sm:$0xff] }
  0x76   :  { %8221 = vmatpush.bf16.msrb.mxu0 %v13693_v2  ;;  %v13784_v2 = vld [vmem:[%s17634_s1 + $0x5e8] sm:$0xff] }
  0x77   :  { %8247 = vmatpush.bf16.msrb.mxu2 %v13709_v3  ;;  %v14568_v3 = vld [vmem:[%s17635_s2] ss:$0 sm:$0xff] }
  0x78   :  { %8234 = vmatpush.bf16.msrb.mxu1 %v13701_v4  ;;  %v13759_v4 = vld [vmem:[%s17634_s1 + $0x520] sm:$0xff] }
  0x79   :  { %8260 = vmatpush.bf16.msrb.mxu3 %v13717_v5  ;;  %v13775_v5 = vld [vmem:[%s17634_s1 + $0x5a0] sm:$0xff] }
  0x7a   :  { %8222 = vmatpush.bf16.msrb.mxu0 %v13692_v6 }
  0x7b   :  { %8248 = vmatpush.bf16.msrb.mxu2 %v13708_v7  ;;  %v13767_v7 = vld [vmem:[%s17634_s1 + $0x560] sm:$0xff] }
  0x7c   :  { %8235 = vmatpush.bf16.msrb.mxu1 %v13700_v13 }
  0x7d   :  { %8261 = vmatpush.bf16.msrb.mxu3 %v13716_v14  ;;  %v13766_v14 = vld [vmem:[%s17634_s1 + $0x558] sm:$0xff] }
  0x7e   :  { %8223 = vmatpush.bf16.msrb.mxu0 %v13691_v15  ;;  %v13782_v15 = vld [vmem:[%s17634_s1 + $0x5d8] sm:$0xff] }
  0x7f   :  { %8249 = vmatpush.bf16.msrb.mxu2 %v13707_v16 }
  0x80   :  { %8236 = vmatpush.bf16.msrb.mxu1 %v13699_v19 }
  0x81   :  { %8262 = vmatpush.bf16.msrb.mxu3 %v13715_v20  ;;  %8224 = vmatmul.bf16.vlgmr.msrb.gmra.mxu0 %v1994_v8  ;;  %v13783_v8 = vld [vmem:[%s17634_s1 + $0x5e0] sm:$0xff] }
  0x82   :  { %8268 = vmatpush.bf16.msra.mxu0 %v13730_v17  ;;  %8250 = vmatmul.bf16.vlgmr.msrb.gmra.mxu2 %v1996_v9  ;;  %v13757_v17 = vld [vmem:[%s17634_s1 + $0x510] sm:$0xff] }
  0x83   :  { %8294 = vmatpush.bf16.msra.mxu2 %v13746_v18  ;;  %8237 = vmatmul.bf16.vlgmr.msrb.gmra.mxu1 %v1995_v10  ;;  %v13773_v18 = vld [vmem:[%s17634_s1 + $0x590] sm:$0xff] }
  0x84   :  { %8281 = vmatpush.bf16.msra.mxu1 %v13738_v21  ;;  %8263 = vmatmul.bf16.vlgmr.msrb.gmra.mxu3 %v1997_v11  ;;  %v13758_v11 = vld [vmem:[%s17634_s1 + $0x518] sm:$0xff] }
  0x85   :  { %8307 = vmatpush.bf16.msra.mxu3 %v13754_v22  ;;  %v13765_v22 = vld [vmem:[%s17634_s1 + $0x550] sm:$0xff] }
  0x86   :  { %8269 = vmatpush.bf16.msra.mxu0 %v13729_v23  ;;  %v13781_v23 = vld [vmem:[%s17634_s1 + $0x5d0] sm:$0xff] }
  0x87   :  { %8295 = vmatpush.bf16.msra.mxu2 %v13745_v24  ;;  %v13756_v24 = vld [vmem:[%s17634_s1 + $0x508] sm:$0xff] }
  0x88   :  { %8282 = vmatpush.bf16.msra.mxu1 %v13737_v25 }
  0x89   :  { %8308 = vmatpush.bf16.msra.mxu3 %v13753_v26  ;;  %v13772_v26 = vld [vmem:[%s17634_s1 + $0x588] sm:$0xff] }
  0x8a   :  { %8270 = vmatpush.bf16.msra.mxu0 %v13728_v27  ;;  %v2004_v27 = vld [vmem:[#allocation1 + $0x24] sm:$0xff] }
  0x8b   :  { %8296 = vmatpush.bf16.msra.mxu2 %v13744_v28  ;;  %v2006_v28 = vld [vmem:[#allocation1 + $0x36] sm:$0xff] }
  0x8c   :  { %8283 = vmatpush.bf16.msra.mxu1 %v13736_v29 }
  0x8d   :  { %8309 = vmatpush.bf16.msra.mxu3 %v13752_v30  ;;  %v2005_v30 = vld [vmem:[#allocation1 + $0x2d] sm:$0xff] }
  0x8e   :  { %8271 = vmatpush.bf16.msra.mxu0 %v13727_v31  ;;  %v2007_v31 = vld [vmem:[#allocation1 + $0x3f] sm:$0xff] }
  0x8f   :  { %8297 = vmatpush.bf16.msra.mxu2 %v13743_v32  ;;  %v25_v32 = vld [vmem:[%s17633_s0 + $0x18] sm:$0xff] }
  0x90   :  { %8284 = vmatpush.bf16.msra.mxu1 %v13735_v33  ;;  %2009 = vst [vmem:[#allocation1] ss:$9 sm:$0xff] %v25_v32  ;;  %v13764_v33 = vld [vmem:[%s17634_s1 + $0x548] sm:$0xff]  ;;  %v13849_v32 = vld [vmem:[%s17634_s1 + $0x7f0] sm:$0xff] }
  0x91   :  { %8310 = vmatpush.bf16.msra.mxu3 %v13751_v34  ;;  %v13780_v34 = vld [vmem:[%s17634_s1 + $0x5c8] sm:$0xff] }
  0x92   :  { %8272 = vmatpush.bf16.msra.mxu0 %v13726_v35 }
  0x93   :  { %8298 = vmatpush.bf16.msra.mxu2 %v13742_v36  ;;  %v13755_v36 = vld [vmem:[%s17634_s1 + $0x500] sm:$0xff] }
  0x94   :  { %8285 = vmatpush.bf16.msra.mxu1 %v13734_v37  ;;  %v13771_v37 = vld [vmem:[%s17634_s1 + $0x580] sm:$0xff] }
  0x95   :  { %8311 = vmatpush.bf16.msra.mxu3 %v13750_v38  ;;  %v13794_v38 = vld [vmem:[%s17634_s1 + $0x638] sm:$0xff] }
  0x96   :  { %8273 = vmatpush.bf16.msra.mxu0 %v13725_v39  ;;  %v13810_v39 = vld [vmem:[%s17634_s1 + $0x6b8] sm:$0xff] }
  0x97   :  { %8299 = vmatpush.bf16.msra.mxu2 %v13741_v40 }
  0x98   :  { %8286 = vmatpush.bf16.msra.mxu1 %v13733_v41  ;;  %v13763_v41 = vld [vmem:[%s17634_s1 + $0x540] sm:$0xff] }
  0x99   :  { %8312 = vmatpush.bf16.msra.mxu3 %v13749_v42  ;;  %v13779_v42 = vld [vmem:[%s17634_s1 + $0x5c0] sm:$0xff] }
  0x9a   :  { %8274 = vmatpush.bf16.msra.mxu0 %v13724_v43  ;;  %v13802_v43 = vld [vmem:[%s17634_s1 + $0x678] sm:$0xff] }
  0x9b   :  { %8300 = vmatpush.bf16.msra.mxu2 %v13740_v44  ;;  %v13818_v44 = vld [vmem:[%s17634_s1 + $0x6f8] sm:$0xff] }
  0x9c   :  { %8287 = vmatpush.bf16.msra.mxu1 %v13732_v45  ;;  %v13793_v45 = vld [vmem:[%s17634_s1 + $0x630] sm:$0xff] }
  0x9d   :  { %8313 = vmatpush.bf16.msra.mxu3 %v13748_v46  ;;  %v13809_v46 = vld [vmem:[%s17634_s1 + $0x6b0] sm:$0xff] }
  0x9e   :  { %8275 = vmatpush.bf16.msra.mxu0 %v13723_v47  ;;  %v8069_v6 = vpop.f32.mrf.mxu0  ;;  %v13801_v47 = vld [vmem:[%s17634_s1 + $0x670] sm:$0xff] }
  0x9f   :  { %8301 = vmatpush.bf16.msra.mxu2 %v13739_v48  ;;  %v8070_v9 = vadd.f32 %v14568_v3, %v8069_v6  ;;  %v13817_v48 = vld [vmem:[%s17634_s1 + $0x6f0] sm:$0xff] }
  0xa0   :  { %8288 = vmatpush.bf16.msra.mxu1 %v13731_v51  ;;  %v8082_v10 = vpop.f32.mrf.mxu1  ;;  %v13800_v51 = vld [vmem:[%s17634_s1 + $0x668] sm:$0xff]  ;;  %v13789_v3 = vld [vmem:[%s17634_s1 + $0x610] sm:$0xff] }
  0xa1   :  { %8314 = vmatpush.bf16.msra.mxu3 %v13747_v52  ;;  %8276 = vmatmul.bf16.vlgmr.msra.gmra.mxu0 %v2000_v54  ;;  %v8083_v13 = vadd.f32 %v8082_v10, %v8070_v9  ;;  %v13816_v52 = vld [vmem:[%s17634_s1 + $0x6e8] sm:$0xff]  ;;  %v13807_v54 = vld [vmem:[%s17634_s1 + $0x6a0] sm:$0xff]  ;;  %v13813_v9 = vld [vmem:[%s17634_s1 + $0x6d0] sm:$0xff] }
  0xa2   :  { %8320 = vmatpush.bf16.msrb.mxu0 %v13762_v49  ;;  %8302 = vmatmul.bf16.vlgmr.msra.gmra.mxu2 %v2002_v55  ;;  %v13792_v49 = vld [vmem:[%s17634_s1 + $0x628] sm:$0xff] }
  0xa3   :  { %8346 = vmatpush.bf16.msrb.mxu2 %v13778_v50  ;;  %8289 = vmatmul.bf16.vlgmr.msra.gmra.mxu1 %v2001_v57  ;;  %v13808_v50 = vld [vmem:[%s17634_s1 + $0x6a8] sm:$0xff]  ;;  %v13799_v57 = vld [vmem:[%s17634_s1 + $0x660] sm:$0xff] }
  0xa4   :  { %8333 = vmatpush.bf16.msrb.mxu1 %v13770_v53  ;;  %8315 = vmatmul.bf16.vlgmr.msra.gmra.mxu3 %v2003_v58  ;;  %v13791_v53 = vld [vmem:[%s17634_s1 + $0x620] sm:$0xff] }
  0xa5   :  { %8359 = vmatpush.bf16.msrb.mxu3 %v13786_v56  ;;  %v8095_v16 = vpop.f32.mrf.mxu2  ;;  %v13815_v58 = vld [vmem:[%s17634_s1 + $0x6e0] sm:$0xff] }
  0xa6   :  { %8321 = vmatpush.bf16.msrb.mxu0 %v13761_v59  ;;  %v8096_v19 = vadd.f32 %v8095_v16, %v8083_v13  ;;  %v8071_v21 = vpop.f32.mrf.mxu0  ;;  %v13796_v13 = vld [vmem:[%s17634_s1 + $0x648] sm:$0xff]  ;;  %v13787_v16 = vld [vmem:[%s17634_s1 + $0x600] sm:$0xff] }
  0xa7   :  { %8347 = vmatpush.bf16.msrb.mxu2 %v13777_v60  ;;  %v8108_v20 = vpop.f32.mrf.mxu3  ;;  %v13795_v21 = vld [vmem:[%s17634_s1 + $0x640] sm:$0xff] }
  0xa8   :  { %8334 = vmatpush.bf16.msrb.mxu1 %v13769_v61  ;;  %v8109_v25 = vadd.f32 %v8108_v20, %v8096_v19  ;;  %v8084_v29 = vpop.f32.mrf.mxu1  ;;  %v13790_v61 = vld [vmem:[%s17634_s1 + $0x618] sm:$0xff] }
  0xa9   :  { %8360 = vmatpush.bf16.msrb.mxu3 %v13785_v62  ;;  %v13806_v62 = vld [vmem:[%s17634_s1 + $0x698] sm:$0xff]  ;;  %v13825_v29 = vld [vmem:[%s17634_s1 + $0x730] sm:$0xff] }
  0xaa   :  { %8322 = vmatpush.bf16.msrb.mxu0 %v13760_v63  ;;  %v13798_v63 = vld [vmem:[%s17634_s1 + $0x658] sm:$0xff] }
  0xab   :  { %8348 = vmatpush.bf16.msrb.mxu2 %v13776_v0  ;;  %v13814_v0 = vld [vmem:[%s17634_s1 + $0x6d8] sm:$0xff] }
  0xac   :  { %8335 = vmatpush.bf16.msrb.mxu1 %v13768_v1  ;;  %v13826_v19 = vld [vmem:[%s17634_s1 + $0x738] sm:$0xff] }
  0xad   :  { %8361 = vmatpush.bf16.msrb.mxu3 %v13784_v2  ;;  %v8097_v35 = vpop.f32.mrf.mxu2  ;;  %v13842_v20 = vld [vmem:[%s17634_s1 + $0x7b8] sm:$0xff] }
  0xae   :  { %8323 = vmatpush.bf16.msrb.mxu0 %v13759_v4  ;;  %v13805_v4 = vld [vmem:[%s17634_s1 + $0x690] sm:$0xff]  ;;  %v13832_v35 = vld [vmem:[%s17634_s1 + $0x768] sm:$0xff] }
  0xaf   :  { %8349 = vmatpush.bf16.msrb.mxu2 %v13775_v5  ;;  %v8110_v40 = vpop.f32.mrf.mxu3 }
  0xb0   :  { %8336 = vmatpush.bf16.msrb.mxu1 %v13767_v7  ;;  %v13839_v40 = vld [vmem:[%s17634_s1 + $0x7a0] sm:$0xff] }
  0xb1   :  { %8362 = vmatpush.bf16.msrb.mxu3 %v13783_v8  ;;  %v13797_v8 = vld [vmem:[%s17634_s1 + $0x650] sm:$0xff] }
  0xb2   :  { %8324 = vmatpush.bf16.msrb.mxu0 %v13758_v11  ;;  %v13788_v11 = vld [vmem:[%s17634_s1 + $0x608] sm:$0xff] }
  0xb3   :  { %8350 = vmatpush.bf16.msrb.mxu2 %v13774_v12  ;;  %v13804_v12 = vld [vmem:[%s17634_s1 + $0x688] sm:$0xff] }
  0xb4   :  { %8337 = vmatpush.bf16.msrb.mxu1 %v13766_v14  ;;  %v13812_v14 = vld [vmem:[%s17634_s1 + $0x6c8] sm:$0xff] }
  0xb5   :  { %8363 = vmatpush.bf16.msrb.mxu3 %v13782_v15 }
  0xb6   :  { %8325 = vmatpush.bf16.msrb.mxu0 %v13757_v17  ;;  %v13803_v17 = vld [vmem:[%s17634_s1 + $0x680] sm:$0xff] }
  0xb7   :  { %8351 = vmatpush.bf16.msrb.mxu2 %v13773_v18 }
  0xb8   :  { %8338 = vmatpush.bf16.msrb.mxu1 %v13765_v22  ;;  %v13811_v22 = vld [vmem:[%s17634_s1 + $0x6c0] sm:$0xff] }
  0xb9   :  { %8364 = vmatpush.bf16.msrb.mxu3 %v13781_v23  ;;  %v13834_v23 = vld [vmem:[%s17634_s1 + $0x778] sm:$0xff] }
  0xba   :  { %8326 = vmatpush.bf16.msrb.mxu0 %v13756_v24  ;;  %v2010_v24 = vld [vmem:[#allocation1] sm:$0xff] }
  0xbb   :  { %8352 = vmatpush.bf16.msrb.mxu2 %v13772_v26  ;;  %v13850_v26 = vld [vmem:[%s17634_s1 + $0x7f8] sm:$0xff] }
  0xbc   :  { %8339 = vmatpush.bf16.msrb.mxu1 %v13764_v33  ;;  %v13824_v33 = vld [vmem:[%s17634_s1 + $0x728] sm:$0xff] }
  0xbd   :  { %8365 = vmatpush.bf16.msrb.mxu3 %v13780_v34  ;;  %v13840_v34 = vld [vmem:[%s17634_s1 + $0x7a8] sm:$0xff] }
  0xbe   :  { %8327 = vmatpush.bf16.msrb.mxu0 %v13755_v36  ;;  %v8121_v55 = vpop.f32.mrf.mxu0  ;;  %v13848_v36 = vld [vmem:[%s17634_s1 + $0x7e8] sm:$0xff] }
  0xbf   :  { %8353 = vmatpush.bf16.msrb.mxu2 %v13771_v37  ;;  %v8122_v56 = vadd.f32 %v8121_v55, %v8109_v25  ;;  %v2012_v25 = vld [vmem:[#allocation1 + $0x12] sm:$0xff] }
  0xc0   :  { %8340 = vmatpush.bf16.msrb.mxu1 %v13763_v41  ;;  %v8134_v59 = vpop.f32.mrf.mxu1  ;;  %v13837_v55 = vld [vmem:[%s17634_s1 + $0x790] sm:$0xff] }
  0xc1   :  { %8366 = vmatpush.bf16.msrb.mxu3 %v13779_v42  ;;  %8328 = vmatmul.bf16.vlgmr.msrb.gmra.mxu0 %v2004_v27  ;;  %v8135_v60 = vadd.f32 %v8134_v59, %v8122_v56  ;;  %v2011_v27 = vld [vmem:[#allocation1 + $0x9] sm:$0xff] }
  0xc2   :  { %8372 = vmatpush.bf16.msra.mxu0 %v13794_v38  ;;  %8354 = vmatmul.bf16.vlgmr.msrb.gmra.mxu2 %v2006_v28  ;;  %v2013_v28 = vld [vmem:[#allocation1 + $0x1b] sm:$0xff]  ;;  %v13820_v59 = vld [vmem:[%s17634_s1 + $0x708] sm:$0xff] }
  0xc3   :  { %8398 = vmatpush.bf16.msra.mxu2 %v13810_v39  ;;  %8341 = vmatmul.bf16.vlgmr.msrb.gmra.mxu1 %v2005_v30  ;;  %v13841_v30 = vld [vmem:[%s17634_s1 + $0x7b0] sm:$0xff]  ;;  %v13823_v39 = vld [vmem:[%s17634_s1 + $0x720] sm:$0xff] }
  0xc4   :  { %8385 = vmatpush.bf16.msra.mxu1 %v13802_v43  ;;  %8367 = vmatmul.bf16.vlgmr.msrb.gmra.mxu3 %v2007_v31  ;;  %v13833_v31 = vld [vmem:[%s17634_s1 + $0x770] sm:$0xff]  ;;  %v13831_v43 = vld [vmem:[%s17634_s1 + $0x760] sm:$0xff] }
  0xc5   :  { %8411 = vmatpush.bf16.msra.mxu3 %v13818_v44  ;;  %v8147_v1 = vpop.f32.mrf.mxu2  ;;  %v13847_v44 = vld [vmem:[%s17634_s1 + $0x7e0] sm:$0xff] }
  0xc6   :  { %8373 = vmatpush.bf16.msra.mxu0 %v13793_v45  ;;  %v8148_v2 = vadd.f32 %v8147_v1, %v8135_v60  ;;  %v8123_v6 = vpop.f32.mrf.mxu0  ;;  %v13822_v45 = vld [vmem:[%s17634_s1 + $0x718] sm:$0xff]  ;;  %v13836_v60 = vld [vmem:[%s17634_s1 + $0x788] sm:$0xff] }
  0xc7   :  { %8399 = vmatpush.bf16.msra.mxu2 %v13809_v46  ;;  %v8160_v5 = vpop.f32.mrf.mxu3  ;;  %v13838_v46 = vld [vmem:[%s17634_s1 + $0x798] sm:$0xff]  ;;  %v13819_v6 = vld [vmem:[%s17634_s1 + $0x700] sm:$0xff] }
  0xc8   :  { %8386 = vmatpush.bf16.msra.mxu1 %v13801_v47  ;;  %v8161_v7 = vadd.f32 %v8160_v5, %v8148_v2  ;;  %v8136_v10 = vpop.f32.mrf.mxu1  ;;  %v26_v2 = vld [vmem:[%s17633_s0 + $0x20] sm:$0xff] }
  0xc9   :  { %8412 = vmatpush.bf16.msra.mxu3 %v13817_v48  ;;  %v13827_v10 = vld [vmem:[%s17634_s1 + $0x740] sm:$0xff] }
  0xca   :  { %8374 = vmatpush.bf16.msra.mxu0 %v13792_v49  ;;  %v13830_v49 = vld [vmem:[%s17634_s1 + $0x758] sm:$0xff] }
  0xcb   :  { %8400 = vmatpush.bf16.msra.mxu2 %v13808_v50  ;;  %v13846_v50 = vld [vmem:[%s17634_s1 + $0x7d8] sm:$0xff] }
  0xcc   :  { %8387 = vmatpush.bf16.msra.mxu1 %v13800_v51 }
  0xcd   :  { %8413 = vmatpush.bf16.msra.mxu3 %v13816_v52  ;;  %v8149_v15 = vpop.f32.mrf.mxu2 }
  0xce   :  { %8375 = vmatpush.bf16.msra.mxu0 %v13791_v53  ;;  %v13873_v15 = vld [vmem:[%s17634_s1 + $0x8b0] sm:$0xff] }
  0xcf   :  { %8401 = vmatpush.bf16.msra.mxu2 %v13807_v54  ;;  %v8162_v18 = vpop.f32.mrf.mxu3  ;;  %v13821_v54 = vld [vmem:[%s17634_s1 + $0x710] sm:$0xff] }
  0xd0   :  { %8388 = vmatpush.bf16.msra.mxu1 %v13799_v57  ;;  %v13829_v57 = vld [vmem:[%s17634_s1 + $0x750] sm:$0xff]  ;;  %v13856_v18 = vld [vmem:[%s17634_s1 + $0x828] sm:$0xff] }
  0xd1   :  { %8414 = vmatpush.bf16.msra.mxu3 %v13815_v58  ;;  %v13845_v58 = vld [vmem:[%s17634_s1 + $0x7d0] sm:$0xff] }
  0xd2   :  { %8376 = vmatpush.bf16.msra.mxu0 %v13790_v61  ;;  %v2014_v61 = vld [vmem:[#allocation1 + $0x24] sm:$0xff] }
  0xd3   :  { %8402 = vmatpush.bf16.msra.mxu2 %v13806_v62  ;;  %v2016_v62 = vld [vmem:[#allocation1 + $0x36] sm:$0xff] }
  0xd4   :  { %8389 = vmatpush.bf16.msra.mxu1 %v13798_v63  ;;  %v2015_v63 = vld [vmem:[#allocation1 + $0x2d] sm:$0xff] }
  0xd5   :  { %8415 = vmatpush.bf16.msra.mxu3 %v13814_v0  ;;  %v2017_v0 = vld [vmem:[#allocation1 + $0x3f] sm:$0xff] }
  0xd6   :  { %8377 = vmatpush.bf16.msra.mxu0 %v13789_v3  ;;  %2019 = vst [vmem:[#allocation1] ss:$9 sm:$0xff] %v26_v2  ;;  %v13828_v3 = vld [vmem:[%s17634_s1 + $0x748] sm:$0xff] }
  0xd7   :  { %8403 = vmatpush.bf16.msra.mxu2 %v13805_v4  ;;  %v13844_v4 = vld [vmem:[%s17634_s1 + $0x7c8] sm:$0xff] }
  0xd8   :  { %8390 = vmatpush.bf16.msra.mxu1 %v13797_v8  ;;  %v13858_v8 = vld [vmem:[%s17634_s1 + $0x838] sm:$0xff]  ;;  %v13888_v2 = vld [vmem:[%s17634_s1 + $0x928] sm:$0xff] }
  0xd9   :  { %8416 = vmatpush.bf16.msra.mxu3 %v13813_v9  ;;  %v13874_v9 = vld [vmem:[%s17634_s1 + $0x8b8] sm:$0xff] }
  0xda   :  { %8378 = vmatpush.bf16.msra.mxu0 %v13788_v11  ;;  %v13843_v11 = vld [vmem:[%s17634_s1 + $0x7c0] sm:$0xff] }
  0xdb   :  { %8404 = vmatpush.bf16.msra.mxu2 %v13804_v12  ;;  %v13866_v12 = vld [vmem:[%s17634_s1 + $0x878] sm:$0xff] }
  0xdc   :  { %8391 = vmatpush.bf16.msra.mxu1 %v13796_v13  ;;  %v13882_v13 = vld [vmem:[%s17634_s1 + $0x8f8] sm:$0xff] }
  0xdd   :  { %8417 = vmatpush.bf16.msra.mxu3 %v13812_v14  ;;  %v13857_v14 = vld [vmem:[%s17634_s1 + $0x830] sm:$0xff] }
  0xde   :  { %8379 = vmatpush.bf16.msra.mxu0 %v13787_v16  ;;  %v8173_v37 = vpop.f32.mrf.mxu0  ;;  %v13865_v16 = vld [vmem:[%s17634_s1 + $0x870] sm:$0xff] }
  0xdf   :  { %8405 = vmatpush.bf16.msra.mxu2 %v13803_v17  ;;  %v8174_v38 = vadd.f32 %v8173_v37, %v8161_v7  ;;  %v13835_v7 = vld [vmem:[%s17634_s1 + $0x780] sm:$0xff]  ;;  %v13881_v17 = vld [vmem:[%s17634_s1 + $0x8f0] sm:$0xff] }
  0xe0   :  { %8392 = vmatpush.bf16.msra.mxu1 %v13795_v21  ;;  %v8186_v41 = vpop.f32.mrf.mxu1  ;;  %v13880_v21 = vld [vmem:[%s17634_s1 + $0x8e8] sm:$0xff] }
  0xe1   :  { %8418 = vmatpush.bf16.msra.mxu3 %v13811_v22  ;;  %8380 = vmatmul.bf16.vlgmr.msra.gmra.mxu0 %v2010_v24  ;;  %v8187_v42 = vadd.f32 %v8186_v41, %v8174_v38  ;;  %v13855_v24 = vld [vmem:[%s17634_s1 + $0x820] sm:$0xff] }
  0xe2   :  { %8424 = vmatpush.bf16.msrb.mxu0 %v13826_v19  ;;  %8406 = vmatmul.bf16.vlgmr.msra.gmra.mxu2 %v2012_v25  ;;  %v13872_v19 = vld [vmem:[%s17634_s1 + $0x8a8] sm:$0xff]  ;;  %v13871_v25 = vld [vmem:[%s17634_s1 + $0x8a0] sm:$0xff] }
  0xe3   :  { %8450 = vmatpush.bf16.msrb.mxu2 %v13842_v20  ;;  %8393 = vmatmul.bf16.vlgmr.msra.gmra.mxu1 %v2011_v27  ;;  %v13864_v20 = vld [vmem:[%s17634_s1 + $0x868] sm:$0xff] }
  0xe4   :  { %8437 = vmatpush.bf16.msrb.mxu1 %v13834_v23  ;;  %8419 = vmatmul.bf16.vlgmr.msra.gmra.mxu3 %v2013_v28  ;;  %v13863_v28 = vld [vmem:[%s17634_s1 + $0x860] sm:$0xff] }
  0xe5   :  { %8463 = vmatpush.bf16.msrb.mxu3 %v13850_v26  ;;  %v8199_v47 = vpop.f32.mrf.mxu2 }
  0xe6   :  { %8425 = vmatpush.bf16.msrb.mxu0 %v13825_v29  ;;  %v8200_v48 = vadd.f32 %v8199_v47, %v8187_v42  ;;  %v8175_v52 = vpop.f32.mrf.mxu0  ;;  %v13879_v29 = vld [vmem:[%s17634_s1 + $0x8e0] sm:$0xff]  ;;  %v13861_v42 = vld [vmem:[%s17634_s1 + $0x850] sm:$0xff]  ;;  %v13860_v47 = vld [vmem:[%s17634_s1 + $0x848] sm:$0xff] }
  0xe7   :  { %8451 = vmatpush.bf16.msrb.mxu2 %v13841_v30  ;;  %v8212_v51 = vpop.f32.mrf.mxu3  ;;  %v13854_v30 = vld [vmem:[%s17634_s1 + $0x818] sm:$0xff] }
  0xe8   :  { %8438 = vmatpush.bf16.msrb.mxu1 %v13833_v31  ;;  %v15374_v53 = vadd.f32 %v8212_v51, %v8200_v48  ;;  %v8188_v56 = vpop.f32.mrf.mxu1  ;;  %v13870_v31 = vld [vmem:[%s17634_s1 + $0x898] sm:$0xff]  ;;  %v13876_v48 = vld [vmem:[%s17634_s1 + $0x8c8] sm:$0xff]  ;;  %v13867_v51 = vld [vmem:[%s17634_s1 + $0x880] sm:$0xff] }
  0xe9   :  { %8464 = vmatpush.bf16.msrb.mxu3 %v13849_v32  ;;  %v13890_v52 = vld [vmem:[%s17634_s1 + $0x938] sm:$0xff] }
  0xea   :  { %8426 = vmatpush.bf16.msrb.mxu0 %v13824_v33  ;;  %v13898_v56 = vld [vmem:[%s17634_s1 + $0x978] sm:$0xff] }
  0xeb   :  { %8452 = vmatpush.bf16.msrb.mxu2 %v13840_v34  ;;  %v13862_v34 = vld [vmem:[%s17634_s1 + $0x858] sm:$0xff] }
  0xec   :  { %8439 = vmatpush.bf16.msrb.mxu1 %v13832_v35  ;;  %v13878_v35 = vld [vmem:[%s17634_s1 + $0x8d8] sm:$0xff] }
  0xed   :  { %8465 = vmatpush.bf16.msrb.mxu3 %v13848_v36  ;;  %v8201_v1 = vpop.f32.mrf.mxu2 }
  0xee   :  { %8427 = vmatpush.bf16.msrb.mxu0 %v13823_v39  ;;  %v13853_v39 = vld [vmem:[%s17634_s1 + $0x810] sm:$0xff] }
  0xef   :  { %8453 = vmatpush.bf16.msrb.mxu2 %v13839_v40  ;;  %v8214_v5 = vpop.f32.mrf.mxu3  ;;  %v13869_v40 = vld [vmem:[%s17634_s1 + $0x890] sm:$0xff] }
  0xf0   :  { %8440 = vmatpush.bf16.msrb.mxu1 %v13831_v43  ;;  %v13877_v43 = vld [vmem:[%s17634_s1 + $0x8d0] sm:$0xff]  ;;  %v13912_v5 = vld [vmem:[%s17634_s1 + $0x9e8] sm:$0xff] }
  0xf1   :  { %8466 = vmatpush.bf16.msrb.mxu3 %v13847_v44  ;;  %v13852_v44 = vld [vmem:[%s17634_s1 + $0x808] sm:$0xff]  ;;  %v13913_v1 = vld [vmem:[%s17634_s1 + $0x9f0] sm:$0xff] }
  0xf2   :  { %8428 = vmatpush.bf16.msrb.mxu0 %v13822_v45  ;;  %v13868_v45 = vld [vmem:[%s17634_s1 + $0x888] sm:$0xff] }
  0xf3   :  { %8454 = vmatpush.bf16.msrb.mxu2 %v13838_v46 }
  0xf4   :  { %8441 = vmatpush.bf16.msrb.mxu1 %v13830_v49 }
  0xf5   :  { %8467 = vmatpush.bf16.msrb.mxu3 %v13846_v50  ;;  %v13851_v50 = vld [vmem:[%s17634_s1 + $0x800] sm:$0xff] }
  0xf6   :  { %8429 = vmatpush.bf16.msrb.mxu0 %v13821_v54  ;;  %v13859_v54 = vld [vmem:[%s17634_s1 + $0x840] sm:$0xff] }
  0xf7   :  { %8455 = vmatpush.bf16.msrb.mxu2 %v13837_v55  ;;  %v13875_v55 = vld [vmem:[%s17634_s1 + $0x8c0] sm:$0xff] }
  0xf8   :  { %8442 = vmatpush.bf16.msrb.mxu1 %v13829_v57  ;;  %v2020_v57 = vld [vmem:[#allocation1] sm:$0xff] }
  0xf9   :  { %8468 = vmatpush.bf16.msrb.mxu3 %v13845_v58  ;;  %v2022_v58 = vld [vmem:[#allocation1 + $0x12] sm:$0xff] }
  0xfa   :  { %8430 = vmatpush.bf16.msrb.mxu0 %v13820_v59  ;;  %v13914_v59 = vld [vmem:[%s17634_s1 + $0x9f8] sm:$0xff] }
  0xfb   :  { %8456 = vmatpush.bf16.msrb.mxu2 %v13836_v60  ;;  %v2021_v60 = vld [vmem:[#allocation1 + $0x9] sm:$0xff] }
  0xfc   :  { %8443 = vmatpush.bf16.msrb.mxu1 %v13828_v3  ;;  %v13904_v3 = vld [vmem:[%s17634_s1 + $0x9a8] sm:$0xff] }
  0xfd   :  { %8469 = vmatpush.bf16.msrb.mxu3 %v13844_v4  ;;  %v13896_v4 = vld [vmem:[%s17634_s1 + $0x968] sm:$0xff] }
  0xfe   :  { %8431 = vmatpush.bf16.msrb.mxu0 %v13819_v6  ;;  %v8225_v22 = vpop.f32.mrf.mxu0 }
  0xff   :  { %8457 = vmatpush.bf16.msrb.mxu2 %v13835_v7  ;;  %v8226_v23 = vadd.f32 %v8225_v22, %v15374_v53  ;;  %v13906_v53 = vld [vmem:[%s17634_s1 + $0x9b8] sm:$0xff] }
 0x100   :  { %8444 = vmatpush.bf16.msrb.mxu1 %v13827_v10  ;;  %v8238_v26 = vpop.f32.mrf.mxu1 }
 0x101   :  { %8470 = vmatpush.bf16.msrb.mxu3 %v13843_v11  ;;  %8432 = vmatmul.bf16.vlgmr.msrb.gmra.mxu0 %v2014_v61  ;;  %v8239_v27 = vadd.f32 %v8238_v26, %v8226_v23  ;;  %v2023_v61 = vld [vmem:[#allocation1 + $0x1b] sm:$0xff]  ;;  %v13885_v23 = vld [vmem:[%s17634_s1 + $0x910] sm:$0xff] }
 0x102   :  { %8476 = vmatpush.bf16.msra.mxu0 %v13858_v8  ;;  %8458 = vmatmul.bf16.vlgmr.msrb.gmra.mxu2 %v2016_v62  ;;  %v13889_v62 = vld [vmem:[%s17634_s1 + $0x930] sm:$0xff]  ;;  %v13887_v8 = vld [vmem:[%s17634_s1 + $0x920] sm:$0xff] }
 0x103   :  { %8502 = vmatpush.bf16.msra.mxu2 %v13874_v9  ;;  %8445 = vmatmul.bf16.vlgmr.msrb.gmra.mxu1 %v2015_v63  ;;  %v13905_v63 = vld [vmem:[%s17634_s1 + $0x9b0] sm:$0xff]  ;;  %v13903_v9 = vld [vmem:[%s17634_s1 + $0x9a0] sm:$0xff] }
 0x104   :  { %8489 = vmatpush.bf16.msra.mxu1 %v13866_v12  ;;  %8471 = vmatmul.bf16.vlgmr.msrb.gmra.mxu3 %v2017_v0  ;;  %v13897_v0 = vld [vmem:[%s17634_s1 + $0x970] sm:$0xff]  ;;  %v13895_v12 = vld [vmem:[%s17634_s1 + $0x960] sm:$0xff] }
 0x105   :  { %8515 = vmatpush.bf16.msra.mxu3 %v13882_v13  ;;  %v8251_v32 = vpop.f32.mrf.mxu2  ;;  %v13911_v13 = vld [vmem:[%s17634_s1 + $0x9e0] sm:$0xff]  ;;  %v13893_v26 = vld [vmem:[%s17634_s1 + $0x950] sm:$0xff] }
 0x106   :  { %8477 = vmatpush.bf16.msra.mxu0 %v13857_v14  ;;  %v8252_v33 = vadd.f32 %v8251_v32, %v8239_v27  ;;  %v8227_v37 = vpop.f32.mrf.mxu0  ;;  %v13886_v14 = vld [vmem:[%s17634_s1 + $0x918] sm:$0xff]  ;;  %v13909_v27 = vld [vmem:[%s17634_s1 + $0x9d0] sm:$0xff] }
 0x107   :  { %8503 = vmatpush.bf16.msra.mxu2 %v13873_v15  ;;  %v8264_v36 = vpop.f32.mrf.mxu3  ;;  %v13902_v15 = vld [vmem:[%s17634_s1 + $0x998] sm:$0xff]  ;;  %v2025_v32 = vld [vmem:[#allocation1 + $0x2d] sm:$0xff] }
 0x108   :  { %8490 = vmatpush.bf16.msra.mxu1 %v13865_v16  ;;  %v8265_v38 = vadd.f32 %v8264_v36, %v8252_v33  ;;  %v8240_v41 = vpop.f32.mrf.mxu1  ;;  %v2027_v33 = vld [vmem:[#allocation1 + $0x3f] sm:$0xff]  ;;  %v13892_v36 = vld [vmem:[%s17634_s1 + $0x948] sm:$0xff] }
 0x109   :  { %8516 = vmatpush.bf16.msra.mxu3 %v13881_v17  ;;  %v13908_v37 = vld [vmem:[%s17634_s1 + $0x9c8] sm:$0xff]  ;;  %v13922_v41 = vld [vmem:[%s17634_s1 + $0xa38] sm:$0xff] }
 0x10a   :  { %8478 = vmatpush.bf16.msra.mxu0 %v13856_v18  ;;  %v13894_v18 = vld [vmem:[%s17634_s1 + $0x958] sm:$0xff] }
 0x10b   :  { %8504 = vmatpush.bf16.msra.mxu2 %v13872_v19  ;;  %v13910_v19 = vld [vmem:[%s17634_s1 + $0x9d8] sm:$0xff] }
 0x10c   :  { %8491 = vmatpush.bf16.msra.mxu1 %v13864_v20 }
 0x10d   :  { %8517 = vmatpush.bf16.msra.mxu3 %v13880_v21  ;;  %v8253_v46 = vpop.f32.mrf.mxu2 }
 0x10e   :  { %8479 = vmatpush.bf16.msra.mxu0 %v13855_v24  ;;  %v13901_v24 = vld [vmem:[%s17634_s1 + $0x990] sm:$0xff]  ;;  %v13946_v46 = vld [vmem:[%s17634_s1 + $0xaf8] sm:$0xff] }
 0x10f   :  { %8505 = vmatpush.bf16.msra.mxu2 %v13871_v25  ;;  %v8266_v49 = vpop.f32.mrf.mxu3 }
 0x110   :  { %8492 = vmatpush.bf16.msra.mxu1 %v13863_v28  ;;  %v13884_v28 = vld [vmem:[%s17634_s1 + $0x908] sm:$0xff]  ;;  %v13929_v49 = vld [vmem:[%s17634_s1 + $0xa70] sm:$0xff] }
 0x111   :  { %8518 = vmatpush.bf16.msra.mxu3 %v13879_v29  ;;  %v13900_v29 = vld [vmem:[%s17634_s1 + $0x988] sm:$0xff] }
 0x112   :  { %8480 = vmatpush.bf16.msra.mxu0 %v13854_v30  ;;  %v2024_v30 = vld [vmem:[#allocation1 + $0x24] sm:$0xff] }
 0x113   :  { %8506 = vmatpush.bf16.msra.mxu2 %v13870_v31  ;;  %v2026_v31 = vld [vmem:[#allocation1 + $0x36] sm:$0xff] }
 0x114   :  { %8493 = vmatpush.bf16.msra.mxu1 %v13862_v34 }
 0x115   :  { %8519 = vmatpush.bf16.msra.mxu3 %v13878_v35  ;;  %v27_v35 = vld [vmem:[%s17633_s0 + $0x28] sm:$0xff] }
 0x116   :  { %8481 = vmatpush.bf16.msra.mxu0 %v13853_v39  ;;  %2029 = vst [vmem:[#allocation1] ss:$9 sm:$0xff] %v27_v35  ;;  %v13883_v39 = vld [vmem:[%s17634_s1 + $0x900] sm:$0xff]  ;;  %v13952_v35 = vld [vmem:[%s17634_s1 + $0xb28] sm:$0xff] }
 0x117   :  { %8507 = vmatpush.bf16.msra.mxu2 %v13869_v40  ;;  %v13899_v40 = vld [vmem:[%s17634_s1 + $0x980] sm:$0xff] }
 0x118   :  { %8494 = vmatpush.bf16.msra.mxu1 %v13861_v42  ;;  %v13938_v42 = vld [vmem:[%s17634_s1 + $0xab8] sm:$0xff] }
 0x119   :  { %8520 = vmatpush.bf16.msra.mxu3 %v13877_v43  ;;  %v13891_v43 = vld [vmem:[%s17634_s1 + $0x940] sm:$0xff] }
 0x11a   :  { %8482 = vmatpush.bf16.msra.mxu0 %v13852_v44  ;;  %v13907_v44 = vld [vmem:[%s17634_s1 + $0x9c0] sm:$0xff] }
 0x11b   :  { %8508 = vmatpush.bf16.msra.mxu2 %v13868_v45  ;;  %v13930_v45 = vld [vmem:[%s17634_s1 + $0xa78] sm:$0xff] }
 0x11c   :  { %8495 = vmatpush.bf16.msra.mxu1 %v13860_v47  ;;  %v13921_v47 = vld [vmem:[%s17634_s1 + $0xa30] sm:$0xff] }
 0x11d   :  { %8521 = vmatpush.bf16.msra.mxu3 %v13876_v48  ;;  %v13937_v48 = vld [vmem:[%s17634_s1 + $0xab0] sm:$0xff] }
 0x11e   :  { %8483 = vmatpush.bf16.msra.mxu0 %v13851_v50  ;;  %v8277_v6 = vpop.f32.mrf.mxu0  ;;  %v13945_v50 = vld [vmem:[%s17634_s1 + $0xaf0] sm:$0xff] }
 0x11f   :  { %8509 = vmatpush.bf16.msra.mxu2 %v13867_v51  ;;  %v8278_v7 = vadd.f32 %v8277_v6, %v8265_v38  ;;  %v13920_v51 = vld [vmem:[%s17634_s1 + $0xa28] sm:$0xff] }
 0x120   :  { %8496 = vmatpush.bf16.msra.mxu1 %v13859_v54  ;;  %v8290_v10 = vpop.f32.mrf.mxu1  ;;  %v13944_v54 = vld [vmem:[%s17634_s1 + $0xae8] sm:$0xff] }
 0x121   :  { %8522 = vmatpush.bf16.msra.mxu3 %v13875_v55  ;;  %8484 = vmatmul.bf16.vlgmr.msra.gmra.mxu0 %v2020_v57  ;;  %v8291_v11 = vadd.f32 %v8290_v10, %v8278_v7  ;;  %v13919_v57 = vld [vmem:[%s17634_s1 + $0xa20] sm:$0xff] }
 0x122   :  { %8528 = vmatpush.bf16.msrb.mxu0 %v13890_v52  ;;  %8510 = vmatmul.bf16.vlgmr.msra.gmra.mxu2 %v2022_v58  ;;  %v13936_v52 = vld [vmem:[%s17634_s1 + $0xaa8] sm:$0xff]  ;;  %v13935_v58 = vld [vmem:[%s17634_s1 + $0xaa0] sm:$0xff] }
 0x123   :  { %8554 = vmatpush.bf16.msrb.mxu2 %v13906_v53  ;;  %8497 = vmatmul.bf16.vlgmr.msra.gmra.mxu1 %v2021_v60  ;;  %v13928_v53 = vld [vmem:[%s17634_s1 + $0xa68] sm:$0xff] }
 0x124   :  { %8541 = vmatpush.bf16.msrb.mxu1 %v13898_v56  ;;  %8523 = vmatmul.bf16.vlgmr.msra.gmra.mxu3 %v2023_v61  ;;  %v13927_v61 = vld [vmem:[%s17634_s1 + $0xa60] sm:$0xff] }
 0x125   :  { %8567 = vmatpush.bf16.msrb.mxu3 %v13914_v59  ;;  %v8303_v16 = vpop.f32.mrf.mxu2 }
 0x126   :  { %8529 = vmatpush.bf16.msrb.mxu0 %v13889_v62  ;;  %v8304_v17 = vadd.f32 %v8303_v16, %v8291_v11  ;;  %v8279_v21 = vpop.f32.mrf.mxu0  ;;  %v13943_v62 = vld [vmem:[%s17634_s1 + $0xae0] sm:$0xff]  ;;  %v13925_v11 = vld [vmem:[%s17634_s1 + $0xa50] sm:$0xff]  ;;  %v13924_v16 = vld [vmem:[%s17634_s1 + $0xa48] sm:$0xff] }
 0x127   :  { %8555 = vmatpush.bf16.msrb.mxu2 %v13905_v63  ;;  %v8316_v20 = vpop.f32.mrf.mxu3  ;;  %v13918_v63 = vld [vmem:[%s17634_s1 + $0xa18] sm:$0xff] }
 0x128   :  { %8542 = vmatpush.bf16.msrb.mxu1 %v13897_v0  ;;  %v15572_v22 = vadd.f32 %v8316_v20, %v8304_v17  ;;  %v8292_v25 = vpop.f32.mrf.mxu1  ;;  %v13934_v0 = vld [vmem:[%s17634_s1 + $0xa98] sm:$0xff]  ;;  %v13940_v17 = vld [vmem:[%s17634_s1 + $0xac8] sm:$0xff]  ;;  %v13931_v20 = vld [vmem:[%s17634_s1 + $0xa80] sm:$0xff] }
 0x129   :  { %8568 = vmatpush.bf16.msrb.mxu3 %v13913_v1  ;;  %v13954_v21 = vld [vmem:[%s17634_s1 + $0xb38] sm:$0xff] }
 0x12a   :  { %8530 = vmatpush.bf16.msrb.mxu0 %v13888_v2  ;;  %v13962_v25 = vld [vmem:[%s17634_s1 + $0xb78] sm:$0xff] }
 0x12b   :  { %8556 = vmatpush.bf16.msrb.mxu2 %v13904_v3  ;;  %v13926_v3 = vld [vmem:[%s17634_s1 + $0xa58] sm:$0xff] }
 0x12c   :  { %8543 = vmatpush.bf16.msrb.mxu1 %v13896_v4  ;;  %v13942_v4 = vld [vmem:[%s17634_s1 + $0xad8] sm:$0xff] }
 0x12d   :  { %8569 = vmatpush.bf16.msrb.mxu3 %v13912_v5  ;;  %v8305_v34 = vpop.f32.mrf.mxu2 }
 0x12e   :  { %8531 = vmatpush.bf16.msrb.mxu0 %v13887_v8  ;;  %v13917_v8 = vld [vmem:[%s17634_s1 + $0xa10] sm:$0xff] }
 0x12f   :  { %8557 = vmatpush.bf16.msrb.mxu2 %v13903_v9  ;;  %v8318_v38 = vpop.f32.mrf.mxu3  ;;  %v13933_v9 = vld [vmem:[%s17634_s1 + $0xa90] sm:$0xff] }
 0x130   :  { %8544 = vmatpush.bf16.msrb.mxu1 %v13895_v12  ;;  %v13941_v12 = vld [vmem:[%s17634_s1 + $0xad0] sm:$0xff]  ;;  %v13976_v38 = vld [vmem:[%s17634_s1 + $0xbe8] sm:$0xff] }
 0x131   :  { %8570 = vmatpush.bf16.msrb.mxu3 %v13911_v13  ;;  %v13916_v13 = vld [vmem:[%s17634_s1 + $0xa08] sm:$0xff]  ;;  %v13977_v34 = vld [vmem:[%s17634_s1 + $0xbf0] sm:$0xff] }
 0x132   :  { %8532 = vmatpush.bf16.msrb.mxu0 %v13886_v14  ;;  %v13932_v14 = vld [vmem:[%s17634_s1 + $0xa88] sm:$0xff] }
 0x133   :  { %8558 = vmatpush.bf16.msrb.mxu2 %v13902_v15 }
 0x134   :  { %8545 = vmatpush.bf16.msrb.mxu1 %v13894_v18 }
 0x135   :  { %8571 = vmatpush.bf16.msrb.mxu3 %v13910_v19  ;;  %v13915_v19 = vld [vmem:[%s17634_s1 + $0xa00] sm:$0xff] }
 0x136   :  { %8533 = vmatpush.bf16.msrb.mxu0 %v13885_v23  ;;  %v13923_v23 = vld [vmem:[%s17634_s1 + $0xa40] sm:$0xff] }
 0x137   :  { %8559 = vmatpush.bf16.msrb.mxu2 %v13901_v24  ;;  %v13939_v24 = vld [vmem:[%s17634_s1 + $0xac0] sm:$0xff] }
 0x138   :  { %8546 = vmatpush.bf16.msrb.mxu1 %v13893_v26  ;;  %v2030_v26 = vld [vmem:[#allocation1] sm:$0xff] }
 0x139   :  { %8572 = vmatpush.bf16.msrb.mxu3 %v13909_v27  ;;  %v2032_v27 = vld [vmem:[#allocation1 + $0x12] sm:$0xff] }
 0x13a   :  { %8534 = vmatpush.bf16.msrb.mxu0 %v13884_v28  ;;  %v13978_v28 = vld [vmem:[%s17634_s1 + $0xbf8] sm:$0xff] }
 0x13b   :  { %8560 = vmatpush.bf16.msrb.mxu2 %v13900_v29  ;;  %v2031_v29 = vld [vmem:[#allocation1 + $0x9] sm:$0xff] }
 0x13c   :  { %8547 = vmatpush.bf16.msrb.mxu1 %v13892_v36  ;;  %v13968_v36 = vld [vmem:[%s17634_s1 + $0xba8] sm:$0xff] }
 0x13d   :  { %8573 = vmatpush.bf16.msrb.mxu3 %v13908_v37  ;;  %v13960_v37 = vld [vmem:[%s17634_s1 + $0xb68] sm:$0xff] }
 0x13e   :  { %8535 = vmatpush.bf16.msrb.mxu0 %v13883_v39  ;;  %v8329_v55 = vpop.f32.mrf.mxu0 }
 0x13f   :  { %8561 = vmatpush.bf16.msrb.mxu2 %v13899_v40  ;;  %v8330_v56 = vadd.f32 %v8329_v55, %v15572_v22  ;;  %v13970_v22 = vld [vmem:[%s17634_s1 + $0xbb8] sm:$0xff] }
 0x140   :  { %8548 = vmatpush.bf16.msrb.mxu1 %v13891_v43  ;;  %v8342_v59 = vpop.f32.mrf.mxu1 }
 0x141   :  { %8574 = vmatpush.bf16.msrb.mxu3 %v13907_v44  ;;  %8536 = vmatmul.bf16.vlgmr.msrb.gmra.mxu0 %v2024_v30  ;;  %v8343_v60 = vadd.f32 %v8342_v59, %v8330_v56  ;;  %v2033_v30 = vld [vmem:[#allocation1 + $0x1b] sm:$0xff]  ;;  %v13949_v56 = vld [vmem:[%s17634_s1 + $0xb10] sm:$0xff] }
 0x142   :  { %8580 = vmatpush.bf16.msra.mxu0 %v13922_v41  ;;  %8562 = vmatmul.bf16.vlgmr.msrb.gmra.mxu2 %v2026_v31  ;;  %v13953_v31 = vld [vmem:[%s17634_s1 + $0xb30] sm:$0xff]  ;;  %v13951_v41 = vld [vmem:[%s17634_s1 + $0xb20] sm:$0xff] }
 0x143   :  { %8606 = vmatpush.bf16.msra.mxu2 %v13938_v42  ;;  %8549 = vmatmul.bf16.vlgmr.msrb.gmra.mxu1 %v2025_v32  ;;  %v13969_v32 = vld [vmem:[%s17634_s1 + $0xbb0] sm:$0xff]  ;;  %v13967_v42 = vld [vmem:[%s17634_s1 + $0xba0] sm:$0xff] }
 0x144   :  { %8593 = vmatpush.bf16.msra.mxu1 %v13930_v45  ;;  %8575 = vmatmul.bf16.vlgmr.msrb.gmra.mxu3 %v2027_v33  ;;  %v13961_v33 = vld [vmem:[%s17634_s1 + $0xb70] sm:$0xff]  ;;  %v13959_v45 = vld [vmem:[%s17634_s1 + $0xb60] sm:$0xff] }
 0x145   :  { %8619 = vmatpush.bf16.msra.mxu3 %v13946_v46  ;;  %v8355_v1 = vpop.f32.mrf.mxu2  ;;  %v13975_v46 = vld [vmem:[%s17634_s1 + $0xbe0] sm:$0xff]  ;;  %v13957_v59 = vld [vmem:[%s17634_s1 + $0xb50] sm:$0xff] }
 0x146   :  { %8581 = vmatpush.bf16.msra.mxu0 %v13921_v47  ;;  %v8356_v2 = vadd.f32 %v8355_v1, %v8343_v60  ;;  %v8331_v6 = vpop.f32.mrf.mxu0  ;;  %v13950_v47 = vld [vmem:[%s17634_s1 + $0xb18] sm:$0xff]  ;;  %v13973_v60 = vld [vmem:[%s17634_s1 + $0xbd0] sm:$0xff] }
 0x147   :  { %8607 = vmatpush.bf16.msra.mxu2 %v13937_v48  ;;  %v8368_v5 = vpop.f32.mrf.mxu3  ;;  %v13966_v48 = vld [vmem:[%s17634_s1 + $0xb98] sm:$0xff]  ;;  %v2035_v1 = vld [vmem:[#allocation1 + $0x2d] sm:$0xff] }
 0x148   :  { %8594 = vmatpush.bf16.msra.mxu1 %v13929_v49  ;;  %v8369_v7 = vadd.f32 %v8368_v5, %v8356_v2  ;;  %v8344_v10 = vpop.f32.mrf.mxu1  ;;  %v2037_v2 = vld [vmem:[#allocation1 + $0x3f] sm:$0xff]  ;;  %v13956_v5 = vld [vmem:[%s17634_s1 + $0xb48] sm:$0xff] }
 0x149   :  { %8620 = vmatpush.bf16.msra.mxu3 %v13945_v50  ;;  %v13972_v6 = vld [vmem:[%s17634_s1 + $0xbc8] sm:$0xff]  ;;  %v13986_v10 = vld [vmem:[%s17634_s1 + $0xc38] sm:$0xff] }
 0x14a   :  { %8582 = vmatpush.bf16.msra.mxu0 %v13920_v51  ;;  %v13958_v51 = vld [vmem:[%s17634_s1 + $0xb58] sm:$0xff] }
 0x14b   :  { %8608 = vmatpush.bf16.msra.mxu2 %v13936_v52  ;;  %v13974_v52 = vld [vmem:[%s17634_s1 + $0xbd8] sm:$0xff] }
 0x14c   :  { %8595 = vmatpush.bf16.msra.mxu1 %v13928_v53 }
 0x14d   :  { %8621 = vmatpush.bf16.msra.mxu3 %v13944_v54  ;;  %v8357_v15 = vpop.f32.mrf.mxu2 }
 0x14e   :  { %8583 = vmatpush.bf16.msra.mxu0 %v13919_v57  ;;  %v13965_v57 = vld [vmem:[%s17634_s1 + $0xb90] sm:$0xff]  ;;  %v14010_v15 = vld [vmem:[%s17634_s1 + $0xcf8] sm:$0xff] }
 0x14f   :  { %8609 = vmatpush.bf16.msra.mxu2 %v13935_v58  ;;  %v8370_v18 = vpop.f32.mrf.mxu3 }
 0x150   :  { %8596 = vmatpush.bf16.msra.mxu1 %v13927_v61  ;;  %v13948_v61 = vld [vmem:[%s17634_s1 + $0xb08] sm:$0xff]  ;;  %v13993_v18 = vld [vmem:[%s17634_s1 + $0xc70] sm:$0xff] }
 0x151   :  { %8622 = vmatpush.bf16.msra.mxu3 %v13943_v62  ;;  %v13964_v62 = vld [vmem:[%s17634_s1 + $0xb88] sm:$0xff] }
 0x152   :  { %8584 = vmatpush.bf16.msra.mxu0 %v13918_v63  ;;  %v2034_v63 = vld [vmem:[#allocation1 + $0x24] sm:$0xff] }
 0x153   :  { %8610 = vmatpush.bf16.msra.mxu2 %v13934_v0  ;;  %v2036_v0 = vld [vmem:[#allocation1 + $0x36] sm:$0xff] }
 0x154   :  { %8597 = vmatpush.bf16.msra.mxu1 %v13926_v3 }
 0x155   :  { %8623 = vmatpush.bf16.msra.mxu3 %v13942_v4  ;;  %v28_v4 = vld [vmem:[%s17633_s0 + $0x30] sm:$0xff] }
 0x156   :  { %8585 = vmatpush.bf16.msra.mxu0 %v13917_v8  ;;  %2039 = vst [vmem:[#allocation1] ss:$9 sm:$0xff] %v28_v4  ;;  %v13947_v8 = vld [vmem:[%s17634_s1 + $0xb00] sm:$0xff]  ;;  %v14016_v4 = vld [vmem:[%s17634_s1 + $0xd28] sm:$0xff] }
 0x157   :  { %8611 = vmatpush.bf16.msra.mxu2 %v13933_v9  ;;  %v13963_v9 = vld [vmem:[%s17634_s1 + $0xb80] sm:$0xff] }
 0x158   :  { %8598 = vmatpush.bf16.msra.mxu1 %v13925_v11  ;;  %v14002_v11 = vld [vmem:[%s17634_s1 + $0xcb8] sm:$0xff] }
 0x159   :  { %8624 = vmatpush.bf16.msra.mxu3 %v13941_v12  ;;  %v13955_v12 = vld [vmem:[%s17634_s1 + $0xb40] sm:$0xff] }
 0x15a   :  { %8586 = vmatpush.bf16.msra.mxu0 %v13916_v13  ;;  %v13971_v13 = vld [vmem:[%s17634_s1 + $0xbc0] sm:$0xff] }
 0x15b   :  { %8612 = vmatpush.bf16.msra.mxu2 %v13932_v14  ;;  %v13994_v14 = vld [vmem:[%s17634_s1 + $0xc78] sm:$0xff] }
 0x15c   :  { %8599 = vmatpush.bf16.msra.mxu1 %v13924_v16  ;;  %v13985_v16 = vld [vmem:[%s17634_s1 + $0xc30] sm:$0xff] }
 0x15d   :  { %8625 = vmatpush.bf16.msra.mxu3 %v13940_v17  ;;  %v14001_v17 = vld [vmem:[%s17634_s1 + $0xcb0] sm:$0xff] }
 0x15e   :  { %8587 = vmatpush.bf16.msra.mxu0 %v13915_v19  ;;  %v8381_v39 = vpop.f32.mrf.mxu0  ;;  %v14009_v19 = vld [vmem:[%s17634_s1 + $0xcf0] sm:$0xff] }
 0x15f   :  { %8613 = vmatpush.bf16.msra.mxu2 %v13931_v20  ;;  %v8382_v40 = vadd.f32 %v8381_v39, %v8369_v7  ;;  %v13984_v20 = vld [vmem:[%s17634_s1 + $0xc28] sm:$0xff] }
 0x160   :  { %8600 = vmatpush.bf16.msra.mxu1 %v13923_v23  ;;  %v8394_v43 = vpop.f32.mrf.mxu1  ;;  %v14008_v23 = vld [vmem:[%s17634_s1 + $0xce8] sm:$0xff] }
 0x161   :  { %8626 = vmatpush.bf16.msra.mxu3 %v13939_v24  ;;  %8588 = vmatmul.bf16.vlgmr.msra.gmra.mxu0 %v2030_v26  ;;  %v8395_v44 = vadd.f32 %v8394_v43, %v8382_v40  ;;  %v13983_v26 = vld [vmem:[%s17634_s1 + $0xc20] sm:$0xff] }
 0x162   :  { %8632 = vmatpush.bf16.msrb.mxu0 %v13954_v21  ;;  %8614 = vmatmul.bf16.vlgmr.msra.gmra.mxu2 %v2032_v27  ;;  %v14000_v21 = vld [vmem:[%s17634_s1 + $0xca8] sm:$0xff]  ;;  %v13999_v27 = vld [vmem:[%s17634_s1 + $0xca0] sm:$0xff] }
 0x163   :  { %8658 = vmatpush.bf16.msrb.mxu2 %v13970_v22  ;;  %8601 = vmatmul.bf16.vlgmr.msra.gmra.mxu1 %v2031_v29  ;;  %v13992_v22 = vld [vmem:[%s17634_s1 + $0xc68] sm:$0xff] }
 0x164   :  { %8645 = vmatpush.bf16.msrb.mxu1 %v13962_v25  ;;  %8627 = vmatmul.bf16.vlgmr.msra.gmra.mxu3 %v2033_v30  ;;  %v13991_v30 = vld [vmem:[%s17634_s1 + $0xc60] sm:$0xff] }
 0x165   :  { %8671 = vmatpush.bf16.msrb.mxu3 %v13978_v28  ;;  %v8407_v49 = vpop.f32.mrf.mxu2 }
 0x166   :  { %8633 = vmatpush.bf16.msrb.mxu0 %v13953_v31  ;;  %v8408_v50 = vadd.f32 %v8407_v49, %v8395_v44  ;;  %v8383_v54 = vpop.f32.mrf.mxu0  ;;  %v14007_v31 = vld [vmem:[%s17634_s1 + $0xce0] sm:$0xff]  ;;  %v13989_v44 = vld [vmem:[%s17634_s1 + $0xc50] sm:$0xff]  ;;  %v13988_v49 = vld [vmem:[%s17634_s1 + $0xc48] sm:$0xff] }
 0x167   :  { %8659 = vmatpush.bf16.msrb.mxu2 %v13969_v32  ;;  %v8420_v53 = vpop.f32.mrf.mxu3  ;;  %v13982_v32 = vld [vmem:[%s17634_s1 + $0xc18] sm:$0xff] }
 0x168   :  { %8646 = vmatpush.bf16.msrb.mxu1 %v13961_v33  ;;  %v15770_v55 = vadd.f32 %v8420_v53, %v8408_v50  ;;  %v8396_v58 = vpop.f32.mrf.mxu1  ;;  %v13998_v33 = vld [vmem:[%s17634_s1 + $0xc98] sm:$0xff]  ;;  %v14004_v50 = vld [vmem:[%s17634_s1 + $0xcc8] sm:$0xff]  ;;  %v13995_v53 = vld [vmem:[%s17634_s1 + $0xc80] sm:$0xff] }
 0x169   :  { %8672 = vmatpush.bf16.msrb.mxu3 %v13977_v34  ;;  %v14018_v54 = vld [vmem:[%s17634_s1 + $0xd38] sm:$0xff] }
 0x16a   :  { %8634 = vmatpush.bf16.msrb.mxu0 %v13952_v35  ;;  %v14026_v58 = vld [vmem:[%s17634_s1 + $0xd78] sm:$0xff] }
 0x16b   :  { %8660 = vmatpush.bf16.msrb.mxu2 %v13968_v36  ;;  %v13990_v36 = vld [vmem:[%s17634_s1 + $0xc58] sm:$0xff] }
 0x16c   :  { %8647 = vmatpush.bf16.msrb.mxu1 %v13960_v37  ;;  %v14006_v37 = vld [vmem:[%s17634_s1 + $0xcd8] sm:$0xff] }
 0x16d   :  { %8673 = vmatpush.bf16.msrb.mxu3 %v13976_v38  ;;  %v8409_v3 = vpop.f32.mrf.mxu2 }
 0x16e   :  { %8635 = vmatpush.bf16.msrb.mxu0 %v13951_v41  ;;  %v13981_v41 = vld [vmem:[%s17634_s1 + $0xc10] sm:$0xff] }
 0x16f   :  { %8661 = vmatpush.bf16.msrb.mxu2 %v13967_v42  ;;  %v8422_v7 = vpop.f32.mrf.mxu3  ;;  %v13997_v42 = vld [vmem:[%s17634_s1 + $0xc90] sm:$0xff] }
 0x170   :  { %8648 = vmatpush.bf16.msrb.mxu1 %v13959_v45  ;;  %v14005_v45 = vld [vmem:[%s17634_s1 + $0xcd0] sm:$0xff]  ;;  %v14040_v7 = vld [vmem:[%s17634_s1 + $0xde8] sm:$0xff] }
 0x171   :  { %8674 = vmatpush.bf16.msrb.mxu3 %v13975_v46  ;;  %v13980_v46 = vld [vmem:[%s17634_s1 + $0xc08] sm:$0xff]  ;;  %v14041_v3 = vld [vmem:[%s17634_s1 + $0xdf0] sm:$0xff] }
 0x172   :  { %8636 = vmatpush.bf16.msrb.mxu0 %v13950_v47  ;;  %v13996_v47 = vld [vmem:[%s17634_s1 + $0xc88] sm:$0xff] }
 0x173   :  { %8662 = vmatpush.bf16.msrb.mxu2 %v13966_v48 }
 0x174   :  { %8649 = vmatpush.bf16.msrb.mxu1 %v13958_v51 }
 0x175   :  { %8675 = vmatpush.bf16.msrb.mxu3 %v13974_v52  ;;  %v13979_v52 = vld [vmem:[%s17634_s1 + $0xc00] sm:$0xff] }
 0x176   :  { %8637 = vmatpush.bf16.msrb.mxu0 %v13949_v56  ;;  %v13987_v56 = vld [vmem:[%s17634_s1 + $0xc40] sm:$0xff] }
 0x177   :  { %8663 = vmatpush.bf16.msrb.mxu2 %v13965_v57  ;;  %v14003_v57 = vld [vmem:[%s17634_s1 + $0xcc0] sm:$0xff] }
 0x178   :  { %8650 = vmatpush.bf16.msrb.mxu1 %v13957_v59  ;;  %v2040_v59 = vld [vmem:[#allocation1] sm:$0xff] }
 0x179   :  { %8676 = vmatpush.bf16.msrb.mxu3 %v13973_v60  ;;  %v2042_v60 = vld [vmem:[#allocation1 + $0x12] sm:$0xff] }
 0x17a   :  { %8638 = vmatpush.bf16.msrb.mxu0 %v13948_v61  ;;  %v14042_v61 = vld [vmem:[%s17634_s1 + $0xdf8] sm:$0xff] }
 0x17b   :  { %8664 = vmatpush.bf16.msrb.mxu2 %v13964_v62  ;;  %v2041_v62 = vld [vmem:[#allocation1 + $0x9] sm:$0xff] }
 0x17c   :  { %8651 = vmatpush.bf16.msrb.mxu1 %v13956_v5  ;;  %v14032_v5 = vld [vmem:[%s17634_s1 + $0xda8] sm:$0xff] }
 0x17d   :  { %8677 = vmatpush.bf16.msrb.mxu3 %v13972_v6  ;;  %v14024_v6 = vld [vmem:[%s17634_s1 + $0xd68] sm:$0xff] }
 0x17e   :  { %8639 = vmatpush.bf16.msrb.mxu0 %v13947_v8  ;;  %v8433_v24 = vpop.f32.mrf.mxu0 }
 0x17f   :  { %8665 = vmatpush.bf16.msrb.mxu2 %v13963_v9  ;;  %v8434_v25 = vadd.f32 %v8433_v24, %v15770_v55  ;;  %v14034_v55 = vld [vmem:[%s17634_s1 + $0xdb8] sm:$0xff] }
 0x180   :  { %8652 = vmatpush.bf16.msrb.mxu1 %v13955_v12  ;;  %v8446_v28 = vpop.f32.mrf.mxu1 }
 0x181   :  { %8678 = vmatpush.bf16.msrb.mxu3 %v13971_v13  ;;  %8640 = vmatmul.bf16.vlgmr.msrb.gmra.mxu0 %v2034_v63  ;;  %v8447_v29 = vadd.f32 %v8446_v28, %v8434_v25  ;;  %v2043_v63 = vld [vmem:[#allocation1 + $0x1b] sm:$0xff]  ;;  %v14013_v25 = vld [vmem:[%s17634_s1 + $0xd10] sm:$0xff] }
 0x182   :  { %8684 = vmatpush.bf16.msra.mxu0 %v13986_v10  ;;  %8666 = vmatmul.bf16.vlgmr.msrb.gmra.mxu2 %v2036_v0  ;;  %v14017_v0 = vld [vmem:[%s17634_s1 + $0xd30] sm:$0xff]  ;;  %v14015_v10 = vld [vmem:[%s17634_s1 + $0xd20] sm:$0xff] }
 0x183   :  { %8710 = vmatpush.bf16.msra.mxu2 %v14002_v11  ;;  %8653 = vmatmul.bf16.vlgmr.msrb.gmra.mxu1 %v2035_v1  ;;  %v14033_v1 = vld [vmem:[%s17634_s1 + $0xdb0] sm:$0xff]  ;;  %v14031_v11 = vld [vmem:[%s17634_s1 + $0xda0] sm:$0xff] }
 0x184   :  { %8697 = vmatpush.bf16.msra.mxu1 %v13994_v14  ;;  %8679 = vmatmul.bf16.vlgmr.msrb.gmra.mxu3 %v2037_v2  ;;  %v14025_v2 = vld [vmem:[%s17634_s1 + $0xd70] sm:$0xff]  ;;  %v14023_v14 = vld [vmem:[%s17634_s1 + $0xd60] sm:$0xff] }
 0x185   :  { %8723 = vmatpush.bf16.msra.mxu3 %v14010_v15  ;;  %v8459_v34 = vpop.f32.mrf.mxu2  ;;  %v14039_v15 = vld [vmem:[%s17634_s1 + $0xde0] sm:$0xff]  ;;  %v14021_v28 = vld [vmem:[%s17634_s1 + $0xd50] sm:$0xff] }
 0x186   :  { %8685 = vmatpush.bf16.msra.mxu0 %v13985_v16  ;;  %v8460_v35 = vadd.f32 %v8459_v34, %v8447_v29  ;;  %v8435_v39 = vpop.f32.mrf.mxu0  ;;  %v14014_v16 = vld [vmem:[%s17634_s1 + $0xd18] sm:$0xff]  ;;  %v14037_v29 = vld [vmem:[%s17634_s1 + $0xdd0] sm:$0xff] }
 0x187   :  { %8711 = vmatpush.bf16.msra.mxu2 %v14001_v17  ;;  %v8472_v38 = vpop.f32.mrf.mxu3  ;;  %v14030_v17 = vld [vmem:[%s17634_s1 + $0xd98] sm:$0xff]  ;;  %v2045_v34 = vld [vmem:[#allocation1 + $0x2d] sm:$0xff] }
 0x188   :  { %8698 = vmatpush.bf16.msra.mxu1 %v13993_v18  ;;  %v8473_v40 = vadd.f32 %v8472_v38, %v8460_v35  ;;  %v8448_v43 = vpop.f32.mrf.mxu1  ;;  %v2047_v35 = vld [vmem:[#allocation1 + $0x3f] sm:$0xff]  ;;  %v14020_v38 = vld [vmem:[%s17634_s1 + $0xd48] sm:$0xff] }
 0x189   :  { %8724 = vmatpush.bf16.msra.mxu3 %v14009_v19  ;;  %v14036_v39 = vld [vmem:[%s17634_s1 + $0xdc8] sm:$0xff]  ;;  %v14050_v43 = vld [vmem:[%s17634_s1 + $0xe38] sm:$0xff] }
 0x18a   :  { %8686 = vmatpush.bf16.msra.mxu0 %v13984_v20  ;;  %v14022_v20 = vld [vmem:[%s17634_s1 + $0xd58] sm:$0xff] }
 0x18b   :  { %8712 = vmatpush.bf16.msra.mxu2 %v14000_v21  ;;  %v14038_v21 = vld [vmem:[%s17634_s1 + $0xdd8] sm:$0xff] }
 0x18c   :  { %8699 = vmatpush.bf16.msra.mxu1 %v13992_v22 }
 0x18d   :  { %8725 = vmatpush.bf16.msra.mxu3 %v14008_v23  ;;  %v8461_v48 = vpop.f32.mrf.mxu2 }
 0x18e   :  { %8687 = vmatpush.bf16.msra.mxu0 %v13983_v26  ;;  %v14029_v26 = vld [vmem:[%s17634_s1 + $0xd90] sm:$0xff]  ;;  %v14074_v48 = vld [vmem:[%s17634_s1 + $0xef8] sm:$0xff] }
 0x18f   :  { %8713 = vmatpush.bf16.msra.mxu2 %v13999_v27  ;;  %v8474_v51 = vpop.f32.mrf.mxu3 }
 0x190   :  { %8700 = vmatpush.bf16.msra.mxu1 %v13991_v30  ;;  %v14012_v30 = vld [vmem:[%s17634_s1 + $0xd08] sm:$0xff]  ;;  %v14057_v51 = vld [vmem:[%s17634_s1 + $0xe70] sm:$0xff] }
 0x191   :  { %8726 = vmatpush.bf16.msra.mxu3 %v14007_v31  ;;  %v14028_v31 = vld [vmem:[%s17634_s1 + $0xd88] sm:$0xff] }
 0x192   :  { %8688 = vmatpush.bf16.msra.mxu0 %v13982_v32  ;;  %v2044_v32 = vld [vmem:[#allocation1 + $0x24] sm:$0xff] }
 0x193   :  { %8714 = vmatpush.bf16.msra.mxu2 %v13998_v33  ;;  %v2046_v33 = vld [vmem:[#allocation1 + $0x36] sm:$0xff] }
 0x194   :  { %8701 = vmatpush.bf16.msra.mxu1 %v13990_v36 }
 0x195   :  { %8727 = vmatpush.bf16.msra.mxu3 %v14006_v37  ;;  %v29_v37 = vld [vmem:[%s17633_s0 + $0x38] sm:$0xff] }
 0x196   :  { %8689 = vmatpush.bf16.msra.mxu0 %v13981_v41  ;;  %2049 = vst [vmem:[#allocation1] ss:$9 sm:$0xff] %v29_v37  ;;  %v14011_v41 = vld [vmem:[%s17634_s1 + $0xd00] sm:$0xff]  ;;  %v14080_v37 = vld [vmem:[%s17634_s1 + $0xf28] sm:$0xff] }
 0x197   :  { %8715 = vmatpush.bf16.msra.mxu2 %v13997_v42  ;;  %v14027_v42 = vld [vmem:[%s17634_s1 + $0xd80] sm:$0xff] }
 0x198   :  { %8702 = vmatpush.bf16.msra.mxu1 %v13989_v44  ;;  %v14066_v44 = vld [vmem:[%s17634_s1 + $0xeb8] sm:$0xff] }
 0x199   :  { %8728 = vmatpush.bf16.msra.mxu3 %v14005_v45  ;;  %v14019_v45 = vld [vmem:[%s17634_s1 + $0xd40] sm:$0xff] }
 0x19a   :  { %8690 = vmatpush.bf16.msra.mxu0 %v13980_v46  ;;  %v14035_v46 = vld [vmem:[%s17634_s1 + $0xdc0] sm:$0xff] }
 0x19b   :  { %8716 = vmatpush.bf16.msra.mxu2 %v13996_v47  ;;  %v14058_v47 = vld [vmem:[%s17634_s1 + $0xe78] sm:$0xff] }
 0x19c   :  { %8703 = vmatpush.bf16.msra.mxu1 %v13988_v49  ;;  %v14049_v49 = vld [vmem:[%s17634_s1 + $0xe30] sm:$0xff] }
 0x19d   :  { %8729 = vmatpush.bf16.msra.mxu3 %v14004_v50  ;;  %v14065_v50 = vld [vmem:[%s17634_s1 + $0xeb0] sm:$0xff] }
 0x19e   :  { %8691 = vmatpush.bf16.msra.mxu0 %v13979_v52  ;;  %v8485_v8 = vpop.f32.mrf.mxu0  ;;  %v14073_v52 = vld [vmem:[%s17634_s1 + $0xef0] sm:$0xff] }
 0x19f   :  { %8717 = vmatpush.bf16.msra.mxu2 %v13995_v53  ;;  %v8486_v9 = vadd.f32 %v8485_v8, %v8473_v40  ;;  %v14048_v53 = vld [vmem:[%s17634_s1 + $0xe28] sm:$0xff] }
 0x1a0   :  { %8704 = vmatpush.bf16.msra.mxu1 %v13987_v56  ;;  %v8498_v12 = vpop.f32.mrf.mxu1  ;;  %v14072_v56 = vld [vmem:[%s17634_s1 + $0xee8] sm:$0xff] }
 0x1a1   :  { %8730 = vmatpush.bf16.msra.mxu3 %v14003_v57  ;;  %8692 = vmatmul.bf16.vlgmr.msra.gmra.mxu0 %v2040_v59  ;;  %v8499_v13 = vadd.f32 %v8498_v12, %v8486_v9  ;;  %v14047_v59 = vld [vmem:[%s17634_s1 + $0xe20] sm:$0xff] }
 0x1a2   :  { %8736 = vmatpush.bf16.msrb.mxu0 %v14018_v54  ;;  %8718 = vmatmul.bf16.vlgmr.msra.gmra.mxu2 %v2042_v60  ;;  %v14064_v54 = vld [vmem:[%s17634_s1 + $0xea8] sm:$0xff]  ;;  %v14063_v60 = vld [vmem:[%s17634_s1 + $0xea0] sm:$0xff] }
 0x1a3   :  { %8762 = vmatpush.bf16.msrb.mxu2 %v14034_v55  ;;  %8705 = vmatmul.bf16.vlgmr.msra.gmra.mxu1 %v2041_v62  ;;  %v14056_v55 = vld [vmem:[%s17634_s1 + $0xe68] sm:$0xff] }
 0x1a4   :  { %8749 = vmatpush.bf16.msrb.mxu1 %v14026_v58  ;;  %8731 = vmatmul.bf16.vlgmr.msra.gmra.mxu3 %v2043_v63  ;;  %v14055_v63 = vld [vmem:[%s17634_s1 + $0xe60] sm:$0xff] }
 0x1a5   :  { %8775 = vmatpush.bf16.msrb.mxu3 %v14042_v61  ;;  %v8511_v18 = vpop.f32.mrf.mxu2 }
 0x1a6   :  { %8737 = vmatpush.bf16.msrb.mxu0 %v14017_v0  ;;  %v8512_v19 = vadd.f32 %v8511_v18, %v8499_v13  ;;  %v8487_v23 = vpop.f32.mrf.mxu0  ;;  %v14071_v0 = vld [vmem:[%s17634_s1 + $0xee0] sm:$0xff]  ;;  %v14053_v13 = vld [vmem:[%s17634_s1 + $0xe50] sm:$0xff]  ;;  %v14052_v18 = vld [vmem:[%s17634_s1 + $0xe48] sm:$0xff] }
 0x1a7   :  { %8763 = vmatpush.bf16.msrb.mxu2 %v14033_v1  ;;  %v8524_v22 = vpop.f32.mrf.mxu3  ;;  %v14046_v1 = vld [vmem:[%s17634_s1 + $0xe18] sm:$0xff] }
 0x1a8   :  { %8750 = vmatpush.bf16.msrb.mxu1 %v14025_v2  ;;  %v15968_v24 = vadd.f32 %v8524_v22, %v8512_v19  ;;  %v8500_v27 = vpop.f32.mrf.mxu1  ;;  %v14062_v2 = vld [vmem:[%s17634_s1 + $0xe98] sm:$0xff]  ;;  %v14068_v19 = vld [vmem:[%s17634_s1 + $0xec8] sm:$0xff]  ;;  %v14059_v22 = vld [vmem:[%s17634_s1 + $0xe80] sm:$0xff] }
 0x1a9   :  { %8776 = vmatpush.bf16.msrb.mxu3 %v14041_v3  ;;  %v14082_v23 = vld [vmem:[%s17634_s1 + $0xf38] sm:$0xff] }
 0x1aa   :  { %8738 = vmatpush.bf16.msrb.mxu0 %v14016_v4  ;;  %v14090_v27 = vld [vmem:[%s17634_s1 + $0xf78] sm:$0xff] }
 0x1ab   :  { %8764 = vmatpush.bf16.msrb.mxu2 %v14032_v5  ;;  %v14054_v5 = vld [vmem:[%s17634_s1 + $0xe58] sm:$0xff] }
 0x1ac   :  { %8751 = vmatpush.bf16.msrb.mxu1 %v14024_v6  ;;  %v14070_v6 = vld [vmem:[%s17634_s1 + $0xed8] sm:$0xff] }
 0x1ad   :  { %8777 = vmatpush.bf16.msrb.mxu3 %v14040_v7  ;;  %v8513_v36 = vpop.f32.mrf.mxu2 }
 0x1ae   :  { %8739 = vmatpush.bf16.msrb.mxu0 %v14015_v10  ;;  %v14045_v10 = vld [vmem:[%s17634_s1 + $0xe10] sm:$0xff] }
 0x1af   :  { %8765 = vmatpush.bf16.msrb.mxu2 %v14031_v11  ;;  %v8526_v40 = vpop.f32.mrf.mxu3  ;;  %v14061_v11 = vld [vmem:[%s17634_s1 + $0xe90] sm:$0xff] }
 0x1b0   :  { %8752 = vmatpush.bf16.msrb.mxu1 %v14023_v14  ;;  %v14069_v14 = vld [vmem:[%s17634_s1 + $0xed0] sm:$0xff]  ;;  %v14104_v40 = vld [vmem:[%s17634_s1 + $0xfe8] sm:$0xff] }
 0x1b1   :  { %8778 = vmatpush.bf16.msrb.mxu3 %v14039_v15  ;;  %v14044_v15 = vld [vmem:[%s17634_s1 + $0xe08] sm:$0xff]  ;;  %v14105_v36 = vld [vmem:[%s17634_s1 + $0xff0] sm:$0xff] }
 0x1b2   :  { %8740 = vmatpush.bf16.msrb.mxu0 %v14014_v16  ;;  %v14060_v16 = vld [vmem:[%s17634_s1 + $0xe88] sm:$0xff] }
 0x1b3   :  { %8766 = vmatpush.bf16.msrb.mxu2 %v14030_v17 }
 0x1b4   :  { %8753 = vmatpush.bf16.msrb.mxu1 %v14022_v20 }
 0x1b5   :  { %8779 = vmatpush.bf16.msrb.mxu3 %v14038_v21  ;;  %v14043_v21 = vld [vmem:[%s17634_s1 + $0xe00] sm:$0xff] }
 0x1b6   :  { %8741 = vmatpush.bf16.msrb.mxu0 %v14013_v25  ;;  %v14051_v25 = vld [vmem:[%s17634_s1 + $0xe40] sm:$0xff] }
 0x1b7   :  { %8767 = vmatpush.bf16.msrb.mxu2 %v14029_v26  ;;  %v14067_v26 = vld [vmem:[%s17634_s1 + $0xec0] sm:$0xff] }
 0x1b8   :  { %8754 = vmatpush.bf16.msrb.mxu1 %v14021_v28  ;;  %v2050_v28 = vld [vmem:[#allocation1] sm:$0xff] }
 0x1b9   :  { %8780 = vmatpush.bf16.msrb.mxu3 %v14037_v29  ;;  %v2052_v29 = vld [vmem:[#allocation1 + $0x12] sm:$0xff] }
 0x1ba   :  { %8742 = vmatpush.bf16.msrb.mxu0 %v14012_v30  ;;  %v14106_v30 = vld [vmem:[%s17634_s1 + $0xff8] sm:$0xff] }
 0x1bb   :  { %8768 = vmatpush.bf16.msrb.mxu2 %v14028_v31  ;;  %v2051_v31 = vld [vmem:[#allocation1 + $0x9] sm:$0xff] }
 0x1bc   :  { %8755 = vmatpush.bf16.msrb.mxu1 %v14020_v38  ;;  %v14096_v38 = vld [vmem:[%s17634_s1 + $0xfa8] sm:$0xff] }
 0x1bd   :  { %8781 = vmatpush.bf16.msrb.mxu3 %v14036_v39  ;;  %v14088_v39 = vld [vmem:[%s17634_s1 + $0xf68] sm:$0xff] }
 0x1be   :  { %8743 = vmatpush.bf16.msrb.mxu0 %v14011_v41  ;;  %v8537_v57 = vpop.f32.mrf.mxu0 }
 0x1bf   :  { %8769 = vmatpush.bf16.msrb.mxu2 %v14027_v42  ;;  %v8538_v58 = vadd.f32 %v8537_v57, %v15968_v24  ;;  %v14098_v24 = vld [vmem:[%s17634_s1 + $0xfb8] sm:$0xff] }
 0x1c0   :  { %8756 = vmatpush.bf16.msrb.mxu1 %v14019_v45  ;;  %v8550_v61 = vpop.f32.mrf.mxu1 }
 0x1c1   :  { %8782 = vmatpush.bf16.msrb.mxu3 %v14035_v46  ;;  %8744 = vmatmul.bf16.vlgmr.msrb.gmra.mxu0 %v2044_v32  ;;  %v8551_v62 = vadd.f32 %v8550_v61, %v8538_v58  ;;  %v2053_v32 = vld [vmem:[#allocation1 + $0x1b] sm:$0xff]  ;;  %v14077_v58 = vld [vmem:[%s17634_s1 + $0xf10] sm:$0xff] }
 0x1c2   :  { %8788 = vmatpush.bf16.msra.mxu0 %v14050_v43  ;;  %8770 = vmatmul.bf16.vlgmr.msrb.gmra.mxu2 %v2046_v33  ;;  %v14081_v33 = vld [vmem:[%s17634_s1 + $0xf30] sm:$0xff]  ;;  %v14079_v43 = vld [vmem:[%s17634_s1 + $0xf20] sm:$0xff] }
 0x1c3   :  { %8814 = vmatpush.bf16.msra.mxu2 %v14066_v44  ;;  %8757 = vmatmul.bf16.vlgmr.msrb.gmra.mxu1 %v2045_v34  ;;  %v14097_v34 = vld [vmem:[%s17634_s1 + $0xfb0] sm:$0xff]  ;;  %v14095_v44 = vld [vmem:[%s17634_s1 + $0xfa0] sm:$0xff] }
 0x1c4   :  { %8801 = vmatpush.bf16.msra.mxu1 %v14058_v47  ;;  %8783 = vmatmul.bf16.vlgmr.msrb.gmra.mxu3 %v2047_v35  ;;  %v14089_v35 = vld [vmem:[%s17634_s1 + $0xf70] sm:$0xff]  ;;  %v14087_v47 = vld [vmem:[%s17634_s1 + $0xf60] sm:$0xff] }
 0x1c5   :  { %8827 = vmatpush.bf16.msra.mxu3 %v14074_v48  ;;  %v8563_v3 = vpop.f32.mrf.mxu2  ;;  %v14103_v48 = vld [vmem:[%s17634_s1 + $0xfe0] sm:$0xff]  ;;  %v14085_v61 = vld [vmem:[%s17634_s1 + $0xf50] sm:$0xff] }
 0x1c6   :  { %8789 = vmatpush.bf16.msra.mxu0 %v14049_v49  ;;  %v8564_v4 = vadd.f32 %v8563_v3, %v8551_v62  ;;  %v8539_v8 = vpop.f32.mrf.mxu0  ;;  %v14078_v49 = vld [vmem:[%s17634_s1 + $0xf18] sm:$0xff]  ;;  %v14101_v62 = vld [vmem:[%s17634_s1 + $0xfd0] sm:$0xff] }
 0x1c7   :  { %8815 = vmatpush.bf16.msra.mxu2 %v14065_v50  ;;  %v8576_v7 = vpop.f32.mrf.mxu3  ;;  %v14094_v50 = vld [vmem:[%s17634_s1 + $0xf98] sm:$0xff]  ;;  %v2055_v3 = vld [vmem:[#allocation1 + $0x2d] sm:$0xff] }
 0x1c8   :  { %8802 = vmatpush.bf16.msra.mxu1 %v14057_v51  ;;  %v8577_v9 = vadd.f32 %v8576_v7, %v8564_v4  ;;  %v8552_v12 = vpop.f32.mrf.mxu1  ;;  %v2057_v4 = vld [vmem:[#allocation1 + $0x3f] sm:$0xff]  ;;  %v14084_v7 = vld [vmem:[%s17634_s1 + $0xf48] sm:$0xff] }
 0x1c9   :  { %8828 = vmatpush.bf16.msra.mxu3 %v14073_v52  ;;  %v14100_v8 = vld [vmem:[%s17634_s1 + $0xfc8] sm:$0xff]  ;;  %v14114_v12 = vld [vmem:[%s17634_s1 + $0x1038] sm:$0xff] }
 0x1ca   :  { %8790 = vmatpush.bf16.msra.mxu0 %v14048_v53  ;;  %v14086_v53 = vld [vmem:[%s17634_s1 + $0xf58] sm:$0xff] }
 0x1cb   :  { %8816 = vmatpush.bf16.msra.mxu2 %v14064_v54  ;;  %v14102_v54 = vld [vmem:[%s17634_s1 + $0xfd8] sm:$0xff] }
 0x1cc   :  { %8803 = vmatpush.bf16.msra.mxu1 %v14056_v55 }
 0x1cd   :  { %8829 = vmatpush.bf16.msra.mxu3 %v14072_v56  ;;  %v8565_v17 = vpop.f32.mrf.mxu2 }
 0x1ce   :  { %8791 = vmatpush.bf16.msra.mxu0 %v14047_v59  ;;  %v14093_v59 = vld [vmem:[%s17634_s1 + $0xf90] sm:$0xff]  ;;  %v14138_v17 = vld [vmem:[%s17634_s1 + $0x10f8] sm:$0xff] }
 0x1cf   :  { %8817 = vmatpush.bf16.msra.mxu2 %v14063_v60  ;;  %v8578_v20 = vpop.f32.mrf.mxu3 }
 0x1d0   :  { %8804 = vmatpush.bf16.msra.mxu1 %v14055_v63  ;;  %v14076_v63 = vld [vmem:[%s17634_s1 + $0xf08] sm:$0xff]  ;;  %v14121_v20 = vld [vmem:[%s17634_s1 + $0x1070] sm:$0xff] }
 0x1d1   :  { %8830 = vmatpush.bf16.msra.mxu3 %v14071_v0  ;;  %v14092_v0 = vld [vmem:[%s17634_s1 + $0xf88] sm:$0xff] }
 0x1d2   :  { %8792 = vmatpush.bf16.msra.mxu0 %v14046_v1  ;;  %v2054_v1 = vld [vmem:[#allocation1 + $0x24] sm:$0xff] }
 0x1d3   :  { %8818 = vmatpush.bf16.msra.mxu2 %v14062_v2  ;;  %v2056_v2 = vld [vmem:[#allocation1 + $0x36] sm:$0xff] }
 0x1d4   :  { %8805 = vmatpush.bf16.msra.mxu1 %v14054_v5 }
 0x1d5   :  { %8831 = vmatpush.bf16.msra.mxu3 %v14070_v6  ;;  %v30_v6 = vld [vmem:[%s17633_s0 + $0x40] sm:$0xff] }
 0x1d6   :  { %8793 = vmatpush.bf16.msra.mxu0 %v14045_v10  ;;  %2059 = vst [vmem:[#allocation1] ss:$9 sm:$0xff] %v30_v6  ;;  %v14075_v10 = vld [vmem:[%s17634_s1 + $0xf00] sm:$0xff]  ;;  %v14144_v6 = vld [vmem:[%s17634_s1 + $0x1128] sm:$0xff] }
 0x1d7   :  { %8819 = vmatpush.bf16.msra.mxu2 %v14061_v11  ;;  %v14091_v11 = vld [vmem:[%s17634_s1 + $0xf80] sm:$0xff] }
 0x1d8   :  { %8806 = vmatpush.bf16.msra.mxu1 %v14053_v13  ;;  %v14130_v13 = vld [vmem:[%s17634_s1 + $0x10b8] sm:$0xff] }
 0x1d9   :  { %8832 = vmatpush.bf16.msra.mxu3 %v14069_v14  ;;  %v14083_v14 = vld [vmem:[%s17634_s1 + $0xf40] sm:$0xff] }
 0x1da   :  { %8794 = vmatpush.bf16.msra.mxu0 %v14044_v15  ;;  %v14099_v15 = vld [vmem:[%s17634_s1 + $0xfc0] sm:$0xff] }
 0x1db   :  { %8820 = vmatpush.bf16.msra.mxu2 %v14060_v16  ;;  %v14122_v16 = vld [vmem:[%s17634_s1 + $0x1078] sm:$0xff] }
 0x1dc   :  { %8807 = vmatpush.bf16.msra.mxu1 %v14052_v18  ;;  %v14113_v18 = vld [vmem:[%s17634_s1 + $0x1030] sm:$0xff] }
 0x1dd   :  { %8833 = vmatpush.bf16.msra.mxu3 %v14068_v19  ;;  %v14129_v19 = vld [vmem:[%s17634_s1 + $0x10b0] sm:$0xff] }
 0x1de   :  { %8795 = vmatpush.bf16.msra.mxu0 %v14043_v21  ;;  %v8589_v41 = vpop.f32.mrf.mxu0  ;;  %v14137_v21 = vld [vmem:[%s17634_s1 + $0x10f0] sm:$0xff] }
 0x1df   :  { %8821 = vmatpush.bf16.msra.mxu2 %v14059_v22  ;;  %v8590_v42 = vadd.f32 %v8589_v41, %v8577_v9  ;;  %v14112_v22 = vld [vmem:[%s17634_s1 + $0x1028] sm:$0xff] }
 0x1e0   :  { %8808 = vmatpush.bf16.msra.mxu1 %v14051_v25  ;;  %v8602_v45 = vpop.f32.mrf.mxu1  ;;  %v14136_v25 = vld [vmem:[%s17634_s1 + $0x10e8] sm:$0xff] }
 0x1e1   :  { %8834 = vmatpush.bf16.msra.mxu3 %v14067_v26  ;;  %8796 = vmatmul.bf16.vlgmr.msra.gmra.mxu0 %v2050_v28  ;;  %v8603_v46 = vadd.f32 %v8602_v45, %v8590_v42  ;;  %v14111_v28 = vld [vmem:[%s17634_s1 + $0x1020] sm:$0xff] }
 0x1e2   :  { %8840 = vmatpush.bf16.msrb.mxu0 %v14082_v23  ;;  %8822 = vmatmul.bf16.vlgmr.msra.gmra.mxu2 %v2052_v29  ;;  %v14128_v23 = vld [vmem:[%s17634_s1 + $0x10a8] sm:$0xff]  ;;  %v14127_v29 = vld [vmem:[%s17634_s1 + $0x10a0] sm:$0xff] }
 0x1e3   :  { %8866 = vmatpush.bf16.msrb.mxu2 %v14098_v24  ;;  %8809 = vmatmul.bf16.vlgmr.msra.gmra.mxu1 %v2051_v31  ;;  %v14120_v24 = vld [vmem:[%s17634_s1 + $0x1068] sm:$0xff] }
 0x1e4   :  { %8853 = vmatpush.bf16.msrb.mxu1 %v14090_v27  ;;  %8835 = vmatmul.bf16.vlgmr.msra.gmra.mxu3 %v2053_v32  ;;  %v14119_v32 = vld [vmem:[%s17634_s1 + $0x1060] sm:$0xff] }
 0x1e5   :  { %8879 = vmatpush.bf16.msrb.mxu3 %v14106_v30  ;;  %v8615_v51 = vpop.f32.mrf.mxu2 }
 0x1e6   :  { %8841 = vmatpush.bf16.msrb.mxu0 %v14081_v33  ;;  %v8616_v52 = vadd.f32 %v8615_v51, %v8603_v46  ;;  %v8591_v56 = vpop.f32.mrf.mxu0  ;;  %v14135_v33 = vld [vmem:[%s17634_s1 + $0x10e0] sm:$0xff]  ;;  %v14117_v46 = vld [vmem:[%s17634_s1 + $0x1050] sm:$0xff]  ;;  %v14116_v51 = vld [vmem:[%s17634_s1 + $0x1048] sm:$0xff] }
 0x1e7   :  { %8867 = vmatpush.bf16.msrb.mxu2 %v14097_v34  ;;  %v8628_v55 = vpop.f32.mrf.mxu3  ;;  %v14110_v34 = vld [vmem:[%s17634_s1 + $0x1018] sm:$0xff] }
 0x1e8   :  { %8854 = vmatpush.bf16.msrb.mxu1 %v14089_v35  ;;  %v16166_v57 = vadd.f32 %v8628_v55, %v8616_v52  ;;  %v8604_v60 = vpop.f32.mrf.mxu1  ;;  %v14126_v35 = vld [vmem:[%s17634_s1 + $0x1098] sm:$0xff]  ;;  %v14132_v52 = vld [vmem:[%s17634_s1 + $0x10c8] sm:$0xff]  ;;  %v14123_v55 = vld [vmem:[%s17634_s1 + $0x1080] sm:$0xff] }
 0x1e9   :  { %8880 = vmatpush.bf16.msrb.mxu3 %v14105_v36  ;;  %v14146_v56 = vld [vmem:[%s17634_s1 + $0x1138] sm:$0xff] }
 0x1ea   :  { %8842 = vmatpush.bf16.msrb.mxu0 %v14080_v37  ;;  %v14154_v60 = vld [vmem:[%s17634_s1 + $0x1178] sm:$0xff] }
 0x1eb   :  { %8868 = vmatpush.bf16.msrb.mxu2 %v14096_v38  ;;  %v14118_v38 = vld [vmem:[%s17634_s1 + $0x1058] sm:$0xff] }
 0x1ec   :  { %8855 = vmatpush.bf16.msrb.mxu1 %v14088_v39  ;;  %v14134_v39 = vld [vmem:[%s17634_s1 + $0x10d8] sm:$0xff] }
 0x1ed   :  { %8881 = vmatpush.bf16.msrb.mxu3 %v14104_v40  ;;  %v8617_v5 = vpop.f32.mrf.mxu2 }
 0x1ee   :  { %8843 = vmatpush.bf16.msrb.mxu0 %v14079_v43  ;;  %v14109_v43 = vld [vmem:[%s17634_s1 + $0x1010] sm:$0xff] }
 0x1ef   :  { %8869 = vmatpush.bf16.msrb.mxu2 %v14095_v44  ;;  %v8630_v9 = vpop.f32.mrf.mxu3  ;;  %v14125_v44 = vld [vmem:[%s17634_s1 + $0x1090] sm:$0xff] }
 0x1f0   :  { %8856 = vmatpush.bf16.msrb.mxu1 %v14087_v47  ;;  %v14133_v47 = vld [vmem:[%s17634_s1 + $0x10d0] sm:$0xff]  ;;  %v14168_v9 = vld [vmem:[%s17634_s1 + $0x11e8] sm:$0xff] }
 0x1f1   :  { %8882 = vmatpush.bf16.msrb.mxu3 %v14103_v48  ;;  %v14108_v48 = vld [vmem:[%s17634_s1 + $0x1008] sm:$0xff]  ;;  %v14169_v5 = vld [vmem:[%s17634_s1 + $0x11f0] sm:$0xff] }
 0x1f2   :  { %8844 = vmatpush.bf16.msrb.mxu0 %v14078_v49  ;;  %v14124_v49 = vld [vmem:[%s17634_s1 + $0x1088] sm:$0xff] }
 0x1f3   :  { %8870 = vmatpush.bf16.msrb.mxu2 %v14094_v50 }
 0x1f4   :  { %8857 = vmatpush.bf16.msrb.mxu1 %v14086_v53 }
 0x1f5   :  { %8883 = vmatpush.bf16.msrb.mxu3 %v14102_v54  ;;  %v14107_v54 = vld [vmem:[%s17634_s1 + $0x1000] sm:$0xff] }
 0x1f6   :  { %8845 = vmatpush.bf16.msrb.mxu0 %v14077_v58  ;;  %v14115_v58 = vld [vmem:[%s17634_s1 + $0x1040] sm:$0xff] }
 0x1f7   :  { %8871 = vmatpush.bf16.msrb.mxu2 %v14093_v59  ;;  %v14131_v59 = vld [vmem:[%s17634_s1 + $0x10c0] sm:$0xff] }
 0x1f8   :  { %8858 = vmatpush.bf16.msrb.mxu1 %v14085_v61  ;;  %v2060_v61 = vld [vmem:[#allocation1] sm:$0xff] }
 0x1f9   :  { %8884 = vmatpush.bf16.msrb.mxu3 %v14101_v62  ;;  %v2062_v62 = vld [vmem:[#allocation1 + $0x12] sm:$0xff] }
 0x1fa   :  { %8846 = vmatpush.bf16.msrb.mxu0 %v14076_v63  ;;  %v14170_v63 = vld [vmem:[%s17634_s1 + $0x11f8] sm:$0xff] }
 0x1fb   :  { %8872 = vmatpush.bf16.msrb.mxu2 %v14092_v0  ;;  %v2061_v0 = vld [vmem:[#allocation1 + $0x9] sm:$0xff] }
 0x1fc   :  { %8859 = vmatpush.bf16.msrb.mxu1 %v14084_v7  ;;  %v14160_v7 = vld [vmem:[%s17634_s1 + $0x11a8] sm:$0xff] }
 0x1fd   :  { %8885 = vmatpush.bf16.msrb.mxu3 %v14100_v8  ;;  %v14152_v8 = vld [vmem:[%s17634_s1 + $0x1168] sm:$0xff] }
 0x1fe   :  { %8847 = vmatpush.bf16.msrb.mxu0 %v14075_v10  ;;  %v8641_v26 = vpop.f32.mrf.mxu0 }
 0x1ff   :  { %8873 = vmatpush.bf16.msrb.mxu2 %v14091_v11  ;;  %v8642_v27 = vadd.f32 %v8641_v26, %v16166_v57  ;;  %v14162_v57 = vld [vmem:[%s17634_s1 + $0x11b8] sm:$0xff] }
 0x200   :  { %8860 = vmatpush.bf16.msrb.mxu1 %v14083_v14  ;;  %v8654_v30 = vpop.f32.mrf.mxu1 }
 0x201   :  { %8886 = vmatpush.bf16.msrb.mxu3 %v14099_v15  ;;  %8848 = vmatmul.bf16.vlgmr.msrb.gmra.mxu0 %v2054_v1  ;;  %v8655_v31 = vadd.f32 %v8654_v30, %v8642_v27  ;;  %v2063_v1 = vld [vmem:[#allocation1 + $0x1b] sm:$0xff]  ;;  %v14141_v27 = vld [vmem:[%s17634_s1 + $0x1110] sm:$0xff] }
 0x202   :  { %8892 = vmatpush.bf16.msra.mxu0 %v14114_v12  ;;  %8874 = vmatmul.bf16.vlgmr.msrb.gmra.mxu2 %v2056_v2  ;;  %v14145_v2 = vld [vmem:[%s17634_s1 + $0x1130] sm:$0xff]  ;;  %v14143_v12 = vld [vmem:[%s17634_s1 + $0x1120] sm:$0xff] }
 0x203   :  { %8918 = vmatpush.bf16.msra.mxu2 %v14130_v13  ;;  %8861 = vmatmul.bf16.vlgmr.msrb.gmra.mxu1 %v2055_v3  ;;  %v14161_v3 = vld [vmem:[%s17634_s1 + $0x11b0] sm:$0xff]  ;;  %v14159_v13 = vld [vmem:[%s17634_s1 + $0x11a0] sm:$0xff] }
 0x204   :  { %8905 = vmatpush.bf16.msra.mxu1 %v14122_v16  ;;  %8887 = vmatmul.bf16.vlgmr.msrb.gmra.mxu3 %v2057_v4  ;;  %v14153_v4 = vld [vmem:[%s17634_s1 + $0x1170] sm:$0xff]  ;;  %v14151_v16 = vld [vmem:[%s17634_s1 + $0x1160] sm:$0xff] }
 0x205   :  { %8931 = vmatpush.bf16.msra.mxu3 %v14138_v17  ;;  %v8667_v36 = vpop.f32.mrf.mxu2  ;;  %v14167_v17 = vld [vmem:[%s17634_s1 + $0x11e0] sm:$0xff]  ;;  %v14149_v30 = vld [vmem:[%s17634_s1 + $0x1150] sm:$0xff] }
 0x206   :  { %8893 = vmatpush.bf16.msra.mxu0 %v14113_v18  ;;  %v8668_v37 = vadd.f32 %v8667_v36, %v8655_v31  ;;  %v8643_v41 = vpop.f32.mrf.mxu0  ;;  %v14142_v18 = vld [vmem:[%s17634_s1 + $0x1118] sm:$0xff]  ;;  %v14165_v31 = vld [vmem:[%s17634_s1 + $0x11d0] sm:$0xff] }
 0x207   :  { %8919 = vmatpush.bf16.msra.mxu2 %v14129_v19  ;;  %v8680_v40 = vpop.f32.mrf.mxu3  ;;  %v14158_v19 = vld [vmem:[%s17634_s1 + $0x1198] sm:$0xff]  ;;  %v2065_v36 = vld [vmem:[#allocation1 + $0x2d] sm:$0xff] }
 0x208   :  { %8906 = vmatpush.bf16.msra.mxu1 %v14121_v20  ;;  %v8681_v42 = vadd.f32 %v8680_v40, %v8668_v37  ;;  %v8656_v45 = vpop.f32.mrf.mxu1  ;;  %v2067_v37 = vld [vmem:[#allocation1 + $0x3f] sm:$0xff]  ;;  %v14148_v40 = vld [vmem:[%s17634_s1 + $0x1148] sm:$0xff] }
 0x209   :  { %8932 = vmatpush.bf16.msra.mxu3 %v14137_v21  ;;  %v14164_v41 = vld [vmem:[%s17634_s1 + $0x11c8] sm:$0xff]  ;;  %v14178_v45 = vld [vmem:[%s17634_s1 + $0x1238] sm:$0xff] }
 0x20a   :  { %8894 = vmatpush.bf16.msra.mxu0 %v14112_v22  ;;  %v14150_v22 = vld [vmem:[%s17634_s1 + $0x1158] sm:$0xff] }
 0x20b   :  { %8920 = vmatpush.bf16.msra.mxu2 %v14128_v23  ;;  %v14166_v23 = vld [vmem:[%s17634_s1 + $0x11d8] sm:$0xff] }
 0x20c   :  { %8907 = vmatpush.bf16.msra.mxu1 %v14120_v24 }
 0x20d   :  { %8933 = vmatpush.bf16.msra.mxu3 %v14136_v25  ;;  %v8669_v50 = vpop.f32.mrf.mxu2 }
 0x20e   :  { %8895 = vmatpush.bf16.msra.mxu0 %v14111_v28  ;;  %v14157_v28 = vld [vmem:[%s17634_s1 + $0x1190] sm:$0xff]  ;;  %v14202_v50 = vld [vmem:[%s17634_s1 + $0x12f8] sm:$0xff] }
 0x20f   :  { %8921 = vmatpush.bf16.msra.mxu2 %v14127_v29  ;;  %v8682_v53 = vpop.f32.mrf.mxu3 }
 0x210   :  { %8908 = vmatpush.bf16.msra.mxu1 %v14119_v32  ;;  %v14140_v32 = vld [vmem:[%s17634_s1 + $0x1108] sm:$0xff]  ;;  %v14185_v53 = vld [vmem:[%s17634_s1 + $0x1270] sm:$0xff] }
 0x211   :  { %8934 = vmatpush.bf16.msra.mxu3 %v14135_v33  ;;  %v14156_v33 = vld [vmem:[%s17634_s1 + $0x1188] sm:$0xff] }
 0x212   :  { %8896 = vmatpush.bf16.msra.mxu0 %v14110_v34  ;;  %v2064_v34 = vld [vmem:[#allocation1 + $0x24] sm:$0xff] }
 0x213   :  { %8922 = vmatpush.bf16.msra.mxu2 %v14126_v35  ;;  %v2066_v35 = vld [vmem:[#allocation1 + $0x36] sm:$0xff] }
 0x214   :  { %8909 = vmatpush.bf16.msra.mxu1 %v14118_v38 }
 0x215   :  { %8935 = vmatpush.bf16.msra.mxu3 %v14134_v39  ;;  %v31_v39 = vld [vmem:[%s17633_s0 + $0x48] sm:$0xff] }
 0x216   :  { %8897 = vmatpush.bf16.msra.mxu0 %v14109_v43  ;;  %2069 = vst [vmem:[#allocation1] ss:$9 sm:$0xff] %v31_v39  ;;  %v14139_v43 = vld [vmem:[%s17634_s1 + $0x1100] sm:$0xff]  ;;  %v14208_v39 = vld [vmem:[%s17634_s1 + $0x1328] sm:$0xff] }
 0x217   :  { %8923 = vmatpush.bf16.msra.mxu2 %v14125_v44  ;;  %v14155_v44 = vld [vmem:[%s17634_s1 + $0x1180] sm:$0xff] }
 0x218   :  { %8910 = vmatpush.bf16.msra.mxu1 %v14117_v46  ;;  %v14194_v46 = vld [vmem:[%s17634_s1 + $0x12b8] sm:$0xff] }
 0x219   :  { %8936 = vmatpush.bf16.msra.mxu3 %v14133_v47  ;;  %v14147_v47 = vld [vmem:[%s17634_s1 + $0x1140] sm:$0xff] }
 0x21a   :  { %8898 = vmatpush.bf16.msra.mxu0 %v14108_v48  ;;  %v14163_v48 = vld [vmem:[%s17634_s1 + $0x11c0] sm:$0xff] }
 0x21b   :  { %8924 = vmatpush.bf16.msra.mxu2 %v14124_v49  ;;  %v14186_v49 = vld [vmem:[%s17634_s1 + $0x1278] sm:$0xff] }
 0x21c   :  { %8911 = vmatpush.bf16.msra.mxu1 %v14116_v51  ;;  %v14177_v51 = vld [vmem:[%s17634_s1 + $0x1230] sm:$0xff] }
 0x21d   :  { %8937 = vmatpush.bf16.msra.mxu3 %v14132_v52  ;;  %v14193_v52 = vld [vmem:[%s17634_s1 + $0x12b0] sm:$0xff] }
 0x21e   :  { %8899 = vmatpush.bf16.msra.mxu0 %v14107_v54  ;;  %v8693_v10 = vpop.f32.mrf.mxu0  ;;  %v14201_v54 = vld [vmem:[%s17634_s1 + $0x12f0] sm:$0xff] }
 0x21f   :  { %8925 = vmatpush.bf16.msra.mxu2 %v14123_v55  ;;  %v8694_v11 = vadd.f32 %v8693_v10, %v8681_v42  ;;  %v14176_v55 = vld [vmem:[%s17634_s1 + $0x1228] sm:$0xff] }
 0x220   :  { %8912 = vmatpush.bf16.msra.mxu1 %v14115_v58  ;;  %v8706_v14 = vpop.f32.mrf.mxu1  ;;  %v14200_v58 = vld [vmem:[%s17634_s1 + $0x12e8] sm:$0xff] }
 0x221   :  { %8938 = vmatpush.bf16.msra.mxu3 %v14131_v59  ;;  %8900 = vmatmul.bf16.vlgmr.msra.gmra.mxu0 %v2060_v61  ;;  %v8707_v15 = vadd.f32 %v8706_v14, %v8694_v11  ;;  %v14175_v61 = vld [vmem:[%s17634_s1 + $0x1220] sm:$0xff] }
 0x222   :  { %8944 = vmatpush.bf16.msrb.mxu0 %v14146_v56  ;;  %8926 = vmatmul.bf16.vlgmr.msra.gmra.mxu2 %v2062_v62  ;;  %v14192_v56 = vld [vmem:[%s17634_s1 + $0x12a8] sm:$0xff]  ;;  %v14191_v62 = vld [vmem:[%s17634_s1 + $0x12a0] sm:$0xff] }
 0x223   :  { %8970 = vmatpush.bf16.msrb.mxu2 %v14162_v57  ;;  %8913 = vmatmul.bf16.vlgmr.msra.gmra.mxu1 %v2061_v0  ;;  %v14184_v57 = vld [vmem:[%s17634_s1 + $0x1268] sm:$0xff] }
 0x224   :  { %8957 = vmatpush.bf16.msrb.mxu1 %v14154_v60  ;;  %8939 = vmatmul.bf16.vlgmr.msra.gmra.mxu3 %v2063_v1  ;;  %v14183_v1 = vld [vmem:[%s17634_s1 + $0x1260] sm:$0xff] }
 0x225   :  { %8983 = vmatpush.bf16.msrb.mxu3 %v14170_v63  ;;  %v8719_v20 = vpop.f32.mrf.mxu2 }
 0x226   :  { %8945 = vmatpush.bf16.msrb.mxu0 %v14145_v2  ;;  %v8720_v21 = vadd.f32 %v8719_v20, %v8707_v15  ;;  %v8695_v25 = vpop.f32.mrf.mxu0  ;;  %v14199_v2 = vld [vmem:[%s17634_s1 + $0x12e0] sm:$0xff]  ;;  %v14181_v15 = vld [vmem:[%s17634_s1 + $0x1250] sm:$0xff]  ;;  %v14180_v20 = vld [vmem:[%s17634_s1 + $0x1248] sm:$0xff] }
 0x227   :  { %8971 = vmatpush.bf16.msrb.mxu2 %v14161_v3  ;;  %v8732_v24 = vpop.f32.mrf.mxu3  ;;  %v14174_v3 = vld [vmem:[%s17634_s1 + $0x1218] sm:$0xff] }
 0x228   :  { %8958 = vmatpush.bf16.msrb.mxu1 %v14153_v4  ;;  %v16364_v26 = vadd.f32 %v8732_v24, %v8720_v21  ;;  %v8708_v29 = vpop.f32.mrf.mxu1  ;;  %v14190_v4 = vld [vmem:[%s17634_s1 + $0x1298] sm:$0xff]  ;;  %v14196_v21 = vld [vmem:[%s17634_s1 + $0x12c8] sm:$0xff]  ;;  %v14187_v24 = vld [vmem:[%s17634_s1 + $0x1280] sm:$0xff] }
 0x229   :  { %8984 = vmatpush.bf16.msrb.mxu3 %v14169_v5  ;;  %v14210_v25 = vld [vmem:[%s17634_s1 + $0x1338] sm:$0xff] }
 0x22a   :  { %8946 = vmatpush.bf16.msrb.mxu0 %v14144_v6  ;;  %v14218_v29 = vld [vmem:[%s17634_s1 + $0x1378] sm:$0xff] }
 0x22b   :  { %8972 = vmatpush.bf16.msrb.mxu2 %v14160_v7  ;;  %v14182_v7 = vld [vmem:[%s17634_s1 + $0x1258] sm:$0xff] }
 0x22c   :  { %8959 = vmatpush.bf16.msrb.mxu1 %v14152_v8  ;;  %v14198_v8 = vld [vmem:[%s17634_s1 + $0x12d8] sm:$0xff] }
 0x22d   :  { %8985 = vmatpush.bf16.msrb.mxu3 %v14168_v9  ;;  %v8721_v38 = vpop.f32.mrf.mxu2 }
 0x22e   :  { %8947 = vmatpush.bf16.msrb.mxu0 %v14143_v12  ;;  %v14173_v12 = vld [vmem:[%s17634_s1 + $0x1210] sm:$0xff] }
 0x22f   :  { %8973 = vmatpush.bf16.msrb.mxu2 %v14159_v13  ;;  %v8734_v42 = vpop.f32.mrf.mxu3  ;;  %v14189_v13 = vld [vmem:[%s17634_s1 + $0x1290] sm:$0xff] }
 0x230   :  { %8960 = vmatpush.bf16.msrb.mxu1 %v14151_v16  ;;  %v14197_v16 = vld [vmem:[%s17634_s1 + $0x12d0] sm:$0xff]  ;;  %v14232_v42 = vld [vmem:[%s17634_s1 + $0x13e8] sm:$0xff] }
 0x231   :  { %8986 = vmatpush.bf16.msrb.mxu3 %v14167_v17  ;;  %v14172_v17 = vld [vmem:[%s17634_s1 + $0x1208] sm:$0xff]  ;;  %v14233_v38 = vld [vmem:[%s17634_s1 + $0x13f0] sm:$0xff] }
 0x232   :  { %8948 = vmatpush.bf16.msrb.mxu0 %v14142_v18  ;;  %v14188_v18 = vld [vmem:[%s17634_s1 + $0x1288] sm:$0xff] }
 0x233   :  { %8974 = vmatpush.bf16.msrb.mxu2 %v14158_v19 }
 0x234   :  { %8961 = vmatpush.bf16.msrb.mxu1 %v14150_v22 }
 0x235   :  { %8987 = vmatpush.bf16.msrb.mxu3 %v14166_v23  ;;  %v14171_v23 = vld [vmem:[%s17634_s1 + $0x1200] sm:$0xff] }
 0x236   :  { %8949 = vmatpush.bf16.msrb.mxu0 %v14141_v27  ;;  %v14179_v27 = vld [vmem:[%s17634_s1 + $0x1240] sm:$0xff] }
 0x237   :  { %8975 = vmatpush.bf16.msrb.mxu2 %v14157_v28  ;;  %v14195_v28 = vld [vmem:[%s17634_s1 + $0x12c0] sm:$0xff] }
 0x238   :  { %8962 = vmatpush.bf16.msrb.mxu1 %v14149_v30  ;;  %v2070_v30 = vld [vmem:[#allocation1] sm:$0xff] }
 0x239   :  { %8988 = vmatpush.bf16.msrb.mxu3 %v14165_v31  ;;  %v2072_v31 = vld [vmem:[#allocation1 + $0x12] sm:$0xff] }
 0x23a   :  { %8950 = vmatpush.bf16.msrb.mxu0 %v14140_v32  ;;  %v14234_v32 = vld [vmem:[%s17634_s1 + $0x13f8] sm:$0xff] }
 0x23b   :  { %8976 = vmatpush.bf16.msrb.mxu2 %v14156_v33  ;;  %v2071_v33 = vld [vmem:[#allocation1 + $0x9] sm:$0xff] }
 0x23c   :  { %8963 = vmatpush.bf16.msrb.mxu1 %v14148_v40  ;;  %v14224_v40 = vld [vmem:[%s17634_s1 + $0x13a8] sm:$0xff] }
 0x23d   :  { %8989 = vmatpush.bf16.msrb.mxu3 %v14164_v41  ;;  %v14216_v41 = vld [vmem:[%s17634_s1 + $0x1368] sm:$0xff] }
 0x23e   :  { %8951 = vmatpush.bf16.msrb.mxu0 %v14139_v43  ;;  %v8745_v59 = vpop.f32.mrf.mxu0 }
 0x23f   :  { %8977 = vmatpush.bf16.msrb.mxu2 %v14155_v44  ;;  %v8746_v60 = vadd.f32 %v8745_v59, %v16364_v26  ;;  %v14226_v26 = vld [vmem:[%s17634_s1 + $0x13b8] sm:$0xff] }
 0x240   :  { %8964 = vmatpush.bf16.msrb.mxu1 %v14147_v47  ;;  %v8758_v63 = vpop.f32.mrf.mxu1 }
 0x241   :  { %8990 = vmatpush.bf16.msrb.mxu3 %v14163_v48  ;;  %8952 = vmatmul.bf16.vlgmr.msrb.gmra.mxu0 %v2064_v34  ;;  %v8759_v0 = vadd.f32 %v8758_v63, %v8746_v60  ;;  %v2073_v34 = vld [vmem:[#allocation1 + $0x1b] sm:$0xff]  ;;  %v14205_v60 = vld [vmem:[%s17634_s1 + $0x1310] sm:$0xff] }
 0x242   :  { %8996 = vmatpush.bf16.msra.mxu0 %v14178_v45  ;;  %8978 = vmatmul.bf16.vlgmr.msrb.gmra.mxu2 %v2066_v35  ;;  %v14209_v35 = vld [vmem:[%s17634_s1 + $0x1330] sm:$0xff]  ;;  %v14207_v45 = vld [vmem:[%s17634_s1 + $0x1320] sm:$0xff] }
 0x243   :  { %9022 = vmatpush.bf16.msra.mxu2 %v14194_v46  ;;  %8965 = vmatmul.bf16.vlgmr.msrb.gmra.mxu1 %v2065_v36  ;;  %v14225_v36 = vld [vmem:[%s17634_s1 + $0x13b0] sm:$0xff]  ;;  %v14223_v46 = vld [vmem:[%s17634_s1 + $0x13a0] sm:$0xff] }
 0x244   :  { %9009 = vmatpush.bf16.msra.mxu1 %v14186_v49  ;;  %8991 = vmatmul.bf16.vlgmr.msrb.gmra.mxu3 %v2067_v37  ;;  %v14217_v37 = vld [vmem:[%s17634_s1 + $0x1370] sm:$0xff]  ;;  %v14215_v49 = vld [vmem:[%s17634_s1 + $0x1360] sm:$0xff] }
 0x245   :  { %9035 = vmatpush.bf16.msra.mxu3 %v14202_v50  ;;  %v8771_v5 = vpop.f32.mrf.mxu2  ;;  %v14231_v50 = vld [vmem:[%s17634_s1 + $0x13e0] sm:$0xff]  ;;  %v14213_v63 = vld [vmem:[%s17634_s1 + $0x1350] sm:$0xff] }
 0x246   :  { %8997 = vmatpush.bf16.msra.mxu0 %v14177_v51  ;;  %v8772_v6 = vadd.f32 %v8771_v5, %v8759_v0  ;;  %v8747_v10 = vpop.f32.mrf.mxu0  ;;  %v14206_v51 = vld [vmem:[%s17634_s1 + $0x1318] sm:$0xff]  ;;  %v14229_v0 = vld [vmem:[%s17634_s1 + $0x13d0] sm:$0xff] }
 0x247   :  { %9023 = vmatpush.bf16.msra.mxu2 %v14193_v52  ;;  %v8784_v9 = vpop.f32.mrf.mxu3  ;;  %v14222_v52 = vld [vmem:[%s17634_s1 + $0x1398] sm:$0xff]  ;;  %v2075_v5 = vld [vmem:[#allocation1 + $0x2d] sm:$0xff] }
 0x248   :  { %9010 = vmatpush.bf16.msra.mxu1 %v14185_v53  ;;  %v8785_v11 = vadd.f32 %v8784_v9, %v8772_v6  ;;  %v8760_v14 = vpop.f32.mrf.mxu1  ;;  %v2077_v6 = vld [vmem:[#allocation1 + $0x3f] sm:$0xff]  ;;  %v14212_v9 = vld [vmem:[%s17634_s1 + $0x1348] sm:$0xff] }
 0x249   :  { %9036 = vmatpush.bf16.msra.mxu3 %v14201_v54  ;;  %v14228_v10 = vld [vmem:[%s17634_s1 + $0x13c8] sm:$0xff]  ;;  %v14242_v14 = vld [vmem:[%s17634_s1 + $0x1438] sm:$0xff] }
 0x24a   :  { %8998 = vmatpush.bf16.msra.mxu0 %v14176_v55  ;;  %v14214_v55 = vld [vmem:[%s17634_s1 + $0x1358] sm:$0xff] }
 0x24b   :  { %9024 = vmatpush.bf16.msra.mxu2 %v14192_v56  ;;  %v14230_v56 = vld [vmem:[%s17634_s1 + $0x13d8] sm:$0xff] }
 0x24c   :  { %9011 = vmatpush.bf16.msra.mxu1 %v14184_v57 }
 0x24d   :  { %9037 = vmatpush.bf16.msra.mxu3 %v14200_v58  ;;  %v8773_v19 = vpop.f32.mrf.mxu2 }
 0x24e   :  { %8999 = vmatpush.bf16.msra.mxu0 %v14175_v61  ;;  %v14221_v61 = vld [vmem:[%s17634_s1 + $0x1390] sm:$0xff]  ;;  %v14266_v19 = vld [vmem:[%s17634_s1 + $0x14f8] sm:$0xff] }
 0x24f   :  { %9025 = vmatpush.bf16.msra.mxu2 %v14191_v62  ;;  %v8786_v22 = vpop.f32.mrf.mxu3 }
 0x250   :  { %9012 = vmatpush.bf16.msra.mxu1 %v14183_v1  ;;  %v14204_v1 = vld [vmem:[%s17634_s1 + $0x1308] sm:$0xff]  ;;  %v14249_v22 = vld [vmem:[%s17634_s1 + $0x1470] sm:$0xff] }
 0x251   :  { %9038 = vmatpush.bf16.msra.mxu3 %v14199_v2  ;;  %v14220_v2 = vld [vmem:[%s17634_s1 + $0x1388] sm:$0xff] }
 0x252   :  { %9000 = vmatpush.bf16.msra.mxu0 %v14174_v3  ;;  %v2074_v3 = vld [vmem:[#allocation1 + $0x24] sm:$0xff] }
 0x253   :  { %9026 = vmatpush.bf16.msra.mxu2 %v14190_v4  ;;  %v2076_v4 = vld [vmem:[#allocation1 + $0x36] sm:$0xff] }
 0x254   :  { %9013 = vmatpush.bf16.msra.mxu1 %v14182_v7 }
 0x255   :  { %9039 = vmatpush.bf16.msra.mxu3 %v14198_v8  ;;  %v32_v8 = vld [vmem:[%s17633_s0 + $0x50] sm:$0xff] }
 0x256   :  { %9001 = vmatpush.bf16.msra.mxu0 %v14173_v12  ;;  %2079 = vst [vmem:[#allocation1] ss:$9 sm:$0xff] %v32_v8  ;;  %v14203_v12 = vld [vmem:[%s17634_s1 + $0x1300] sm:$0xff]  ;;  %v14272_v8 = vld [vmem:[%s17634_s1 + $0x1528] sm:$0xff] }
 0x257   :  { %9027 = vmatpush.bf16.msra.mxu2 %v14189_v13  ;;  %v14219_v13 = vld [vmem:[%s17634_s1 + $0x1380] sm:$0xff] }
 0x258   :  { %9014 = vmatpush.bf16.msra.mxu1 %v14181_v15  ;;  %v14258_v15 = vld [vmem:[%s17634_s1 + $0x14b8] sm:$0xff] }
 0x259   :  { %9040 = vmatpush.bf16.msra.mxu3 %v14197_v16  ;;  %v14211_v16 = vld [vmem:[%s17634_s1 + $0x1340] sm:$0xff] }
 0x25a   :  { %9002 = vmatpush.bf16.msra.mxu0 %v14172_v17  ;;  %v14227_v17 = vld [vmem:[%s17634_s1 + $0x13c0] sm:$0xff] }
 0x25b   :  { %9028 = vmatpush.bf16.msra.mxu2 %v14188_v18  ;;  %v14250_v18 = vld [vmem:[%s17634_s1 + $0x1478] sm:$0xff] }
 0x25c   :  { %9015 = vmatpush.bf16.msra.mxu1 %v14180_v20  ;;  %v14241_v20 = vld [vmem:[%s17634_s1 + $0x1430] sm:$0xff] }
 0x25d   :  { %9041 = vmatpush.bf16.msra.mxu3 %v14196_v21  ;;  %v14257_v21 = vld [vmem:[%s17634_s1 + $0x14b0] sm:$0xff] }
 0x25e   :  { %9003 = vmatpush.bf16.msra.mxu0 %v14171_v23  ;;  %v8797_v43 = vpop.f32.mrf.mxu0  ;;  %v14265_v23 = vld [vmem:[%s17634_s1 + $0x14f0] sm:$0xff] }
 0x25f   :  { %9029 = vmatpush.bf16.msra.mxu2 %v14187_v24  ;;  %v8798_v44 = vadd.f32 %v8797_v43, %v8785_v11  ;;  %v14240_v24 = vld [vmem:[%s17634_s1 + $0x1428] sm:$0xff] }
 0x260   :  { %9016 = vmatpush.bf16.msra.mxu1 %v14179_v27  ;;  %v8810_v47 = vpop.f32.mrf.mxu1  ;;  %v14264_v27 = vld [vmem:[%s17634_s1 + $0x14e8] sm:$0xff] }
 0x261   :  { %9042 = vmatpush.bf16.msra.mxu3 %v14195_v28  ;;  %9004 = vmatmul.bf16.vlgmr.msra.gmra.mxu0 %v2070_v30  ;;  %v8811_v48 = vadd.f32 %v8810_v47, %v8798_v44  ;;  %v14239_v30 = vld [vmem:[%s17634_s1 + $0x1420] sm:$0xff] }
 0x262   :  { %9048 = vmatpush.bf16.msrb.mxu0 %v14210_v25  ;;  %9030 = vmatmul.bf16.vlgmr.msra.gmra.mxu2 %v2072_v31  ;;  %v14256_v25 = vld [vmem:[%s17634_s1 + $0x14a8] sm:$0xff]  ;;  %v14255_v31 = vld [vmem:[%s17634_s1 + $0x14a0] sm:$0xff] }
 0x263   :  { %9074 = vmatpush.bf16.msrb.mxu2 %v14226_v26  ;;  %9017 = vmatmul.bf16.vlgmr.msra.gmra.mxu1 %v2071_v33  ;;  %v14248_v26 = vld [vmem:[%s17634_s1 + $0x1468] sm:$0xff] }
 0x264   :  { %9061 = vmatpush.bf16.msrb.mxu1 %v14218_v29  ;;  %9043 = vmatmul.bf16.vlgmr.msra.gmra.mxu3 %v2073_v34  ;;  %v14247_v34 = vld [vmem:[%s17634_s1 + $0x1460] sm:$0xff] }
 0x265   :  { %9087 = vmatpush.bf16.msrb.mxu3 %v14234_v32  ;;  %v8823_v53 = vpop.f32.mrf.mxu2 }
 0x266   :  { %9049 = vmatpush.bf16.msrb.mxu0 %v14209_v35  ;;  %v8824_v54 = vadd.f32 %v8823_v53, %v8811_v48  ;;  %v8799_v58 = vpop.f32.mrf.mxu0  ;;  %v14263_v35 = vld [vmem:[%s17634_s1 + $0x14e0] sm:$0xff]  ;;  %v14245_v48 = vld [vmem:[%s17634_s1 + $0x1450] sm:$0xff]  ;;  %v14244_v53 = vld [vmem:[%s17634_s1 + $0x1448] sm:$0xff] }
 0x267   :  { %9075 = vmatpush.bf16.msrb.mxu2 %v14225_v36  ;;  %v8836_v57 = vpop.f32.mrf.mxu3  ;;  %v14238_v36 = vld [vmem:[%s17634_s1 + $0x1418] sm:$0xff] }
 0x268   :  { %9062 = vmatpush.bf16.msrb.mxu1 %v14217_v37  ;;  %v16562_v59 = vadd.f32 %v8836_v57, %v8824_v54  ;;  %v8812_v62 = vpop.f32.mrf.mxu1  ;;  %v14254_v37 = vld [vmem:[%s17634_s1 + $0x1498] sm:$0xff]  ;;  %v14260_v54 = vld [vmem:[%s17634_s1 + $0x14c8] sm:$0xff]  ;;  %v14251_v57 = vld [vmem:[%s17634_s1 + $0x1480] sm:$0xff] }
 0x269   :  { %9088 = vmatpush.bf16.msrb.mxu3 %v14233_v38  ;;  %v14274_v58 = vld [vmem:[%s17634_s1 + $0x1538] sm:$0xff] }
 0x26a   :  { %9050 = vmatpush.bf16.msrb.mxu0 %v14208_v39  ;;  %v14282_v62 = vld [vmem:[%s17634_s1 + $0x1578] sm:$0xff] }
 0x26b   :  { %9076 = vmatpush.bf16.msrb.mxu2 %v14224_v40  ;;  %v14246_v40 = vld [vmem:[%s17634_s1 + $0x1458] sm:$0xff] }
 0x26c   :  { %9063 = vmatpush.bf16.msrb.mxu1 %v14216_v41  ;;  %v14262_v41 = vld [vmem:[%s17634_s1 + $0x14d8] sm:$0xff] }
 0x26d   :  { %9089 = vmatpush.bf16.msrb.mxu3 %v14232_v42  ;;  %v8825_v7 = vpop.f32.mrf.mxu2 }
 0x26e   :  { %9051 = vmatpush.bf16.msrb.mxu0 %v14207_v45  ;;  %v14237_v45 = vld [vmem:[%s17634_s1 + $0x1410] sm:$0xff] }
 0x26f   :  { %9077 = vmatpush.bf16.msrb.mxu2 %v14223_v46  ;;  %v8838_v11 = vpop.f32.mrf.mxu3  ;;  %v14253_v46 = vld [vmem:[%s17634_s1 + $0x1490] sm:$0xff] }
 0x270   :  { %9064 = vmatpush.bf16.msrb.mxu1 %v14215_v49  ;;  %v14261_v49 = vld [vmem:[%s17634_s1 + $0x14d0] sm:$0xff]  ;;  %v14296_v11 = vld [vmem:[%s17634_s1 + $0x15e8] sm:$0xff] }
 0x271   :  { %9090 = vmatpush.bf16.msrb.mxu3 %v14231_v50  ;;  %v14236_v50 = vld [vmem:[%s17634_s1 + $0x1408] sm:$0xff]  ;;  %v14297_v7 = vld [vmem:[%s17634_s1 + $0x15f0] sm:$0xff] }
 0x272   :  { %9052 = vmatpush.bf16.msrb.mxu0 %v14206_v51  ;;  %v14252_v51 = vld [vmem:[%s17634_s1 + $0x1488] sm:$0xff] }
 0x273   :  { %9078 = vmatpush.bf16.msrb.mxu2 %v14222_v52 }
 0x274   :  { %9065 = vmatpush.bf16.msrb.mxu1 %v14214_v55 }
 0x275   :  { %9091 = vmatpush.bf16.msrb.mxu3 %v14230_v56  ;;  %v14235_v56 = vld [vmem:[%s17634_s1 + $0x1400] sm:$0xff] }
 0x276   :  { %9053 = vmatpush.bf16.msrb.mxu0 %v14205_v60  ;;  %v14243_v60 = vld [vmem:[%s17634_s1 + $0x1440] sm:$0xff] }
 0x277   :  { %9079 = vmatpush.bf16.msrb.mxu2 %v14221_v61  ;;  %v14259_v61 = vld [vmem:[%s17634_s1 + $0x14c0] sm:$0xff] }
 0x278   :  { %9066 = vmatpush.bf16.msrb.mxu1 %v14213_v63  ;;  %v2080_v63 = vld [vmem:[#allocation1] sm:$0xff] }
 0x279   :  { %9092 = vmatpush.bf16.msrb.mxu3 %v14229_v0  ;;  %v2082_v0 = vld [vmem:[#allocation1 + $0x12] sm:$0xff] }
 0x27a   :  { %9054 = vmatpush.bf16.msrb.mxu0 %v14204_v1  ;;  %v14298_v1 = vld [vmem:[%s17634_s1 + $0x15f8] sm:$0xff] }
 0x27b   :  { %9080 = vmatpush.bf16.msrb.mxu2 %v14220_v2  ;;  %v2081_v2 = vld [vmem:[#allocation1 + $0x9] sm:$0xff] }
 0x27c   :  { %9067 = vmatpush.bf16.msrb.mxu1 %v14212_v9  ;;  %v14288_v9 = vld [vmem:[%s17634_s1 + $0x15a8] sm:$0xff] }
 0x27d   :  { %9093 = vmatpush.bf16.msrb.mxu3 %v14228_v10  ;;  %v14280_v10 = vld [vmem:[%s17634_s1 + $0x1568] sm:$0xff] }
 0x27e   :  { %9055 = vmatpush.bf16.msrb.mxu0 %v14203_v12  ;;  %v8849_v28 = vpop.f32.mrf.mxu0 }
 0x27f   :  { %9081 = vmatpush.bf16.msrb.mxu2 %v14219_v13  ;;  %v8850_v29 = vadd.f32 %v8849_v28, %v16562_v59  ;;  %v14290_v59 = vld [vmem:[%s17634_s1 + $0x15b8] sm:$0xff] }
 0x280   :  { %9068 = vmatpush.bf16.msrb.mxu1 %v14211_v16  ;;  %v8862_v32 = vpop.f32.mrf.mxu1 }
 0x281   :  { %9094 = vmatpush.bf16.msrb.mxu3 %v14227_v17  ;;  %9056 = vmatmul.bf16.vlgmr.msrb.gmra.mxu0 %v2074_v3  ;;  %v8863_v33 = vadd.f32 %v8862_v32, %v8850_v29  ;;  %v2083_v3 = vld [vmem:[#allocation1 + $0x1b] sm:$0xff]  ;;  %v14269_v29 = vld [vmem:[%s17634_s1 + $0x1510] sm:$0xff] }
 0x282   :  { %9100 = vmatpush.bf16.msra.mxu0 %v14242_v14  ;;  %9082 = vmatmul.bf16.vlgmr.msrb.gmra.mxu2 %v2076_v4  ;;  %v14273_v4 = vld [vmem:[%s17634_s1 + $0x1530] sm:$0xff]  ;;  %v14271_v14 = vld [vmem:[%s17634_s1 + $0x1520] sm:$0xff] }
 0x283   :  { %9126 = vmatpush.bf16.msra.mxu2 %v14258_v15  ;;  %9069 = vmatmul.bf16.vlgmr.msrb.gmra.mxu1 %v2075_v5  ;;  %v14289_v5 = vld [vmem:[%s17634_s1 + $0x15b0] sm:$0xff]  ;;  %v14287_v15 = vld [vmem:[%s17634_s1 + $0x15a0] sm:$0xff] }
 0x284   :  { %9113 = vmatpush.bf16.msra.mxu1 %v14250_v18  ;;  %9095 = vmatmul.bf16.vlgmr.msrb.gmra.mxu3 %v2077_v6  ;;  %v14281_v6 = vld [vmem:[%s17634_s1 + $0x1570] sm:$0xff]  ;;  %v14279_v18 = vld [vmem:[%s17634_s1 + $0x1560] sm:$0xff] }
 0x285   :  { %9139 = vmatpush.bf16.msra.mxu3 %v14266_v19  ;;  %v8875_v38 = vpop.f32.mrf.mxu2  ;;  %v14295_v19 = vld [vmem:[%s17634_s1 + $0x15e0] sm:$0xff]  ;;  %v14277_v32 = vld [vmem:[%s17634_s1 + $0x1550] sm:$0xff] }
 0x286   :  { %9101 = vmatpush.bf16.msra.mxu0 %v14241_v20  ;;  %v8876_v39 = vadd.f32 %v8875_v38, %v8863_v33  ;;  %v8851_v43 = vpop.f32.mrf.mxu0  ;;  %v14270_v20 = vld [vmem:[%s17634_s1 + $0x1518] sm:$0xff]  ;;  %v14293_v33 = vld [vmem:[%s17634_s1 + $0x15d0] sm:$0xff] }
 0x287   :  { %9127 = vmatpush.bf16.msra.mxu2 %v14257_v21  ;;  %v8888_v42 = vpop.f32.mrf.mxu3  ;;  %v14286_v21 = vld [vmem:[%s17634_s1 + $0x1598] sm:$0xff]  ;;  %v2085_v38 = vld [vmem:[#allocation1 + $0x2d] sm:$0xff] }
 0x288   :  { %9114 = vmatpush.bf16.msra.mxu1 %v14249_v22  ;;  %v8889_v44 = vadd.f32 %v8888_v42, %v8876_v39  ;;  %v8864_v47 = vpop.f32.mrf.mxu1  ;;  %v2087_v39 = vld [vmem:[#allocation1 + $0x3f] sm:$0xff]  ;;  %v14276_v42 = vld [vmem:[%s17634_s1 + $0x1548] sm:$0xff] }
 0x289   :  { %9140 = vmatpush.bf16.msra.mxu3 %v14265_v23  ;;  %v14292_v43 = vld [vmem:[%s17634_s1 + $0x15c8] sm:$0xff]  ;;  %v14306_v47 = vld [vmem:[%s17634_s1 + $0x1638] sm:$0xff] }
 0x28a   :  { %9102 = vmatpush.bf16.msra.mxu0 %v14240_v24  ;;  %v14278_v24 = vld [vmem:[%s17634_s1 + $0x1558] sm:$0xff] }
 0x28b   :  { %9128 = vmatpush.bf16.msra.mxu2 %v14256_v25  ;;  %v14294_v25 = vld [vmem:[%s17634_s1 + $0x15d8] sm:$0xff] }
 0x28c   :  { %9115 = vmatpush.bf16.msra.mxu1 %v14248_v26 }
 0x28d   :  { %9141 = vmatpush.bf16.msra.mxu3 %v14264_v27  ;;  %v8877_v52 = vpop.f32.mrf.mxu2 }
 0x28e   :  { %9103 = vmatpush.bf16.msra.mxu0 %v14239_v30  ;;  %v14285_v30 = vld [vmem:[%s17634_s1 + $0x1590] sm:$0xff]  ;;  %v14330_v52 = vld [vmem:[%s17634_s1 + $0x16f8] sm:$0xff] }
 0x28f   :  { %9129 = vmatpush.bf16.msra.mxu2 %v14255_v31  ;;  %v8890_v55 = vpop.f32.mrf.mxu3 }
 0x290   :  { %9116 = vmatpush.bf16.msra.mxu1 %v14247_v34  ;;  %v14268_v34 = vld [vmem:[%s17634_s1 + $0x1508] sm:$0xff]  ;;  %v14313_v55 = vld [vmem:[%s17634_s1 + $0x1670] sm:$0xff] }
 0x291   :  { %9142 = vmatpush.bf16.msra.mxu3 %v14263_v35  ;;  %v14284_v35 = vld [vmem:[%s17634_s1 + $0x1588] sm:$0xff] }
 0x292   :  { %9104 = vmatpush.bf16.msra.mxu0 %v14238_v36  ;;  %v2084_v36 = vld [vmem:[#allocation1 + $0x24] sm:$0xff] }
 0x293   :  { %9130 = vmatpush.bf16.msra.mxu2 %v14254_v37  ;;  %v2086_v37 = vld [vmem:[#allocation1 + $0x36] sm:$0xff] }
 0x294   :  { %9117 = vmatpush.bf16.msra.mxu1 %v14246_v40 }
 0x295   :  { %9143 = vmatpush.bf16.msra.mxu3 %v14262_v41  ;;  %v33_v41 = vld [vmem:[%s17633_s0 + $0x58] sm:$0xff] }
 0x296   :  { %9105 = vmatpush.bf16.msra.mxu0 %v14237_v45  ;;  %2089 = vst [vmem:[#allocation1] ss:$9 sm:$0xff] %v33_v41  ;;  %v14267_v45 = vld [vmem:[%s17634_s1 + $0x1500] sm:$0xff]  ;;  %v14336_v41 = vld [vmem:[%s17634_s1 + $0x1728] sm:$0xff] }
 0x297   :  { %9131 = vmatpush.bf16.msra.mxu2 %v14253_v46  ;;  %v14283_v46 = vld [vmem:[%s17634_s1 + $0x1580] sm:$0xff] }
 0x298   :  { %9118 = vmatpush.bf16.msra.mxu1 %v14245_v48  ;;  %v14322_v48 = vld [vmem:[%s17634_s1 + $0x16b8] sm:$0xff] }
 0x299   :  { %9144 = vmatpush.bf16.msra.mxu3 %v14261_v49  ;;  %v14275_v49 = vld [vmem:[%s17634_s1 + $0x1540] sm:$0xff] }
 0x29a   :  { %9106 = vmatpush.bf16.msra.mxu0 %v14236_v50  ;;  %v14291_v50 = vld [vmem:[%s17634_s1 + $0x15c0] sm:$0xff] }
 0x29b   :  { %9132 = vmatpush.bf16.msra.mxu2 %v14252_v51  ;;  %v14314_v51 = vld [vmem:[%s17634_s1 + $0x1678] sm:$0xff] }
 0x29c   :  { %9119 = vmatpush.bf16.msra.mxu1 %v14244_v53  ;;  %v14305_v53 = vld [vmem:[%s17634_s1 + $0x1630] sm:$0xff] }
 0x29d   :  { %9145 = vmatpush.bf16.msra.mxu3 %v14260_v54  ;;  %v14321_v54 = vld [vmem:[%s17634_s1 + $0x16b0] sm:$0xff] }
 0x29e   :  { %9107 = vmatpush.bf16.msra.mxu0 %v14235_v56  ;;  %v8901_v12 = vpop.f32.mrf.mxu0  ;;  %v14329_v56 = vld [vmem:[%s17634_s1 + $0x16f0] sm:$0xff] }
 0x29f   :  { %9133 = vmatpush.bf16.msra.mxu2 %v14251_v57  ;;  %v8902_v13 = vadd.f32 %v8901_v12, %v8889_v44  ;;  %v14304_v57 = vld [vmem:[%s17634_s1 + $0x1628] sm:$0xff] }
 0x2a0   :  { %9120 = vmatpush.bf16.msra.mxu1 %v14243_v60  ;;  %v8914_v16 = vpop.f32.mrf.mxu1  ;;  %v14328_v60 = vld [vmem:[%s17634_s1 + $0x16e8] sm:$0xff] }
 0x2a1   :  { %9146 = vmatpush.bf16.msra.mxu3 %v14259_v61  ;;  %9108 = vmatmul.bf16.vlgmr.msra.gmra.mxu0 %v2080_v63  ;;  %v8915_v17 = vadd.f32 %v8914_v16, %v8902_v13  ;;  %v14303_v63 = vld [vmem:[%s17634_s1 + $0x1620] sm:$0xff] }
 0x2a2   :  { %9152 = vmatpush.bf16.msrb.mxu0 %v14274_v58  ;;  %9134 = vmatmul.bf16.vlgmr.msra.gmra.mxu2 %v2082_v0  ;;  %v14320_v58 = vld [vmem:[%s17634_s1 + $0x16a8] sm:$0xff]  ;;  %v14319_v0 = vld [vmem:[%s17634_s1 + $0x16a0] sm:$0xff] }
 0x2a3   :  { %9178 = vmatpush.bf16.msrb.mxu2 %v14290_v59  ;;  %9121 = vmatmul.bf16.vlgmr.msra.gmra.mxu1 %v2081_v2  ;;  %v14312_v59 = vld [vmem:[%s17634_s1 + $0x1668] sm:$0xff] }
 0x2a4   :  { %9165 = vmatpush.bf16.msrb.mxu1 %v14282_v62  ;;  %9147 = vmatmul.bf16.vlgmr.msra.gmra.mxu3 %v2083_v3  ;;  %v14311_v3 = vld [vmem:[%s17634_s1 + $0x1660] sm:$0xff] }
 0x2a5   :  { %9191 = vmatpush.bf16.msrb.mxu3 %v14298_v1  ;;  %v8927_v22 = vpop.f32.mrf.mxu2 }
 0x2a6   :  { %9153 = vmatpush.bf16.msrb.mxu0 %v14273_v4  ;;  %v8928_v23 = vadd.f32 %v8927_v22, %v8915_v17  ;;  %v8903_v27 = vpop.f32.mrf.mxu0  ;;  %v14327_v4 = vld [vmem:[%s17634_s1 + $0x16e0] sm:$0xff]  ;;  %v14309_v17 = vld [vmem:[%s17634_s1 + $0x1650] sm:$0xff]  ;;  %v14308_v22 = vld [vmem:[%s17634_s1 + $0x1648] sm:$0xff] }
 0x2a7   :  { %9179 = vmatpush.bf16.msrb.mxu2 %v14289_v5  ;;  %v8940_v26 = vpop.f32.mrf.mxu3  ;;  %v14302_v5 = vld [vmem:[%s17634_s1 + $0x1618] sm:$0xff] }
 0x2a8   :  { %9166 = vmatpush.bf16.msrb.mxu1 %v14281_v6  ;;  %v16760_v28 = vadd.f32 %v8940_v26, %v8928_v23  ;;  %v8916_v31 = vpop.f32.mrf.mxu1  ;;  %v14318_v6 = vld [vmem:[%s17634_s1 + $0x1698] sm:$0xff]  ;;  %v14324_v23 = vld [vmem:[%s17634_s1 + $0x16c8] sm:$0xff]  ;;  %v14315_v26 = vld [vmem:[%s17634_s1 + $0x1680] sm:$0xff] }
 0x2a9   :  { %9192 = vmatpush.bf16.msrb.mxu3 %v14297_v7  ;;  %v14338_v27 = vld [vmem:[%s17634_s1 + $0x1738] sm:$0xff] }
 0x2aa   :  { %9154 = vmatpush.bf16.msrb.mxu0 %v14272_v8  ;;  %v14346_v31 = vld [vmem:[%s17634_s1 + $0x1778] sm:$0xff] }
 0x2ab   :  { %9180 = vmatpush.bf16.msrb.mxu2 %v14288_v9  ;;  %v14310_v9 = vld [vmem:[%s17634_s1 + $0x1658] sm:$0xff] }
 0x2ac   :  { %9167 = vmatpush.bf16.msrb.mxu1 %v14280_v10  ;;  %v14326_v10 = vld [vmem:[%s17634_s1 + $0x16d8] sm:$0xff] }
 0x2ad   :  { %9193 = vmatpush.bf16.msrb.mxu3 %v14296_v11  ;;  %v8929_v40 = vpop.f32.mrf.mxu2 }
 0x2ae   :  { %9155 = vmatpush.bf16.msrb.mxu0 %v14271_v14  ;;  %v14301_v14 = vld [vmem:[%s17634_s1 + $0x1610] sm:$0xff] }
 0x2af   :  { %9181 = vmatpush.bf16.msrb.mxu2 %v14287_v15  ;;  %v8942_v44 = vpop.f32.mrf.mxu3  ;;  %v14317_v15 = vld [vmem:[%s17634_s1 + $0x1690] sm:$0xff] }
 0x2b0   :  { %9168 = vmatpush.bf16.msrb.mxu1 %v14279_v18  ;;  %v14325_v18 = vld [vmem:[%s17634_s1 + $0x16d0] sm:$0xff]  ;;  %v14360_v44 = vld [vmem:[%s17634_s1 + $0x17e8] sm:$0xff] }
 0x2b1   :  { %9194 = vmatpush.bf16.msrb.mxu3 %v14295_v19  ;;  %v14300_v19 = vld [vmem:[%s17634_s1 + $0x1608] sm:$0xff]  ;;  %v14361_v40 = vld [vmem:[%s17634_s1 + $0x17f0] sm:$0xff] }
 0x2b2   :  { %9156 = vmatpush.bf16.msrb.mxu0 %v14270_v20  ;;  %v14316_v20 = vld [vmem:[%s17634_s1 + $0x1688] sm:$0xff] }
 0x2b3   :  { %9182 = vmatpush.bf16.msrb.mxu2 %v14286_v21 }
 0x2b4   :  { %9169 = vmatpush.bf16.msrb.mxu1 %v14278_v24 }
 0x2b5   :  { %9195 = vmatpush.bf16.msrb.mxu3 %v14294_v25  ;;  %v14299_v25 = vld [vmem:[%s17634_s1 + $0x1600] sm:$0xff] }
 0x2b6   :  { %9157 = vmatpush.bf16.msrb.mxu0 %v14269_v29  ;;  %v14307_v29 = vld [vmem:[%s17634_s1 + $0x1640] sm:$0xff] }
 0x2b7   :  { %9183 = vmatpush.bf16.msrb.mxu2 %v14285_v30  ;;  %v14323_v30 = vld [vmem:[%s17634_s1 + $0x16c0] sm:$0xff] }
 0x2b8   :  { %9170 = vmatpush.bf16.msrb.mxu1 %v14277_v32  ;;  %v2090_v32 = vld [vmem:[#allocation1] sm:$0xff] }
 0x2b9   :  { %9196 = vmatpush.bf16.msrb.mxu3 %v14293_v33  ;;  %v2092_v33 = vld [vmem:[#allocation1 + $0x12] sm:$0xff] }
 0x2ba   :  { %9158 = vmatpush.bf16.msrb.mxu0 %v14268_v34  ;;  %v14362_v34 = vld [vmem:[%s17634_s1 + $0x17f8] sm:$0xff] }
 0x2bb   :  { %9184 = vmatpush.bf16.msrb.mxu2 %v14284_v35  ;;  %v2091_v35 = vld [vmem:[#allocation1 + $0x9] sm:$0xff] }
 0x2bc   :  { %9171 = vmatpush.bf16.msrb.mxu1 %v14276_v42  ;;  %v14352_v42 = vld [vmem:[%s17634_s1 + $0x17a8] sm:$0xff] }
 0x2bd   :  { %9197 = vmatpush.bf16.msrb.mxu3 %v14292_v43  ;;  %v14344_v43 = vld [vmem:[%s17634_s1 + $0x1768] sm:$0xff] }
 0x2be   :  { %9159 = vmatpush.bf16.msrb.mxu0 %v14267_v45  ;;  %v8953_v61 = vpop.f32.mrf.mxu0 }
 0x2bf   :  { %9185 = vmatpush.bf16.msrb.mxu2 %v14283_v46  ;;  %v8954_v62 = vadd.f32 %v8953_v61, %v16760_v28  ;;  %v14354_v28 = vld [vmem:[%s17634_s1 + $0x17b8] sm:$0xff] }
 0x2c0   :  { %9172 = vmatpush.bf16.msrb.mxu1 %v14275_v49  ;;  %v8966_v1 = vpop.f32.mrf.mxu1 }
 0x2c1   :  { %9198 = vmatpush.bf16.msrb.mxu3 %v14291_v50  ;;  %9160 = vmatmul.bf16.vlgmr.msrb.gmra.mxu0 %v2084_v36  ;;  %v8967_v2 = vadd.f32 %v8966_v1, %v8954_v62  ;;  %v2093_v36 = vld [vmem:[#allocation1 + $0x1b] sm:$0xff]  ;;  %v14333_v62 = vld [vmem:[%s17634_s1 + $0x1710] sm:$0xff] }
 0x2c2   :  { %9204 = vmatpush.bf16.msra.mxu0 %v14306_v47  ;;  %9186 = vmatmul.bf16.vlgmr.msrb.gmra.mxu2 %v2086_v37  ;;  %v14337_v37 = vld [vmem:[%s17634_s1 + $0x1730] sm:$0xff]  ;;  %v14335_v47 = vld [vmem:[%s17634_s1 + $0x1720] sm:$0xff] }
 0x2c3   :  { %9230 = vmatpush.bf16.msra.mxu2 %v14322_v48  ;;  %9173 = vmatmul.bf16.vlgmr.msrb.gmra.mxu1 %v2085_v38  ;;  %v14353_v38 = vld [vmem:[%s17634_s1 + $0x17b0] sm:$0xff]  ;;  %v14351_v48 = vld [vmem:[%s17634_s1 + $0x17a0] sm:$0xff] }
 0x2c4   :  { %9217 = vmatpush.bf16.msra.mxu1 %v14314_v51  ;;  %9199 = vmatmul.bf16.vlgmr.msrb.gmra.mxu3 %v2087_v39  ;;  %v14345_v39 = vld [vmem:[%s17634_s1 + $0x1770] sm:$0xff]  ;;  %v14343_v51 = vld [vmem:[%s17634_s1 + $0x1760] sm:$0xff] }
 0x2c5   :  { %9243 = vmatpush.bf16.msra.mxu3 %v14330_v52  ;;  %v8979_v7 = vpop.f32.mrf.mxu2  ;;  %v14359_v52 = vld [vmem:[%s17634_s1 + $0x17e0] sm:$0xff]  ;;  %v14341_v1 = vld [vmem:[%s17634_s1 + $0x1750] sm:$0xff] }
 0x2c6   :  { %9205 = vmatpush.bf16.msra.mxu0 %v14305_v53  ;;  %v8980_v8 = vadd.f32 %v8979_v7, %v8967_v2  ;;  %v8955_v12 = vpop.f32.mrf.mxu0  ;;  %v14334_v53 = vld [vmem:[%s17634_s1 + $0x1718] sm:$0xff]  ;;  %v14357_v2 = vld [vmem:[%s17634_s1 + $0x17d0] sm:$0xff] }
 0x2c7   :  { %9231 = vmatpush.bf16.msra.mxu2 %v14321_v54  ;;  %v8992_v11 = vpop.f32.mrf.mxu3  ;;  %v14350_v54 = vld [vmem:[%s17634_s1 + $0x1798] sm:$0xff]  ;;  %v2095_v7 = vld [vmem:[#allocation1 + $0x2d] sm:$0xff] }
 0x2c8   :  { %9218 = vmatpush.bf16.msra.mxu1 %v14313_v55  ;;  %v8993_v13 = vadd.f32 %v8992_v11, %v8980_v8  ;;  %v8968_v16 = vpop.f32.mrf.mxu1  ;;  %v2097_v8 = vld [vmem:[#allocation1 + $0x3f] sm:$0xff]  ;;  %v14340_v11 = vld [vmem:[%s17634_s1 + $0x1748] sm:$0xff] }
 0x2c9   :  { %9244 = vmatpush.bf16.msra.mxu3 %v14329_v56  ;;  %v14356_v12 = vld [vmem:[%s17634_s1 + $0x17c8] sm:$0xff]  ;;  %v14370_v16 = vld [vmem:[%s17634_s1 + $0x1838] sm:$0xff] }
 0x2ca   :  { %9206 = vmatpush.bf16.msra.mxu0 %v14304_v57  ;;  %v14342_v57 = vld [vmem:[%s17634_s1 + $0x1758] sm:$0xff] }
 0x2cb   :  { %9232 = vmatpush.bf16.msra.mxu2 %v14320_v58  ;;  %v14358_v58 = vld [vmem:[%s17634_s1 + $0x17d8] sm:$0xff] }
 0x2cc   :  { %9219 = vmatpush.bf16.msra.mxu1 %v14312_v59 }
 0x2cd   :  { %9245 = vmatpush.bf16.msra.mxu3 %v14328_v60  ;;  %v8981_v21 = vpop.f32.mrf.mxu2 }
 0x2ce   :  { %9207 = vmatpush.bf16.msra.mxu0 %v14303_v63  ;;  %v14349_v63 = vld [vmem:[%s17634_s1 + $0x1790] sm:$0xff]  ;;  %v14394_v21 = vld [vmem:[%s17634_s1 + $0x18f8] sm:$0xff] }
 0x2cf   :  { %9233 = vmatpush.bf16.msra.mxu2 %v14319_v0  ;;  %v8994_v24 = vpop.f32.mrf.mxu3 }
 0x2d0   :  { %9220 = vmatpush.bf16.msra.mxu1 %v14311_v3  ;;  %v14332_v3 = vld [vmem:[%s17634_s1 + $0x1708] sm:$0xff]  ;;  %v14377_v24 = vld [vmem:[%s17634_s1 + $0x1870] sm:$0xff] }
 0x2d1   :  { %9246 = vmatpush.bf16.msra.mxu3 %v14327_v4  ;;  %v14348_v4 = vld [vmem:[%s17634_s1 + $0x1788] sm:$0xff] }
 0x2d2   :  { %9208 = vmatpush.bf16.msra.mxu0 %v14302_v5  ;;  %v2094_v5 = vld [vmem:[#allocation1 + $0x24] sm:$0xff] }
 0x2d3   :  { %9234 = vmatpush.bf16.msra.mxu2 %v14318_v6  ;;  %v2096_v6 = vld [vmem:[#allocation1 + $0x36] sm:$0xff] }
 0x2d4   :  { %9221 = vmatpush.bf16.msra.mxu1 %v14310_v9 }
 0x2d5   :  { %9247 = vmatpush.bf16.msra.mxu3 %v14326_v10  ;;  %v34_v10 = vld [vmem:[%s17633_s0 + $0x60] sm:$0xff] }
 0x2d6   :  { %9209 = vmatpush.bf16.msra.mxu0 %v14301_v14  ;;  %2099 = vst [vmem:[#allocation1] ss:$9 sm:$0xff] %v34_v10  ;;  %v14331_v14 = vld [vmem:[%s17634_s1 + $0x1700] sm:$0xff]  ;;  %v14400_v10 = vld [vmem:[%s17634_s1 + $0x1928] sm:$0xff] }
 0x2d7   :  { %9235 = vmatpush.bf16.msra.mxu2 %v14317_v15  ;;  %v14347_v15 = vld [vmem:[%s17634_s1 + $0x1780] sm:$0xff] }
 0x2d8   :  { %9222 = vmatpush.bf16.msra.mxu1 %v14309_v17  ;;  %v14386_v17 = vld [vmem:[%s17634_s1 + $0x18b8] sm:$0xff] }
 0x2d9   :  { %9248 = vmatpush.bf16.msra.mxu3 %v14325_v18  ;;  %v14339_v18 = vld [vmem:[%s17634_s1 + $0x1740] sm:$0xff] }
 0x2da   :  { %9210 = vmatpush.bf16.msra.mxu0 %v14300_v19  ;;  %v14355_v19 = vld [vmem:[%s17634_s1 + $0x17c0] sm:$0xff] }
 0x2db   :  { %9236 = vmatpush.bf16.msra.mxu2 %v14316_v20  ;;  %v14378_v20 = vld [vmem:[%s17634_s1 + $0x1878] sm:$0xff] }
 0x2dc   :  { %9223 = vmatpush.bf16.msra.mxu1 %v14308_v22  ;;  %v14369_v22 = vld [vmem:[%s17634_s1 + $0x1830] sm:$0xff] }
 0x2dd   :  { %9249 = vmatpush.bf16.msra.mxu3 %v14324_v23  ;;  %v14385_v23 = vld [vmem:[%s17634_s1 + $0x18b0] sm:$0xff] }
 0x2de   :  { %9211 = vmatpush.bf16.msra.mxu0 %v14299_v25  ;;  %v9005_v45 = vpop.f32.mrf.mxu0  ;;  %v14393_v25 = vld [vmem:[%s17634_s1 + $0x18f0] sm:$0xff] }
 0x2df   :  { %9237 = vmatpush.bf16.msra.mxu2 %v14315_v26  ;;  %v9006_v46 = vadd.f32 %v9005_v45, %v8993_v13  ;;  %v14368_v26 = vld [vmem:[%s17634_s1 + $0x1828] sm:$0xff] }
 0x2e0   :  { %9224 = vmatpush.bf16.msra.mxu1 %v14307_v29  ;;  %v9018_v49 = vpop.f32.mrf.mxu1  ;;  %v14392_v29 = vld [vmem:[%s17634_s1 + $0x18e8] sm:$0xff] }
 0x2e1   :  { %9250 = vmatpush.bf16.msra.mxu3 %v14323_v30  ;;  %9212 = vmatmul.bf16.vlgmr.msra.gmra.mxu0 %v2090_v32  ;;  %v9019_v50 = vadd.f32 %v9018_v49, %v9006_v46  ;;  %v14367_v32 = vld [vmem:[%s17634_s1 + $0x1820] sm:$0xff] }
 0x2e2   :  { %9256 = vmatpush.bf16.msrb.mxu0 %v14338_v27  ;;  %9238 = vmatmul.bf16.vlgmr.msra.gmra.mxu2 %v2092_v33  ;;  %v14384_v27 = vld [vmem:[%s17634_s1 + $0x18a8] sm:$0xff]  ;;  %v14383_v33 = vld [vmem:[%s17634_s1 + $0x18a0] sm:$0xff] }
 0x2e3   :  { %9282 = vmatpush.bf16.msrb.mxu2 %v14354_v28  ;;  %9225 = vmatmul.bf16.vlgmr.msra.gmra.mxu1 %v2091_v35  ;;  %v14376_v28 = vld [vmem:[%s17634_s1 + $0x1868] sm:$0xff] }
 0x2e4   :  { %9269 = vmatpush.bf16.msrb.mxu1 %v14346_v31  ;;  %9251 = vmatmul.bf16.vlgmr.msra.gmra.mxu3 %v2093_v36  ;;  %v14375_v36 = vld [vmem:[%s17634_s1 + $0x1860] sm:$0xff] }
 0x2e5   :  { %9295 = vmatpush.bf16.msrb.mxu3 %v14362_v34  ;;  %v9031_v55 = vpop.f32.mrf.mxu2 }
 0x2e6   :  { %9257 = vmatpush.bf16.msrb.mxu0 %v14337_v37  ;;  %v9032_v56 = vadd.f32 %v9031_v55, %v9019_v50  ;;  %v9007_v60 = vpop.f32.mrf.mxu0  ;;  %v14391_v37 = vld [vmem:[%s17634_s1 + $0x18e0] sm:$0xff]  ;;  %v14373_v50 = vld [vmem:[%s17634_s1 + $0x1850] sm:$0xff]  ;;  %v14372_v55 = vld [vmem:[%s17634_s1 + $0x1848] sm:$0xff] }
 0x2e7   :  { %9283 = vmatpush.bf16.msrb.mxu2 %v14353_v38  ;;  %v9044_v59 = vpop.f32.mrf.mxu3  ;;  %v14366_v38 = vld [vmem:[%s17634_s1 + $0x1818] sm:$0xff] }
 0x2e8   :  { %9270 = vmatpush.bf16.msrb.mxu1 %v14345_v39  ;;  %v16958_v61 = vadd.f32 %v9044_v59, %v9032_v56  ;;  %v9020_v0 = vpop.f32.mrf.mxu1  ;;  %v14382_v39 = vld [vmem:[%s17634_s1 + $0x1898] sm:$0xff]  ;;  %v14388_v56 = vld [vmem:[%s17634_s1 + $0x18c8] sm:$0xff]  ;;  %v14379_v59 = vld [vmem:[%s17634_s1 + $0x1880] sm:$0xff] }
 0x2e9   :  { %9296 = vmatpush.bf16.msrb.mxu3 %v14361_v40  ;;  %v14402_v60 = vld [vmem:[%s17634_s1 + $0x1938] sm:$0xff] }
 0x2ea   :  { %9258 = vmatpush.bf16.msrb.mxu0 %v14336_v41  ;;  %v14410_v0 = vld [vmem:[%s17634_s1 + $0x1978] sm:$0xff] }
 0x2eb   :  { %9284 = vmatpush.bf16.msrb.mxu2 %v14352_v42  ;;  %v14374_v42 = vld [vmem:[%s17634_s1 + $0x1858] sm:$0xff] }
 0x2ec   :  { %9271 = vmatpush.bf16.msrb.mxu1 %v14344_v43  ;;  %v14390_v43 = vld [vmem:[%s17634_s1 + $0x18d8] sm:$0xff] }
 0x2ed   :  { %9297 = vmatpush.bf16.msrb.mxu3 %v14360_v44  ;;  %v9033_v9 = vpop.f32.mrf.mxu2 }
 0x2ee   :  { %9259 = vmatpush.bf16.msrb.mxu0 %v14335_v47  ;;  %v14365_v47 = vld [vmem:[%s17634_s1 + $0x1810] sm:$0xff] }
 0x2ef   :  { %9285 = vmatpush.bf16.msrb.mxu2 %v14351_v48  ;;  %v9046_v13 = vpop.f32.mrf.mxu3  ;;  %v14381_v48 = vld [vmem:[%s17634_s1 + $0x1890] sm:$0xff] }
 0x2f0   :  { %9272 = vmatpush.bf16.msrb.mxu1 %v14343_v51  ;;  %v14389_v51 = vld [vmem:[%s17634_s1 + $0x18d0] sm:$0xff]  ;;  %v14424_v13 = vld [vmem:[%s17634_s1 + $0x19e8] sm:$0xff] }
 0x2f1   :  { %9298 = vmatpush.bf16.msrb.mxu3 %v14359_v52  ;;  %v14364_v52 = vld [vmem:[%s17634_s1 + $0x1808] sm:$0xff]  ;;  %v14425_v9 = vld [vmem:[%s17634_s1 + $0x19f0] sm:$0xff] }
 0x2f2   :  { %9260 = vmatpush.bf16.msrb.mxu0 %v14334_v53  ;;  %v14380_v53 = vld [vmem:[%s17634_s1 + $0x1888] sm:$0xff] }
 0x2f3   :  { %9286 = vmatpush.bf16.msrb.mxu2 %v14350_v54 }
 0x2f4   :  { %9273 = vmatpush.bf16.msrb.mxu1 %v14342_v57 }
 0x2f5   :  { %9299 = vmatpush.bf16.msrb.mxu3 %v14358_v58  ;;  %v14363_v58 = vld [vmem:[%s17634_s1 + $0x1800] sm:$0xff] }
 0x2f6   :  { %9261 = vmatpush.bf16.msrb.mxu0 %v14333_v62  ;;  %v14371_v62 = vld [vmem:[%s17634_s1 + $0x1840] sm:$0xff] }
 0x2f7   :  { %9287 = vmatpush.bf16.msrb.mxu2 %v14349_v63  ;;  %v14387_v63 = vld [vmem:[%s17634_s1 + $0x18c0] sm:$0xff] }
 0x2f8   :  { %9274 = vmatpush.bf16.msrb.mxu1 %v14341_v1  ;;  %v2100_v1 = vld [vmem:[#allocation1] sm:$0xff] }
 0x2f9   :  { %9300 = vmatpush.bf16.msrb.mxu3 %v14357_v2  ;;  %v2102_v2 = vld [vmem:[#allocation1 + $0x12] sm:$0xff] }
 0x2fa   :  { %9262 = vmatpush.bf16.msrb.mxu0 %v14332_v3  ;;  %v14426_v3 = vld [vmem:[%s17634_s1 + $0x19f8] sm:$0xff] }
 0x2fb   :  { %9288 = vmatpush.bf16.msrb.mxu2 %v14348_v4  ;;  %v2101_v4 = vld [vmem:[#allocation1 + $0x9] sm:$0xff] }
 0x2fc   :  { %9275 = vmatpush.bf16.msrb.mxu1 %v14340_v11  ;;  %v14416_v11 = vld [vmem:[%s17634_s1 + $0x19a8] sm:$0xff] }
 0x2fd   :  { %9301 = vmatpush.bf16.msrb.mxu3 %v14356_v12  ;;  %v14408_v12 = vld [vmem:[%s17634_s1 + $0x1968] sm:$0xff] }
 0x2fe   :  { %9263 = vmatpush.bf16.msrb.mxu0 %v14331_v14  ;;  %v9057_v30 = vpop.f32.mrf.mxu0 }
 0x2ff   :  { %9289 = vmatpush.bf16.msrb.mxu2 %v14347_v15  ;;  %v9058_v31 = vadd.f32 %v9057_v30, %v16958_v61  ;;  %v14418_v61 = vld [vmem:[%s17634_s1 + $0x19b8] sm:$0xff] }
 0x300   :  { %9276 = vmatpush.bf16.msrb.mxu1 %v14339_v18  ;;  %v9070_v34 = vpop.f32.mrf.mxu1 }
 0x301   :  { %9302 = vmatpush.bf16.msrb.mxu3 %v14355_v19  ;;  %9264 = vmatmul.bf16.vlgmr.msrb.gmra.mxu0 %v2094_v5  ;;  %v9071_v35 = vadd.f32 %v9070_v34, %v9058_v31  ;;  %v2103_v5 = vld [vmem:[#allocation1 + $0x1b] sm:$0xff]  ;;  %v14397_v31 = vld [vmem:[%s17634_s1 + $0x1910] sm:$0xff] }
 0x302   :  { %9308 = vmatpush.bf16.msra.mxu0 %v14370_v16  ;;  %9290 = vmatmul.bf16.vlgmr.msrb.gmra.mxu2 %v2096_v6  ;;  %v14401_v6 = vld [vmem:[%s17634_s1 + $0x1930] sm:$0xff]  ;;  %v14399_v16 = vld [vmem:[%s17634_s1 + $0x1920] sm:$0xff] }
 0x303   :  { %9334 = vmatpush.bf16.msra.mxu2 %v14386_v17  ;;  %9277 = vmatmul.bf16.vlgmr.msrb.gmra.mxu1 %v2095_v7  ;;  %v14417_v7 = vld [vmem:[%s17634_s1 + $0x19b0] sm:$0xff]  ;;  %v14415_v17 = vld [vmem:[%s17634_s1 + $0x19a0] sm:$0xff] }
 0x304   :  { %9321 = vmatpush.bf16.msra.mxu1 %v14378_v20  ;;  %9303 = vmatmul.bf16.vlgmr.msrb.gmra.mxu3 %v2097_v8  ;;  %v14409_v8 = vld [vmem:[%s17634_s1 + $0x1970] sm:$0xff]  ;;  %v14407_v20 = vld [vmem:[%s17634_s1 + $0x1960] sm:$0xff] }
 0x305   :  { %9347 = vmatpush.bf16.msra.mxu3 %v14394_v21  ;;  %v9083_v40 = vpop.f32.mrf.mxu2  ;;  %v14423_v21 = vld [vmem:[%s17634_s1 + $0x19e0] sm:$0xff]  ;;  %v14405_v34 = vld [vmem:[%s17634_s1 + $0x1950] sm:$0xff] }
 0x306   :  { %9309 = vmatpush.bf16.msra.mxu0 %v14369_v22  ;;  %v9084_v41 = vadd.f32 %v9083_v40, %v9071_v35  ;;  %v9059_v45 = vpop.f32.mrf.mxu0  ;;  %v14398_v22 = vld [vmem:[%s17634_s1 + $0x1918] sm:$0xff]  ;;  %v14421_v35 = vld [vmem:[%s17634_s1 + $0x19d0] sm:$0xff] }
 0x307   :  { %9335 = vmatpush.bf16.msra.mxu2 %v14385_v23  ;;  %v9096_v44 = vpop.f32.mrf.mxu3  ;;  %v14414_v23 = vld [vmem:[%s17634_s1 + $0x1998] sm:$0xff]  ;;  %v2105_v40 = vld [vmem:[#allocation1 + $0x2d] sm:$0xff] }
 0x308   :  { %9322 = vmatpush.bf16.msra.mxu1 %v14377_v24  ;;  %v9097_v46 = vadd.f32 %v9096_v44, %v9084_v41  ;;  %v9072_v49 = vpop.f32.mrf.mxu1  ;;  %v2107_v41 = vld [vmem:[#allocation1 + $0x3f] sm:$0xff]  ;;  %v14404_v44 = vld [vmem:[%s17634_s1 + $0x1948] sm:$0xff] }
 0x309   :  { %9348 = vmatpush.bf16.msra.mxu3 %v14393_v25  ;;  %v14420_v45 = vld [vmem:[%s17634_s1 + $0x19c8] sm:$0xff]  ;;  %v14434_v49 = vld [vmem:[%s17634_s1 + $0x1a38] sm:$0xff] }
 0x30a   :  { %9310 = vmatpush.bf16.msra.mxu0 %v14368_v26  ;;  %v14406_v26 = vld [vmem:[%s17634_s1 + $0x1958] sm:$0xff] }
 0x30b   :  { %9336 = vmatpush.bf16.msra.mxu2 %v14384_v27  ;;  %v14422_v27 = vld [vmem:[%s17634_s1 + $0x19d8] sm:$0xff] }
 0x30c   :  { %9323 = vmatpush.bf16.msra.mxu1 %v14376_v28 }
 0x30d   :  { %9349 = vmatpush.bf16.msra.mxu3 %v14392_v29  ;;  %v9085_v54 = vpop.f32.mrf.mxu2 }
 0x30e   :  { %9311 = vmatpush.bf16.msra.mxu0 %v14367_v32  ;;  %v14413_v32 = vld [vmem:[%s17634_s1 + $0x1990] sm:$0xff]  ;;  %v14458_v54 = vld [vmem:[%s17634_s1 + $0x1af8] sm:$0xff] }
 0x30f   :  { %9337 = vmatpush.bf16.msra.mxu2 %v14383_v33  ;;  %v9098_v57 = vpop.f32.mrf.mxu3 }
 0x310   :  { %9324 = vmatpush.bf16.msra.mxu1 %v14375_v36  ;;  %v14396_v36 = vld [vmem:[%s17634_s1 + $0x1908] sm:$0xff]  ;;  %v14441_v57 = vld [vmem:[%s17634_s1 + $0x1a70] sm:$0xff] }
 0x311   :  { %9350 = vmatpush.bf16.msra.mxu3 %v14391_v37  ;;  %v14412_v37 = vld [vmem:[%s17634_s1 + $0x1988] sm:$0xff] }
 0x312   :  { %9312 = vmatpush.bf16.msra.mxu0 %v14366_v38  ;;  %v2104_v38 = vld [vmem:[#allocation1 + $0x24] sm:$0xff] }
 0x313   :  { %9338 = vmatpush.bf16.msra.mxu2 %v14382_v39  ;;  %v2106_v39 = vld [vmem:[#allocation1 + $0x36] sm:$0xff] }
 0x314   :  { %9325 = vmatpush.bf16.msra.mxu1 %v14374_v42 }
 0x315   :  { %9351 = vmatpush.bf16.msra.mxu3 %v14390_v43  ;;  %v35_v43 = vld [vmem:[%s17633_s0 + $0x68] sm:$0xff] }
 0x316   :  { %9313 = vmatpush.bf16.msra.mxu0 %v14365_v47  ;;  %2109 = vst [vmem:[#allocation1] ss:$9 sm:$0xff] %v35_v43  ;;  %v14395_v47 = vld [vmem:[%s17634_s1 + $0x1900] sm:$0xff]  ;;  %v14464_v43 = vld [vmem:[%s17634_s1 + $0x1b28] sm:$0xff] }
 0x317   :  { %9339 = vmatpush.bf16.msra.mxu2 %v14381_v48  ;;  %v14411_v48 = vld [vmem:[%s17634_s1 + $0x1980] sm:$0xff] }
 0x318   :  { %9326 = vmatpush.bf16.msra.mxu1 %v14373_v50  ;;  %v14450_v50 = vld [vmem:[%s17634_s1 + $0x1ab8] sm:$0xff] }
 0x319   :  { %9352 = vmatpush.bf16.msra.mxu3 %v14389_v51  ;;  %v14403_v51 = vld [vmem:[%s17634_s1 + $0x1940] sm:$0xff] }
 0x31a   :  { %9314 = vmatpush.bf16.msra.mxu0 %v14364_v52  ;;  %v14419_v52 = vld [vmem:[%s17634_s1 + $0x19c0] sm:$0xff] }
 0x31b   :  { %9340 = vmatpush.bf16.msra.mxu2 %v14380_v53  ;;  %v14442_v53 = vld [vmem:[%s17634_s1 + $0x1a78] sm:$0xff] }
 0x31c   :  { %9327 = vmatpush.bf16.msra.mxu1 %v14372_v55  ;;  %v14433_v55 = vld [vmem:[%s17634_s1 + $0x1a30] sm:$0xff] }
 0x31d   :  { %9353 = vmatpush.bf16.msra.mxu3 %v14388_v56  ;;  %v14449_v56 = vld [vmem:[%s17634_s1 + $0x1ab0] sm:$0xff] }
 0x31e   :  { %9315 = vmatpush.bf16.msra.mxu0 %v14363_v58  ;;  %v9109_v14 = vpop.f32.mrf.mxu0  ;;  %v14457_v58 = vld [vmem:[%s17634_s1 + $0x1af0] sm:$0xff] }
 0x31f   :  { %9341 = vmatpush.bf16.msra.mxu2 %v14379_v59  ;;  %v9110_v15 = vadd.f32 %v9109_v14, %v9097_v46  ;;  %v14432_v59 = vld [vmem:[%s17634_s1 + $0x1a28] sm:$0xff] }
 0x320   :  { %9328 = vmatpush.bf16.msra.mxu1 %v14371_v62  ;;  %v9122_v18 = vpop.f32.mrf.mxu1  ;;  %v14456_v62 = vld [vmem:[%s17634_s1 + $0x1ae8] sm:$0xff] }
 0x321   :  { %9354 = vmatpush.bf16.msra.mxu3 %v14387_v63  ;;  %9316 = vmatmul.bf16.vlgmr.msra.gmra.mxu0 %v2100_v1  ;;  %v9123_v19 = vadd.f32 %v9122_v18, %v9110_v15  ;;  %v14431_v1 = vld [vmem:[%s17634_s1 + $0x1a20] sm:$0xff] }
 0x322   :  { %9360 = vmatpush.bf16.msrb.mxu0 %v14402_v60  ;;  %9342 = vmatmul.bf16.vlgmr.msra.gmra.mxu2 %v2102_v2  ;;  %v14448_v60 = vld [vmem:[%s17634_s1 + $0x1aa8] sm:$0xff]  ;;  %v14447_v2 = vld [vmem:[%s17634_s1 + $0x1aa0] sm:$0xff] }
 0x323   :  { %9386 = vmatpush.bf16.msrb.mxu2 %v14418_v61  ;;  %9329 = vmatmul.bf16.vlgmr.msra.gmra.mxu1 %v2101_v4  ;;  %v14440_v61 = vld [vmem:[%s17634_s1 + $0x1a68] sm:$0xff] }
 0x324   :  { %9373 = vmatpush.bf16.msrb.mxu1 %v14410_v0  ;;  %9355 = vmatmul.bf16.vlgmr.msra.gmra.mxu3 %v2103_v5  ;;  %v14439_v5 = vld [vmem:[%s17634_s1 + $0x1a60] sm:$0xff] }
 0x325   :  { %9399 = vmatpush.bf16.msrb.mxu3 %v14426_v3  ;;  %v9135_v24 = vpop.f32.mrf.mxu2 }
 0x326   :  { %9361 = vmatpush.bf16.msrb.mxu0 %v14401_v6  ;;  %v9136_v25 = vadd.f32 %v9135_v24, %v9123_v19  ;;  %v9111_v29 = vpop.f32.mrf.mxu0  ;;  %v14455_v6 = vld [vmem:[%s17634_s1 + $0x1ae0] sm:$0xff]  ;;  %v14437_v19 = vld [vmem:[%s17634_s1 + $0x1a50] sm:$0xff]  ;;  %v14436_v24 = vld [vmem:[%s17634_s1 + $0x1a48] sm:$0xff] }
 0x327   :  { %9387 = vmatpush.bf16.msrb.mxu2 %v14417_v7  ;;  %v9148_v28 = vpop.f32.mrf.mxu3  ;;  %v14430_v7 = vld [vmem:[%s17634_s1 + $0x1a18] sm:$0xff] }
 0x328   :  { %9374 = vmatpush.bf16.msrb.mxu1 %v14409_v8  ;;  %v17156_v30 = vadd.f32 %v9148_v28, %v9136_v25  ;;  %v9124_v33 = vpop.f32.mrf.mxu1  ;;  %v14446_v8 = vld [vmem:[%s17634_s1 + $0x1a98] sm:$0xff]  ;;  %v14452_v25 = vld [vmem:[%s17634_s1 + $0x1ac8] sm:$0xff]  ;;  %v14443_v28 = vld [vmem:[%s17634_s1 + $0x1a80] sm:$0xff] }
 0x329   :  { %9400 = vmatpush.bf16.msrb.mxu3 %v14425_v9  ;;  %v14466_v29 = vld [vmem:[%s17634_s1 + $0x1b38] sm:$0xff] }
 0x32a   :  { %9362 = vmatpush.bf16.msrb.mxu0 %v14400_v10  ;;  %v14474_v33 = vld [vmem:[%s17634_s1 + $0x1b78] sm:$0xff] }
 0x32b   :  { %9388 = vmatpush.bf16.msrb.mxu2 %v14416_v11  ;;  %v14438_v11 = vld [vmem:[%s17634_s1 + $0x1a58] sm:$0xff] }
 0x32c   :  { %9375 = vmatpush.bf16.msrb.mxu1 %v14408_v12  ;;  %v14454_v12 = vld [vmem:[%s17634_s1 + $0x1ad8] sm:$0xff] }
 0x32d   :  { %9401 = vmatpush.bf16.msrb.mxu3 %v14424_v13  ;;  %v9137_v42 = vpop.f32.mrf.mxu2 }
 0x32e   :  { %9363 = vmatpush.bf16.msrb.mxu0 %v14399_v16  ;;  %v14429_v16 = vld [vmem:[%s17634_s1 + $0x1a10] sm:$0xff] }
 0x32f   :  { %9389 = vmatpush.bf16.msrb.mxu2 %v14415_v17  ;;  %v9150_v46 = vpop.f32.mrf.mxu3  ;;  %v14445_v17 = vld [vmem:[%s17634_s1 + $0x1a90] sm:$0xff] }
 0x330   :  { %9376 = vmatpush.bf16.msrb.mxu1 %v14407_v20  ;;  %v14453_v20 = vld [vmem:[%s17634_s1 + $0x1ad0] sm:$0xff]  ;;  %v14488_v46 = vld [vmem:[%s17634_s1 + $0x1be8] sm:$0xff] }
 0x331   :  { %9402 = vmatpush.bf16.msrb.mxu3 %v14423_v21  ;;  %v14428_v21 = vld [vmem:[%s17634_s1 + $0x1a08] sm:$0xff]  ;;  %v14489_v42 = vld [vmem:[%s17634_s1 + $0x1bf0] sm:$0xff] }
 0x332   :  { %9364 = vmatpush.bf16.msrb.mxu0 %v14398_v22  ;;  %v14444_v22 = vld [vmem:[%s17634_s1 + $0x1a88] sm:$0xff] }
 0x333   :  { %9390 = vmatpush.bf16.msrb.mxu2 %v14414_v23 }
 0x334   :  { %9377 = vmatpush.bf16.msrb.mxu1 %v14406_v26 }
 0x335   :  { %9403 = vmatpush.bf16.msrb.mxu3 %v14422_v27  ;;  %v14427_v27 = vld [vmem:[%s17634_s1 + $0x1a00] sm:$0xff] }
 0x336   :  { %9365 = vmatpush.bf16.msrb.mxu0 %v14397_v31  ;;  %v14435_v31 = vld [vmem:[%s17634_s1 + $0x1a40] sm:$0xff] }
 0x337   :  { %9391 = vmatpush.bf16.msrb.mxu2 %v14413_v32  ;;  %v14451_v32 = vld [vmem:[%s17634_s1 + $0x1ac0] sm:$0xff] }
 0x338   :  { %9378 = vmatpush.bf16.msrb.mxu1 %v14405_v34  ;;  %v2110_v34 = vld [vmem:[#allocation1] sm:$0xff] }
 0x339   :  { %9404 = vmatpush.bf16.msrb.mxu3 %v14421_v35  ;;  %v2112_v35 = vld [vmem:[#allocation1 + $0x12] sm:$0xff] }
 0x33a   :  { %9366 = vmatpush.bf16.msrb.mxu0 %v14396_v36  ;;  %v14490_v36 = vld [vmem:[%s17634_s1 + $0x1bf8] sm:$0xff] }
 0x33b   :  { %9392 = vmatpush.bf16.msrb.mxu2 %v14412_v37  ;;  %v2111_v37 = vld [vmem:[#allocation1 + $0x9] sm:$0xff] }
 0x33c   :  { %9379 = vmatpush.bf16.msrb.mxu1 %v14404_v44  ;;  %v14480_v44 = vld [vmem:[%s17634_s1 + $0x1ba8] sm:$0xff] }
 0x33d   :  { %9405 = vmatpush.bf16.msrb.mxu3 %v14420_v45  ;;  %v14472_v45 = vld [vmem:[%s17634_s1 + $0x1b68] sm:$0xff] }
 0x33e   :  { %9367 = vmatpush.bf16.msrb.mxu0 %v14395_v47  ;;  %v9161_v63 = vpop.f32.mrf.mxu0 }
 0x33f   :  { %9393 = vmatpush.bf16.msrb.mxu2 %v14411_v48  ;;  %v9162_v0 = vadd.f32 %v9161_v63, %v17156_v30  ;;  %v14482_v30 = vld [vmem:[%s17634_s1 + $0x1bb8] sm:$0xff] }
 0x340   :  { %9380 = vmatpush.bf16.msrb.mxu1 %v14403_v51  ;;  %v9174_v3 = vpop.f32.mrf.mxu1 }
 0x341   :  { %9406 = vmatpush.bf16.msrb.mxu3 %v14419_v52  ;;  %9368 = vmatmul.bf16.vlgmr.msrb.gmra.mxu0 %v2104_v38  ;;  %v9175_v4 = vadd.f32 %v9174_v3, %v9162_v0  ;;  %v2113_v38 = vld [vmem:[#allocation1 + $0x1b] sm:$0xff]  ;;  %v14461_v0 = vld [vmem:[%s17634_s1 + $0x1b10] sm:$0xff] }
 0x342   :  { %9412 = vmatpush.bf16.msra.mxu0 %v14434_v49  ;;  %9394 = vmatmul.bf16.vlgmr.msrb.gmra.mxu2 %v2106_v39  ;;  %v14465_v39 = vld [vmem:[%s17634_s1 + $0x1b30] sm:$0xff]  ;;  %v14463_v49 = vld [vmem:[%s17634_s1 + $0x1b20] sm:$0xff] }
 0x343   :  { %9438 = vmatpush.bf16.msra.mxu2 %v14450_v50  ;;  %9381 = vmatmul.bf16.vlgmr.msrb.gmra.mxu1 %v2105_v40  ;;  %v14481_v40 = vld [vmem:[%s17634_s1 + $0x1bb0] sm:$0xff]  ;;  %v14479_v50 = vld [vmem:[%s17634_s1 + $0x1ba0] sm:$0xff] }
 0x344   :  { %9425 = vmatpush.bf16.msra.mxu1 %v14442_v53  ;;  %9407 = vmatmul.bf16.vlgmr.msrb.gmra.mxu3 %v2107_v41  ;;  %v14473_v41 = vld [vmem:[%s17634_s1 + $0x1b70] sm:$0xff]  ;;  %v14471_v53 = vld [vmem:[%s17634_s1 + $0x1b60] sm:$0xff] }
 0x345   :  { %9451 = vmatpush.bf16.msra.mxu3 %v14458_v54  ;;  %v9187_v9 = vpop.f32.mrf.mxu2  ;;  %v14487_v54 = vld [vmem:[%s17634_s1 + $0x1be0] sm:$0xff]  ;;  %v14469_v3 = vld [vmem:[%s17634_s1 + $0x1b50] sm:$0xff] }
 0x346   :  { %9413 = vmatpush.bf16.msra.mxu0 %v14433_v55  ;;  %v9188_v10 = vadd.f32 %v9187_v9, %v9175_v4  ;;  %v9163_v14 = vpop.f32.mrf.mxu0  ;;  %v14462_v55 = vld [vmem:[%s17634_s1 + $0x1b18] sm:$0xff]  ;;  %v14485_v4 = vld [vmem:[%s17634_s1 + $0x1bd0] sm:$0xff] }
 0x347   :  { %9439 = vmatpush.bf16.msra.mxu2 %v14449_v56  ;;  %v9200_v13 = vpop.f32.mrf.mxu3  ;;  %v14478_v56 = vld [vmem:[%s17634_s1 + $0x1b98] sm:$0xff]  ;;  %v2115_v9 = vld [vmem:[#allocation1 + $0x2d] sm:$0xff] }
 0x348   :  { %9426 = vmatpush.bf16.msra.mxu1 %v14441_v57  ;;  %v9201_v15 = vadd.f32 %v9200_v13, %v9188_v10  ;;  %v9176_v18 = vpop.f32.mrf.mxu1  ;;  %v2117_v10 = vld [vmem:[#allocation1 + $0x3f] sm:$0xff]  ;;  %v14468_v13 = vld [vmem:[%s17634_s1 + $0x1b48] sm:$0xff] }
 0x349   :  { %9452 = vmatpush.bf16.msra.mxu3 %v14457_v58  ;;  %v14484_v14 = vld [vmem:[%s17634_s1 + $0x1bc8] sm:$0xff]  ;;  %v14498_v18 = vld [vmem:[%s17634_s1 + $0x1c38] sm:$0xff] }
 0x34a   :  { %9414 = vmatpush.bf16.msra.mxu0 %v14432_v59  ;;  %v14470_v59 = vld [vmem:[%s17634_s1 + $0x1b58] sm:$0xff] }
 0x34b   :  { %9440 = vmatpush.bf16.msra.mxu2 %v14448_v60  ;;  %v14486_v60 = vld [vmem:[%s17634_s1 + $0x1bd8] sm:$0xff] }
 0x34c   :  { %9427 = vmatpush.bf16.msra.mxu1 %v14440_v61 }
 0x34d   :  { %9453 = vmatpush.bf16.msra.mxu3 %v14456_v62  ;;  %v9189_v23 = vpop.f32.mrf.mxu2 }
 0x34e   :  { %9415 = vmatpush.bf16.msra.mxu0 %v14431_v1  ;;  %v14477_v1 = vld [vmem:[%s17634_s1 + $0x1b90] sm:$0xff]  ;;  %v14522_v23 = vld [vmem:[%s17634_s1 + $0x1cf8] sm:$0xff] }
 0x34f   :  { %9441 = vmatpush.bf16.msra.mxu2 %v14447_v2  ;;  %v9202_v26 = vpop.f32.mrf.mxu3 }
 0x350   :  { %9428 = vmatpush.bf16.msra.mxu1 %v14439_v5  ;;  %v14460_v5 = vld [vmem:[%s17634_s1 + $0x1b08] sm:$0xff]  ;;  %v14505_v26 = vld [vmem:[%s17634_s1 + $0x1c70] sm:$0xff] }
 0x351   :  { %9454 = vmatpush.bf16.msra.mxu3 %v14455_v6  ;;  %v14476_v6 = vld [vmem:[%s17634_s1 + $0x1b88] sm:$0xff] }
 0x352   :  { %9416 = vmatpush.bf16.msra.mxu0 %v14430_v7  ;;  %v2114_v7 = vld [vmem:[#allocation1 + $0x24] sm:$0xff] }
 0x353   :  { %9442 = vmatpush.bf16.msra.mxu2 %v14446_v8  ;;  %v2116_v8 = vld [vmem:[#allocation1 + $0x36] sm:$0xff] }
 0x354   :  { %9429 = vmatpush.bf16.msra.mxu1 %v14438_v11 }
 0x355   :  { %9455 = vmatpush.bf16.msra.mxu3 %v14454_v12  ;;  %v36_v12 = vld [vmem:[%s17633_s0 + $0x70] sm:$0xff] }
 0x356   :  { %9417 = vmatpush.bf16.msra.mxu0 %v14429_v16  ;;  %2119 = vst [vmem:[#allocation1] ss:$9 sm:$0xff] %v36_v12  ;;  %v14459_v16 = vld [vmem:[%s17634_s1 + $0x1b00] sm:$0xff]  ;;  %v14528_v12 = vld [vmem:[%s17634_s1 + $0x1d28] sm:$0xff] }
 0x357   :  { %9443 = vmatpush.bf16.msra.mxu2 %v14445_v17  ;;  %v14475_v17 = vld [vmem:[%s17634_s1 + $0x1b80] sm:$0xff] }
 0x358   :  { %9430 = vmatpush.bf16.msra.mxu1 %v14437_v19  ;;  %v14514_v19 = vld [vmem:[%s17634_s1 + $0x1cb8] sm:$0xff] }
 0x359   :  { %9456 = vmatpush.bf16.msra.mxu3 %v14453_v20  ;;  %v14467_v20 = vld [vmem:[%s17634_s1 + $0x1b40] sm:$0xff] }
 0x35a   :  { %9418 = vmatpush.bf16.msra.mxu0 %v14428_v21  ;;  %v14483_v21 = vld [vmem:[%s17634_s1 + $0x1bc0] sm:$0xff] }
 0x35b   :  { %9444 = vmatpush.bf16.msra.mxu2 %v14444_v22  ;;  %v14506_v22 = vld [vmem:[%s17634_s1 + $0x1c78] sm:$0xff] }
 0x35c   :  { %9431 = vmatpush.bf16.msra.mxu1 %v14436_v24  ;;  %v14497_v24 = vld [vmem:[%s17634_s1 + $0x1c30] sm:$0xff] }
 0x35d   :  { %9457 = vmatpush.bf16.msra.mxu3 %v14452_v25  ;;  %v14513_v25 = vld [vmem:[%s17634_s1 + $0x1cb0] sm:$0xff] }
 0x35e   :  { %9419 = vmatpush.bf16.msra.mxu0 %v14427_v27  ;;  %v9213_v47 = vpop.f32.mrf.mxu0  ;;  %v14521_v27 = vld [vmem:[%s17634_s1 + $0x1cf0] sm:$0xff] }
 0x35f   :  { %9445 = vmatpush.bf16.msra.mxu2 %v14443_v28  ;;  %v9214_v48 = vadd.f32 %v9213_v47, %v9201_v15  ;;  %v14496_v28 = vld [vmem:[%s17634_s1 + $0x1c28] sm:$0xff] }
 0x360   :  { %9432 = vmatpush.bf16.msra.mxu1 %v14435_v31  ;;  %v9226_v51 = vpop.f32.mrf.mxu1  ;;  %v14520_v31 = vld [vmem:[%s17634_s1 + $0x1ce8] sm:$0xff] }
 0x361   :  { %9458 = vmatpush.bf16.msra.mxu3 %v14451_v32  ;;  %9420 = vmatmul.bf16.vlgmr.msra.gmra.mxu0 %v2110_v34  ;;  %v9227_v52 = vadd.f32 %v9226_v51, %v9214_v48  ;;  %v14495_v34 = vld [vmem:[%s17634_s1 + $0x1c20] sm:$0xff] }
 0x362   :  { %9464 = vmatpush.bf16.msrb.mxu0 %v14466_v29  ;;  %9446 = vmatmul.bf16.vlgmr.msra.gmra.mxu2 %v2112_v35  ;;  %v14512_v29 = vld [vmem:[%s17634_s1 + $0x1ca8] sm:$0xff]  ;;  %v14511_v35 = vld [vmem:[%s17634_s1 + $0x1ca0] sm:$0xff] }
 0x363   :  { %9490 = vmatpush.bf16.msrb.mxu2 %v14482_v30  ;;  %9433 = vmatmul.bf16.vlgmr.msra.gmra.mxu1 %v2111_v37  ;;  %v14504_v30 = vld [vmem:[%s17634_s1 + $0x1c68] sm:$0xff] }
 0x364   :  { %9477 = vmatpush.bf16.msrb.mxu1 %v14474_v33  ;;  %9459 = vmatmul.bf16.vlgmr.msra.gmra.mxu3 %v2113_v38  ;;  %v14503_v38 = vld [vmem:[%s17634_s1 + $0x1c60] sm:$0xff] }
 0x365   :  { %9503 = vmatpush.bf16.msrb.mxu3 %v14490_v36  ;;  %v9239_v57 = vpop.f32.mrf.mxu2 }
 0x366   :  { %9465 = vmatpush.bf16.msrb.mxu0 %v14465_v39  ;;  %v9240_v58 = vadd.f32 %v9239_v57, %v9227_v52  ;;  %v9215_v62 = vpop.f32.mrf.mxu0  ;;  %v14519_v39 = vld [vmem:[%s17634_s1 + $0x1ce0] sm:$0xff]  ;;  %v14501_v52 = vld [vmem:[%s17634_s1 + $0x1c50] sm:$0xff]  ;;  %v14500_v57 = vld [vmem:[%s17634_s1 + $0x1c48] sm:$0xff] }
 0x367   :  { %9491 = vmatpush.bf16.msrb.mxu2 %v14481_v40  ;;  %v9252_v61 = vpop.f32.mrf.mxu3  ;;  %v14494_v40 = vld [vmem:[%s17634_s1 + $0x1c18] sm:$0xff] }
 0x368   :  { %9478 = vmatpush.bf16.msrb.mxu1 %v14473_v41  ;;  %v17354_v63 = vadd.f32 %v9252_v61, %v9240_v58  ;;  %v9228_v2 = vpop.f32.mrf.mxu1  ;;  %v14510_v41 = vld [vmem:[%s17634_s1 + $0x1c98] sm:$0xff]  ;;  %v14516_v58 = vld [vmem:[%s17634_s1 + $0x1cc8] sm:$0xff]  ;;  %v14507_v61 = vld [vmem:[%s17634_s1 + $0x1c80] sm:$0xff] }
 0x369   :  { %9504 = vmatpush.bf16.msrb.mxu3 %v14489_v42  ;;  %v14530_v62 = vld [vmem:[%s17634_s1 + $0x1d38] sm:$0xff] }
 0x36a   :  { %9466 = vmatpush.bf16.msrb.mxu0 %v14464_v43  ;;  %v14538_v2 = vld [vmem:[%s17634_s1 + $0x1d78] sm:$0xff] }
 0x36b   :  { %9492 = vmatpush.bf16.msrb.mxu2 %v14480_v44  ;;  %v14502_v44 = vld [vmem:[%s17634_s1 + $0x1c58] sm:$0xff] }
 0x36c   :  { %9479 = vmatpush.bf16.msrb.mxu1 %v14472_v45  ;;  %v14518_v45 = vld [vmem:[%s17634_s1 + $0x1cd8] sm:$0xff] }
 0x36d   :  { %9505 = vmatpush.bf16.msrb.mxu3 %v14488_v46  ;;  %v9241_v11 = vpop.f32.mrf.mxu2 }
 0x36e   :  { %9467 = vmatpush.bf16.msrb.mxu0 %v14463_v49  ;;  %v14493_v49 = vld [vmem:[%s17634_s1 + $0x1c10] sm:$0xff] }
 0x36f   :  { %9493 = vmatpush.bf16.msrb.mxu2 %v14479_v50  ;;  %v9254_v15 = vpop.f32.mrf.mxu3  ;;  %v14509_v50 = vld [vmem:[%s17634_s1 + $0x1c90] sm:$0xff] }
 0x370   :  { %9480 = vmatpush.bf16.msrb.mxu1 %v14471_v53  ;;  %v14517_v53 = vld [vmem:[%s17634_s1 + $0x1cd0] sm:$0xff]  ;;  %v14552_v15 = vld [vmem:[%s17634_s1 + $0x1de8] sm:$0xff] }
 0x371   :  { %9506 = vmatpush.bf16.msrb.mxu3 %v14487_v54  ;;  %v14492_v54 = vld [vmem:[%s17634_s1 + $0x1c08] sm:$0xff]  ;;  %v14553_v11 = vld [vmem:[%s17634_s1 + $0x1df0] sm:$0xff] }
 0x372   :  { %9468 = vmatpush.bf16.msrb.mxu0 %v14462_v55  ;;  %v14508_v55 = vld [vmem:[%s17634_s1 + $0x1c88] sm:$0xff] }
 0x373   :  { %9494 = vmatpush.bf16.msrb.mxu2 %v14478_v56 }
 0x374   :  { %9481 = vmatpush.bf16.msrb.mxu1 %v14470_v59 }
 0x375   :  { %9507 = vmatpush.bf16.msrb.mxu3 %v14486_v60  ;;  %v14491_v60 = vld [vmem:[%s17634_s1 + $0x1c00] sm:$0xff] }
 0x376   :  { %9469 = vmatpush.bf16.msrb.mxu0 %v14461_v0  ;;  %v14499_v0 = vld [vmem:[%s17634_s1 + $0x1c40] sm:$0xff] }
 0x377   :  { %9495 = vmatpush.bf16.msrb.mxu2 %v14477_v1  ;;  %v14515_v1 = vld [vmem:[%s17634_s1 + $0x1cc0] sm:$0xff] }
 0x378   :  { %9482 = vmatpush.bf16.msrb.mxu1 %v14469_v3  ;;  %v2120_v3 = vld [vmem:[#allocation1] sm:$0xff] }
 0x379   :  { %9508 = vmatpush.bf16.msrb.mxu3 %v14485_v4  ;;  %v2122_v4 = vld [vmem:[#allocation1 + $0x12] sm:$0xff] }
 0x37a   :  { %9470 = vmatpush.bf16.msrb.mxu0 %v14460_v5  ;;  %v14554_v5 = vld [vmem:[%s17634_s1 + $0x1df8] sm:$0xff] }
 0x37b   :  { %9496 = vmatpush.bf16.msrb.mxu2 %v14476_v6  ;;  %v2121_v6 = vld [vmem:[#allocation1 + $0x9] sm:$0xff] }
 0x37c   :  { %9483 = vmatpush.bf16.msrb.mxu1 %v14468_v13  ;;  %v14544_v13 = vld [vmem:[%s17634_s1 + $0x1da8] sm:$0xff] }
 0x37d   :  { %9509 = vmatpush.bf16.msrb.mxu3 %v14484_v14  ;;  %v14536_v14 = vld [vmem:[%s17634_s1 + $0x1d68] sm:$0xff] }
 0x37e   :  { %9471 = vmatpush.bf16.msrb.mxu0 %v14459_v16  ;;  %v9265_v32 = vpop.f32.mrf.mxu0 }
 0x37f   :  { %9497 = vmatpush.bf16.msrb.mxu2 %v14475_v17  ;;  %v9266_v33 = vadd.f32 %v9265_v32, %v17354_v63  ;;  %v14546_v63 = vld [vmem:[%s17634_s1 + $0x1db8] sm:$0xff] }
 0x380   :  { %9484 = vmatpush.bf16.msrb.mxu1 %v14467_v20  ;;  %v9278_v36 = vpop.f32.mrf.mxu1 }
 0x381   :  { %9510 = vmatpush.bf16.msrb.mxu3 %v14483_v21  ;;  %9472 = vmatmul.bf16.vlgmr.msrb.gmra.mxu0 %v2114_v7  ;;  %v9279_v37 = vadd.f32 %v9278_v36, %v9266_v33  ;;  %v2123_v7 = vld [vmem:[#allocation1 + $0x1b] sm:$0xff]  ;;  %v14525_v33 = vld [vmem:[%s17634_s1 + $0x1d10] sm:$0xff] }
 0x382   :  { %9516 = vmatpush.bf16.msra.mxu0 %v14498_v18  ;;  %9498 = vmatmul.bf16.vlgmr.msrb.gmra.mxu2 %v2116_v8  ;;  %v14529_v8 = vld [vmem:[%s17634_s1 + $0x1d30] sm:$0xff]  ;;  %v14527_v18 = vld [vmem:[%s17634_s1 + $0x1d20] sm:$0xff] }
 0x383   :  { %9542 = vmatpush.bf16.msra.mxu2 %v14514_v19  ;;  %9485 = vmatmul.bf16.vlgmr.msrb.gmra.mxu1 %v2115_v9  ;;  %v14545_v9 = vld [vmem:[%s17634_s1 + $0x1db0] sm:$0xff]  ;;  %v14543_v19 = vld [vmem:[%s17634_s1 + $0x1da0] sm:$0xff] }
 0x384   :  { %9529 = vmatpush.bf16.msra.mxu1 %v14506_v22  ;;  %9511 = vmatmul.bf16.vlgmr.msrb.gmra.mxu3 %v2117_v10  ;;  %v14537_v10 = vld [vmem:[%s17634_s1 + $0x1d70] sm:$0xff]  ;;  %v14535_v22 = vld [vmem:[%s17634_s1 + $0x1d60] sm:$0xff] }
 0x385   :  { %9555 = vmatpush.bf16.msra.mxu3 %v14522_v23  ;;  %v9291_v42 = vpop.f32.mrf.mxu2  ;;  %v14551_v23 = vld [vmem:[%s17634_s1 + $0x1de0] sm:$0xff]  ;;  %v14533_v36 = vld [vmem:[%s17634_s1 + $0x1d50] sm:$0xff] }
 0x386   :  { %9517 = vmatpush.bf16.msra.mxu0 %v14497_v24  ;;  %v9292_v43 = vadd.f32 %v9291_v42, %v9279_v37  ;;  %v9267_v47 = vpop.f32.mrf.mxu0  ;;  %v14526_v24 = vld [vmem:[%s17634_s1 + $0x1d18] sm:$0xff]  ;;  %v14549_v37 = vld [vmem:[%s17634_s1 + $0x1dd0] sm:$0xff] }
 0x387   :  { %9543 = vmatpush.bf16.msra.mxu2 %v14513_v25  ;;  %v9304_v46 = vpop.f32.mrf.mxu3  ;;  %v14542_v25 = vld [vmem:[%s17634_s1 + $0x1d98] sm:$0xff]  ;;  %v2125_v42 = vld [vmem:[#allocation1 + $0x2d] sm:$0xff] }
 0x388   :  { %9530 = vmatpush.bf16.msra.mxu1 %v14505_v26  ;;  %v9305_v48 = vadd.f32 %v9304_v46, %v9292_v43  ;;  %v9280_v51 = vpop.f32.mrf.mxu1  ;;  %v2127_v43 = vld [vmem:[#allocation1 + $0x3f] sm:$0xff]  ;;  %v14532_v46 = vld [vmem:[%s17634_s1 + $0x1d48] sm:$0xff] }
 0x389   :  { %9556 = vmatpush.bf16.msra.mxu3 %v14521_v27  ;;  %v14548_v47 = vld [vmem:[%s17634_s1 + $0x1dc8] sm:$0xff]  ;;  %v14562_v51 = vld [vmem:[%s17634_s1 + $0x1e38] sm:$0xff] }
 0x38a   :  { %9518 = vmatpush.bf16.msra.mxu0 %v14496_v28  ;;  %v14534_v28 = vld [vmem:[%s17634_s1 + $0x1d58] sm:$0xff] }
 0x38b   :  { %9544 = vmatpush.bf16.msra.mxu2 %v14512_v29  ;;  %v14550_v29 = vld [vmem:[%s17634_s1 + $0x1dd8] sm:$0xff] }
 0x38c   :  { %9531 = vmatpush.bf16.msra.mxu1 %v14504_v30 }
 0x38d   :  { %9557 = vmatpush.bf16.msra.mxu3 %v14520_v31  ;;  %v9293_v56 = vpop.f32.mrf.mxu2 }
 0x38e   :  { %9519 = vmatpush.bf16.msra.mxu0 %v14495_v34  ;;  %v14541_v34 = vld [vmem:[%s17634_s1 + $0x1d90] sm:$0xff] }
 0x38f   :  { %9545 = vmatpush.bf16.msra.mxu2 %v14511_v35  ;;  %v9306_v59 = vpop.f32.mrf.mxu3 }
 0x390   :  { %9532 = vmatpush.bf16.msra.mxu1 %v14503_v38  ;;  %v14524_v38 = vld [vmem:[%s17634_s1 + $0x1d08] sm:$0xff] }
 0x391   :  { %9558 = vmatpush.bf16.msra.mxu3 %v14519_v39  ;;  %v14540_v39 = vld [vmem:[%s17634_s1 + $0x1d88] sm:$0xff] }
 0x392   :  { %9520 = vmatpush.bf16.msra.mxu0 %v14494_v40  ;;  %v2124_v40 = vld [vmem:[#allocation1 + $0x24] sm:$0xff] }
 0x393   :  { %9546 = vmatpush.bf16.msra.mxu2 %v14510_v41  ;;  %v2126_v41 = vld [vmem:[#allocation1 + $0x36] sm:$0xff] }
 0x394   :  { %9533 = vmatpush.bf16.msra.mxu1 %v14502_v44 }
 0x395   :  { %9559 = vmatpush.bf16.msra.mxu3 %v14518_v45  ;;  %v37_v45 = vld [vmem:[%s17633_s0 + $0x78] sm:$0x1] }
 0x396   :  { %9521 = vmatpush.bf16.msra.mxu0 %v14493_v49  ;;  %2129 = vst [vmem:[#allocation1] ss:$9 sm:$0xff] %v37_v45  ;;  %v14523_v49 = vld [vmem:[%s17634_s1 + $0x1d00] sm:$0xff] }
 0x397   :  { %9547 = vmatpush.bf16.msra.mxu2 %v14509_v50  ;;  %v14539_v50 = vld [vmem:[%s17634_s1 + $0x1d80] sm:$0xff] }
 0x398   :  { %9534 = vmatpush.bf16.msra.mxu1 %v14501_v52  ;;  %v14531_v52 = vld [vmem:[%s17634_s1 + $0x1d40] sm:$0xff] }
 0x399   :  { %9560 = vmatpush.bf16.msra.mxu3 %v14517_v53  ;;  %v14547_v53 = vld [vmem:[%s17634_s1 + $0x1dc0] sm:$0xff] }
 0x39a   :  { %9522 = vmatpush.bf16.msra.mxu0 %v14492_v54  ;;  %v14561_v54 = vld [vmem:[%s17634_s1 + $0x1e30] sm:$0xff] }
 0x39b   :  { %9548 = vmatpush.bf16.msra.mxu2 %v14508_v55  ;;  %v14560_v55 = vld [vmem:[%s17634_s1 + $0x1e28] sm:$0xff] }
 0x39c   :  { %9535 = vmatpush.bf16.msra.mxu1 %v14500_v57 }
 0x39d   :  { %9561 = vmatpush.bf16.msra.mxu3 %v14516_v58  ;;  %v14559_v58 = vld [vmem:[%s17634_s1 + $0x1e20] sm:$0xff] }
 0x39e   :  { %9523 = vmatpush.bf16.msra.mxu0 %v14491_v60  ;;  %v9317_v16 = vpop.f32.mrf.mxu0 }
 0x39f   :  { %9549 = vmatpush.bf16.msra.mxu2 %v14507_v61  ;;  %v9318_v17 = vadd.f32 %v9317_v16, %v9305_v48  ;;  %v14558_v61 = vld [vmem:[%s17634_s1 + $0x1e18] sm:$0xff] }
 0x3a0   :  { %9536 = vmatpush.bf16.msra.mxu1 %v14499_v0  ;;  %v9330_v20 = vpop.f32.mrf.mxu1 }
 0x3a1   :  { %9562 = vmatpush.bf16.msra.mxu3 %v14515_v1  ;;  %9524 = vmatmul.bf16.vlgmr.msra.gmra.mxu0 %v2120_v3  ;;  %v9331_v21 = vadd.f32 %v9330_v20, %v9318_v17  ;;  %v14557_v3 = vld [vmem:[%s17634_s1 + $0x1e10] sm:$0xff] }
 0x3a2   :  { %9568 = vmatpush.bf16.msrb.mxu0 %v14530_v62  ;;  %9550 = vmatmul.bf16.vlgmr.msra.gmra.mxu2 %v2122_v4 }
 0x3a3   :  { %9594 = vmatpush.bf16.msrb.mxu2 %v14546_v63  ;;  %9537 = vmatmul.bf16.vlgmr.msra.gmra.mxu1 %v2121_v6 }
 0x3a4   :  { %9581 = vmatpush.bf16.msrb.mxu1 %v14538_v2  ;;  %9563 = vmatmul.bf16.vlgmr.msra.gmra.mxu3 %v2123_v7 }
 0x3a5   :  { %9607 = vmatpush.bf16.msrb.mxu3 %v14554_v5  ;;  %v9343_v26 = vpop.f32.mrf.mxu2  ;;  %v14556_v5 = vld [vmem:[%s17634_s1 + $0x1e08] sm:$0xff] }
 0x3a6   :  { %9569 = vmatpush.bf16.msrb.mxu0 %v14529_v8  ;;  %v9344_v27 = vadd.f32 %v9343_v26, %v9331_v21  ;;  %v9319_v31 = vpop.f32.mrf.mxu0  ;;  %v14555_v8 = vld [vmem:[%s17634_s1 + $0x1e00] sm:$0xff] }
 0x3a7   :  { %9595 = vmatpush.bf16.msrb.mxu2 %v14545_v9  ;;  %v9356_v30 = vpop.f32.mrf.mxu3  ;;  %v2130_v9 = vld [vmem:[#allocation1] sm:$0xff] }
 0x3a8   :  { %9582 = vmatpush.bf16.msrb.mxu1 %v14537_v10  ;;  %v9357_v32 = vadd.f32 %v9356_v30, %v9344_v27  ;;  %v9332_v35 = vpop.f32.mrf.mxu1 }
 0x3a9   :  { %9608 = vmatpush.bf16.msrb.mxu3 %v14553_v11 }
 0x3aa   :  { %9570 = vmatpush.bf16.msrb.mxu0 %v14528_v12 }
 0x3ab   :  { %9596 = vmatpush.bf16.msrb.mxu2 %v14544_v13 }
 0x3ac   :  { %9583 = vmatpush.bf16.msrb.mxu1 %v14536_v14 }
 0x3ad   :  { %9609 = vmatpush.bf16.msrb.mxu3 %v14552_v15  ;;  %v9345_v44 = vpop.f32.mrf.mxu2 }
 0x3ae   :  { %9571 = vmatpush.bf16.msrb.mxu0 %v14527_v18 }
 0x3af   :  { %9597 = vmatpush.bf16.msrb.mxu2 %v14543_v19  ;;  %v9358_v48 = vpop.f32.mrf.mxu3 }
 0x3b0   :  { %9584 = vmatpush.bf16.msrb.mxu1 %v14535_v22 }
 0x3b1   :  { %9610 = vmatpush.bf16.msrb.mxu3 %v14551_v23 }
 0x3b2   :  { %9572 = vmatpush.bf16.msrb.mxu0 %v14526_v24 }
 0x3b3   :  { %9598 = vmatpush.bf16.msrb.mxu2 %v14542_v25 }
 0x3b4   :  { %9585 = vmatpush.bf16.msrb.mxu1 %v14534_v28 }
 0x3b5   :  { %9611 = vmatpush.bf16.msrb.mxu3 %v14550_v29 }
 0x3b6   :  { %9573 = vmatpush.bf16.msrb.mxu0 %v14525_v33 }
 0x3b7   :  { %9599 = vmatpush.bf16.msrb.mxu2 %v14541_v34 }
 0x3b8   :  { %9586 = vmatpush.bf16.msrb.mxu1 %v14533_v36 }
 0x3b9   :  { %9612 = vmatpush.bf16.msrb.mxu3 %v14549_v37  ;;  %v14566_v37 = vld [vmem:[%s17636_s3 + $0x18] sm:$0xff] }
 0x3ba   :  { %9574 = vmatpush.bf16.msrb.mxu0 %v14524_v38 }
 0x3bb   :  { %9600 = vmatpush.bf16.msrb.mxu2 %v14540_v39 }
 0x3bc   :  { %9587 = vmatpush.bf16.msrb.mxu1 %v14532_v46  ;;  %v14563_v46 = vld [vmem:[%s17636_s3] sm:$0xff] }
 0x3bd   :  { %9613 = vmatpush.bf16.msrb.mxu3 %v14548_v47 }
 0x3be   :  { %9575 = vmatpush.bf16.msrb.mxu0 %v14523_v49  ;;  %v9369_v56 = vpop.f32.mrf.mxu0 }
 0x3bf   :  { %9601 = vmatpush.bf16.msrb.mxu2 %v14539_v50  ;;  %v9370_v57 = vadd.f32 %v9369_v56, %v9357_v32 }
 0x3c0   :  { %9588 = vmatpush.bf16.msrb.mxu1 %v14531_v52  ;;  %v9382_v59 = vpop.f32.mrf.mxu1 }
 0x3c1   :  { %9614 = vmatpush.bf16.msrb.mxu3 %v14547_v53  ;;  %9576 = vmatmul.bf16.vlgmr.msrb.gmra.mxu0 %v2124_v40  ;;  %v9383_v60 = vadd.f32 %v9382_v59, %v9370_v57  ;;  %v14565_v40 = vld [vmem:[%s17636_s3 + $0x10] sm:$0xff] }
 0x3c2   :  { %9620 = vmatpush.bf16.msra.mxu0 %v14562_v51  ;;  %9602 = vmatmul.bf16.vlgmr.msrb.gmra.mxu2 %v2126_v41 }
 0x3c3   :  { %9589 = vmatmul.bf16.vlgmr.msrb.gmra.mxu1 %v2125_v42 }
 0x3c4   :  { %9615 = vmatmul.bf16.vlgmr.msrb.gmra.mxu3 %v2127_v43  ;;  %9679 = vmatpush.bf16.msra.mxu1 %v14566_v37  ;;  %v14564_v43 = vld [vmem:[%s17636_s3 + $0x8] sm:$0xff] }
 0x3c5   :  { %v9395_v62 = vpop.f32.mrf.mxu2 }
 0x3c6   :  { %9621 = vmatpush.bf16.msra.mxu0 %v14561_v54  ;;  %v9396_v63 = vadd.f32 %v9395_v62, %v9383_v60  ;;  %v9371_v1 = vpop.f32.mrf.mxu0 }
 0x3c7   :  { %v9408_v0 = vpop.f32.mrf.mxu3 }
 0x3c8   :  { %v9409_v2 = vadd.f32 %v9408_v0, %v9396_v63  ;;  %v9384_v4 = vpop.f32.mrf.mxu1  ;;  %9680 = vmatpush.bf16.msra.mxu1 %v14565_v40 }
 0x3ca   :  { %9622 = vmatpush.bf16.msra.mxu0 %v14560_v55 }
 0x3cc   :  { %9681 = vmatpush.bf16.msra.mxu1 %v14564_v43 }
 0x3cd   :  { %v9397_v6 = vpop.f32.mrf.mxu2 }
 0x3ce   :  { %9623 = vmatpush.bf16.msra.mxu0 %v14559_v58 }
 0x3cf   :  { %v9410_v7 = vpop.f32.mrf.mxu3 }
 0x3d0   :  { %9682 = vmatpush.bf16.msra.mxu1 %v14563_v46 }
 0x3d2   :  { %9624 = vmatpush.bf16.msra.mxu0 %v14558_v61 }
 0x3d6   :  { %9625 = vmatpush.bf16.msra.mxu0 %v14557_v3  ;;  %v14569_v3 = vld [vmem:[%s17637_s4] ss:$0 sm:$0xff] }
 0x3da   :  { %9626 = vmatpush.bf16.msra.mxu0 %v14556_v5 }
 0x3de   :  { %9627 = vmatpush.bf16.msra.mxu0 %v14555_v8  ;;  %v9421_v10 = vpop.f32.mrf.mxu0 }
 0x3df   :  { %v9422_v11 = vadd.f32 %v9421_v10, %v9409_v2 }
 0x3e0   :  { %v9434_v12 = vpop.f32.mrf.mxu1 }
 0x3e1   :  { %9628 = vmatmul.bf16.vlgmr.msra.gmra.mxu0 %v2130_v9  ;;  %v9435_v13 = vadd.f32 %v9434_v12, %v9422_v11 }
 0x3e5   :  { %v9447_v14 = vpop.f32.mrf.mxu2 }
 0x3e6   :  { %v9448_v15 = vadd.f32 %v9447_v14, %v9435_v13  ;;  %v9423_v17 = vpop.f32.mrf.mxu0 }
 0x3e7   :  { %v9460_v16 = vpop.f32.mrf.mxu3 }
 0x3e8   :  { %v9461_v18 = vadd.f32 %v9460_v16, %v9448_v15  ;;  %v9436_v19 = vpop.f32.mrf.mxu1 }
 0x3ed   :  { %v9449_v20 = vpop.f32.mrf.mxu2 }
 0x3ef   :  { %v9462_v21 = vpop.f32.mrf.mxu3 }
 0x3fe   :  { %v9473_v22 = vpop.f32.mrf.mxu0 }
 0x3ff   :  { %v9474_v23 = vadd.f32 %v9473_v22, %v9461_v18 }
 0x400   :  { %v9486_v24 = vpop.f32.mrf.mxu1 }
 0x401   :  { %v9487_v25 = vadd.f32 %v9486_v24, %v9474_v23 }
 0x405   :  { %v9499_v26 = vpop.f32.mrf.mxu2 }
 0x406   :  { %v9500_v27 = vadd.f32 %v9499_v26, %v9487_v25  ;;  %v9475_v29 = vpop.f32.mrf.mxu0 }
 0x407   :  { %v9512_v28 = vpop.f32.mrf.mxu3 }
 0x408   :  { %v9513_v30 = vadd.f32 %v9512_v28, %v9500_v27  ;;  %v9488_v31 = vpop.f32.mrf.mxu1 }
 0x40d   :  { %v9501_v32 = vpop.f32.mrf.mxu2 }
 0x40f   :  { %v9514_v33 = vpop.f32.mrf.mxu3 }
 0x41e   :  { %v9525_v34 = vpop.f32.mrf.mxu0 }
 0x41f   :  { %v9526_v49 = vadd.f32 %v9525_v34, %v9513_v30 }
 0x420   :  { %v9538_v35 = vpop.f32.mrf.mxu1 }
 0x421   :  { %v9539_v53 = vadd.f32 %v9538_v35, %v9526_v49 }
 0x425   :  { %v9551_v36 = vpop.f32.mrf.mxu2 }
 0x426   :  { %v9527_v39 = vpop.f32.mrf.mxu0  ;;  %v9552_v54 = vadd.f32 %v9551_v36, %v9539_v53 }
 0x427   :  { %v9564_v38 = vpop.f32.mrf.mxu3 }
 0x428   :  { %v9540_v41 = vpop.f32.mrf.mxu1  ;;  %v9565_v57 = vadd.f32 %v9564_v38, %v9552_v54 }
 0x42d   :  { %v9553_v42 = vpop.f32.mrf.mxu2 }
 0x42f   :  { %v9566_v44 = vpop.f32.mrf.mxu3 }
 0x43e   :  { %v9577_v45 = vpop.f32.mrf.mxu0 }
 0x43f   :  { %v9578_v58 = vadd.f32 %v9577_v45, %v9565_v57 }
 0x440   :  { %v9590_v47 = vpop.f32.mrf.mxu1 }
 0x441   :  { %v9591_v59 = vadd.f32 %v9590_v47, %v9578_v58 }
 0x445   :  { %v9603_v48 = vpop.f32.mrf.mxu2 }
 0x446   :  { %v9579_v51 = vpop.f32.mrf.mxu0  ;;  %v9604_v60 = vadd.f32 %v9603_v48, %v9591_v59 }
 0x447   :  { %v9616_v50 = vpop.f32.mrf.mxu3 }
 0x448   :  { %v9592_v52 = vpop.f32.mrf.mxu1  ;;  %v9617_v61 = vadd.f32 %v9616_v50, %v9604_v60 }
 0x44d   :  { %v9605_v55 = vpop.f32.mrf.mxu2 }
 0x44f   :  { %v9618_v56 = vpop.f32.mrf.mxu3 }
 0x45e   :  { %v9629_v62 = vpop.f32.mrf.mxu0 }
 0x45f   :  { %v9630_v63 = vadd.f32 %v9629_v62, %v9617_v61 }
 0x461   :  { %v9633_v0 = vmax.f32 %v9630_v63, 0.0 }
 0x463   :  { %v9634_v1 = vpack.c.bf16 %v9633_v0, %v9633_v0 }
 0x465   :  { %13594 = vmatmul.msk.bf16.vlgmr.msra.gmra.mxu1 %vm9671_vm0, %v9634_v1 }
 0x466   :  { %v9631_v2 = vpop.f32.mrf.mxu0 }
 0x4e2   :  { %v9684_v4 = vpop.f32.mrf.mxu1 }
 0x4e3   :  { %v9685_v5 = vadd.f32 %v14569_v3, %v9684_v4 }
 0x4e5   :  { %9689 = vst.msk [vmem:[#allocation2] sm:$0x3] %vm9688_vm1, %v9685_v5 }
 0x4e6   :  { %9700 = dma.vmem_to_hbm [thread:$0]  %s9696_s7, 32, %s9698_s10, [#allocation3]  }
 0x4ea   :  { %v9686_v6 = vpop.f32.mrf.mxu1 }
 0x4eb   :  { %14594 = dma.done.wait [#allocation3], 32  }
 0x4ec   :  { %14595 = vsyncadd [#allocation3], 4294967264 }
 0x4ed   :  { %9705 = vsyncpa [#allocation3], 1 }

</bundles_post_ra>
